<compile_context>
chip_gen: v6e
topology: v6e:2x2x1
jax: 0.10.0
libtpu: 0.0.40
codegen_flags: <defaults>
</compile_context>

<pallas_src>
import functools
import math
from typing import NamedTuple

import jax
import jax.numpy as jnp
from jax.experimental import pallas as pl
from jax.experimental.pallas import tpu as pltpu


# ---------------------------------------------------------------------------
# Static per-block configuration (NOT part of the traced params pytree).
# ---------------------------------------------------------------------------

class BlockCfg(NamedTuple):
    stride: int
    dilation: int
    has_ds: bool


# ---------------------------------------------------------------------------
# Helpers
# ---------------------------------------------------------------------------

def _round_up(x, m):
    return (x + m - 1) // m * m


def _pick_tm(m, cap=256):
    """Row tile: multiple of 16 (bf16 native (16,128) tile).  Cap at 256 so a
    large M gives >=4 grid steps (v7x megacore); tiny M takes one exact tile."""
    for t in (cap, cap // 2):
        if m % t == 0 and m // t >= 2:
            return t
    return _round_up(m, 16)


def _vmem_limit(block_bytes):
    """Per-call VMEM budget: double-buffered blocks + headroom, clamped so it is
    sane on v7x (64 MiB physical) and generous on v5e/v6e (128 MiB)."""
    need = 2 * sum(block_bytes) + (2 << 20)
    return int(min(max(need, 16 << 20), 100 << 20))


# ---------------------------------------------------------------------------
# Pallas kernels
# ---------------------------------------------------------------------------

def _mm_bn_kernel(a_ref, w_ref, scale_ref, bias_ref, *rest, relu, has_res):
    """out = act((a @ w) * scale + bias [+ residual]).

    a_ref     : (tm, K)  bf16 patch / activation tile
    w_ref     : (K, N)   bf16 folded conv / linear weight (resident)
    scale/bias: (1, N)   f32 folded BN affine
    res_ref   : (tm, N)  bf16 residual tile (optional, fused add before ReLU)
    Single MXU dot (K >= 128 for all conv layers), f32 epilogue, one store.
    """
    if has_res:
        res_ref, o_ref = rest
    else:
        (o_ref,) = rest
    y = jnp.dot(a_ref[...], w_ref[...], preferred_element_type=jnp.float32)
    y = y * scale_ref[...] + bias_ref[...]
    if has_res:
        y = y + res_ref[...].astype(jnp.float32)
    if relu:
        y = jnp.maximum(y, 0.0)
    o_ref[...] = y.astype(o_ref.dtype)


def _maxpool_kernel(x_ref, o_ref):
    """x_ref: (k^3, tm, C) stacked shifted windows -> o_ref: (tm, C).
    Reduction over the leading (non-layout) axis is pure VPU element-wise max
    accumulated in vregs; the output tile is written exactly once."""
    o_ref[...] = jnp.max(x_ref[...], axis=0)


# ---------------------------------------------------------------------------
# Wrappers
# ---------------------------------------------------------------------------

def fused_matmul_bn(a, w, scale, bias, *, relu, residual=None):
    """a: (M, K), w: (K, N), scale/bias: (N,), residual: (M, N) optional.
    Returns bf16 (M, N).  Grid tiles M only; weights stay resident in VMEM."""
    m, k = a.shape
    n = w.shape[1]
    tm = _pick_tm(m)
    mp = _round_up(m, tm)

    a = a.astype(jnp.bfloat16)
    if mp != m:                                   # never hit at the demo shapes
        a = jnp.pad(a, ((0, mp - m), (0, 0)))

    args = [a, w.astype(jnp.bfloat16),
            scale.reshape(1, n).astype(jnp.float32),
            bias.reshape(1, n).astype(jnp.float32)]
    in_specs = [
        pl.BlockSpec((tm, k), lambda i: (i, 0)),   # patches / activations
        pl.BlockSpec((k, n), lambda i: (0, 0)),    # weight (resident)
        pl.BlockSpec((1, n), lambda i: (0, 0)),    # BN scale
        pl.BlockSpec((1, n), lambda i: (0, 0)),    # BN bias
    ]
    block_bytes = [tm * k * 2, k * n * 2, n * 4, n * 4, tm * n * 2]

    has_res = residual is not None
    if has_res:
        r = residual.astype(jnp.bfloat16)
        if mp != m:
            r = jnp.pad(r, ((0, mp - m), (0, 0)))
        args.append(r)
        in_specs.append(pl.BlockSpec((tm, n), lambda i: (i, 0)))
        block_bytes.append(tm * n * 2)

    out = pl.pallas_call(
        functools.partial(_mm_bn_kernel, relu=relu, has_res=has_res),
        out_shape=jax.ShapeDtypeStruct((mp, n), jnp.bfloat16),
        grid=(mp // tm,),
        in_specs=in_specs,
        out_specs=pl.BlockSpec((tm, n), lambda i: (i, 0)),
        compiler_params=pltpu.CompilerParams(
            dimension_semantics=("parallel",),
            vmem_limit_bytes=_vmem_limit(block_bytes)),
    )(*args)
    return out if mp == m else out[:m]


def conv3d_bn(x5, w5, scale, bias, *, stride, dilation, pad, relu,
              residual=None, pad_k_to=None):
    """k^3 Conv3d (no bias) + folded BN (+ residual) (+ ReLU).

    Only valid, stride-selected output rows are computed: the patch matrix
    (M_valid, k^3*Cin) is built lane-dense by XLA strided slicing (pure data
    movement), and all compute happens in one fused Pallas matmul kernel.
    """
    k = w5.shape[0]
    cin, cout = w5.shape[3], w5.shape[4]
    b, d, h, w = x5.shape[:4]
    assert x5.shape[4] == cin

    xp = jnp.pad(x5.astype(jnp.bfloat16),
                 ((0, 0), (pad, pad), (pad, pad), (pad, pad), (0, 0)))

    def odim(n):
        return (n + 2 * pad - dilation * (k - 1) - 1) // stride + 1

    do, ho, wo = odim(d), odim(h), odim(w)
    slabs = []
    for dz in range(k):
        for dy in range(k):
            for dx in range(k):
                slabs.append(
                    xp[:, dz * dilation: dz * dilation + stride * (do - 1) + 1: stride,
                          dy * dilation: dy * dilation + stride * (ho - 1) + 1: stride,
                          dx * dilation: dx * dilation + stride * (wo - 1) + 1: stride, :])
    m = b * do * ho * wo
    patches = jnp.stack(slabs, axis=4).reshape(m, k * k * k * cin)
    wmat = w5.reshape(k * k * k * cin, cout)

    if pad_k_to is not None and pad_k_to > patches.shape[1]:
        extra = pad_k_to - patches.shape[1]          # e.g. stem 343 -> 384
        patches = jnp.pad(patches, ((0, 0), (0, extra)))
        wmat = jnp.pad(wmat, ((0, extra), (0, 0)))

    y = fused_matmul_bn(patches, wmat, scale, bias, relu=relu, residual=residual)
    return y.reshape(b, do, ho, wo, cout)


def maxpool3d(x5, k=3, stride=2, pad=1):
    """MaxPool3d: stack the k^3 valid shifted windows (only kept rows) and take
    a single in-kernel max over the stacked axis — one store per output tile."""
    b, d, h, w, c = x5.shape
    xp = jnp.pad(x5, ((0, 0), (pad, pad), (pad, pad), (pad, pad), (0, 0)),
                 constant_values=-jnp.inf)

    def odim(n):
        return (n + 2 * pad - (k - 1) - 1) // stride + 1

    do, ho, wo = odim(d), odim(h), odim(w)
    slabs = []
    for dz in range(k):
        for dy in range(k):
            for dx in range(k):
                slabs.append(
                    xp[:, dz: dz + stride * (do - 1) + 1: stride,
                          dy: dy + stride * (ho - 1) + 1: stride,
                          dx: dx + stride * (wo - 1) + 1: stride, :])
    m = b * do * ho * wo
    stack = jnp.stack(slabs, axis=0).reshape(k * k * k, m, c)

    tm = _pick_tm(m)
    mp = _round_up(m, tm)
    if mp != m:
        stack = jnp.pad(stack, ((0, 0), (0, mp - m), (0, 0)))

    out = pl.pallas_call(
        _maxpool_kernel,
        out_shape=jax.ShapeDtypeStruct((mp, c), x5.dtype),
        grid=(mp // tm,),
        in_specs=[pl.BlockSpec((k * k * k, tm, c), lambda i: (0, i, 0))],
        out_specs=pl.BlockSpec((tm, c), lambda i: (i, 0)),
        compiler_params=pltpu.CompilerParams(
            dimension_semantics=("parallel",),
            vmem_limit_bytes=_vmem_limit([k * k * k * tm * c * 2, tm * c * 2])),
    )(stack)
    out = out if mp == m else out[:m]
    return out.reshape(b, do, ho, wo, c)


# ---------------------------------------------------------------------------
# Deterministic parameter construction (synthetic, no checkpoint loading).
# TODO(synk): load_pretrained_weights (reading *_23dataset.pth) has no in-script
#             equivalent; parameters are synthesized deterministically instead.
# ---------------------------------------------------------------------------

def _conv_w(key, k, cin, cout):
    fan = k * k * k * cin
    return jax.random.normal(key, (k, k, k, cin, cout), jnp.float32) / math.sqrt(fan)


def _bn_fold(key, c, eps=1e-5):
    k1, k2, k3, k4 = jax.random.split(key, 4)
    gamma = 1.0 + 0.1 * jax.random.normal(k1, (c,), jnp.float32)
    beta = 0.1 * jax.random.normal(k2, (c,), jnp.float32)
    mean = 0.1 * jax.random.normal(k3, (c,), jnp.float32)
    var = 1.0 + 0.1 * jnp.abs(jax.random.normal(k4, (c,), jnp.float32))
    scale = gamma / jnp.sqrt(var + eps)
    bias = beta - mean * scale
    return scale, bias


def init_clsnet_params(key, base_width=16, num_classes=3, in_channels=1):
    keys = iter(jax.random.split(key, 64))
    params = {}
    params["conv1_w"] = _conv_w(next(keys), 7, in_channels, base_width)
    params["bn1"] = _bn_fold(next(keys), base_width)

    widths = (base_width, 2 * base_width, 4 * base_width, 8 * base_width)
    strides = (1, 2, 1, 1)
    dilations = (1, 1, 2, 4)      # MedicalNet resnet: layer3/4 use dilated convs
    inplanes = base_width
    layers, cfg = [], []
    for planes, stride, dil in zip(widths, strides, dilations):
        has_ds = (stride != 1) or (inplanes != planes)
        blk = {
            "conv1_w": _conv_w(next(keys), 3, inplanes, planes),
            "bn1": _bn_fold(next(keys), planes),
            "conv2_w": _conv_w(next(keys), 3, planes, planes),
            "bn2": _bn_fold(next(keys), planes),
        }
        if has_ds:
            # shortcut_type 'B': 1x1x1 conv + BN downsample
            blk["ds_w"] = _conv_w(next(keys), 1, inplanes, planes)
            blk["ds_bn"] = _bn_fold(next(keys), planes)
        layers.append(blk)
        cfg.append(BlockCfg(stride=stride, dilation=dil, has_ds=has_ds))
        inplanes = planes
    params["layers"] = layers
    params["fc_w"] = jax.random.normal(
        next(keys), (inplanes, num_classes), jnp.float32) / math.sqrt(inplanes)
    params["fc_b"] = 0.01 * jax.random.normal(next(keys), (num_classes,), jnp.float32)
    return params, tuple(cfg)


# ---------------------------------------------------------------------------
# Forward pass (ClsNet.forward == resnet10 forward)
# ---------------------------------------------------------------------------

def basic_block(x5, p, c: BlockCfg):
    stride, dil = c.stride, c.dilation
    if c.has_ds:
        # 1x1x1 stride-s downsample == strided subsample + channel matmul + BN.
        xs = x5[:, ::stride, ::stride, ::stride, :]
        cin = xs.shape[-1]
        ds_scale, ds_bias = p["ds_bn"]
        res_flat = fused_matmul_bn(xs.reshape(-1, cin), p["ds_w"].reshape(cin, -1),
                                   ds_scale, ds_bias, relu=False)
    else:
        res_flat = x5.reshape(-1, x5.shape[-1])

    s1, b1 = p["bn1"]
    out = conv3d_bn(x5, p["conv1_w"], s1, b1,
                    stride=stride, dilation=dil, pad=dil, relu=True)
    s2, b2 = p["bn2"]
    # Second conv: BN + residual add + final ReLU fused into the kernel epilogue.
    out = conv3d_bn(out, p["conv2_w"], s2, b2,
                    stride=1, dilation=dil, pad=dil, relu=True, residual=res_flat)
    return out


def clsnet_forward(params, x_ncdhw, *, cfg):
    # NCDHW (PyTorch) -> NDHWC internally, bf16 activations, f32 epilogues.
    x = jnp.transpose(x_ncdhw, (0, 2, 3, 4, 1)).astype(jnp.bfloat16)
    s1, b1 = params["bn1"]
    # 7x7x7 stride-2 stem: K padded 343 -> 384 (multiple of 128).
    x = conv3d_bn(x, params["conv1_w"], s1, b1,
                  stride=2, dilation=1, pad=3, relu=True, pad_k_to=384)
    x = maxpool3d(x, k=3, stride=2, pad=1)
    for blk_p, blk_c in zip(params["layers"], cfg):
        x = basic_block(x, blk_p, blk_c)
    # Global avg-pool + final Linear: a few KB — left to XLA (a dedicated
    # pallas_call here is pure launch/DMA overhead).
    pooled = jnp.mean(x.astype(jnp.float32), axis=(1, 2, 3))          # (B, 8*base)
    logits = pooled @ params["fc_w"] + params["fc_b"]
    return logits                                                     # (B, classes) f32


class ClsNetPallas:
    """Pallas equivalent of ClsNet(arch, resnet_shortcut, num_classes)."""

    def __init__(self, arch="resnet10", resnet_shortcut="B", num_classes=3,
                 base_width=16, key=None):
        assert arch == "resnet10", "demo implements the resnet10 (BasicBlock [1,1,1,1]) arch"
        # TODO(synk): shortcut_type 'A' (avgpool + zero-pad channels) not implemented; only 'B'.
        assert resnet_shortcut == "B"
        if key is None:
            key = jax.random.PRNGKey(0)
        self.params, self.cfg = init_clsnet_params(
            key, base_width=base_width, num_classes=num_classes)
        # cfg is static Python config closed over by the jitted forward.
        self._fwd = jax.jit(functools.partial(clsnet_forward, cfg=self.cfg))

    def __call__(self, x_ncdhw):
        return self._fwd(self.params, x_ncdhw)


if __name__ == "__main__":
    key = jax.random.PRNGKey(0)
    pkey, xkey = jax.random.split(key)
    net = ClsNetPallas(arch="resnet10", resnet_shortcut="B", num_classes=3,
                       base_width=16, key=pkey)
    # Small 3D medical-style volume: (batch=2, channels=1, D=H=W=16), NCDHW.
    x = jax.random.normal(xkey, (2, 1, 16, 16, 16), jnp.float32)
    out = net(x)
    jax.block_until_ready(out)
    assert out.shape == (2, 3) and out.dtype == jnp.float32
    print("KERNEL_OK")
</pallas_src>

<mosaic_0001>
module attributes {stable_mosaic.version = 11 : i64} {
  func.func @_mm_bn_kernel(%arg0: i32, %arg1: memref<256x384xbf16, #tpu.memory_space<vmem>>, %arg2: memref<384x16xbf16, #tpu.memory_space<vmem>>, %arg3: memref<1x16xf32, #tpu.memory_space<vmem>>, %arg4: memref<1x16xf32, #tpu.memory_space<vmem>>, %arg5: memref<256x16xbf16, #tpu.memory_space<vmem>>) attributes {dimension_semantics = [#tpu.dimension_semantics<parallel>], iteration_bounds = array<i64: 4>, scalar_prefetch = 0 : i64, scratch_operands = 0 : i64, tpu.core_type = #tpu.core_type<tc>, window_params = [{transform_indices = @transform_0, window_bounds = array<i64: 256, 384>}, {pipeline_mode = #tpu.pipeline_mode<synchronous>, transform_indices = @transform_1, window_bounds = array<i64: 384, 16>}, {pipeline_mode = #tpu.pipeline_mode<synchronous>, transform_indices = @transform_2, window_bounds = array<i64: 1, 16>}, {pipeline_mode = #tpu.pipeline_mode<synchronous>, transform_indices = @transform_3, window_bounds = array<i64: 1, 16>}, {transform_indices = @transform_4, window_bounds = array<i64: 256, 16>}]} {
    %c0 = arith.constant 0 : index
    %c0_0 = arith.constant 0 : index
    %0 = vector.load %arg1[%c0, %c0_0] : memref<256x384xbf16, #tpu.memory_space<vmem>>, vector<256x384xbf16>
    %c0_1 = arith.constant 0 : index
    %c0_2 = arith.constant 0 : index
    %1 = vector.load %arg2[%c0_1, %c0_2] : memref<384x16xbf16, #tpu.memory_space<vmem>>, vector<384x16xbf16>
    %cst = arith.constant dense<0.000000e+00> : vector<256x16xf32>
    %2 = tpu.matmul %0, %1, %cst {dimension_numbers = #tpu.dot_dimension_numbers<[1], [0], [0], [1], [0, 0, 1, 1], [], []>} : vector<256x384xbf16>, vector<384x16xbf16>, vector<256x16xf32> -> vector<256x16xf32>
    %c0_3 = arith.constant 0 : index
    %c0_4 = arith.constant 0 : index
    %3 = vector.load %arg3[%c0_3, %c0_4] : memref<1x16xf32, #tpu.memory_space<vmem>>, vector<1x16xf32>
    %4 = vector.broadcast %3 : vector<1x16xf32> to vector<256x16xf32>
    %5 = arith.mulf %2, %4 : vector<256x16xf32>
    %c0_5 = arith.constant 0 : index
    %c0_6 = arith.constant 0 : index
    %6 = vector.load %arg4[%c0_5, %c0_6] : memref<1x16xf32, #tpu.memory_space<vmem>>, vector<1x16xf32>
    %7 = vector.broadcast %6 : vector<1x16xf32> to vector<256x16xf32>
    %8 = arith.addf %5, %7 : vector<256x16xf32>
    %cst_7 = arith.constant 0.000000e+00 : f32
    %9 = vector.broadcast %cst_7 : f32 to vector<256x16xf32>
    %10 = arith.maximumf %8, %9 : vector<256x16xf32>
    %11 = arith.truncf %10 : vector<256x16xf32> to vector<256x16xbf16>
    %c0_8 = arith.constant 0 : index
    %c0_9 = arith.constant 0 : index
    %12 = vector.load %arg5[%c0_8, %c0_9] : memref<256x16xbf16, #tpu.memory_space<vmem>>, vector<256x16xbf16>
    tpu.vector_store %arg5[%c0_8, %c0_9], %11 {strides = array<i32>} : memref<256x16xbf16, #tpu.memory_space<vmem>>, vector<256x16xbf16>,
    return
  }
  func.func @transform_0(%arg0: i32) -> (i32, i32) {
    %c0_i32 = arith.constant 0 : i32
    %c0_i32_0 = arith.constant 0 : i32
    return %arg0, %c0_i32 : i32, i32
  }
  func.func @transform_1(%arg0: i32) -> (i32, i32) {
    %c0_i32 = arith.constant 0 : i32
    %c0_i32_0 = arith.constant 0 : i32
    %c0_i32_1 = arith.constant 0 : i32
    return %c0_i32, %c0_i32_0 : i32, i32
  }
  func.func @transform_2(%arg0: i32) -> (i32, i32) {
    %c0_i32 = arith.constant 0 : i32
    %c0_i32_0 = arith.constant 0 : i32
    %c0_i32_1 = arith.constant 0 : i32
    return %c0_i32, %c0_i32_0 : i32, i32
  }
  func.func @transform_3(%arg0: i32) -> (i32, i32) {
    %c0_i32 = arith.constant 0 : i32
    %c0_i32_0 = arith.constant 0 : i32
    %c0_i32_1 = arith.constant 0 : i32
    return %c0_i32, %c0_i32_0 : i32, i32
  }
  func.func @transform_4(%arg0: i32) -> (i32, i32) {
    %c0_i32 = arith.constant 0 : i32
    %c0_i32_0 = arith.constant 0 : i32
    return %arg0, %c0_i32 : i32, i32
  }
}

module attributes {stable_mosaic.version = 11 : i64} {
  func.func @_maxpool_kernel(%arg0: i32, %arg1: memref<27x128x16xbf16, #tpu.memory_space<vmem>>, %arg2: memref<128x16xbf16, #tpu.memory_space<vmem>>) attributes {dimension_semantics = [#tpu.dimension_semantics<parallel>], iteration_bounds = array<i64: 1>, scalar_prefetch = 0 : i64, scratch_operands = 0 : i64, tpu.core_type = #tpu.core_type<tc>, window_params = [{transform_indices = @transform_0, window_bounds = array<i64: 27, 128, 16>}, {transform_indices = @transform_1, window_bounds = array<i64: 128, 16>}]} {
    %c0 = arith.constant 0 : index
    %c0_0 = arith.constant 0 : index
    %c0_1 = arith.constant 0 : index
    %0 = vector.load %arg1[%c0, %c0_0, %c0_1] : memref<27x128x16xbf16, #tpu.memory_space<vmem>>, vector<27x128x16xbf16>
    %cst = arith.constant dense<0xFF80> : vector<128x16xbf16>
    %1 = vector.multi_reduction <maximumf>, %0, %cst [0] : vector<27x128x16xbf16> to vector<128x16xbf16>
    %c0_2 = arith.constant 0 : index
    %c0_3 = arith.constant 0 : index
    %2 = vector.load %arg2[%c0_2, %c0_3] : memref<128x16xbf16, #tpu.memory_space<vmem>>, vector<128x16xbf16>
    tpu.vector_store %arg2[%c0_2, %c0_3], %1 {strides = array<i32>} : memref<128x16xbf16, #tpu.memory_space<vmem>>, vector<128x16xbf16>,
    return
  }
  func.func @transform_0(%arg0: i32) -> (i32, i32, i32) {
    %c0_i32 = arith.constant 0 : i32
    %c0_i32_0 = arith.constant 0 : i32
    %c0_i32_1 = arith.constant 0 : i32
    return %c0_i32, %arg0, %c0_i32_0 : i32, i32, i32
  }
  func.func @transform_1(%arg0: i32) -> (i32, i32) {
    %c0_i32 = arith.constant 0 : i32
    %c0_i32_0 = arith.constant 0 : i32
    return %arg0, %c0_i32 : i32, i32
  }
}

module attributes {stable_mosaic.version = 11 : i64} {
  func.func @_mm_bn_kernel(%arg0: i32, %arg1: memref<128x432xbf16, #tpu.memory_space<vmem>>, %arg2: memref<432x16xbf16, #tpu.memory_space<vmem>>, %arg3: memref<1x16xf32, #tpu.memory_space<vmem>>, %arg4: memref<1x16xf32, #tpu.memory_space<vmem>>, %arg5: memref<128x16xbf16, #tpu.memory_space<vmem>>) attributes {dimension_semantics = [#tpu.dimension_semantics<parallel>], iteration_bounds = array<i64: 1>, scalar_prefetch = 0 : i64, scratch_operands = 0 : i64, tpu.core_type = #tpu.core_type<tc>, window_params = [{transform_indices = @transform_0, window_bounds = array<i64: 128, 432>}, {pipeline_mode = #tpu.pipeline_mode<synchronous>, transform_indices = @transform_1, window_bounds = array<i64: 432, 16>}, {pipeline_mode = #tpu.pipeline_mode<synchronous>, transform_indices = @transform_2, window_bounds = array<i64: 1, 16>}, {pipeline_mode = #tpu.pipeline_mode<synchronous>, transform_indices = @transform_3, window_bounds = array<i64: 1, 16>}, {transform_indices = @transform_4, window_bounds = array<i64: 128, 16>}]} {
    %c0 = arith.constant 0 : index
    %c0_0 = arith.constant 0 : index
    %0 = vector.load %arg1[%c0, %c0_0] : memref<128x432xbf16, #tpu.memory_space<vmem>>, vector<128x432xbf16>
    %c0_1 = arith.constant 0 : index
    %c0_2 = arith.constant 0 : index
    %1 = vector.load %arg2[%c0_1, %c0_2] : memref<432x16xbf16, #tpu.memory_space<vmem>>, vector<432x16xbf16>
    %cst = arith.constant dense<0.000000e+00> : vector<128x16xf32>
    %2 = tpu.matmul %0, %1, %cst {dimension_numbers = #tpu.dot_dimension_numbers<[1], [0], [0], [1], [0, 0, 1, 1], [], []>} : vector<128x432xbf16>, vector<432x16xbf16>, vector<128x16xf32> -> vector<128x16xf32>
    %c0_3 = arith.constant 0 : index
    %c0_4 = arith.constant 0 : index
    %3 = vector.load %arg3[%c0_3, %c0_4] : memref<1x16xf32, #tpu.memory_space<vmem>>, vector<1x16xf32>
    %4 = vector.broadcast %3 : vector<1x16xf32> to vector<128x16xf32>
    %5 = arith.mulf %2, %4 : vector<128x16xf32>
    %c0_5 = arith.constant 0 : index
    %c0_6 = arith.constant 0 : index
    %6 = vector.load %arg4[%c0_5, %c0_6] : memref<1x16xf32, #tpu.memory_space<vmem>>, vector<1x16xf32>
    %7 = vector.broadcast %6 : vector<1x16xf32> to vector<128x16xf32>
    %8 = arith.addf %5, %7 : vector<128x16xf32>
    %cst_7 = arith.constant 0.000000e+00 : f32
    %9 = vector.broadcast %cst_7 : f32 to vector<128x16xf32>
    %10 = arith.maximumf %8, %9 : vector<128x16xf32>
    %11 = arith.truncf %10 : vector<128x16xf32> to vector<128x16xbf16>
    %c0_8 = arith.constant 0 : index
    %c0_9 = arith.constant 0 : index
    %12 = vector.load %arg5[%c0_8, %c0_9] : memref<128x16xbf16, #tpu.memory_space<vmem>>, vector<128x16xbf16>
    tpu.vector_store %arg5[%c0_8, %c0_9], %11 {strides = array<i32>} : memref<128x16xbf16, #tpu.memory_space<vmem>>, vector<128x16xbf16>,
    return
  }
  func.func @transform_0(%arg0: i32) -> (i32, i32) {
    %c0_i32 = arith.constant 0 : i32
    %c0_i32_0 = arith.constant 0 : i32
    return %arg0, %c0_i32 : i32, i32
  }
  func.func @transform_1(%arg0: i32) -> (i32, i32) {
    %c0_i32 = arith.constant 0 : i32
    %c0_i32_0 = arith.constant 0 : i32
    %c0_i32_1 = arith.constant 0 : i32
    return %c0_i32, %c0_i32_0 : i32, i32
  }
  func.func @transform_2(%arg0: i32) -> (i32, i32) {
    %c0_i32 = arith.constant 0 : i32
    %c0_i32_0 = arith.constant 0 : i32
    %c0_i32_1 = arith.constant 0 : i32
    return %c0_i32, %c0_i32_0 : i32, i32
  }
  func.func @transform_3(%arg0: i32) -> (i32, i32) {
    %c0_i32 = arith.constant 0 : i32
    %c0_i32_0 = arith.constant 0 : i32
    %c0_i32_1 = arith.constant 0 : i32
    return %c0_i32, %c0_i32_0 : i32, i32
  }
  func.func @transform_4(%arg0: i32) -> (i32, i32) {
    %c0_i32 = arith.constant 0 : i32
    %c0_i32_0 = arith.constant 0 : i32
    return %arg0, %c0_i32 : i32, i32
  }
}

module attributes {stable_mosaic.version = 11 : i64} {
  func.func @_mm_bn_kernel(%arg0: i32, %arg1: memref<128x432xbf16, #tpu.memory_space<vmem>>, %arg2: memref<432x16xbf16, #tpu.memory_space<vmem>>, %arg3: memref<1x16xf32, #tpu.memory_space<vmem>>, %arg4: memref<1x16xf32, #tpu.memory_space<vmem>>, %arg5: memref<128x16xbf16, #tpu.memory_space<vmem>>, %arg6: memref<128x16xbf16, #tpu.memory_space<vmem>>) attributes {dimension_semantics = [#tpu.dimension_semantics<parallel>], iteration_bounds = array<i64: 1>, scalar_prefetch = 0 : i64, scratch_operands = 0 : i64, tpu.core_type = #tpu.core_type<tc>, window_params = [{transform_indices = @transform_0, window_bounds = array<i64: 128, 432>}, {pipeline_mode = #tpu.pipeline_mode<synchronous>, transform_indices = @transform_1, window_bounds = array<i64: 432, 16>}, {pipeline_mode = #tpu.pipeline_mode<synchronous>, transform_indices = @transform_2, window_bounds = array<i64: 1, 16>}, {pipeline_mode = #tpu.pipeline_mode<synchronous>, transform_indices = @transform_3, window_bounds = array<i64: 1, 16>}, {transform_indices = @transform_4, window_bounds = array<i64: 128, 16>}, {transform_indices = @transform_5, window_bounds = array<i64: 128, 16>}]} {
    %c0 = arith.constant 0 : index
    %c0_0 = arith.constant 0 : index
    %0 = vector.load %arg1[%c0, %c0_0] : memref<128x432xbf16, #tpu.memory_space<vmem>>, vector<128x432xbf16>
    %c0_1 = arith.constant 0 : index
    %c0_2 = arith.constant 0 : index
    %1 = vector.load %arg2[%c0_1, %c0_2] : memref<432x16xbf16, #tpu.memory_space<vmem>>, vector<432x16xbf16>
    %cst = arith.constant dense<0.000000e+00> : vector<128x16xf32>
    %2 = tpu.matmul %0, %1, %cst {dimension_numbers = #tpu.dot_dimension_numbers<[1], [0], [0], [1], [0, 0, 1, 1], [], []>} : vector<128x432xbf16>, vector<432x16xbf16>, vector<128x16xf32> -> vector<128x16xf32>
    %c0_3 = arith.constant 0 : index
    %c0_4 = arith.constant 0 : index
    %3 = vector.load %arg3[%c0_3, %c0_4] : memref<1x16xf32, #tpu.memory_space<vmem>>, vector<1x16xf32>
    %4 = vector.broadcast %3 : vector<1x16xf32> to vector<128x16xf32>
    %5 = arith.mulf %2, %4 : vector<128x16xf32>
    %c0_5 = arith.constant 0 : index
    %c0_6 = arith.constant 0 : index
    %6 = vector.load %arg4[%c0_5, %c0_6] : memref<1x16xf32, #tpu.memory_space<vmem>>, vector<1x16xf32>
    %7 = vector.broadcast %6 : vector<1x16xf32> to vector<128x16xf32>
    %8 = arith.addf %5, %7 : vector<128x16xf32>
    %c0_7 = arith.constant 0 : index
    %c0_8 = arith.constant 0 : index
    %9 = vector.load %arg5[%c0_7, %c0_8] : memref<128x16xbf16, #tpu.memory_space<vmem>>, vector<128x16xbf16>
    %10 = arith.extf %9 : vector<128x16xbf16> to vector<128x16xf32>
    %11 = arith.addf %8, %10 : vector<128x16xf32>
    %cst_9 = arith.constant 0.000000e+00 : f32
    %12 = vector.broadcast %cst_9 : f32 to vector<128x16xf32>
    %13 = arith.maximumf %11, %12 : vector<128x16xf32>
    %14 = arith.truncf %13 : vector<128x16xf32> to vector<128x16xbf16>
    %c0_10 = arith.constant 0 : index
    %c0_11 = arith.constant 0 : index
    %15 = vector.load %arg6[%c0_10, %c0_11] : memref<128x16xbf16, #tpu.memory_space<vmem>>, vector<128x16xbf16>
    tpu.vector_store %arg6[%c0_10, %c0_11], %14 {strides = array<i32>} : memref<128x16xbf16, #tpu.memory_space<vmem>>, vector<128x16xbf16>,
    return
  }
  func.func @transform_0(%arg0: i32) -> (i32, i32) {
    %c0_i32 = arith.constant 0 : i32
    %c0_i32_0 = arith.constant 0 : i32
    return %arg0, %c0_i32 : i32, i32
  }
  func.func @transform_1(%arg0: i32) -> (i32, i32) {
    %c0_i32 = arith.constant 0 : i32
    %c0_i32_0 = arith.constant 0 : i32
    %c0_i32_1 = arith.constant 0 : i32
    return %c0_i32, %c0_i32_0 : i32, i32
  }
  func.func @transform_2(%arg0: i32) -> (i32, i32) {
    %c0_i32 = arith.constant 0 : i32
    %c0_i32_0 = arith.constant 0 : i32
    %c0_i32_1 = arith.constant 0 : i32
    return %c0_i32, %c0_i32_0 : i32, i32
  }
  func.func @transform_3(%arg0: i32) -> (i32, i32) {
    %c0_i32 = arith.constant 0 : i32
    %c0_i32_0 = arith.constant 0 : i32
    %c0_i32_1 = arith.constant 0 : i32
    return %c0_i32, %c0_i32_0 : i32, i32
  }
  func.func @transform_4(%arg0: i32) -> (i32, i32) {
    %c0_i32 = arith.constant 0 : i32
    %c0_i32_0 = arith.constant 0 : i32
    return %arg0, %c0_i32 : i32, i32
  }
  func.func @transform_5(%arg0: i32) -> (i32, i32) {
    %c0_i32 = arith.constant 0 : i32
    %c0_i32_0 = arith.constant 0 : i32
    return %arg0, %c0_i32 : i32, i32
  }
}

module attributes {stable_mosaic.version = 11 : i64} {
  func.func @_mm_bn_kernel(%arg0: i32, %arg1: memref<16x432xbf16, #tpu.memory_space<vmem>>, %arg2: memref<432x32xbf16, #tpu.memory_space<vmem>>, %arg3: memref<1x32xf32, #tpu.memory_space<vmem>>, %arg4: memref<1x32xf32, #tpu.memory_space<vmem>>, %arg5: memref<16x32xbf16, #tpu.memory_space<vmem>>) attributes {dimension_semantics = [#tpu.dimension_semantics<parallel>], iteration_bounds = array<i64: 1>, scalar_prefetch = 0 : i64, scratch_operands = 0 : i64, tpu.core_type = #tpu.core_type<tc>, window_params = [{transform_indices = @transform_0, window_bounds = array<i64: 16, 432>}, {pipeline_mode = #tpu.pipeline_mode<synchronous>, transform_indices = @transform_1, window_bounds = array<i64: 432, 32>}, {pipeline_mode = #tpu.pipeline_mode<synchronous>, transform_indices = @transform_2, window_bounds = array<i64: 1, 32>}, {pipeline_mode = #tpu.pipeline_mode<synchronous>, transform_indices = @transform_3, window_bounds = array<i64: 1, 32>}, {transform_indices = @transform_4, window_bounds = array<i64: 16, 32>}]} {
    %c0 = arith.constant 0 : index
    %c0_0 = arith.constant 0 : index
    %0 = vector.load %arg1[%c0, %c0_0] : memref<16x432xbf16, #tpu.memory_space<vmem>>, vector<16x432xbf16>
    %c0_1 = arith.constant 0 : index
    %c0_2 = arith.constant 0 : index
    %1 = vector.load %arg2[%c0_1, %c0_2] : memref<432x32xbf16, #tpu.memory_space<vmem>>, vector<432x32xbf16>
    %cst = arith.constant dense<0.000000e+00> : vector<16x32xf32>
    %2 = tpu.matmul %0, %1, %cst {dimension_numbers = #tpu.dot_dimension_numbers<[1], [0], [0], [1], [0, 0, 1, 1], [], []>} : vector<16x432xbf16>, vector<432x32xbf16>, vector<16x32xf32> -> vector<16x32xf32>
    %c0_3 = arith.constant 0 : index
    %c0_4 = arith.constant 0 : index
    %3 = vector.load %arg3[%c0_3, %c0_4] : memref<1x32xf32, #tpu.memory_space<vmem>>, vector<1x32xf32>
    %4 = vector.broadcast %3 : vector<1x32xf32> to vector<16x32xf32>
    %5 = arith.mulf %2, %4 : vector<16x32xf32>
    %c0_5 = arith.constant 0 : index
    %c0_6 = arith.constant 0 : index
    %6 = vector.load %arg4[%c0_5, %c0_6] : memref<1x32xf32, #tpu.memory_space<vmem>>, vector<1x32xf32>
    %7 = vector.broadcast %6 : vector<1x32xf32> to vector<16x32xf32>
    %8 = arith.addf %5, %7 : vector<16x32xf32>
    %cst_7 = arith.constant 0.000000e+00 : f32
    %9 = vector.broadcast %cst_7 : f32 to vector<16x32xf32>
    %10 = arith.maximumf %8, %9 : vector<16x32xf32>
    %11 = arith.truncf %10 : vector<16x32xf32> to vector<16x32xbf16>
    %c0_8 = arith.constant 0 : index
    %c0_9 = arith.constant 0 : index
    %12 = vector.load %arg5[%c0_8, %c0_9] : memref<16x32xbf16, #tpu.memory_space<vmem>>, vector<16x32xbf16>
    tpu.vector_store %arg5[%c0_8, %c0_9], %11 {strides = array<i32>} : memref<16x32xbf16, #tpu.memory_space<vmem>>, vector<16x32xbf16>,
    return
  }
  func.func @transform_0(%arg0: i32) -> (i32, i32) {
    %c0_i32 = arith.constant 0 : i32
    %c0_i32_0 = arith.constant 0 : i32
    return %arg0, %c0_i32 : i32, i32
  }
  func.func @transform_1(%arg0: i32) -> (i32, i32) {
    %c0_i32 = arith.constant 0 : i32
    %c0_i32_0 = arith.constant 0 : i32
    %c0_i32_1 = arith.constant 0 : i32
    return %c0_i32, %c0_i32_0 : i32, i32
  }
  func.func @transform_2(%arg0: i32) -> (i32, i32) {
    %c0_i32 = arith.constant 0 : i32
    %c0_i32_0 = arith.constant 0 : i32
    %c0_i32_1 = arith.constant 0 : i32
    return %c0_i32, %c0_i32_0 : i32, i32
  }
  func.func @transform_3(%arg0: i32) -> (i32, i32) {
    %c0_i32 = arith.constant 0 : i32
    %c0_i32_0 = arith.constant 0 : i32
    %c0_i32_1 = arith.constant 0 : i32
    return %c0_i32, %c0_i32_0 : i32, i32
  }
  func.func @transform_4(%arg0: i32) -> (i32, i32) {
    %c0_i32 = arith.constant 0 : i32
    %c0_i32_0 = arith.constant 0 : i32
    return %arg0, %c0_i32 : i32, i32
  }
}

module attributes {stable_mosaic.version = 11 : i64} {
  func.func @_mm_bn_kernel(%arg0: i32, %arg1: memref<16x16xbf16, #tpu.memory_space<vmem>>, %arg2: memref<16x32xbf16, #tpu.memory_space<vmem>>, %arg3: memref<1x32xf32, #tpu.memory_space<vmem>>, %arg4: memref<1x32xf32, #tpu.memory_space<vmem>>, %arg5: memref<16x32xbf16, #tpu.memory_space<vmem>>) attributes {dimension_semantics = [#tpu.dimension_semantics<parallel>], iteration_bounds = array<i64: 1>, scalar_prefetch = 0 : i64, scratch_operands = 0 : i64, tpu.core_type = #tpu.core_type<tc>, window_params = [{transform_indices = @transform_0, window_bounds = array<i64: 16, 16>}, {pipeline_mode = #tpu.pipeline_mode<synchronous>, transform_indices = @transform_1, window_bounds = array<i64: 16, 32>}, {pipeline_mode = #tpu.pipeline_mode<synchronous>, transform_indices = @transform_2, window_bounds = array<i64: 1, 32>}, {pipeline_mode = #tpu.pipeline_mode<synchronous>, transform_indices = @transform_3, window_bounds = array<i64: 1, 32>}, {transform_indices = @transform_4, window_bounds = array<i64: 16, 32>}]} {
    %c0 = arith.constant 0 : index
    %c0_0 = arith.constant 0 : index
    %0 = vector.load %arg1[%c0, %c0_0] : memref<16x16xbf16, #tpu.memory_space<vmem>>, vector<16x16xbf16>
    %c0_1 = arith.constant 0 : index
    %c0_2 = arith.constant 0 : index
    %1 = vector.load %arg2[%c0_1, %c0_2] : memref<16x32xbf16, #tpu.memory_space<vmem>>, vector<16x32xbf16>
    %cst = arith.constant dense<0.000000e+00> : vector<16x32xf32>
    %2 = tpu.matmul %0, %1, %cst {dimension_numbers = #tpu.dot_dimension_numbers<[1], [0], [0], [1], [0, 0, 1, 1], [], []>} : vector<16x16xbf16>, vector<16x32xbf16>, vector<16x32xf32> -> vector<16x32xf32>
    %c0_3 = arith.constant 0 : index
    %c0_4 = arith.constant 0 : index
    %3 = vector.load %arg3[%c0_3, %c0_4] : memref<1x32xf32, #tpu.memory_space<vmem>>, vector<1x32xf32>
    %4 = vector.broadcast %3 : vector<1x32xf32> to vector<16x32xf32>
    %5 = arith.mulf %2, %4 : vector<16x32xf32>
    %c0_5 = arith.constant 0 : index
    %c0_6 = arith.constant 0 : index
    %6 = vector.load %arg4[%c0_5, %c0_6] : memref<1x32xf32, #tpu.memory_space<vmem>>, vector<1x32xf32>
    %7 = vector.broadcast %6 : vector<1x32xf32> to vector<16x32xf32>
    %8 = arith.addf %5, %7 : vector<16x32xf32>
    %9 = arith.truncf %8 : vector<16x32xf32> to vector<16x32xbf16>
    %c0_7 = arith.constant 0 : index
    %c0_8 = arith.constant 0 : index
    %10 = vector.load %arg5[%c0_7, %c0_8] : memref<16x32xbf16, #tpu.memory_space<vmem>>, vector<16x32xbf16>
    tpu.vector_store %arg5[%c0_7, %c0_8], %9 {strides = array<i32>} : memref<16x32xbf16, #tpu.memory_space<vmem>>, vector<16x32xbf16>,
    return
  }
  func.func @transform_0(%arg0: i32) -> (i32, i32) {
    %c0_i32 = arith.constant 0 : i32
    %c0_i32_0 = arith.constant 0 : i32
    return %arg0, %c0_i32 : i32, i32
  }
  func.func @transform_1(%arg0: i32) -> (i32, i32) {
    %c0_i32 = arith.constant 0 : i32
    %c0_i32_0 = arith.constant 0 : i32
    %c0_i32_1 = arith.constant 0 : i32
    return %c0_i32, %c0_i32_0 : i32, i32
  }
  func.func @transform_2(%arg0: i32) -> (i32, i32) {
    %c0_i32 = arith.constant 0 : i32
    %c0_i32_0 = arith.constant 0 : i32
    %c0_i32_1 = arith.constant 0 : i32
    return %c0_i32, %c0_i32_0 : i32, i32
  }
  func.func @transform_3(%arg0: i32) -> (i32, i32) {
    %c0_i32 = arith.constant 0 : i32
    %c0_i32_0 = arith.constant 0 : i32
    %c0_i32_1 = arith.constant 0 : i32
    return %c0_i32, %c0_i32_0 : i32, i32
  }
  func.func @transform_4(%arg0: i32) -> (i32, i32) {
    %c0_i32 = arith.constant 0 : i32
    %c0_i32_0 = arith.constant 0 : i32
    return %arg0, %c0_i32 : i32, i32
  }
}

module attributes {stable_mosaic.version = 11 : i64} {
  func.func @_mm_bn_kernel(%arg0: i32, %arg1: memref<16x864xbf16, #tpu.memory_space<vmem>>, %arg2: memref<864x32xbf16, #tpu.memory_space<vmem>>, %arg3: memref<1x32xf32, #tpu.memory_space<vmem>>, %arg4: memref<1x32xf32, #tpu.memory_space<vmem>>, %arg5: memref<16x32xbf16, #tpu.memory_space<vmem>>, %arg6: memref<16x32xbf16, #tpu.memory_space<vmem>>) attributes {dimension_semantics = [#tpu.dimension_semantics<parallel>], iteration_bounds = array<i64: 1>, scalar_prefetch = 0 : i64, scratch_operands = 0 : i64, tpu.core_type = #tpu.core_type<tc>, window_params = [{transform_indices = @transform_0, window_bounds = array<i64: 16, 864>}, {pipeline_mode = #tpu.pipeline_mode<synchronous>, transform_indices = @transform_1, window_bounds = array<i64: 864, 32>}, {pipeline_mode = #tpu.pipeline_mode<synchronous>, transform_indices = @transform_2, window_bounds = array<i64: 1, 32>}, {pipeline_mode = #tpu.pipeline_mode<synchronous>, transform_indices = @transform_3, window_bounds = array<i64: 1, 32>}, {transform_indices = @transform_4, window_bounds = array<i64: 16, 32>}, {transform_indices = @transform_5, window_bounds = array<i64: 16, 32>}]} {
    %c0 = arith.constant 0 : index
    %c0_0 = arith.constant 0 : index
    %0 = vector.load %arg1[%c0, %c0_0] : memref<16x864xbf16, #tpu.memory_space<vmem>>, vector<16x864xbf16>
    %c0_1 = arith.constant 0 : index
    %c0_2 = arith.constant 0 : index
    %1 = vector.load %arg2[%c0_1, %c0_2] : memref<864x32xbf16, #tpu.memory_space<vmem>>, vector<864x32xbf16>
    %cst = arith.constant dense<0.000000e+00> : vector<16x32xf32>
    %2 = tpu.matmul %0, %1, %cst {dimension_numbers = #tpu.dot_dimension_numbers<[1], [0], [0], [1], [0, 0, 1, 1], [], []>} : vector<16x864xbf16>, vector<864x32xbf16>, vector<16x32xf32> -> vector<16x32xf32>
    %c0_3 = arith.constant 0 : index
    %c0_4 = arith.constant 0 : index
    %3 = vector.load %arg3[%c0_3, %c0_4] : memref<1x32xf32, #tpu.memory_space<vmem>>, vector<1x32xf32>
    %4 = vector.broadcast %3 : vector<1x32xf32> to vector<16x32xf32>
    %5 = arith.mulf %2, %4 : vector<16x32xf32>
    %c0_5 = arith.constant 0 : index
    %c0_6 = arith.constant 0 : index
    %6 = vector.load %arg4[%c0_5, %c0_6] : memref<1x32xf32, #tpu.memory_space<vmem>>, vector<1x32xf32>
    %7 = vector.broadcast %6 : vector<1x32xf32> to vector<16x32xf32>
    %8 = arith.addf %5, %7 : vector<16x32xf32>
    %c0_7 = arith.constant 0 : index
    %c0_8 = arith.constant 0 : index
    %9 = vector.load %arg5[%c0_7, %c0_8] : memref<16x32xbf16, #tpu.memory_space<vmem>>, vector<16x32xbf16>
    %10 = arith.extf %9 : vector<16x32xbf16> to vector<16x32xf32>
    %11 = arith.addf %8, %10 : vector<16x32xf32>
    %cst_9 = arith.constant 0.000000e+00 : f32
    %12 = vector.broadcast %cst_9 : f32 to vector<16x32xf32>
    %13 = arith.maximumf %11, %12 : vector<16x32xf32>
    %14 = arith.truncf %13 : vector<16x32xf32> to vector<16x32xbf16>
    %c0_10 = arith.constant 0 : index
    %c0_11 = arith.constant 0 : index
    %15 = vector.load %arg6[%c0_10, %c0_11] : memref<16x32xbf16, #tpu.memory_space<vmem>>, vector<16x32xbf16>
    tpu.vector_store %arg6[%c0_10, %c0_11], %14 {strides = array<i32>} : memref<16x32xbf16, #tpu.memory_space<vmem>>, vector<16x32xbf16>,
    return
  }
  func.func @transform_0(%arg0: i32) -> (i32, i32) {
    %c0_i32 = arith.constant 0 : i32
    %c0_i32_0 = arith.constant 0 : i32
    return %arg0, %c0_i32 : i32, i32
  }
  func.func @transform_1(%arg0: i32) -> (i32, i32) {
    %c0_i32 = arith.constant 0 : i32
    %c0_i32_0 = arith.constant 0 : i32
    %c0_i32_1 = arith.constant 0 : i32
    return %c0_i32, %c0_i32_0 : i32, i32
  }
  func.func @transform_2(%arg0: i32) -> (i32, i32) {
    %c0_i32 = arith.constant 0 : i32
    %c0_i32_0 = arith.constant 0 : i32
    %c0_i32_1 = arith.constant 0 : i32
    return %c0_i32, %c0_i32_0 : i32, i32
  }
  func.func @transform_3(%arg0: i32) -> (i32, i32) {
    %c0_i32 = arith.constant 0 : i32
    %c0_i32_0 = arith.constant 0 : i32
    %c0_i32_1 = arith.constant 0 : i32
    return %c0_i32, %c0_i32_0 : i32, i32
  }
  func.func @transform_4(%arg0: i32) -> (i32, i32) {
    %c0_i32 = arith.constant 0 : i32
    %c0_i32_0 = arith.constant 0 : i32
    return %arg0, %c0_i32 : i32, i32
  }
  func.func @transform_5(%arg0: i32) -> (i32, i32) {
    %c0_i32 = arith.constant 0 : i32
    %c0_i32_0 = arith.constant 0 : i32
    return %arg0, %c0_i32 : i32, i32
  }
}

module attributes {stable_mosaic.version = 11 : i64} {
  func.func @_mm_bn_kernel(%arg0: i32, %arg1: memref<16x864xbf16, #tpu.memory_space<vmem>>, %arg2: memref<864x64xbf16, #tpu.memory_space<vmem>>, %arg3: memref<1x64xf32, #tpu.memory_space<vmem>>, %arg4: memref<1x64xf32, #tpu.memory_space<vmem>>, %arg5: memref<16x64xbf16, #tpu.memory_space<vmem>>) attributes {dimension_semantics = [#tpu.dimension_semantics<parallel>], iteration_bounds = array<i64: 1>, scalar_prefetch = 0 : i64, scratch_operands = 0 : i64, tpu.core_type = #tpu.core_type<tc>, window_params = [{transform_indices = @transform_0, window_bounds = array<i64: 16, 864>}, {pipeline_mode = #tpu.pipeline_mode<synchronous>, transform_indices = @transform_1, window_bounds = array<i64: 864, 64>}, {pipeline_mode = #tpu.pipeline_mode<synchronous>, transform_indices = @transform_2, window_bounds = array<i64: 1, 64>}, {pipeline_mode = #tpu.pipeline_mode<synchronous>, transform_indices = @transform_3, window_bounds = array<i64: 1, 64>}, {transform_indices = @transform_4, window_bounds = array<i64: 16, 64>}]} {
    %c0 = arith.constant 0 : index
    %c0_0 = arith.constant 0 : index
    %0 = vector.load %arg1[%c0, %c0_0] : memref<16x864xbf16, #tpu.memory_space<vmem>>, vector<16x864xbf16>
    %c0_1 = arith.constant 0 : index
    %c0_2 = arith.constant 0 : index
    %1 = vector.load %arg2[%c0_1, %c0_2] : memref<864x64xbf16, #tpu.memory_space<vmem>>, vector<864x64xbf16>
    %cst = arith.constant dense<0.000000e+00> : vector<16x64xf32>
    %2 = tpu.matmul %0, %1, %cst {dimension_numbers = #tpu.dot_dimension_numbers<[1], [0], [0], [1], [0, 0, 1, 1], [], []>} : vector<16x864xbf16>, vector<864x64xbf16>, vector<16x64xf32> -> vector<16x64xf32>
    %c0_3 = arith.constant 0 : index
    %c0_4 = arith.constant 0 : index
    %3 = vector.load %arg3[%c0_3, %c0_4] : memref<1x64xf32, #tpu.memory_space<vmem>>, vector<1x64xf32>
    %4 = vector.broadcast %3 : vector<1x64xf32> to vector<16x64xf32>
    %5 = arith.mulf %2, %4 : vector<16x64xf32>
    %c0_5 = arith.constant 0 : index
    %c0_6 = arith.constant 0 : index
    %6 = vector.load %arg4[%c0_5, %c0_6] : memref<1x64xf32, #tpu.memory_space<vmem>>, vector<1x64xf32>
    %7 = vector.broadcast %6 : vector<1x64xf32> to vector<16x64xf32>
    %8 = arith.addf %5, %7 : vector<16x64xf32>
    %cst_7 = arith.constant 0.000000e+00 : f32
    %9 = vector.broadcast %cst_7 : f32 to vector<16x64xf32>
    %10 = arith.maximumf %8, %9 : vector<16x64xf32>
    %11 = arith.truncf %10 : vector<16x64xf32> to vector<16x64xbf16>
    %c0_8 = arith.constant 0 : index
    %c0_9 = arith.constant 0 : index
    %12 = vector.load %arg5[%c0_8, %c0_9] : memref<16x64xbf16, #tpu.memory_space<vmem>>, vector<16x64xbf16>
    tpu.vector_store %arg5[%c0_8, %c0_9], %11 {strides = array<i32>} : memref<16x64xbf16, #tpu.memory_space<vmem>>, vector<16x64xbf16>,
    return
  }
  func.func @transform_0(%arg0: i32) -> (i32, i32) {
    %c0_i32 = arith.constant 0 : i32
    %c0_i32_0 = arith.constant 0 : i32
    return %arg0, %c0_i32 : i32, i32
  }
  func.func @transform_1(%arg0: i32) -> (i32, i32) {
    %c0_i32 = arith.constant 0 : i32
    %c0_i32_0 = arith.constant 0 : i32
    %c0_i32_1 = arith.constant 0 : i32
    return %c0_i32, %c0_i32_0 : i32, i32
  }
  func.func @transform_2(%arg0: i32) -> (i32, i32) {
    %c0_i32 = arith.constant 0 : i32
    %c0_i32_0 = arith.constant 0 : i32
    %c0_i32_1 = arith.constant 0 : i32
    return %c0_i32, %c0_i32_0 : i32, i32
  }
  func.func @transform_3(%arg0: i32) -> (i32, i32) {
    %c0_i32 = arith.constant 0 : i32
    %c0_i32_0 = arith.constant 0 : i32
    %c0_i32_1 = arith.constant 0 : i32
    return %c0_i32, %c0_i32_0 : i32, i32
  }
  func.func @transform_4(%arg0: i32) -> (i32, i32) {
    %c0_i32 = arith.constant 0 : i32
    %c0_i32_0 = arith.constant 0 : i32
    return %arg0, %c0_i32 : i32, i32
  }
}

module attributes {stable_mosaic.version = 11 : i64} {
  func.func @_mm_bn_kernel(%arg0: i32, %arg1: memref<16x32xbf16, #tpu.memory_space<vmem>>, %arg2: memref<32x64xbf16, #tpu.memory_space<vmem>>, %arg3: memref<1x64xf32, #tpu.memory_space<vmem>>, %arg4: memref<1x64xf32, #tpu.memory_space<vmem>>, %arg5: memref<16x64xbf16, #tpu.memory_space<vmem>>) attributes {dimension_semantics = [#tpu.dimension_semantics<parallel>], iteration_bounds = array<i64: 1>, scalar_prefetch = 0 : i64, scratch_operands = 0 : i64, tpu.core_type = #tpu.core_type<tc>, window_params = [{transform_indices = @transform_0, window_bounds = array<i64: 16, 32>}, {pipeline_mode = #tpu.pipeline_mode<synchronous>, transform_indices = @transform_1, window_bounds = array<i64: 32, 64>}, {pipeline_mode = #tpu.pipeline_mode<synchronous>, transform_indices = @transform_2, window_bounds = array<i64: 1, 64>}, {pipeline_mode = #tpu.pipeline_mode<synchronous>, transform_indices = @transform_3, window_bounds = array<i64: 1, 64>}, {transform_indices = @transform_4, window_bounds = array<i64: 16, 64>}]} {
    %c0 = arith.constant 0 : index
    %c0_0 = arith.constant 0 : index
    %0 = vector.load %arg1[%c0, %c0_0] : memref<16x32xbf16, #tpu.memory_space<vmem>>, vector<16x32xbf16>
    %c0_1 = arith.constant 0 : index
    %c0_2 = arith.constant 0 : index
    %1 = vector.load %arg2[%c0_1, %c0_2] : memref<32x64xbf16, #tpu.memory_space<vmem>>, vector<32x64xbf16>
    %cst = arith.constant dense<0.000000e+00> : vector<16x64xf32>
    %2 = tpu.matmul %0, %1, %cst {dimension_numbers = #tpu.dot_dimension_numbers<[1], [0], [0], [1], [0, 0, 1, 1], [], []>} : vector<16x32xbf16>, vector<32x64xbf16>, vector<16x64xf32> -> vector<16x64xf32>
    %c0_3 = arith.constant 0 : index
    %c0_4 = arith.constant 0 : index
    %3 = vector.load %arg3[%c0_3, %c0_4] : memref<1x64xf32, #tpu.memory_space<vmem>>, vector<1x64xf32>
    %4 = vector.broadcast %3 : vector<1x64xf32> to vector<16x64xf32>
    %5 = arith.mulf %2, %4 : vector<16x64xf32>
    %c0_5 = arith.constant 0 : index
    %c0_6 = arith.constant 0 : index
    %6 = vector.load %arg4[%c0_5, %c0_6] : memref<1x64xf32, #tpu.memory_space<vmem>>, vector<1x64xf32>
    %7 = vector.broadcast %6 : vector<1x64xf32> to vector<16x64xf32>
    %8 = arith.addf %5, %7 : vector<16x64xf32>
    %9 = arith.truncf %8 : vector<16x64xf32> to vector<16x64xbf16>
    %c0_7 = arith.constant 0 : index
    %c0_8 = arith.constant 0 : index
    %10 = vector.load %arg5[%c0_7, %c0_8] : memref<16x64xbf16, #tpu.memory_space<vmem>>, vector<16x64xbf16>
    tpu.vector_store %arg5[%c0_7, %c0_8], %9 {strides = array<i32>} : memref<16x64xbf16, #tpu.memory_space<vmem>>, vector<16x64xbf16>,
    return
  }
  func.func @transform_0(%arg0: i32) -> (i32, i32) {
    %c0_i32 = arith.constant 0 : i32
    %c0_i32_0 = arith.constant 0 : i32
    return %arg0, %c0_i32 : i32, i32
  }
  func.func @transform_1(%arg0: i32) -> (i32, i32) {
    %c0_i32 = arith.constant 0 : i32
    %c0_i32_0 = arith.constant 0 : i32
    %c0_i32_1 = arith.constant 0 : i32
    return %c0_i32, %c0_i32_0 : i32, i32
  }
  func.func @transform_2(%arg0: i32) -> (i32, i32) {
    %c0_i32 = arith.constant 0 : i32
    %c0_i32_0 = arith.constant 0 : i32
    %c0_i32_1 = arith.constant 0 : i32
    return %c0_i32, %c0_i32_0 : i32, i32
  }
  func.func @transform_3(%arg0: i32) -> (i32, i32) {
    %c0_i32 = arith.constant 0 : i32
    %c0_i32_0 = arith.constant 0 : i32
    %c0_i32_1 = arith.constant 0 : i32
    return %c0_i32, %c0_i32_0 : i32, i32
  }
  func.func @transform_4(%arg0: i32) -> (i32, i32) {
    %c0_i32 = arith.constant 0 : i32
    %c0_i32_0 = arith.constant 0 : i32
    return %arg0, %c0_i32 : i32, i32
  }
}

module attributes {stable_mosaic.version = 11 : i64} {
  func.func @_mm_bn_kernel(%arg0: i32, %arg1: memref<16x1728xbf16, #tpu.memory_space<vmem>>, %arg2: memref<1728x64xbf16, #tpu.memory_space<vmem>>, %arg3: memref<1x64xf32, #tpu.memory_space<vmem>>, %arg4: memref<1x64xf32, #tpu.memory_space<vmem>>, %arg5: memref<16x64xbf16, #tpu.memory_space<vmem>>, %arg6: memref<16x64xbf16, #tpu.memory_space<vmem>>) attributes {dimension_semantics = [#tpu.dimension_semantics<parallel>], iteration_bounds = array<i64: 1>, scalar_prefetch = 0 : i64, scratch_operands = 0 : i64, tpu.core_type = #tpu.core_type<tc>, window_params = [{transform_indices = @transform_0, window_bounds = array<i64: 16, 1728>}, {pipeline_mode = #tpu.pipeline_mode<synchronous>, transform_indices = @transform_1, window_bounds = array<i64: 1728, 64>}, {pipeline_mode = #tpu.pipeline_mode<synchronous>, transform_indices = @transform_2, window_bounds = array<i64: 1, 64>}, {pipeline_mode = #tpu.pipeline_mode<synchronous>, transform_indices = @transform_3, window_bounds = array<i64: 1, 64>}, {transform_indices = @transform_4, window_bounds = array<i64: 16, 64>}, {transform_indices = @transform_5, window_bounds = array<i64: 16, 64>}]} {
    %c0 = arith.constant 0 : index
    %c0_0 = arith.constant 0 : index
    %0 = vector.load %arg1[%c0, %c0_0] : memref<16x1728xbf16, #tpu.memory_space<vmem>>, vector<16x1728xbf16>
    %c0_1 = arith.constant 0 : index
    %c0_2 = arith.constant 0 : index
    %1 = vector.load %arg2[%c0_1, %c0_2] : memref<1728x64xbf16, #tpu.memory_space<vmem>>, vector<1728x64xbf16>
    %cst = arith.constant dense<0.000000e+00> : vector<16x64xf32>
    %2 = tpu.matmul %0, %1, %cst {dimension_numbers = #tpu.dot_dimension_numbers<[1], [0], [0], [1], [0, 0, 1, 1], [], []>} : vector<16x1728xbf16>, vector<1728x64xbf16>, vector<16x64xf32> -> vector<16x64xf32>
    %c0_3 = arith.constant 0 : index
    %c0_4 = arith.constant 0 : index
    %3 = vector.load %arg3[%c0_3, %c0_4] : memref<1x64xf32, #tpu.memory_space<vmem>>, vector<1x64xf32>
    %4 = vector.broadcast %3 : vector<1x64xf32> to vector<16x64xf32>
    %5 = arith.mulf %2, %4 : vector<16x64xf32>
    %c0_5 = arith.constant 0 : index
    %c0_6 = arith.constant 0 : index
    %6 = vector.load %arg4[%c0_5, %c0_6] : memref<1x64xf32, #tpu.memory_space<vmem>>, vector<1x64xf32>
    %7 = vector.broadcast %6 : vector<1x64xf32> to vector<16x64xf32>
    %8 = arith.addf %5, %7 : vector<16x64xf32>
    %c0_7 = arith.constant 0 : index
    %c0_8 = arith.constant 0 : index
    %9 = vector.load %arg5[%c0_7, %c0_8] : memref<16x64xbf16, #tpu.memory_space<vmem>>, vector<16x64xbf16>
    %10 = arith.extf %9 : vector<16x64xbf16> to vector<16x64xf32>
    %11 = arith.addf %8, %10 : vector<16x64xf32>
    %cst_9 = arith.constant 0.000000e+00 : f32
    %12 = vector.broadcast %cst_9 : f32 to vector<16x64xf32>
    %13 = arith.maximumf %11, %12 : vector<16x64xf32>
    %14 = arith.truncf %13 : vector<16x64xf32> to vector<16x64xbf16>
    %c0_10 = arith.constant 0 : index
    %c0_11 = arith.constant 0 : index
    %15 = vector.load %arg6[%c0_10, %c0_11] : memref<16x64xbf16, #tpu.memory_space<vmem>>, vector<16x64xbf16>
    tpu.vector_store %arg6[%c0_10, %c0_11], %14 {strides = array<i32>} : memref<16x64xbf16, #tpu.memory_space<vmem>>, vector<16x64xbf16>,
    return
  }
  func.func @transform_0(%arg0: i32) -> (i32, i32) {
    %c0_i32 = arith.constant 0 : i32
    %c0_i32_0 = arith.constant 0 : i32
    return %arg0, %c0_i32 : i32, i32
  }
  func.func @transform_1(%arg0: i32) -> (i32, i32) {
    %c0_i32 = arith.constant 0 : i32
    %c0_i32_0 = arith.constant 0 : i32
    %c0_i32_1 = arith.constant 0 : i32
    return %c0_i32, %c0_i32_0 : i32, i32
  }
  func.func @transform_2(%arg0: i32) -> (i32, i32) {
    %c0_i32 = arith.constant 0 : i32
    %c0_i32_0 = arith.constant 0 : i32
    %c0_i32_1 = arith.constant 0 : i32
    return %c0_i32, %c0_i32_0 : i32, i32
  }
  func.func @transform_3(%arg0: i32) -> (i32, i32) {
    %c0_i32 = arith.constant 0 : i32
    %c0_i32_0 = arith.constant 0 : i32
    %c0_i32_1 = arith.constant 0 : i32
    return %c0_i32, %c0_i32_0 : i32, i32
  }
  func.func @transform_4(%arg0: i32) -> (i32, i32) {
    %c0_i32 = arith.constant 0 : i32
    %c0_i32_0 = arith.constant 0 : i32
    return %arg0, %c0_i32 : i32, i32
  }
  func.func @transform_5(%arg0: i32) -> (i32, i32) {
    %c0_i32 = arith.constant 0 : i32
    %c0_i32_0 = arith.constant 0 : i32
    return %arg0, %c0_i32 : i32, i32
  }
}

module attributes {stable_mosaic.version = 11 : i64} {
  func.func @_mm_bn_kernel(%arg0: i32, %arg1: memref<16x1728xbf16, #tpu.memory_space<vmem>>, %arg2: memref<1728x128xbf16, #tpu.memory_space<vmem>>, %arg3: memref<1x128xf32, #tpu.memory_space<vmem>>, %arg4: memref<1x128xf32, #tpu.memory_space<vmem>>, %arg5: memref<16x128xbf16, #tpu.memory_space<vmem>>) attributes {dimension_semantics = [#tpu.dimension_semantics<parallel>], iteration_bounds = array<i64: 1>, scalar_prefetch = 0 : i64, scratch_operands = 0 : i64, tpu.core_type = #tpu.core_type<tc>, window_params = [{transform_indices = @transform_0, window_bounds = array<i64: 16, 1728>}, {pipeline_mode = #tpu.pipeline_mode<synchronous>, transform_indices = @transform_1, window_bounds = array<i64: 1728, 128>}, {pipeline_mode = #tpu.pipeline_mode<synchronous>, transform_indices = @transform_2, window_bounds = array<i64: 1, 128>}, {pipeline_mode = #tpu.pipeline_mode<synchronous>, transform_indices = @transform_3, window_bounds = array<i64: 1, 128>}, {transform_indices = @transform_4, window_bounds = array<i64: 16, 128>}]} {
    %c0 = arith.constant 0 : index
    %c0_0 = arith.constant 0 : index
    %0 = vector.load %arg1[%c0, %c0_0] : memref<16x1728xbf16, #tpu.memory_space<vmem>>, vector<16x1728xbf16>
    %c0_1 = arith.constant 0 : index
    %c0_2 = arith.constant 0 : index
    %1 = vector.load %arg2[%c0_1, %c0_2] : memref<1728x128xbf16, #tpu.memory_space<vmem>>, vector<1728x128xbf16>
    %cst = arith.constant dense<0.000000e+00> : vector<16x128xf32>
    %2 = tpu.matmul %0, %1, %cst {dimension_numbers = #tpu.dot_dimension_numbers<[1], [0], [0], [1], [0, 0, 1, 1], [], []>} : vector<16x1728xbf16>, vector<1728x128xbf16>, vector<16x128xf32> -> vector<16x128xf32>
    %c0_3 = arith.constant 0 : index
    %c0_4 = arith.constant 0 : index
    %3 = vector.load %arg3[%c0_3, %c0_4] : memref<1x128xf32, #tpu.memory_space<vmem>>, vector<1x128xf32>
    %4 = vector.broadcast %3 : vector<1x128xf32> to vector<16x128xf32>
    %5 = arith.mulf %2, %4 : vector<16x128xf32>
    %c0_5 = arith.constant 0 : index
    %c0_6 = arith.constant 0 : index
    %6 = vector.load %arg4[%c0_5, %c0_6] : memref<1x128xf32, #tpu.memory_space<vmem>>, vector<1x128xf32>
    %7 = vector.broadcast %6 : vector<1x128xf32> to vector<16x128xf32>
    %8 = arith.addf %5, %7 : vector<16x128xf32>
    %cst_7 = arith.constant 0.000000e+00 : f32
    %9 = vector.broadcast %cst_7 : f32 to vector<16x128xf32>
    %10 = arith.maximumf %8, %9 : vector<16x128xf32>
    %11 = arith.truncf %10 : vector<16x128xf32> to vector<16x128xbf16>
    %c0_8 = arith.constant 0 : index
    %c0_9 = arith.constant 0 : index
    %12 = vector.load %arg5[%c0_8, %c0_9] : memref<16x128xbf16, #tpu.memory_space<vmem>>, vector<16x128xbf16>
    tpu.vector_store %arg5[%c0_8, %c0_9], %11 {strides = array<i32>} : memref<16x128xbf16, #tpu.memory_space<vmem>>, vector<16x128xbf16>,
    return
  }
  func.func @transform_0(%arg0: i32) -> (i32, i32) {
    %c0_i32 = arith.constant 0 : i32
    %c0_i32_0 = arith.constant 0 : i32
    return %arg0, %c0_i32 : i32, i32
  }
  func.func @transform_1(%arg0: i32) -> (i32, i32) {
    %c0_i32 = arith.constant 0 : i32
    %c0_i32_0 = arith.constant 0 : i32
    %c0_i32_1 = arith.constant 0 : i32
    return %c0_i32, %c0_i32_0 : i32, i32
  }
  func.func @transform_2(%arg0: i32) -> (i32, i32) {
    %c0_i32 = arith.constant 0 : i32
    %c0_i32_0 = arith.constant 0 : i32
    %c0_i32_1 = arith.constant 0 : i32
    return %c0_i32, %c0_i32_0 : i32, i32
  }
  func.func @transform_3(%arg0: i32) -> (i32, i32) {
    %c0_i32 = arith.constant 0 : i32
    %c0_i32_0 = arith.constant 0 : i32
    %c0_i32_1 = arith.constant 0 : i32
    return %c0_i32, %c0_i32_0 : i32, i32
  }
  func.func @transform_4(%arg0: i32) -> (i32, i32) {
    %c0_i32 = arith.constant 0 : i32
    %c0_i32_0 = arith.constant 0 : i32
    return %arg0, %c0_i32 : i32, i32
  }
}

module attributes {stable_mosaic.version = 11 : i64} {
  func.func @_mm_bn_kernel(%arg0: i32, %arg1: memref<16x64xbf16, #tpu.memory_space<vmem>>, %arg2: memref<64x128xbf16, #tpu.memory_space<vmem>>, %arg3: memref<1x128xf32, #tpu.memory_space<vmem>>, %arg4: memref<1x128xf32, #tpu.memory_space<vmem>>, %arg5: memref<16x128xbf16, #tpu.memory_space<vmem>>) attributes {dimension_semantics = [#tpu.dimension_semantics<parallel>], iteration_bounds = array<i64: 1>, scalar_prefetch = 0 : i64, scratch_operands = 0 : i64, tpu.core_type = #tpu.core_type<tc>, window_params = [{transform_indices = @transform_0, window_bounds = array<i64: 16, 64>}, {pipeline_mode = #tpu.pipeline_mode<synchronous>, transform_indices = @transform_1, window_bounds = array<i64: 64, 128>}, {pipeline_mode = #tpu.pipeline_mode<synchronous>, transform_indices = @transform_2, window_bounds = array<i64: 1, 128>}, {pipeline_mode = #tpu.pipeline_mode<synchronous>, transform_indices = @transform_3, window_bounds = array<i64: 1, 128>}, {transform_indices = @transform_4, window_bounds = array<i64: 16, 128>}]} {
    %c0 = arith.constant 0 : index
    %c0_0 = arith.constant 0 : index
    %0 = vector.load %arg1[%c0, %c0_0] : memref<16x64xbf16, #tpu.memory_space<vmem>>, vector<16x64xbf16>
    %c0_1 = arith.constant 0 : index
    %c0_2 = arith.constant 0 : index
    %1 = vector.load %arg2[%c0_1, %c0_2] : memref<64x128xbf16, #tpu.memory_space<vmem>>, vector<64x128xbf16>
    %cst = arith.constant dense<0.000000e+00> : vector<16x128xf32>
    %2 = tpu.matmul %0, %1, %cst {dimension_numbers = #tpu.dot_dimension_numbers<[1], [0], [0], [1], [0, 0, 1, 1], [], []>} : vector<16x64xbf16>, vector<64x128xbf16>, vector<16x128xf32> -> vector<16x128xf32>
    %c0_3 = arith.constant 0 : index
    %c0_4 = arith.constant 0 : index
    %3 = vector.load %arg3[%c0_3, %c0_4] : memref<1x128xf32, #tpu.memory_space<vmem>>, vector<1x128xf32>
    %4 = vector.broadcast %3 : vector<1x128xf32> to vector<16x128xf32>
    %5 = arith.mulf %2, %4 : vector<16x128xf32>
    %c0_5 = arith.constant 0 : index
    %c0_6 = arith.constant 0 : index
    %6 = vector.load %arg4[%c0_5, %c0_6] : memref<1x128xf32, #tpu.memory_space<vmem>>, vector<1x128xf32>
    %7 = vector.broadcast %6 : vector<1x128xf32> to vector<16x128xf32>
    %8 = arith.addf %5, %7 : vector<16x128xf32>
    %9 = arith.truncf %8 : vector<16x128xf32> to vector<16x128xbf16>
    %c0_7 = arith.constant 0 : index
    %c0_8 = arith.constant 0 : index
    %10 = vector.load %arg5[%c0_7, %c0_8] : memref<16x128xbf16, #tpu.memory_space<vmem>>, vector<16x128xbf16>
    tpu.vector_store %arg5[%c0_7, %c0_8], %9 {strides = array<i32>} : memref<16x128xbf16, #tpu.memory_space<vmem>>, vector<16x128xbf16>,
    return
  }
  func.func @transform_0(%arg0: i32) -> (i32, i32) {
    %c0_i32 = arith.constant 0 : i32
    %c0_i32_0 = arith.constant 0 : i32
    return %arg0, %c0_i32 : i32, i32
  }
  func.func @transform_1(%arg0: i32) -> (i32, i32) {
    %c0_i32 = arith.constant 0 : i32
    %c0_i32_0 = arith.constant 0 : i32
    %c0_i32_1 = arith.constant 0 : i32
    return %c0_i32, %c0_i32_0 : i32, i32
  }
  func.func @transform_2(%arg0: i32) -> (i32, i32) {
    %c0_i32 = arith.constant 0 : i32
    %c0_i32_0 = arith.constant 0 : i32
    %c0_i32_1 = arith.constant 0 : i32
    return %c0_i32, %c0_i32_0 : i32, i32
  }
  func.func @transform_3(%arg0: i32) -> (i32, i32) {
    %c0_i32 = arith.constant 0 : i32
    %c0_i32_0 = arith.constant 0 : i32
    %c0_i32_1 = arith.constant 0 : i32
    return %c0_i32, %c0_i32_0 : i32, i32
  }
  func.func @transform_4(%arg0: i32) -> (i32, i32) {
    %c0_i32 = arith.constant 0 : i32
    %c0_i32_0 = arith.constant 0 : i32
    return %arg0, %c0_i32 : i32, i32
  }
}

module attributes {stable_mosaic.version = 11 : i64} {
  func.func @_mm_bn_kernel(%arg0: i32, %arg1: memref<16x3456xbf16, #tpu.memory_space<vmem>>, %arg2: memref<3456x128xbf16, #tpu.memory_space<vmem>>, %arg3: memref<1x128xf32, #tpu.memory_space<vmem>>, %arg4: memref<1x128xf32, #tpu.memory_space<vmem>>, %arg5: memref<16x128xbf16, #tpu.memory_space<vmem>>, %arg6: memref<16x128xbf16, #tpu.memory_space<vmem>>) attributes {dimension_semantics = [#tpu.dimension_semantics<parallel>], iteration_bounds = array<i64: 1>, scalar_prefetch = 0 : i64, scratch_operands = 0 : i64, tpu.core_type = #tpu.core_type<tc>, window_params = [{transform_indices = @transform_0, window_bounds = array<i64: 16, 3456>}, {pipeline_mode = #tpu.pipeline_mode<synchronous>, transform_indices = @transform_1, window_bounds = array<i64: 3456, 128>}, {pipeline_mode = #tpu.pipeline_mode<synchronous>, transform_indices = @transform_2, window_bounds = array<i64: 1, 128>}, {pipeline_mode = #tpu.pipeline_mode<synchronous>, transform_indices = @transform_3, window_bounds = array<i64: 1, 128>}, {transform_indices = @transform_4, window_bounds = array<i64: 16, 128>}, {transform_indices = @transform_5, window_bounds = array<i64: 16, 128>}]} {
    %c0 = arith.constant 0 : index
    %c0_0 = arith.constant 0 : index
    %0 = vector.load %arg1[%c0, %c0_0] : memref<16x3456xbf16, #tpu.memory_space<vmem>>, vector<16x3456xbf16>
    %c0_1 = arith.constant 0 : index
    %c0_2 = arith.constant 0 : index
    %1 = vector.load %arg2[%c0_1, %c0_2] : memref<3456x128xbf16, #tpu.memory_space<vmem>>, vector<3456x128xbf16>
    %cst = arith.constant dense<0.000000e+00> : vector<16x128xf32>
    %2 = tpu.matmul %0, %1, %cst {dimension_numbers = #tpu.dot_dimension_numbers<[1], [0], [0], [1], [0, 0, 1, 1], [], []>} : vector<16x3456xbf16>, vector<3456x128xbf16>, vector<16x128xf32> -> vector<16x128xf32>
    %c0_3 = arith.constant 0 : index
    %c0_4 = arith.constant 0 : index
    %3 = vector.load %arg3[%c0_3, %c0_4] : memref<1x128xf32, #tpu.memory_space<vmem>>, vector<1x128xf32>
    %4 = vector.broadcast %3 : vector<1x128xf32> to vector<16x128xf32>
    %5 = arith.mulf %2, %4 : vector<16x128xf32>
    %c0_5 = arith.constant 0 : index
    %c0_6 = arith.constant 0 : index
    %6 = vector.load %arg4[%c0_5, %c0_6] : memref<1x128xf32, #tpu.memory_space<vmem>>, vector<1x128xf32>
    %7 = vector.broadcast %6 : vector<1x128xf32> to vector<16x128xf32>
    %8 = arith.addf %5, %7 : vector<16x128xf32>
    %c0_7 = arith.constant 0 : index
    %c0_8 = arith.constant 0 : index
    %9 = vector.load %arg5[%c0_7, %c0_8] : memref<16x128xbf16, #tpu.memory_space<vmem>>, vector<16x128xbf16>
    %10 = arith.extf %9 : vector<16x128xbf16> to vector<16x128xf32>
    %11 = arith.addf %8, %10 : vector<16x128xf32>
    %cst_9 = arith.constant 0.000000e+00 : f32
    %12 = vector.broadcast %cst_9 : f32 to vector<16x128xf32>
    %13 = arith.maximumf %11, %12 : vector<16x128xf32>
    %14 = arith.truncf %13 : vector<16x128xf32> to vector<16x128xbf16>
    %c0_10 = arith.constant 0 : index
    %c0_11 = arith.constant 0 : index
    %15 = vector.load %arg6[%c0_10, %c0_11] : memref<16x128xbf16, #tpu.memory_space<vmem>>, vector<16x128xbf16>
    tpu.vector_store %arg6[%c0_10, %c0_11], %14 {strides = array<i32>} : memref<16x128xbf16, #tpu.memory_space<vmem>>, vector<16x128xbf16>,
    return
  }
  func.func @transform_0(%arg0: i32) -> (i32, i32) {
    %c0_i32 = arith.constant 0 : i32
    %c0_i32_0 = arith.constant 0 : i32
    return %arg0, %c0_i32 : i32, i32
  }
  func.func @transform_1(%arg0: i32) -> (i32, i32) {
    %c0_i32 = arith.constant 0 : i32
    %c0_i32_0 = arith.constant 0 : i32
    %c0_i32_1 = arith.constant 0 : i32
    return %c0_i32, %c0_i32_0 : i32, i32
  }
  func.func @transform_2(%arg0: i32) -> (i32, i32) {
    %c0_i32 = arith.constant 0 : i32
    %c0_i32_0 = arith.constant 0 : i32
    %c0_i32_1 = arith.constant 0 : i32
    return %c0_i32, %c0_i32_0 : i32, i32
  }
  func.func @transform_3(%arg0: i32) -> (i32, i32) {
    %c0_i32 = arith.constant 0 : i32
    %c0_i32_0 = arith.constant 0 : i32
    %c0_i32_1 = arith.constant 0 : i32
    return %c0_i32, %c0_i32_0 : i32, i32
  }
  func.func @transform_4(%arg0: i32) -> (i32, i32) {
    %c0_i32 = arith.constant 0 : i32
    %c0_i32_0 = arith.constant 0 : i32
    return %arg0, %c0_i32 : i32, i32
  }
  func.func @transform_5(%arg0: i32) -> (i32, i32) {
    %c0_i32 = arith.constant 0 : i32
    %c0_i32_0 = arith.constant 0 : i32
    return %arg0, %c0_i32 : i32, i32
  }
}

</mosaic_0001>

<bundles_post_ra>
// kernel: clsnet_forward.13
= control target key start
LH: loop header
LB: loop body
LE: loop exit
PB: predicated region body
PF: predicated region fallthrough
CT: control target
= control target key end

     0   :  { %s1845_s15 = smov 0   ;;  %s2173_s0 = inlined_call_operand.vmem [shape: bf16[1024,384], index: 0, kind: input, shape index: {}]   ;;  %s2174_s1 = inlined_call_operand.vmem [shape: bf16[384,16], index: 1, kind: input, shape index: {}]   ;;  %s2175_s2 = inlined_call_operand.vmem [shape: f32[1,16], index: 2, kind: input, shape index: {}]   ;;  %s2176_s3 = inlined_call_operand.vmem [shape: f32[1,16], index: 3, kind: input, shape index: {}]   ;;  %s2177_s4 = inlined_call_operand.vmem [shape: bf16[1024,16], index: 4, kind: output, shape index: {}]  }
   0x1 LB: > { %s1366_s16 = sadd.s32 4294967295, %s1818_s15   ;;  %p1370_p0 = scmp.ge.s32.totalorder %s1818_s15, 1  ;;  %s1818_s15 = sphi %s1845_s15, %s14_s15  }
   0x2   : > { %p164_p1 = scmp.lt.s32.totalorder %s1818_s15, 5 }
   0x4   : > { %p165_p2 = pnand %p1370_p0, %p164_p1 }
   0x5   : > { %s1371_s19 = sshll.u32 (!%p165_p2), %s1366_s16, 5 }
   0x6   : > { %168 = sbr.rel (%p165_p2) target bundleno = 344 (0x158), region = 36  ;;  %p192_p3 = scmp.lt.s32.totalorder (!%p165_p2), %s1371_s19, 127 }
   0xb   : > { %v1724_v0 = vld [vmem:[%s2174_s1 + $0x78] sm:$0xff]   ;;  %v1726_v2 = vld [vmem:[%s2174_s1 + $0x70] sm:$0xff]   ;;  %v1728_v4 = vld [vmem:[%s2174_s1 + $0x68] sm:$0xff]   ;;  %s2179_s19 = smov (!%p192_p3, %s1371_s19), 127  ;;  %vm1277_vm0 = vcmask 125952  }
   0xc   : > { %v1725_v1 = vld [vmem:[%s2174_s1 + $0x38] sm:$0xff]   ;;  %1515 = vmatprep.subr.bf16.mxu0 %v1724_v0  ;;  %1699 = vmatprep.subr.bf16.mxu1 %v1724_v0  ;;  %v1727_v3 = vld [vmem:[%s2174_s1 + $0x30] sm:$0xff]   ;;  %v1729_v5 = vld [vmem:[%s2174_s1 + $0x28] sm:$0xff]   ;;  %s1715_s6 = smul.u32 12, %s2179_s19  ;;  %s1374_s26 = sshll.u32 %s2179_s19, 2 }
   0xd   : > { %1516 = vmatpush3.bf16.msra.mxu0 %v1725_v1  ;;  %1707 = vmatpush3.bf16.msra.mxu1 %v1725_v1  ;;  %v1730_v6 = vld [vmem:[%s2174_s1 + $0x60] sm:$0xff]   ;;  %v1732_v8 = vld [vmem:[%s2174_s1 + $0x58] sm:$0xff]   ;;  %v1734_v10 = vld [vmem:[%s2174_s1 + $0x50] sm:$0xff]   ;;  %s2026_s29 = scalar_lea.vmem %s2177_s4, %s1374_s26 }
   0xe   : > { %1517 = vmatprep.subr.bf16.mxu0 %v1726_v2  ;;  %1700 = vmatprep.subr.bf16.mxu1 %v1726_v2  ;;  %v1731_v7 = vld [vmem:[%s2174_s1 + $0x20] sm:$0xff]   ;;  %s1886_s13 = scalar_lea.vmem %s2173_s0, %s1715_s6  ;;  %v1733_v9 = vld [vmem:[%s2174_s1 + $0x18] sm:$0xff]   ;;  %v1735_v13 = vld [vmem:[%s2174_s1 + $0x10] sm:$0xff]  }
   0xf   : > { %v1742_v11 = vld [vmem:[%s1886_s13 + $0x4] ss:$12 sps:$4 sm:$0xff]   ;;  %v1736_v14 = vld [vmem:[%s2174_s1 + $0x48] sm:$0xff]   ;;  %v1746_v18 = vld [vmem:[%s2174_s1 + $0xb8] sm:$0xff]  }
  0x10   : > { %v1745_v12 = vld [vmem:[%s1886_s13 + $0x124] ss:$12 sps:$4 sm:$0xff]   ;;  %749 = vmatprep.mubr.bf16.mxu0 %v1742_v11  ;;  %v1737_v15 = vld [vmem:[%s2174_s1 + $0x8] sm:$0xff]   ;;  %v1756_v28 = vld [vmem:[%s1886_s13 + $0x34] ss:$12 sps:$4 sm:$0xff]  }
  0x11   : > { %1518 = vmatpush3.bf16.msra.mxu0 %v1727_v3  ;;  %1708 = vmatpush3.bf16.msra.mxu1 %v1727_v3  ;;  %v1738_v16 = vld [vmem:[%s2174_s1 + $0x40] sm:$0xff]   ;;  %v1748_v21 = vld [vmem:[%s1886_s13 + $0x1c] ss:$12 sps:$4 sm:$0xff]   ;;  %v1747_v22 = vld [vmem:[%s2174_s1 + $0xb0] sm:$0xff]  }
  0x12   : > { %1519 = vmatprep.subr.bf16.mxu0 %v1728_v4  ;;  %1701 = vmatprep.subr.bf16.mxu1 %v1728_v4  ;;  %v1739_v17 = vld [vmem:[%s2174_s1] sm:$0xff]   ;;  %v1750_v23 = vld [vmem:[%s1886_s13 + $0x13c] ss:$12 sps:$4 sm:$0xff]   ;;  %v1763_v33 = vld [vmem:[%s2174_s1 + $0x90] sm:$0xff]  }
  0x13   : > { %845 = vmatprep.mubr.bf16.mxu1 %v1745_v12  ;;  %v1740_v19 = vld [vmem:[%s1886_s13] ss:$12 sps:$4 sm:$0xff]   ;;  %v1752_v24 = vld [vmem:[%s1886_s13 + $0x18] ss:$12 sps:$4 sm:$0xff]   ;;  %v1760_v31 = vld [vmem:[%s1886_s13 + $0x30] ss:$12 sps:$4 sm:$0xff]  }
  0x14   : > { %v1743_v20 = vld [vmem:[%s1886_s13 + $0x120] ss:$12 sps:$4 sm:$0xff]   ;;  %v1753_v26 = vld [vmem:[%s1886_s13 + $0x138] ss:$12 sps:$4 sm:$0xff]   ;;  %v1761_v32 = vld [vmem:[%s1886_s13 + $0x150] ss:$12 sps:$4 sm:$0xff]  }
  0x15   : > { %1520 = vmatpush3.bf16.msra.mxu0 %v1729_v5  ;;  %1709 = vmatpush3.bf16.msra.mxu1 %v1729_v5  ;;  %v1754_v25 = vld [vmem:[%s2174_s1 + $0xa8] sm:$0xff]   ;;  %v1755_v27 = vld [vmem:[%s2174_s1 + $0xa0] sm:$0xff]   ;;  %v1762_v30 = vld [vmem:[%s2174_s1 + $0x98] sm:$0xff]  }
  0x16   : > { %1521 = vmatprep.subr.bf16.mxu0 %v1730_v6  ;;  %1702 = vmatprep.subr.bf16.mxu1 %v1730_v6  ;;  %v1758_v29 = vld [vmem:[%s1886_s13 + $0x154] ss:$12 sps:$4 sm:$0xff]   ;;  %v1764_v34 = vld [vmem:[%s1886_s13 + $0x4c] ss:$12 sps:$4 sm:$0xff]   ;;  %v1772_v39 = vld [vmem:[%s1886_s13 + $0x64] ss:$12 sps:$4 sm:$0xff]  }
  0x17   : > { %v1766_v35 = vld [vmem:[%s1886_s13 + $0x16c] ss:$12 sps:$4 sm:$0xff]   ;;  %v1768_v37 = vld [vmem:[%s1886_s13 + $0x48] ss:$12 sps:$4 sm:$0xff]   ;;  %v1771_v40 = vld [vmem:[%s2174_s1 + $0x80] sm:$0xff]  }
  0x18   : > { %v1770_v36 = vld [vmem:[%s2174_s1 + $0x88] sm:$0xff]   ;;  %v1779_v45 = vld [vmem:[%s1886_s13 + $0x38] ss:$12 sps:$4 sm:$0xff]   ;;  %v1781_v47 = vld [vmem:[%s1886_s13 + $0x50] ss:$12 sps:$4 sm:$0xff]  }
  0x19   : > { %1522 = vmatpush3.bf16.msra.mxu0 %v1731_v7  ;;  %1710 = vmatpush3.bf16.msra.mxu1 %v1731_v7  ;;  %v1769_v38 = vld [vmem:[%s1886_s13 + $0x168] ss:$12 sps:$4 sm:$0xff]   ;;  %v1775_v42 = vld [vmem:[%s1886_s13 + $0x60] ss:$12 sps:$4 sm:$0xff]   ;;  %v1780_v46 = vld [vmem:[%s1886_s13 + $0x78] ss:$12 sps:$4 sm:$0xff]  }
  0x1a   : > { %1523 = vmatprep.subr.bf16.mxu0 %v1732_v8  ;;  %1703 = vmatprep.subr.bf16.mxu1 %v1732_v8  ;;  %v1774_v41 = vld [vmem:[%s1886_s13 + $0x8] ss:$12 sps:$4 sm:$0xff]   ;;  %v1776_v43 = vld [vmem:[%s1886_s13 + $0x20] ss:$12 sps:$4 sm:$0xff]   ;;  %v1785_v50 = vld [vmem:[%s1886_s13 + $0x90] ss:$12 sps:$4 sm:$0xff]  }
  0x1b   : > { %v1777_v44 = vld [vmem:[%s1886_s13 + $0x7c] ss:$12 sps:$4 sm:$0xff]   ;;  %v1782_v48 = vld [vmem:[%s1886_s13 + $0x94] ss:$12 sps:$4 sm:$0xff]   ;;  %v1787_v52 = vld [vmem:[%s1886_s13 + $0xac] ss:$12 sps:$4 sm:$0xff]  }
  0x1c   : > { %v1784_v49 = vld [vmem:[%s1886_s13 + $0x68] ss:$12 sps:$4 sm:$0xff]   ;;  %v1786_v51 = vld [vmem:[%s1886_s13 + $0x80] ss:$12 sps:$4 sm:$0xff]   ;;  %v1789_v53 = vld [vmem:[%s1886_s13 + $0x98] ss:$12 sps:$4 sm:$0xff]  }
  0x1d   : > { %1524 = vmatpush3.bf16.msra.mxu0 %v1733_v9  ;;  %1711 = vmatpush3.bf16.msra.mxu1 %v1733_v9  ;;  %v1790_v54 = vld [vmem:[%s1886_s13 + $0xa8] ss:$12 sps:$4 sm:$0xff]   ;;  %v1791_v55 = vld [vmem:[%s1886_s13 + $0xb0] ss:$12 sps:$4 sm:$0xff]   ;;  %v1795_v58 = vld [vmem:[%s1886_s13 + $0xc0] ss:$12 sps:$4 sm:$0xff]  }
  0x1e   : > { %1525 = vmatprep.subr.bf16.mxu0 %v1734_v10  ;;  %1704 = vmatprep.subr.bf16.mxu1 %v1734_v10  ;;  %v1792_v56 = vld [vmem:[%s1886_s13 + $0xc4] ss:$12 sps:$4 sm:$0xff]   ;;  %v1794_v57 = vld [vmem:[%s1886_s13 + $0xc8] ss:$12 sps:$4 sm:$0xff]   ;;  %v1796_v59 = vld [vmem:[%s1886_s13 + $0xe0] ss:$12 sps:$4 sm:$0xff]  }
  0x1f   : > { %v1797_v60 = vld [vmem:[%s1886_s13 + $0xdc] ss:$12 sps:$4 sm:$0xff]   ;;  %v1799_v61 = vld [vmem:[%s1886_s13 + $0xf8] ss:$12 sps:$4 sm:$0xff]   ;;  %v1802_v0 = vld [vmem:[%s1886_s13 + $0xf4] ss:$12 sps:$4 sm:$0xff]  }
  0x20   : > { %v1800_v62 = vld [vmem:[%s1886_s13 + $0xd8] ss:$12 sps:$4 sm:$0xff]   ;;  %v1801_v63 = vld [vmem:[%s1886_s13 + $0x110] ss:$12 sps:$4 sm:$0xff]   ;;  %v1804_v1 = vld [vmem:[%s1886_s13 + $0x128] ss:$12 sps:$4 sm:$0xff]  }
  0x21   : > { %1526 = vmatpush3.bf16.msra.mxu0 %v1735_v13  ;;  %1712 = vmatpush3.bf16.msra.mxu1 %v1735_v13  ;;  %v1805_v2 = vld [vmem:[%s1886_s13 + $0xf0] ss:$12 sps:$4 sm:$0xff]   ;;  %v1806_v3 = vld [vmem:[%s1886_s13 + $0x140] ss:$12 sps:$4 sm:$0xff]   ;;  %v1809_v5 = vld [vmem:[%s1886_s13 + $0x158] ss:$12 sps:$4 sm:$0xff]  }
  0x22   : > { %1527 = vmatprep.subr.bf16.mxu0 %v1736_v14  ;;  %1705 = vmatprep.subr.bf16.mxu1 %v1736_v14  ;;  %v1807_v4 = vld [vmem:[%s1886_s13 + $0x10c] ss:$12 sps:$4 sm:$0xff]   ;;  %v1810_v6 = vld [vmem:[%s1886_s13 + $0x108] ss:$12 sps:$4 sm:$0xff]   ;;  %v1811_v7 = vld [vmem:[%s1886_s13 + $0x170] ss:$12 sps:$4 sm:$0xff]  }
  0x25   : > { %1528 = vmatpush3.bf16.msra.mxu0 %v1737_v15  ;;  %1713 = vmatpush3.bf16.msra.mxu1 %v1737_v15 }
  0x26   : > { %1529 = vmatprep.subr.bf16.mxu0 %v1738_v16  ;;  %1706 = vmatprep.subr.bf16.mxu1 %v1738_v16 }
  0x29   : > { %1530 = vmatpush3.bf16.msra.mxu0 %v1739_v17  ;;  %1714 = vmatpush3.bf16.msra.mxu1 %v1739_v17 }
  0x2a   : > { %1651 = vmatprep.subr.bf16.mxu1 %v1746_v18 }
  0x2c   : > { %750 = vmatmul.mubr.bf16.vlgmr.msra.gmra.mxu0 %v1740_v19  ;;  %846 = vmatmul.mubr.bf16.vlgmr.msra.gmra.mxu1 %v1743_v20 }
  0x2d   : > { %1652 = vmatpush3.bf16.msra.mxu1 %v1746_v18  ;;  %757 = vmatprep.mubr.bf16.mxu0 %v1748_v21 }
  0x2e   : > { %1653 = vmatprep.subr.bf16.mxu1 %v1747_v22  ;;  %853 = vmatprep.mubr.bf16.mxu1 %v1750_v23 }
  0x31   : > { %1654 = vmatpush3.bf16.msra.mxu1 %v1747_v22 }
  0x32   : > { %1655 = vmatprep.subr.bf16.mxu1 %v1754_v25 }
  0x34   : > { %758 = vmatmul.mubr.bf16.gmra.mxu0 %v1752_v24  ;;  %854 = vmatmul.mubr.bf16.gmra.mxu1 %v1753_v26 }
  0x35   : > { %1656 = vmatpush3.bf16.msra.mxu1 %v1754_v25  ;;  %765 = vmatprep.mubr.bf16.mxu0 %v1756_v28 }
  0x36   : > { %1657 = vmatprep.subr.bf16.mxu1 %v1755_v27  ;;  %861 = vmatprep.mubr.bf16.mxu1 %v1758_v29 }
  0x39   : > { %1658 = vmatpush3.bf16.msra.mxu1 %v1755_v27 }
  0x3a   : > { %1659 = vmatprep.subr.bf16.mxu1 %v1762_v30 }
  0x3c   : > { %766 = vmatmul.mubr.bf16.gmra.mxu0 %v1760_v31  ;;  %862 = vmatmul.mubr.bf16.gmra.mxu1 %v1761_v32 }
  0x3d   : > { %1660 = vmatpush3.bf16.msra.mxu1 %v1762_v30  ;;  %773 = vmatprep.mubr.bf16.mxu0 %v1764_v34 }
  0x3e   : > { %1661 = vmatprep.subr.bf16.mxu1 %v1763_v33  ;;  %869 = vmatprep.mubr.bf16.mxu1 %v1766_v35 }
  0x41   : > { %1662 = vmatpush3.bf16.msra.mxu1 %v1763_v33 }
  0x42   : > { %1663 = vmatprep.subr.bf16.mxu1 %v1770_v36 }
  0x44   : > { %774 = vmatmul.mubr.bf16.gmra.mxu0 %v1768_v37  ;;  %870 = vmatmul.mubr.bf16.gmra.mxu1 %v1769_v38 }
  0x45   : > { %1664 = vmatpush3.bf16.msra.mxu1 %v1770_v36  ;;  %781 = vmatprep.mubr.bf16.mxu0 %v1772_v39 }
  0x46   : > { %1665 = vmatprep.subr.bf16.mxu1 %v1771_v40  ;;  %1667 = vmatprep.mubr.bf16.mxu1 %v1774_v41 }
  0x49   : > { %1666 = vmatpush3.bf16.msra.mxu1 %v1771_v40 }
  0x4c   : > { %782 = vmatmul.mubr.bf16.gmra.mxu0 %v1775_v42  ;;  %1668 = vmatmul.mubr.bf16.vlgmr.msra.gmra.mxu1 %v1776_v43 }
  0x4d   : > { %789 = vmatprep.mubr.bf16.mxu0 %v1777_v44  ;;  %1671 = vmatprep.mubr.bf16.mxu1 %v1779_v45 }
  0x54   : > { %790 = vmatmul.mubr.bf16.gmra.mxu0 %v1780_v46  ;;  %1672 = vmatmul.mubr.bf16.gmra.mxu1 %v1781_v47 }
  0x55   : > { %797 = vmatprep.mubr.bf16.mxu0 %v1782_v48  ;;  %1675 = vmatprep.mubr.bf16.mxu1 %v1784_v49  ;;  %v2006_v49 = vld [vmem:[%s2175_s2] ss:$0 sm:$0xff] }
  0x5c   : > { %798 = vmatmul.mubr.bf16.gmra.mxu0 %v1785_v50  ;;  %1676 = vmatmul.mubr.bf16.gmra.mxu1 %v1786_v51 }
  0x5d   : > { %805 = vmatprep.mubr.bf16.mxu0 %v1787_v52  ;;  %1679 = vmatprep.mubr.bf16.mxu1 %v1789_v53  ;;  %v2011_v52 = vld [vmem:[%s2176_s3] ss:$0 sm:$0xff] }
  0x64   : > { %806 = vmatmul.mubr.bf16.gmra.mxu0 %v1790_v54  ;;  %1680 = vmatmul.mubr.bf16.gmra.mxu1 %v1791_v55 }
  0x65   : > { %813 = vmatprep.mubr.bf16.mxu0 %v1792_v56  ;;  %1683 = vmatprep.mubr.bf16.mxu1 %v1794_v57 }
  0x6c   : > { %814 = vmatmul.mubr.bf16.gmra.mxu0 %v1795_v58  ;;  %1684 = vmatmul.mubr.bf16.gmra.mxu1 %v1796_v59 }
  0x6d   : > { %821 = vmatprep.mubr.bf16.mxu0 %v1797_v60  ;;  %1687 = vmatprep.mubr.bf16.mxu1 %v1799_v61 }
  0x74   : > { %822 = vmatmul.mubr.bf16.gmra.mxu0 %v1800_v62  ;;  %1688 = vmatmul.mubr.bf16.gmra.mxu1 %v1801_v63 }
  0x75   : > { %829 = vmatprep.mubr.bf16.mxu0 %v1802_v0  ;;  %1691 = vmatprep.mubr.bf16.mxu1 %v1804_v1 }
  0x7c   : > { %830 = vmatmul.mubr.bf16.gmra.mxu0 %v1805_v2  ;;  %1692 = vmatmul.mubr.bf16.gmra.mxu1 %v1806_v3 }
  0x7d   : > { %837 = vmatprep.mubr.bf16.mxu0 %v1807_v4  ;;  %1695 = vmatprep.mubr.bf16.mxu1 %v1809_v5 }
  0x84   : > { %838 = vmatmul.mubr.bf16.gmra.mxu0 %v1810_v6  ;;  %1696 = vmatmul.mubr.bf16.gmra.mxu1 %v1811_v7 }
  0xec   : > { %v1531_v8 = vpop.f32.mrf.mxu0  ;;  %v1603_v9 = vpop.f32.mrf.mxu1 }
  0xee   : > { %v1532_v10 = vpop.f32.mrf.mxu0  ;;  %v1604_v11 = vpop.f32.mrf.mxu1 }
  0xef   : > { %v1981_v12 = vadd.f32 %v1604_v11, %v1603_v9  ;;  %v1533_v50 = vadd.f32 %v1532_v10, %v1531_v8 }
  0xf0   : > { %v1534_v13 = vpop.f32.mrf.mxu0  ;;  %v1606_v14 = vpop.f32.mrf.mxu1 }
  0xf2   : > { %v1535_v15 = vpop.f32.mrf.mxu0  ;;  %v1607_v16 = vpop.f32.mrf.mxu1 }
  0xf3   : > { %v1983_v17 = vadd.f32 %v1607_v16, %v1606_v14  ;;  %v1536_v63 = vadd.f32 %v1535_v15, %v1534_v13 }
  0xf4   : > { %v1537_v18 = vpop.f32.mrf.mxu0  ;;  %v1609_v19 = vpop.f32.mrf.mxu1 }
  0xf6   : > { %v1538_v20 = vpop.f32.mrf.mxu0  ;;  %v1610_v21 = vpop.f32.mrf.mxu1 }
  0xf7   : > { %v1985_v22 = vadd.f32 %v1610_v21, %v1609_v19  ;;  %v1539_v46 = vadd.f32 %v1538_v20, %v1537_v18 }
  0xf8   : > { %v1540_v23 = vpop.f32.mrf.mxu0  ;;  %v1612_v24 = vpop.f32.mrf.mxu1 }
  0xfa   : > { %v1541_v25 = vpop.f32.mrf.mxu0  ;;  %v1613_v26 = vpop.f32.mrf.mxu1 }
  0xfb   : > { %v1987_v27 = vadd.f32 %v1613_v26, %v1612_v24  ;;  %v1542_v55 = vadd.f32 %v1541_v25, %v1540_v23 }
  0xfc   : > { %v1543_v28 = vpop.f32.mrf.mxu0  ;;  %v1615_v29 = vpop.f32.mrf.mxu1 }
  0xfe   : > { %v1544_v30 = vpop.f32.mrf.mxu0  ;;  %v1616_v31 = vpop.f32.mrf.mxu1 }
  0xff   : > { %v1989_v32 = vadd.f32 %v1616_v31, %v1615_v29  ;;  %v1545_v14 = vadd.f32 %v1544_v30, %v1543_v28 }
 0x100   : > { %v1546_v33 = vpop.f32.mrf.mxu0  ;;  %v1618_v34 = vpop.f32.mrf.mxu1 }
 0x102   : > { %v1547_v35 = vpop.f32.mrf.mxu0  ;;  %v1619_v36 = vpop.f32.mrf.mxu1 }
 0x103   : > { %v1991_v37 = vadd.f32 %v1619_v36, %v1618_v34  ;;  %v1548_v31 = vadd.f32 %v1547_v35, %v1546_v33 }
 0x104   : > { %v1549_v38 = vpop.f32.mrf.mxu0  ;;  %v1993_v39 = vpop.f32.mrf.mxu1 }
 0x106   : > { %v1550_v40 = vpop.f32.mrf.mxu0  ;;  %v1995_v41 = vpop.f32.mrf.mxu1 }
 0x107   : > { %v1551_v2 = vadd.f32 %v1550_v40, %v1549_v38 }
 0x108   : > { %v1552_v42 = vpop.f32.mrf.mxu0  ;;  %v1997_v43 = vpop.f32.mrf.mxu1 }
 0x10a   : > { %v1553_v44 = vpop.f32.mrf.mxu0  ;;  %v1999_v45 = vpop.f32.mrf.mxu1 }
 0x10b   : > { %v1554_v19 = vadd.f32 %v1553_v44, %v1552_v42 }
 0x10c   : > { %v2001_v47 = vpop.f32.mrf.mxu0  ;;  %v1669_v48 = vpop.f32.mrf.mxu1 }
 0x10d   : > { %v921_v51 = vadd.f32 %v1669_v48, %v1539_v46 }
 0x10e   : > { %v1556_v53 = vpop.f32.mrf.mxu0  ;;  %v912_v54 = vpop.f32.mrf.mxu1 }
 0x10f   : > { %v1048_v56 = vmul.f32 %v2006_v49, %v921_v51  ;;  %v913_v57 = vadd.f32 %v1533_v50, %v912_v54 }
 0x110   : > { %v2014_v58 = vpop.f32.mrf.mxu0  ;;  %v1670_v59 = vpop.f32.mrf.mxu1 }
 0x111   : > { %v1087_v60 = vadd.f32 %v2011_v52, %v1048_v56  ;;  %v1046_v61 = vmul.f32 %v2006_v49, %v913_v57  ;;  %v924_v62 = vadd.f32 %v1670_v59, %v1542_v55 }
 0x112   : > { %v2019_v0 = vpop.f32.mrf.mxu0  ;;  %v915_v1 = vpop.f32.mrf.mxu1 }
 0x113   : > { %v1119_v3 = vmax.f32 %v1087_v60, 0.0  ;;  %v1085_v4 = vadd.f32 %v2011_v52, %v1046_v61  ;;  %v1049_v5 = vmul.f32 %v2006_v49, %v924_v62  ;;  %v916_v6 = vadd.f32 %v1536_v63, %v915_v1 }
 0x114   : > { %v1561_v7 = vpop.f32.mrf.mxu0  ;;  %v1673_v8 = vpop.f32.mrf.mxu1  ;;  %v1557_v60 = vadd.f32 %v1556_v53, %v2001_v47 }
 0x115   : > { %v1485_v9 = vpack.c.bf16 %v1119_v3, %v1119_v3  ;;  %v1117_v10 = vmax.f32 %v1085_v4, 0.0  ;;  %v1088_v11 = vadd.f32 %v2011_v52, %v1049_v5  ;;  %v937_v13 = vadd.f32 %v1673_v8, %v1551_v2 }
 0x116   : > { %v1047_v15 = vmul.f32 %v2006_v49, %v916_v6  ;;  %v1562_v16 = vpop.f32.mrf.mxu0  ;;  %v928_v18 = vpop.f32.mrf.mxu1 }
 0x117   : > { %1280 = vst.msk [vmem:[%s2026_s29 + $0x8] sm:$0xf] %vm1277_vm0, %v1485_v9  ;;  %v1483_v20 = vpack.c.bf16 %v1117_v10, %v1117_v10  ;;  %v1120_v21 = vmax.f32 %v1088_v11, 0.0  ;;  %v1052_v23 = vmul.f32 %v2006_v49, %v937_v13  ;;  %v929_v25 = vadd.f32 %v1545_v14, %v928_v18 }
 0x118   : > { %v1086_v24 = vadd.f32 %v2011_v52, %v1047_v15  ;;  %v1564_v26 = vpop.f32.mrf.mxu0  ;;  %v1674_v29 = vpop.f32.mrf.mxu1  ;;  %v1563_v46 = vadd.f32 %v1562_v16, %v1561_v7  ;;  %v1560_v11 = vadd.f32 %v2019_v0, %v2014_v58 }
 0x119   : > { %1278 = vst.msk [vmem:[%s2026_s29] sm:$0xf] %vm1277_vm0, %v1483_v20  ;;  %v1486_v28 = vpack.c.bf16 %v1120_v21, %v1120_v21  ;;  %v1091_v30 = vadd.f32 %v2011_v52, %v1052_v23  ;;  %v940_v34 = vadd.f32 %v1674_v29, %v1554_v19  ;;  %v1050_v38 = vmul.f32 %v2006_v49, %v929_v25 }
 0x11a   : > { %v1118_v36 = vmax.f32 %v1086_v24, 0.0  ;;  %v1565_v40 = vpop.f32.mrf.mxu0  ;;  %v931_v42 = vpop.f32.mrf.mxu1 }
 0x11b   : > { %1281 = vst.msk [vmem:[%s2026_s29 + $0xc] sm:$0xf] %vm1277_vm0, %v1486_v28  ;;  %v1123_v44 = vmax.f32 %v1091_v30, 0.0  ;;  %v1053_v48 = vmul.f32 %v2006_v49, %v940_v34  ;;  %v932_v33 = vadd.f32 %v1548_v31, %v931_v42  ;;  %v1089_v50 = vadd.f32 %v2011_v52, %v1050_v38 }
 0x11c   : > { %v1484_v35 = vpack.c.bf16 %v1118_v36, %v1118_v36  ;;  %v1567_v51 = vpop.f32.mrf.mxu0  ;;  %v1677_v54 = vpop.f32.mrf.mxu1  ;;  %v1566_v2 = vadd.f32 %v1565_v40, %v1564_v26 }
 0x11d   : > { %v1489_v55 = vpack.c.bf16 %v1123_v44, %v1123_v44  ;;  %v1092_v56 = vadd.f32 %v2011_v52, %v1053_v48  ;;  %v1051_v57 = vmul.f32 %v2006_v49, %v932_v33  ;;  %v953_v59 = vadd.f32 %v1677_v54, %v1563_v46 }
 0x11e   : > { %1279 = vst.msk [vmem:[%s2026_s29 + $0x4] sm:$0xf] %vm1277_vm0, %v1484_v35  ;;  %v1121_v61 = vmax.f32 %v1089_v50, 0.0  ;;  %v1568_v62 = vpop.f32.mrf.mxu0  ;;  %v944_v63 = vpop.f32.mrf.mxu1 }
 0x11f   : > { %1284 = vst.msk [vmem:[%s2026_s29 + $0x18] sm:$0xf] %vm1277_vm0, %v1489_v55  ;;  %v1124_v1 = vmax.f32 %v1092_v56, 0.0  ;;  %v1090_v3 = vadd.f32 %v2011_v52, %v1051_v57  ;;  %v1056_v4 = vmul.f32 %v2006_v49, %v953_v59  ;;  %v945_v6 = vadd.f32 %v1557_v60, %v944_v63 }
 0x120   : > { %v1487_v5 = vpack.c.bf16 %v1121_v61, %v1121_v61  ;;  %v1570_v7 = vpop.f32.mrf.mxu0  ;;  %v1678_v8 = vpop.f32.mrf.mxu1  ;;  %v1569_v0 = vadd.f32 %v1568_v62, %v1567_v51 }
 0x121   : > { %v1490_v47 = vpack.c.bf16 %v1124_v1, %v1124_v1  ;;  %v1122_v53 = vmax.f32 %v1090_v3, 0.0  ;;  %v1095_v9 = vadd.f32 %v2011_v52, %v1056_v4  ;;  %v956_v10 = vadd.f32 %v1678_v8, %v1566_v2 }
 0x122   : > { %1282 = vst.msk [vmem:[%s2026_s29 + $0x10] sm:$0xf] %vm1277_vm0, %v1487_v5  ;;  %v1054_v13 = vmul.f32 %v2006_v49, %v945_v6  ;;  %v1571_v14 = vpop.f32.mrf.mxu0  ;;  %v947_v15 = vpop.f32.mrf.mxu1 }
 0x123   : > { %1285 = vst.msk [vmem:[%s2026_s29 + $0x1c] sm:$0xf] %vm1277_vm0, %v1490_v47  ;;  %v1488_v16 = vpack.c.bf16 %v1122_v53, %v1122_v53  ;;  %v1127_v18 = vmax.f32 %v1095_v9, 0.0  ;;  %v1057_v19 = vmul.f32 %v2006_v49, %v956_v10  ;;  %v948_v21 = vadd.f32 %v1560_v11, %v947_v15 }
 0x124   : > { %v1093_v20 = vadd.f32 %v2011_v52, %v1054_v13  ;;  %v1573_v23 = vpop.f32.mrf.mxu0  ;;  %v1681_v24 = vpop.f32.mrf.mxu1  ;;  %v1572_v48 = vadd.f32 %v1571_v14, %v1570_v7 }
 0x125   : > { %1283 = vst.msk [vmem:[%s2026_s29 + $0x14] sm:$0xf] %vm1277_vm0, %v1488_v16  ;;  %v1493_v58 = vpack.c.bf16 %v1127_v18, %v1127_v18  ;;  %v1096_v25 = vadd.f32 %v2011_v52, %v1057_v19  ;;  %v1055_v29 = vmul.f32 %v2006_v49, %v948_v21 }
 0x126   : > { %v1125_v26 = vmax.f32 %v1093_v20, 0.0  ;;  %v1574_v31 = vpop.f32.mrf.mxu0  ;;  %v960_v28 = vpop.f32.mrf.mxu1 }
 0x127   : > { %1288 = vst.msk [vmem:[%s2026_s29 + $0x28] sm:$0xf] %vm1277_vm0, %v1493_v58  ;;  %v1128_v30 = vmax.f32 %v1096_v25, 0.0  ;;  %v1575_v34 = vadd.f32 %v1574_v31, %v1573_v23  ;;  %v961_v36 = vadd.f32 %v1569_v0, %v960_v28  ;;  %v1094_v40 = vadd.f32 %v2011_v52, %v1055_v29 }
 0x128   : > { %v1491_v38 = vpack.c.bf16 %v1125_v26, %v1125_v26  ;;  %v1576_v42 = vpop.f32.mrf.mxu0  ;;  %v1682_v44 = vpop.f32.mrf.mxu1 }
 0x129   : > { %v1494_v46 = vpack.c.bf16 %v1128_v30, %v1128_v30  ;;  %v969_v33 = vadd.f32 %v1681_v24, %v1575_v34  ;;  %v1058_v35 = vmul.f32 %v2006_v49, %v961_v36  ;;  %v1126_v50 = vmax.f32 %v1094_v40, 0.0 }
 0x12a   : > { %1286 = vst.msk [vmem:[%s2026_s29 + $0x20] sm:$0xf] %vm1277_vm0, %v1491_v38  ;;  %v1577_v51 = vpop.f32.mrf.mxu0  ;;  %v963_v54 = vpop.f32.mrf.mxu1 }
 0x12b   : > { %1289 = vst.msk [vmem:[%s2026_s29 + $0x2c] sm:$0xf] %vm1277_vm0, %v1494_v46  ;;  %v1060_v55 = vmul.f32 %v2006_v49, %v969_v33  ;;  %v1097_v56 = vadd.f32 %v2011_v52, %v1058_v35  ;;  %v1578_v57 = vadd.f32 %v1577_v51, %v1576_v42  ;;  %v964_v59 = vadd.f32 %v1572_v48, %v963_v54 }
 0x12c   : > { %v1492_v60 = vpack.c.bf16 %v1126_v50, %v1126_v50  ;;  %v1579_v61 = vpop.f32.mrf.mxu0  ;;  %v1685_v62 = vpop.f32.mrf.mxu1 }
 0x12d   : > { %v1099_v63 = vadd.f32 %v2011_v52, %v1060_v55  ;;  %v1129_v1 = vmax.f32 %v1097_v56, 0.0  ;;  %v972_v2 = vadd.f32 %v1682_v44, %v1578_v57  ;;  %v1059_v3 = vmul.f32 %v2006_v49, %v964_v59 }
 0x12e   : > { %1287 = vst.msk [vmem:[%s2026_s29 + $0x24] sm:$0xf] %vm1277_vm0, %v1492_v60  ;;  %v1580_v4 = vpop.f32.mrf.mxu0  ;;  %v976_v5 = vpop.f32.mrf.mxu1 }
 0x12f   : > { %v1131_v6 = vmax.f32 %v1099_v63, 0.0  ;;  %v1495_v7 = vpack.c.bf16 %v1129_v1, %v1129_v1  ;;  %v1061_v8 = vmul.f32 %v2006_v49, %v972_v2  ;;  %v1098_v47 = vadd.f32 %v2011_v52, %v1059_v3 }
 0x130   : > { %v1581_v53 = vadd.f32 %v1580_v4, %v1579_v61  ;;  %v1582_v9 = vpop.f32.mrf.mxu0  ;;  %v1686_v10 = vpop.f32.mrf.mxu1 }
 0x131   : > { %v1497_v11 = vpack.c.bf16 %v1131_v6, %v1131_v6  ;;  %1290 = vst.msk [vmem:[%s2026_s29 + $0x30] sm:$0xf] %vm1277_vm0, %v1495_v7  ;;  %v1100_v13 = vadd.f32 %v2011_v52, %v1061_v8  ;;  %v1130_v14 = vmax.f32 %v1098_v47, 0.0  ;;  %v1623_v47 = vadd.f32 %v1995_v41, %v1993_v39 }
 0x132   : > { %v977_v15 = vadd.f32 %v1581_v53, %v976_v5  ;;  %v1583_v16 = vpop.f32.mrf.mxu0  ;;  %v979_v18 = vpop.f32.mrf.mxu1 }
 0x133   : > { %1292 = vst.msk [vmem:[%s2026_s29 + $0x38] sm:$0xf] %vm1277_vm0, %v1497_v11  ;;  %v1132_v19 = vmax.f32 %v1100_v13, 0.0  ;;  %v1496_v20 = vpack.c.bf16 %v1130_v14, %v1130_v14  ;;  %v1584_v21 = vadd.f32 %v1583_v16, %v1582_v9  ;;  %v1626_v16 = vadd.f32 %v1999_v45, %v1997_v43 }
 0x134   : > { %v1062_v23 = vmul.f32 %v2006_v49, %v977_v15  ;;  %v1585_v24 = vpop.f32.mrf.mxu0  ;;  %v2087_v58 = vpop.f32.mrf.mxu1 }
 0x135   : > { %v1498_v0 = vpack.c.bf16 %v1132_v19, %v1132_v19  ;;  %1291 = vst.msk [vmem:[%s2026_s29 + $0x34] sm:$0xf] %vm1277_vm0, %v1496_v20  ;;  %v980_v25 = vadd.f32 %v1584_v21, %v979_v18 }
 0x136   : > { %v1101_v26 = vadd.f32 %v2011_v52, %v1062_v23  ;;  %v1586_v29 = vpop.f32.mrf.mxu0  ;;  %v992_v31 = vpop.f32.mrf.mxu1 }
 0x137   : > { %1293 = vst.msk [vmem:[%s2026_s29 + $0x3c] sm:$0xf] %vm1277_vm0, %v1498_v0  ;;  %v1063_v28 = vmul.f32 %v2006_v49, %v980_v25  ;;  %v1587_v30 = vadd.f32 %v1586_v29, %v1585_v24 }
 0x138   : > { %v1133_v34 = vmax.f32 %v1101_v26, 0.0  ;;  %v1588_v36 = vpop.f32.mrf.mxu0  ;;  %v2095_v38 = vpop.f32.mrf.mxu1 }
 0x139   : > { %v1102_v40 = vadd.f32 %v2011_v52, %v1063_v28  ;;  %v985_v42 = vadd.f32 %v1685_v62, %v1587_v30 }
 0x13a   : > { %v1499_v44 = vpack.c.bf16 %v1133_v34, %v1133_v34  ;;  %v1589_v46 = vpop.f32.mrf.mxu0  ;;  %v995_v48 = vpop.f32.mrf.mxu1 }
 0x13b   : > { %v1134_v33 = vmax.f32 %v1102_v40, 0.0  ;;  %v1064_v35 = vmul.f32 %v2006_v49, %v985_v42  ;;  %v1590_v50 = vadd.f32 %v1589_v46, %v1588_v36 }
 0x13c   : > { %1294 = vst.msk [vmem:[%s2026_s29 + $0x40] sm:$0xf] %vm1277_vm0, %v1499_v44  ;;  %v1591_v51 = vpop.f32.mrf.mxu0  ;;  %v1693_v54 = vpop.f32.mrf.mxu1 }
 0x13d   : > { %v1500_v55 = vpack.c.bf16 %v1134_v33, %v1134_v33  ;;  %v1103_v56 = vadd.f32 %v2011_v52, %v1064_v35  ;;  %v988_v57 = vadd.f32 %v1686_v10, %v1590_v50  ;;  %v1017_v59 = vadd.f32 %v1693_v54, %v1985_v22 }
 0x13e   : > { %v1592_v60 = vpop.f32.mrf.mxu0  ;;  %v1008_v61 = vpop.f32.mrf.mxu1 }
 0x13f   : > { %1295 = vst.msk [vmem:[%s2026_s29 + $0x44] sm:$0xf] %vm1277_vm0, %v1500_v55  ;;  %v1135_v62 = vmax.f32 %v1103_v56, 0.0  ;;  %v1065_v63 = vmul.f32 %v2006_v49, %v988_v57  ;;  %v1072_v1 = vmul.f32 %v2006_v49, %v1017_v59  ;;  %v1593_v2 = vadd.f32 %v1592_v60, %v1591_v51 }
 0x140   : > { %v1009_v3 = vadd.f32 %v1981_v12, %v1008_v61  ;;  %v1594_v4 = vpop.f32.mrf.mxu0  ;;  %v1694_v5 = vpop.f32.mrf.mxu1 }
 0x141   : > { %v1501_v6 = vpack.c.bf16 %v1135_v62, %v1135_v62  ;;  %v1104_v7 = vadd.f32 %v2011_v52, %v1065_v63  ;;  %v1111_v22 = vadd.f32 %v2011_v52, %v1072_v1  ;;  %v993_v8 = vadd.f32 %v1593_v2, %v992_v31 }
 0x142   : > { %v1070_v53 = vmul.f32 %v2006_v49, %v1009_v3  ;;  %v1020_v9 = vadd.f32 %v1694_v5, %v1987_v27  ;;  %v1595_v10 = vpop.f32.mrf.mxu0  ;;  %v1011_v11 = vpop.f32.mrf.mxu1 }
 0x143   : > { %1296 = vst.msk [vmem:[%s2026_s29 + $0x48] sm:$0xf] %vm1277_vm0, %v1501_v6  ;;  %v1136_v12 = vmax.f32 %v1104_v7, 0.0  ;;  %v1143_v13 = vmax.f32 %v1111_v22, 0.0  ;;  %v1066_v14 = vmul.f32 %v2006_v49, %v993_v8  ;;  %v1596_v15 = vadd.f32 %v1595_v10, %v1594_v4 }
 0x144   : > { %v1109_v18 = vadd.f32 %v2011_v52, %v1070_v53  ;;  %v1073_v39 = vmul.f32 %v2006_v49, %v1020_v9  ;;  %v1012_v27 = vadd.f32 %v1983_v17, %v1011_v11  ;;  %v1597_v41 = vpop.f32.mrf.mxu0  ;;  %v1697_v19 = vpop.f32.mrf.mxu1 }
 0x145   : > { %v1502_v20 = vpack.c.bf16 %v1136_v12, %v1136_v12  ;;  %v1509_v21 = vpack.c.bf16 %v1143_v13, %v1143_v13  ;;  %v1105_v23 = vadd.f32 %v2011_v52, %v1066_v14  ;;  %v996_v24 = vadd.f32 %v1596_v15, %v995_v48 }
 0x146   : > { %v1141_v0 = vmax.f32 %v1109_v18, 0.0  ;;  %v1112_v25 = vadd.f32 %v2011_v52, %v1073_v39  ;;  %v1071_v43 = vmul.f32 %v2006_v49, %v1012_v27  ;;  %v1033_v45 = vadd.f32 %v1697_v19, %v1623_v47  ;;  %v1598_v26 = vpop.f32.mrf.mxu0  ;;  %v1024_v29 = vpop.f32.mrf.mxu1 }
 0x147   : > { %1297 = vst.msk [vmem:[%s2026_s29 + $0x4c] sm:$0xf] %vm1277_vm0, %v1502_v20  ;;  %1304 = vst.msk [vmem:[%s2026_s29 + $0x68] sm:$0xf] %vm1277_vm0, %v1509_v21  ;;  %v1137_v17 = vmax.f32 %v1105_v23, 0.0  ;;  %v1067_v31 = vmul.f32 %v2006_v49, %v996_v24  ;;  %v1599_v28 = vadd.f32 %v1598_v26, %v1597_v41  ;;  %v1025_v30 = vadd.f32 %v1989_v32, %v1024_v29 }
 0x148   : > { %v1507_v34 = vpack.c.bf16 %v1141_v0, %v1141_v0  ;;  %v1144_v36 = vmax.f32 %v1112_v25, 0.0  ;;  %v1110_v40 = vadd.f32 %v2011_v52, %v1071_v43  ;;  %v1076_v42 = vmul.f32 %v2006_v49, %v1033_v45  ;;  %v1600_v44 = vpop.f32.mrf.mxu0  ;;  %v1698_v46 = vpop.f32.mrf.mxu1 }
 0x149   : > { %v1503_v48 = vpack.c.bf16 %v1137_v17, %v1137_v17  ;;  %v1106_v33 = vadd.f32 %v2011_v52, %v1067_v31  ;;  %v1001_v35 = vadd.f32 %v2087_v58, %v1599_v28  ;;  %v1074_v50 = vmul.f32 %v2006_v49, %v1025_v30 }
 0x14a   : > { %1302 = vst.msk [vmem:[%s2026_s29 + $0x60] sm:$0xf] %vm1277_vm0, %v1507_v34  ;;  %v1510_v32 = vpack.c.bf16 %v1144_v36, %v1144_v36  ;;  %v1142_v51 = vmax.f32 %v1110_v40, 0.0  ;;  %v1115_v54 = vadd.f32 %v2011_v52, %v1076_v42  ;;  %v1036_v55 = vadd.f32 %v1698_v46, %v1626_v16  ;;  %v1601_v56 = vpop.f32.mrf.mxu0  ;;  %v1027_v57 = vpop.f32.mrf.mxu1 }
 0x14b   : > { %1298 = vst.msk [vmem:[%s2026_s29 + $0x50] sm:$0xf] %vm1277_vm0, %v1503_v48  ;;  %v1138_v59 = vmax.f32 %v1106_v33, 0.0  ;;  %v1068_v60 = vmul.f32 %v2006_v49, %v1001_v35  ;;  %v1113_v58 = vadd.f32 %v2011_v52, %v1074_v50  ;;  %v1602_v61 = vadd.f32 %v1601_v56, %v1600_v44 }
 0x14c   : > { %1305 = vst.msk [vmem:[%s2026_s29 + $0x6c] sm:$0xf] %vm1277_vm0, %v1510_v32  ;;  %v1508_v62 = vpack.c.bf16 %v1142_v51, %v1142_v51  ;;  %v1147_v63 = vmax.f32 %v1115_v54, 0.0  ;;  %v1077_v1 = vmul.f32 %v2006_v49, %v1036_v55  ;;  %v1028_v2 = vadd.f32 %v1991_v37, %v1027_v57 }
 0x14d   : > { %v1504_v3 = vpack.c.bf16 %v1138_v59, %v1138_v59  ;;  %v1107_v4 = vadd.f32 %v2011_v52, %v1068_v60  ;;  %v1145_v5 = vmax.f32 %v1113_v58, 0.0  ;;  %v1004_v6 = vadd.f32 %v2095_v38, %v1602_v61 }
 0x14e   : > { %1303 = vst.msk [vmem:[%s2026_s29 + $0x64] sm:$0xf] %vm1277_vm0, %v1508_v62  ;;  %v1513_v7 = vpack.c.bf16 %v1147_v63, %v1147_v63  ;;  %v1116_v22 = vadd.f32 %v2011_v52, %v1077_v1  ;;  %v1075_v8 = vmul.f32 %v2006_v49, %v1028_v2 }
 0x14f   : > { %1299 = vst.msk [vmem:[%s2026_s29 + $0x54] sm:$0xf] %vm1277_vm0, %v1504_v3  ;;  %v1139_v47 = vmax.f32 %v1107_v4, 0.0  ;;  %v1511_v37 = vpack.c.bf16 %v1145_v5, %v1145_v5  ;;  %v1069_v53 = vmul.f32 %v2006_v49, %v1004_v6 }
 0x150   : > { %1308 = vst.msk [vmem:[%s2026_s29 + $0x78] sm:$0xf] %vm1277_vm0, %v1513_v7  ;;  %v1148_v38 = vmax.f32 %v1116_v22, 0.0  ;;  %v1114_v9 = vadd.f32 %v2011_v52, %v1075_v8 }
 0x151   : > { %v1505_v10 = vpack.c.bf16 %v1139_v47, %v1139_v47  ;;  %1306 = vst.msk [vmem:[%s2026_s29 + $0x70] sm:$0xf] %vm1277_vm0, %v1511_v37  ;;  %v1108_v11 = vadd.f32 %v2011_v52, %v1069_v53 }
 0x152   : > { %v1514_v12 = vpack.c.bf16 %v1148_v38, %v1148_v38  ;;  %v1146_v13 = vmax.f32 %v1114_v9, 0.0 }
 0x153   : > { %1300 = vst.msk [vmem:[%s2026_s29 + $0x58] sm:$0xf] %vm1277_vm0, %v1505_v10  ;;  %v1140_v14 = vmax.f32 %v1108_v11, 0.0 }
 0x154   : > { %1309 = vst.msk [vmem:[%s2026_s29 + $0x7c] sm:$0xf] %vm1277_vm0, %v1514_v12  ;;  %v1512_v15 = vpack.c.bf16 %v1146_v13, %v1146_v13 }
 0x155   : > { %v1506_v16 = vpack.c.bf16 %v1140_v14, %v1140_v14 }
 0x156   : > { %1307 = vst.msk [vmem:[%s2026_s29 + $0x74] sm:$0xf] %vm1277_vm0, %v1512_v15 }
 0x157   : > { %1301 = vst.msk [vmem:[%s2026_s29 + $0x5c] sm:$0xf] %vm1277_vm0, %v1506_v16 }
 0x158 PF: > { %s14_s15 = sadd.s32 1, %s1818_s15  }
 0x159   : > { %p11_p4 = scmp.ge.s32.totalorder %s14_s15, 6  }
 0x15b   :  { %13 = sbr.rel (!%p11_p4) target bundleno = 1 (0x1), region = 66 }

// kernel: clsnet_forward.14
= control target key start
LH: loop header
LB: loop body
LE: loop exit
PB: predicated region body
PF: predicated region fallthrough
CT: control target
= control target key end

     0   :  { %vm441_vm0 = vcmask 125952   ;;  %s4055_s0 = inlined_call_operand.vmem [shape: bf16[27,128,16], index: 0, kind: input, shape index: {}]   ;;  %s4056_s1 = inlined_call_operand.vmem [shape: bf16[128,16], index: 1, kind: output, shape index: {}]  }
   0x1   :  { %v9_v0 = vld [vmem:[%s4055_s0] sm:$0xf]  ;;  %v10_v13 = vld [vmem:[%s4055_s0 + $0x4] sm:$0xf]  ;;  %v11_v45 = vld [vmem:[%s4055_s0 + $0x8] sm:$0xf] }
   0x2   :  { %v25_v1 = vld [vmem:[%s4055_s0 + $0x40] sm:$0xf]  ;;  %v444_v4 = vsel %vm441_vm0, %v9_v0, 4286644096  ;;  %v26_v16 = vld [vmem:[%s4055_s0 + $0x44] sm:$0xf] }
   0x3   :  { %v41_v2 = vld [vmem:[%s4055_s0 + $0x80] sm:$0xf]  ;;  %v447_v5 = vsel %vm441_vm0, %v25_v1, 4286644096  ;;  %v42_v17 = vld [vmem:[%s4055_s0 + $0x84] sm:$0xf] }
   0x4   :  { %v57_v3 = vld [vmem:[%s4055_s0 + $0xc0] sm:$0xf]  ;;  %v451_v6 = vsel %vm441_vm0, %v41_v2, 4286644096  ;;  %v449_v8 = vmax.bf16 %v447_v5, %v444_v4  ;;  %v58_v19 = vld [vmem:[%s4055_s0 + $0xc4] sm:$0xf] }
   0x5   :  { %v73_v7 = vld [vmem:[%s4055_s0 + $0x100] sm:$0xf]  ;;  %v455_v9 = vsel %vm441_vm0, %v57_v3, 4286644096  ;;  %v74_v22 = vld [vmem:[%s4055_s0 + $0x104] sm:$0xf] }
   0x6   :  { %v89_v10 = vld [vmem:[%s4055_s0 + $0x140] sm:$0xf]  ;;  %v453_v11 = vmax.bf16 %v451_v6, %v449_v8  ;;  %v459_v12 = vsel %vm441_vm0, %v73_v7, 4286644096  ;;  %v551_v28 = vsel %vm441_vm0, %v10_v13, 4286644096 }
   0x7   :  { %v105_v14 = vld [vmem:[%s4055_s0 + $0x180] sm:$0xf]  ;;  %v463_v18 = vsel %vm441_vm0, %v89_v10, 4286644096  ;;  %v554_v29 = vsel %vm441_vm0, %v26_v16, 4286644096 }
   0x8   :  { %v457_v15 = vmax.bf16 %v455_v9, %v453_v11  ;;  %v121_v20 = vld [vmem:[%s4055_s0 + $0x1c0] sm:$0xf]  ;;  %v467_v24 = vsel %vm441_vm0, %v105_v14, 4286644096  ;;  %v558_v30 = vsel %vm441_vm0, %v42_v17, 4286644096  ;;  %v556_v35 = vmax.bf16 %v554_v29, %v551_v28 }
   0x9   :  { %v137_v23 = vld [vmem:[%s4055_s0 + $0x200] sm:$0xf]  ;;  %v90_v31 = vld [vmem:[%s4055_s0 + $0x144] sm:$0xf]  ;;  %v471_v34 = vsel %vm441_vm0, %v121_v20, 4286644096 }
   0xa   :  { %v461_v21 = vmax.bf16 %v459_v12, %v457_v15  ;;  %v153_v25 = vld [vmem:[%s4055_s0 + $0x240] sm:$0xf]  ;;  %v562_v39 = vsel %vm441_vm0, %v58_v19, 4286644096  ;;  %v106_v40 = vld [vmem:[%s4055_s0 + $0x184] sm:$0xf]  ;;  %v560_v44 = vmax.bf16 %v558_v30, %v556_v35 }
   0xb   :  { %v169_v26 = vld [vmem:[%s4055_s0 + $0x280] sm:$0xf]  ;;  %v475_v43 = vsel %vm441_vm0, %v137_v23, 4286644096  ;;  %v27_v46 = vld [vmem:[%s4055_s0 + $0x48] sm:$0xf] }
   0xc   :  { %v465_v27 = vmax.bf16 %v463_v18, %v461_v21  ;;  %v185_v32 = vld [vmem:[%s4055_s0 + $0x2c0] sm:$0xf]  ;;  %v43_v47 = vld [vmem:[%s4055_s0 + $0x88] sm:$0xf]  ;;  %v566_v51 = vsel %vm441_vm0, %v74_v22, 4286644096  ;;  %v564_v57 = vmax.bf16 %v562_v39, %v560_v44 }
   0xd   :  { %v201_v33 = vld [vmem:[%s4055_s0 + $0x300] sm:$0xf]  ;;  %v122_v52 = vld [vmem:[%s4055_s0 + $0x1c4] sm:$0xf]  ;;  %v479_v54 = vsel %vm441_vm0, %v153_v25, 4286644096 }
   0xe   :  { %v217_v36 = vld [vmem:[%s4055_s0 + $0x340] sm:$0xf]  ;;  %v469_v38 = vmax.bf16 %v467_v24, %v465_v27  ;;  %v483_v55 = vsel %vm441_vm0, %v169_v26, 4286644096  ;;  %v487_v56 = vsel %vm441_vm0, %v185_v32, 4286644096  ;;  %v568_v6 = vmax.bf16 %v566_v51, %v564_v57 }
   0xf   :  { %v233_v37 = vld [vmem:[%s4055_s0 + $0x380] sm:$0xf]  ;;  %v59_v58 = vld [vmem:[%s4055_s0 + $0xc8] sm:$0xf]  ;;  %v491_v62 = vsel %vm441_vm0, %v201_v33, 4286644096 }
  0x10   :  { %v249_v41 = vld [vmem:[%s4055_s0 + $0x3c0] sm:$0xf]  ;;  %v473_v50 = vmax.bf16 %v471_v34, %v469_v38  ;;  %v2306_v63 = vsel %vm441_vm0, %v217_v36, 4286644096  ;;  %v570_v0 = vsel %vm441_vm0, %v90_v31, 4286644096 }
  0x11   :  { %v265_v42 = vld [vmem:[%s4055_s0 + $0x400] sm:$0xf]  ;;  %v138_v1 = vld [vmem:[%s4055_s0 + $0x204] sm:$0xf]  ;;  %v2316_v3 = vsel %vm441_vm0, %v233_v37, 4286644096  ;;  %v572_v15 = vmax.bf16 %v570_v0, %v568_v6 }
  0x12   :  { %v281_v48 = vld [vmem:[%s4055_s0 + $0x440] sm:$0xf]  ;;  %v477_v61 = vmax.bf16 %v475_v43, %v473_v50  ;;  %v2319_v4 = vsel %vm441_vm0, %v249_v41, 4286644096  ;;  %v2322_v5 = vsel %vm441_vm0, %v265_v42, 4286644096 }
  0x13   :  { %v297_v49 = vld [vmem:[%s4055_s0 + $0x480] sm:$0xf]  ;;  %v75_v7 = vld [vmem:[%s4055_s0 + $0x108] sm:$0xf]  ;;  %v2334_v11 = vsel %vm441_vm0, %v281_v48, 4286644096 }
  0x14   :  { %v313_v53 = vld [vmem:[%s4055_s0 + $0x4c0] sm:$0xf]  ;;  %v481_v10 = vmax.bf16 %v479_v54, %v477_v61  ;;  %v2337_v12 = vsel %vm441_vm0, %v297_v49, 4286644096  ;;  %v574_v13 = vsel %vm441_vm0, %v106_v40, 4286644096 }
  0x15   :  { %v329_v59 = vld [vmem:[%s4055_s0 + $0x500] sm:$0xf]  ;;  %v154_v14 = vld [vmem:[%s4055_s0 + $0x244] sm:$0xf]  ;;  %v658_v16 = vsel %vm441_vm0, %v11_v45, 4286644096  ;;  %v576_v30 = vmax.bf16 %v574_v13, %v572_v15 }
  0x16   :  { %v345_v60 = vld [vmem:[%s4055_s0 + $0x540] sm:$0xf]  ;;  %v661_v17 = vsel %vm441_vm0, %v27_v46, 4286644096  ;;  %v665_v18 = vsel %vm441_vm0, %v43_v47, 4286644096  ;;  %v485_v22 = vmax.bf16 %v483_v55, %v481_v10 }
  0x17   :  { %v361_v2 = vld [vmem:[%s4055_s0 + $0x580] sm:$0xf]  ;;  %v91_v19 = vld [vmem:[%s4055_s0 + $0x148] sm:$0xf]  ;;  %v170_v20 = vld [vmem:[%s4055_s0 + $0x284] sm:$0xf]  ;;  %v663_v25 = vmax.bf16 %v661_v17, %v658_v16 }
  0x18   :  { %v377_v8 = vld [vmem:[%s4055_s0 + $0x5c0] sm:$0xf]  ;;  %v2356_v23 = vsel %vm441_vm0, %v313_v53, 4286644096  ;;  %v578_v24 = vsel %vm441_vm0, %v122_v52, 4286644096  ;;  %v489_v36 = vmax.bf16 %v487_v56, %v485_v22 }
  0x19   :  { %v393_v9 = vld [vmem:[%s4055_s0 + $0x600] sm:$0xf]  ;;  %v186_v26 = vld [vmem:[%s4055_s0 + $0x2c4] sm:$0xf]  ;;  %v2366_v28 = vsel %vm441_vm0, %v329_v59, 4286644096  ;;  %v667_v39 = vmax.bf16 %v665_v18, %v663_v25  ;;  %v580_v44 = vmax.bf16 %v578_v24, %v576_v30 }
  0x1a   :  { %v409_v21 = vld [vmem:[%s4055_s0 + $0x640] sm:$0xf]  ;;  %v202_v27 = vld [vmem:[%s4055_s0 + $0x304] sm:$0xf]  ;;  %v2369_v29 = vsel %vm441_vm0, %v345_v60, 4286644096  ;;  %v493_v49 = vmax.bf16 %v491_v62, %v489_v36 }
  0x1b   :  { %v669_v31 = vsel %vm441_vm0, %v59_v58, 4286644096  ;;  %v107_v32 = vld [vmem:[%s4055_s0 + $0x188] sm:$0xf]  ;;  %v218_v33 = vld [vmem:[%s4055_s0 + $0x344] sm:$0xf] }
  0x1c   :  { %v234_v34 = vld [vmem:[%s4055_s0 + $0x384] sm:$0xf]  ;;  %v425_v35 = vld [vmem:[%s4055_s0 + $0x680] sm:$0xf]  ;;  %v2385_v37 = vsel %vm441_vm0, %v361_v2, 4286644096  ;;  %v671_v52 = vmax.bf16 %v669_v31, %v667_v39  ;;  %v497_v61 = vmax.bf16 %v2306_v63, %v493_v49 }
  0x1d   :  { %v582_v38 = vsel %vm441_vm0, %v138_v1, 4286644096  ;;  %v250_v40 = vld [vmem:[%s4055_s0 + $0x3c4] sm:$0xf]  ;;  %v2395_v42 = vsel %vm441_vm0, %v377_v8, 4286644096 }
  0x1e   :  { %v266_v41 = vld [vmem:[%s4055_s0 + $0x404] sm:$0xf]  ;;  %v2398_v43 = vsel %vm441_vm0, %v393_v9, 4286644096  ;;  %v673_v45 = vsel %vm441_vm0, %v75_v7, 4286644096  ;;  %v584_v56 = vmax.bf16 %v582_v38, %v580_v44  ;;  %v501_v13 = vmax.bf16 %v2316_v3, %v497_v61 }
  0x1f   :  { %v12_v46 = vld [vmem:[%s4055_s0 + $0xc] sm:$0xf]  ;;  %v123_v47 = vld [vmem:[%s4055_s0 + $0x1c8] sm:$0xf]  ;;  %v282_v48 = vld [vmem:[%s4055_s0 + $0x444] sm:$0xf]  ;;  %v675_v1 = vmax.bf16 %v673_v45, %v671_v52 }
  0x20   :  { %v2411_v50 = vsel %vm441_vm0, %v409_v21, 4286644096  ;;  %v586_v51 = vsel %vm441_vm0, %v154_v14, 4286644096  ;;  %v28_v53 = vld [vmem:[%s4055_s0 + $0x4c] sm:$0xf]  ;;  %v505_v24 = vmax.bf16 %v2319_v4, %v501_v13 }
  0x21   :  { %v44_v54 = vld [vmem:[%s4055_s0 + $0x8c] sm:$0xf]  ;;  %v2421_v55 = vsel %vm441_vm0, %v425_v35, 4286644096  ;;  %v590_v57 = vsel %vm441_vm0, %v170_v20, 4286644096  ;;  %v588_v6 = vmax.bf16 %v586_v51, %v584_v56 }
  0x22   :  { %v677_v58 = vsel %vm441_vm0, %v91_v19, 4286644096  ;;  %v139_v59 = vld [vmem:[%s4055_s0 + $0x208] sm:$0xf]  ;;  %v298_v60 = vld [vmem:[%s4055_s0 + $0x484] sm:$0xf]  ;;  %v509_v38 = vmax.bf16 %v2322_v5, %v505_v24 }
  0x23   :  { %v594_v62 = vsel %vm441_vm0, %v186_v26, 4286644096  ;;  %v598_v0 = vsel %vm441_vm0, %v202_v27, 4286644096  ;;  %v60_v2 = vld [vmem:[%s4055_s0 + $0xcc] sm:$0xf]  ;;  %v679_v16 = vmax.bf16 %v677_v58, %v675_v1  ;;  %v592_v18 = vmax.bf16 %v590_v57, %v588_v6 }
  0x24   :  { %v602_v7 = vsel %vm441_vm0, %v218_v33, 4286644096  ;;  %v606_v8 = vsel %vm441_vm0, %v234_v34, 4286644096  ;;  %v681_v9 = vsel %vm441_vm0, %v107_v32, 4286644096  ;;  %v513_v52 = vmax.bf16 %v2334_v11, %v509_v38 }
  0x25   :  { %v155_v63 = vld [vmem:[%s4055_s0 + $0x248] sm:$0xf]  ;;  %v314_v10 = vld [vmem:[%s4055_s0 + $0x4c4] sm:$0xf]  ;;  %v2448_v14 = vsel %vm441_vm0, %v250_v40, 4286644096  ;;  %v683_v25 = vmax.bf16 %v681_v9, %v679_v16  ;;  %v596_v32 = vmax.bf16 %v594_v62, %v592_v18 }
  0x26   :  { %v2451_v15 = vsel %vm441_vm0, %v266_v41, 4286644096  ;;  %v76_v17 = vld [vmem:[%s4055_s0 + $0x10c] sm:$0xf]  ;;  %v2457_v19 = vsel %vm441_vm0, %v282_v48, 4286644096  ;;  %v517_v1 = vmax.bf16 %v2337_v12, %v513_v52 }
  0x27   :  { %v685_v20 = vsel %vm441_vm0, %v123_v47, 4286644096  ;;  %v765_v21 = vsel %vm441_vm0, %v12_v46, 4286644096  ;;  %v171_v3 = vld [vmem:[%s4055_s0 + $0x288] sm:$0xf]  ;;  %v600_v46 = vmax.bf16 %v598_v0, %v596_v32 }
  0x28   :  { %v330_v22 = vld [vmem:[%s4055_s0 + $0x504] sm:$0xf]  ;;  %v768_v26 = vsel %vm441_vm0, %v28_v53, 4286644096  ;;  %v772_v27 = vsel %vm441_vm0, %v44_v54, 4286644096  ;;  %v687_v40 = vmax.bf16 %v685_v20, %v683_v25 }
  0x29   :  { %v92_v30 = vld [vmem:[%s4055_s0 + $0x14c] sm:$0xf]  ;;  %v346_v31 = vld [vmem:[%s4055_s0 + $0x544] sm:$0xf]  ;;  %v2477_v33 = vsel %vm441_vm0, %v298_v60, 4286644096  ;;  %v770_v4 = vmax.bf16 %v768_v26, %v765_v21  ;;  %v604_v60 = vmax.bf16 %v602_v7, %v600_v46 }
  0x2a   :  { %v689_v34 = vsel %vm441_vm0, %v139_v59, 4286644096  ;;  %v187_v35 = vld [vmem:[%s4055_s0 + $0x2c8] sm:$0xf]  ;;  %v362_v36 = vld [vmem:[%s4055_s0 + $0x584] sm:$0xf] }
  0x2b   :  { %v2488_v39 = vsel %vm441_vm0, %v314_v10, 4286644096  ;;  %v776_v41 = vsel %vm441_vm0, %v60_v2, 4286644096  ;;  %v108_v44 = vld [vmem:[%s4055_s0 + $0x18c] sm:$0xf]  ;;  %v774_v48 = vmax.bf16 %v772_v27, %v770_v4  ;;  %v691_v54 = vmax.bf16 %v689_v34, %v687_v40 }
  0x2c   :  { %v378_v45 = vld [vmem:[%s4055_s0 + $0x5c4] sm:$0xf]  ;;  %v2498_v47 = vsel %vm441_vm0, %v330_v22, 4286644096  ;;  %v693_v5 = vsel %vm441_vm0, %v155_v63, 4286644096  ;;  %v608_v10 = vmax.bf16 %v606_v8, %v604_v60  ;;  %v521_v8 = vmax.bf16 %v2356_v23, %v517_v1 }
  0x2d   :  { %v203_v49 = vld [vmem:[%s4055_s0 + $0x308] sm:$0xf]  ;;  %v394_v51 = vld [vmem:[%s4055_s0 + $0x604] sm:$0xf]  ;;  %v2509_v53 = vsel %vm441_vm0, %v346_v31, 4286644096  ;;  %v778_v62 = vmax.bf16 %v776_v41, %v774_v48  ;;  %v695_v6 = vmax.bf16 %v693_v5, %v691_v54 }
  0x2e   :  { %v780_v56 = vsel %vm441_vm0, %v76_v17, 4286644096  ;;  %v124_v57 = vld [vmem:[%s4055_s0 + $0x1cc] sm:$0xf]  ;;  %v219_v58 = vld [vmem:[%s4055_s0 + $0x348] sm:$0xf]  ;;  %v612_v25 = vmax.bf16 %v2448_v14, %v608_v10  ;;  %v525_v31 = vmax.bf16 %v2366_v28, %v521_v8 }
  0x2f   :  { %v410_v59 = vld [vmem:[%s4055_s0 + $0x644] sm:$0xf]  ;;  %v2522_v11 = vsel %vm441_vm0, %v362_v36, 4286644096  ;;  %v697_v61 = vsel %vm441_vm0, %v171_v3, 4286644096  ;;  %v782_v16 = vmax.bf16 %v780_v56, %v778_v62 }
  0x30   :  { %v426_v0 = vld [vmem:[%s4055_s0 + $0x684] sm:$0xf]  ;;  %v2530_v2 = vsel %vm441_vm0, %v378_v45, 4286644096  ;;  %v784_v9 = vsel %vm441_vm0, %v92_v30, 4286644096  ;;  %v699_v3 = vmax.bf16 %v697_v61, %v695_v6 }
  0x31   :  { %v140_v7 = vld [vmem:[%s4055_s0 + $0x20c] sm:$0xf]  ;;  %v235_v63 = vld [vmem:[%s4055_s0 + $0x388] sm:$0xf]  ;;  %v2540_v13 = vsel %vm441_vm0, %v394_v51, 4286644096  ;;  %v786_v30 = vmax.bf16 %v784_v9, %v782_v16 }
  0x32   :  { %v701_v12 = vsel %vm441_vm0, %v187_v35, 4286644096  ;;  %v13_v17 = vld [vmem:[%s4055_s0 + $0x10] sm:$0xf]  ;;  %v251_v20 = vld [vmem:[%s4055_s0 + $0x3c8] sm:$0xf]  ;;  %v616_v35 = vmax.bf16 %v2451_v15, %v612_v25 }
  0x33   :  { %v29_v18 = vld [vmem:[%s4055_s0 + $0x50] sm:$0xf]  ;;  %v2554_v21 = vsel %vm441_vm0, %v410_v59, 4286644096  ;;  %v788_v22 = vsel %vm441_vm0, %v108_v44, 4286644096  ;;  %v703_v32 = vmax.bf16 %v701_v12, %v699_v3  ;;  %v529_v44 = vmax.bf16 %v2369_v29, %v525_v31 }
  0x34   :  { %v156_v24 = vld [vmem:[%s4055_s0 + $0x24c] sm:$0xf]  ;;  %v2562_v26 = vsel %vm441_vm0, %v426_v0, 4286644096  ;;  %v705_v27 = vsel %vm441_vm0, %v203_v49, 4286644096  ;;  %v790_v40 = vmax.bf16 %v788_v22, %v786_v30  ;;  %v620_v48 = vmax.bf16 %v2457_v19, %v616_v35 }
  0x35   :  { %v45_v23 = vld [vmem:[%s4055_s0 + $0x90] sm:$0xf]  ;;  %v709_v34 = vsel %vm441_vm0, %v219_v58, 4286644096  ;;  %v792_v4 = vsel %vm441_vm0, %v124_v57, 4286644096  ;;  %v707_v45 = vmax.bf16 %v705_v27, %v703_v32  ;;  %v533_v56 = vmax.bf16 %v2385_v37, %v529_v44 }
  0x36   :  { %v61_v14 = vld [vmem:[%s4055_s0 + $0xd0] sm:$0xf]  ;;  %v713_v36 = vsel %vm441_vm0, %v235_v63, 4286644096  ;;  %v717_v38 = vsel %vm441_vm0, %v251_v20, 4286644096  ;;  %v794_v49 = vmax.bf16 %v792_v4, %v790_v40  ;;  %v624_v60 = vmax.bf16 %v2477_v33, %v620_v48 }
  0x37   :  { %v77_v28 = vld [vmem:[%s4055_s0 + $0x110] sm:$0xf]  ;;  %v267_v41 = vld [vmem:[%s4055_s0 + $0x408] sm:$0xf]  ;;  %v796_v46 = vsel %vm441_vm0, %v140_v7, 4286644096  ;;  %v711_v57 = vmax.bf16 %v709_v34, %v707_v45  ;;  %v537_v6 = vmax.bf16 %v2395_v42, %v533_v56 }
  0x38   :  { %v800_v15 = vsel %vm441_vm0, %v156_v24, 4286644096  ;;  %v172_v5 = vld [vmem:[%s4055_s0 + $0x28c] sm:$0xf]  ;;  %v872_v51 = vsel %vm441_vm0, %v13_v17, 4286644096  ;;  %v798_v62 = vmax.bf16 %v796_v46, %v794_v49  ;;  %v628_v10 = vmax.bf16 %v2488_v39, %v624_v60 }
  0x39   :  { %v875_v52 = vsel %vm441_vm0, %v29_v18, 4286644096  ;;  %v93_v29 = vld [vmem:[%s4055_s0 + $0x150] sm:$0xf]  ;;  %v283_v54 = vld [vmem:[%s4055_s0 + $0x448] sm:$0xf]  ;;  %v715_v9 = vmax.bf16 %v713_v36, %v711_v57  ;;  %v541_v20 = vmax.bf16 %v2398_v43, %v537_v6 }
  0x3a   :  { %v877_v58 = vmax.bf16 %v875_v52, %v872_v51  ;;  %v879_v59 = vsel %vm441_vm0, %v45_v23, 4286644096  ;;  %v188_v19 = vld [vmem:[%s4055_s0 + $0x2cc] sm:$0xf]  ;;  %v721_v61 = vsel %vm441_vm0, %v267_v41, 4286644096  ;;  %v802_v16 = vmax.bf16 %v800_v15, %v798_v62 }
  0x3b   :  { %v883_v0 = vsel %vm441_vm0, %v61_v14, 4286644096  ;;  %v109_v1 = vld [vmem:[%s4055_s0 + $0x190] sm:$0xf]  ;;  %v299_v37 = vld [vmem:[%s4055_s0 + $0x488] sm:$0xf]  ;;  %v719_v8 = vmax.bf16 %v717_v38, %v715_v9  ;;  %v632_v24 = vmax.bf16 %v2498_v47, %v628_v10  ;;  %v545_v32 = vmax.bf16 %v2411_v50, %v541_v20 }
  0x3c   :  { %v804_v7 = vsel %vm441_vm0, %v172_v5, 4286644096  ;;  %v881_v63 = vmax.bf16 %v879_v59, %v877_v58  ;;  %v204_v33 = vld [vmem:[%s4055_s0 + $0x30c] sm:$0xf]  ;;  %v725_v12 = vsel %vm441_vm0, %v283_v54, 4286644096 }
  0x3d   :  { %v887_v17 = vsel %vm441_vm0, %v77_v28, 4286644096  ;;  %v125_v18 = vld [vmem:[%s4055_s0 + $0x1d0] sm:$0xf]  ;;  %v315_v42 = vld [vmem:[%s4055_s0 + $0x4c8] sm:$0xf]  ;;  %v806_v27 = vmax.bf16 %v804_v7, %v802_v16  ;;  %v723_v47 = vmax.bf16 %v721_v61, %v719_v8  ;;  %v636_v35 = vmax.bf16 %v2509_v53, %v632_v24 }
  0x3e   :  { %v808_v3 = vsel %vm441_vm0, %v188_v19, 4286644096  ;;  %v885_v22 = vmax.bf16 %v883_v0, %v881_v63  ;;  %v220_v39 = vld [vmem:[%s4055_s0 + $0x34c] sm:$0xf]  ;;  %v729_v25 = vsel %vm441_vm0, %v299_v37, 4286644096  ;;  %v549_v44 = vmax.bf16 %v2421_v55, %v545_v32 }
  0x3f   :  { %v891_v30 = vsel %vm441_vm0, %v93_v29, 4286644096  ;;  %v141_v23 = vld [vmem:[%s4055_s0 + $0x210] sm:$0xf]  ;;  %v236_v43 = vld [vmem:[%s4055_s0 + $0x38c] sm:$0xf]  ;;  %v810_v38 = vmax.bf16 %v808_v3, %v806_v27  ;;  %v727_v53 = vmax.bf16 %v725_v12, %v723_v47  ;;  %v640_v48 = vmax.bf16 %v2522_v11, %v636_v35 }
  0x40   :  { %v331_v31 = vld [vmem:[%s4055_s0 + $0x508] sm:$0xf]  ;;  %v812_v34 = vsel %vm441_vm0, %v204_v33, 4286644096  ;;  %v889_v4 = vmax.bf16 %v887_v17, %v885_v22  ;;  %v733_v36 = vsel %vm441_vm0, %v315_v42, 4286644096 }
  0x41   :  { %v347_v14 = vld [vmem:[%s4055_s0 + $0x548] sm:$0xf]  ;;  %v895_v40 = vsel %vm441_vm0, %v109_v1, 4286644096  ;;  %v157_v28 = vld [vmem:[%s4055_s0 + $0x250] sm:$0xf]  ;;  %v814_v51 = vmax.bf16 %v812_v34, %v810_v38  ;;  %v731_v56 = vmax.bf16 %v729_v25, %v727_v53  ;;  %v644_v60 = vmax.bf16 %v2530_v2, %v640_v48 }
  0x42   :  { %v252_v50 = vld [vmem:[%s4055_s0 + $0x3cc] sm:$0xf]  ;;  %v363_v41 = vld [vmem:[%s4055_s0 + $0x588] sm:$0xf]  ;;  %v816_v45 = vsel %vm441_vm0, %v220_v39, 4286644096  ;;  %v893_v46 = vmax.bf16 %v891_v30, %v889_v4 }
  0x43   :  { %v173_v15 = vld [vmem:[%s4055_s0 + $0x290] sm:$0xf]  ;;  %v379_v5 = vld [vmem:[%s4055_s0 + $0x5c8] sm:$0xf]  ;;  %v737_v49 = vsel %vm441_vm0, %v331_v31, 4286644096  ;;  %v818_v62 = vmax.bf16 %v816_v45, %v814_v51  ;;  %v735_v37 = vmax.bf16 %v733_v36, %v731_v56  ;;  %v648_v2 = vmax.bf16 %v2540_v13, %v644_v60 }
  0x44   :  { %v899_v52 = vsel %vm441_vm0, %v125_v18, 4286644096  ;;  %v14_v55 = vld [vmem:[%s4055_s0 + $0x14] sm:$0xf]  ;;  %v268_v54 = vld [vmem:[%s4055_s0 + $0x40c] sm:$0xf]  ;;  %v897_v58 = vmax.bf16 %v895_v40, %v893_v46 }
  0x45   :  { %v30_v29 = vld [vmem:[%s4055_s0 + $0x54] sm:$0xf]  ;;  %v741_v11 = vsel %vm441_vm0, %v347_v14, 4286644096  ;;  %v820_v57 = vsel %vm441_vm0, %v236_v43, 4286644096  ;;  %v739_v18 = vmax.bf16 %v737_v49, %v735_v37  ;;  %v652_v3 = vmax.bf16 %v2554_v21, %v648_v2 }
  0x46   :  { %2155 = vst.msk [vmem:[%s4056_s1] sm:$0xf] %vm441_vm0, %v549_v44  ;;  %v46_v59 = vld [vmem:[%s4055_s0 + $0x94] sm:$0xf]  ;;  %v284_v19 = vld [vmem:[%s4055_s0 + $0x44c] sm:$0xf]  ;;  %v901_v7 = vmax.bf16 %v899_v52, %v897_v58  ;;  %v822_v33 = vmax.bf16 %v820_v57, %v818_v62 }
  0x47   :  { %v745_v61 = vsel %vm441_vm0, %v363_v41, 4286644096  ;;  %v903_v0 = vsel %vm441_vm0, %v141_v23, 4286644096  ;;  %v62_v1 = vld [vmem:[%s4055_s0 + $0xd4] sm:$0xf]  ;;  %v743_v23 = vmax.bf16 %v741_v11, %v739_v18  ;;  %v656_v47 = vmax.bf16 %v2562_v26, %v652_v3 }
  0x48   :  { %v749_v6 = vsel %vm441_vm0, %v379_v5, 4286644096  ;;  %v824_v9 = vsel %vm441_vm0, %v252_v50, 4286644096  ;;  %v189_v63 = vld [vmem:[%s4055_s0 + $0x2d0] sm:$0xf]  ;;  %v905_v20 = vmax.bf16 %v903_v0, %v901_v7 }
  0x49   :  { %v828_v10 = vsel %vm441_vm0, %v268_v54, 4286644096  ;;  %v907_v12 = vsel %vm441_vm0, %v157_v28, 4286644096  ;;  %v78_v16 = vld [vmem:[%s4055_s0 + $0x114] sm:$0xf]  ;;  %v826_v22 = vmax.bf16 %v824_v9, %v822_v33  ;;  %v747_v40 = vmax.bf16 %v745_v61, %v743_v23 }
  0x4a   :  { %v205_v17 = vld [vmem:[%s4055_s0 + $0x310] sm:$0xf]  ;;  %v832_v42 = vsel %vm441_vm0, %v284_v19, 4286644096  ;;  %v911_v8 = vsel %vm441_vm0, %v173_v15, 4286644096  ;;  %v909_v43 = vmax.bf16 %v907_v12, %v905_v20 }
  0x4b   :  { %v300_v13 = vld [vmem:[%s4055_s0 + $0x48c] sm:$0xf]  ;;  %v979_v39 = vsel %vm441_vm0, %v14_v55, 4286644096  ;;  %v982_v24 = vsel %vm441_vm0, %v30_v29, 4286644096  ;;  %v830_v34 = vmax.bf16 %v828_v10, %v826_v22  ;;  %v751_v51 = vmax.bf16 %v749_v6, %v747_v40 }
  0x4c   :  { %v94_v25 = vld [vmem:[%s4055_s0 + $0x154] sm:$0xf]  ;;  %v221_v27 = vld [vmem:[%s4055_s0 + $0x350] sm:$0xf]  ;;  %v395_v30 = vld [vmem:[%s4055_s0 + $0x608] sm:$0xf]  ;;  %v984_v21 = vmax.bf16 %v982_v24, %v979_v39  ;;  %v913_v50 = vmax.bf16 %v911_v8, %v909_v43 }
  0x4d   :  { %v986_v31 = vsel %vm441_vm0, %v46_v59, 4286644096  ;;  %v316_v32 = vld [vmem:[%s4055_s0 + $0x4cc] sm:$0xf]  ;;  %v915_v4 = vsel %vm441_vm0, %v189_v63, 4286644096  ;;  %v834_v53 = vmax.bf16 %v832_v42, %v830_v34 }
  0x4e   :  { %v990_v14 = vsel %vm441_vm0, %v62_v1, 4286644096  ;;  %v110_v35 = vld [vmem:[%s4055_s0 + $0x194] sm:$0xf]  ;;  %v237_v36 = vld [vmem:[%s4055_s0 + $0x390] sm:$0xf]  ;;  %v988_v41 = vmax.bf16 %v986_v31, %v984_v21  ;;  %v917_v55 = vmax.bf16 %v915_v4, %v913_v50 }
  0x4f   :  { %v332_v38 = vld [vmem:[%s4055_s0 + $0x50c] sm:$0xf]  ;;  %v411_v26 = vld [vmem:[%s4055_s0 + $0x648] sm:$0xf]  ;;  %v836_v28 = vsel %vm441_vm0, %v300_v13, 4286644096 }
  0x50   :  { %v753_v44 = vsel %vm441_vm0, %v395_v30, 4286644096  ;;  %v919_v45 = vsel %vm441_vm0, %v205_v17, 4286644096  ;;  %v994_v46 = vsel %vm441_vm0, %v78_v16, 4286644096  ;;  %v992_v29 = vmax.bf16 %v990_v14, %v988_v41 }
  0x51   :  { %2156 = vst.msk [vmem:[%s4056_s1 + $0x4] sm:$0xf] %vm441_vm0, %v656_v47  ;;  %v126_v15 = vld [vmem:[%s4055_s0 + $0x1d4] sm:$0xf]  ;;  %v253_v5 = vld [vmem:[%s4055_s0 + $0x3d0] sm:$0xf]  ;;  %v838_v56 = vmax.bf16 %v836_v28, %v834_v53  ;;  %v755_v61 = vmax.bf16 %v753_v44, %v751_v51  ;;  %v921_v0 = vmax.bf16 %v919_v45, %v917_v55 }
  0x52   :  { %v348_v48 = vld [vmem:[%s4055_s0 + $0x54c] sm:$0xf]  ;;  %v427_v49 = vld [vmem:[%s4055_s0 + $0x688] sm:$0xf]  ;;  %v840_v52 = vsel %vm441_vm0, %v316_v32, 4286644096  ;;  %v996_v1 = vmax.bf16 %v994_v46, %v992_v29 }
  0x53   :  { %v757_v54 = vsel %vm441_vm0, %v411_v26, 4286644096  ;;  %v923_v11 = vsel %vm441_vm0, %v221_v27, 4286644096  ;;  %v998_v57 = vsel %vm441_vm0, %v94_v25, 4286644096  ;;  %v842_v9 = vmax.bf16 %v840_v52, %v838_v56 }
  0x54   :  { %v142_v58 = vld [vmem:[%s4055_s0 + $0x214] sm:$0xf]  ;;  %v269_v59 = vld [vmem:[%s4055_s0 + $0x410] sm:$0xf]  ;;  %v364_v19 = vld [vmem:[%s4055_s0 + $0x58c] sm:$0xf]  ;;  %v759_v17 = vmax.bf16 %v757_v54, %v755_v61  ;;  %v925_v42 = vmax.bf16 %v923_v11, %v921_v0  ;;  %v1000_v20 = vmax.bf16 %v998_v57, %v996_v1 }
  0x55   :  { %v380_v60 = vld [vmem:[%s4055_s0 + $0x5cc] sm:$0xf]  ;;  %v844_v62 = vsel %vm441_vm0, %v332_v38, 4286644096  ;;  %v158_v37 = vld [vmem:[%s4055_s0 + $0x254] sm:$0xf] }
  0x56   :  { %v761_v6 = vsel %vm441_vm0, %v427_v49, 4286644096  ;;  %v927_v7 = vsel %vm441_vm0, %v237_v36, 4286644096  ;;  %v1002_v63 = vsel %vm441_vm0, %v110_v35, 4286644096  ;;  %v846_v8 = vmax.bf16 %v844_v62, %v842_v9 }
  0x57   :  { %v15_v2 = vld [vmem:[%s4055_s0 + $0x18] sm:$0xf]  ;;  %v285_v12 = vld [vmem:[%s4055_s0 + $0x450] sm:$0xf]  ;;  %v396_v16 = vld [vmem:[%s4055_s0 + $0x60c] sm:$0xf]  ;;  %v763_v30 = vmax.bf16 %v761_v6, %v759_v17  ;;  %v929_v43 = vmax.bf16 %v927_v7, %v925_v42  ;;  %v1004_v21 = vmax.bf16 %v1002_v63, %v1000_v20 }
  0x58   :  { %v31_v33 = vld [vmem:[%s4055_s0 + $0x58] sm:$0xf]  ;;  %v848_v18 = vsel %vm441_vm0, %v348_v48, 4286644096  ;;  %v852_v13 = vsel %vm441_vm0, %v364_v19, 4286644096 }
  0x59   :  { %v47_v10 = vld [vmem:[%s4055_s0 + $0x98] sm:$0xf]  ;;  %v931_v3 = vsel %vm441_vm0, %v253_v5, 4286644096  ;;  %v1006_v22 = vsel %vm441_vm0, %v126_v15, 4286644096  ;;  %v850_v31 = vmax.bf16 %v848_v18, %v846_v8 }
  0x5a   :  { %v63_v39 = vld [vmem:[%s4055_s0 + $0xd8] sm:$0xf]  ;;  %v174_v24 = vld [vmem:[%s4055_s0 + $0x294] sm:$0xf]  ;;  %v301_v25 = vld [vmem:[%s4055_s0 + $0x490] sm:$0xf]  ;;  %v933_v36 = vmax.bf16 %v931_v3, %v929_v43  ;;  %v1008_v26 = vmax.bf16 %v1006_v22, %v1004_v21 }
  0x5b   :  { %v412_v27 = vld [vmem:[%s4055_s0 + $0x64c] sm:$0xf]  ;;  %v856_v23 = vsel %vm441_vm0, %v380_v60, 4286644096  ;;  %v860_v32 = vsel %vm441_vm0, %v396_v16, 4286644096  ;;  %v854_v28 = vmax.bf16 %v852_v13, %v850_v31 }
  0x5c   :  { %v935_v47 = vsel %vm441_vm0, %v269_v59, 4286644096  ;;  %v1010_v34 = vsel %vm441_vm0, %v142_v58, 4286644096  ;;  %v79_v4 = vld [vmem:[%s4055_s0 + $0x118] sm:$0xf] }
  0x5d   :  { %v190_v14 = vld [vmem:[%s4055_s0 + $0x2d4] sm:$0xf]  ;;  %v428_v35 = vld [vmem:[%s4055_s0 + $0x68c] sm:$0xf]  ;;  %v939_v38 = vsel %vm441_vm0, %v285_v12, 4286644096  ;;  %v937_v48 = vmax.bf16 %v935_v47, %v933_v36  ;;  %v1012_v49 = vmax.bf16 %v1010_v34, %v1008_v26  ;;  %v858_v52 = vmax.bf16 %v856_v23, %v854_v28 }
  0x5e   :  { %v1014_v40 = vsel %vm441_vm0, %v158_v37, 4286644096  ;;  %2157 = vst.msk [vmem:[%s4056_s1 + $0x8] sm:$0xf] %vm441_vm0, %v763_v30  ;;  %v1086_v50 = vsel %vm441_vm0, %v15_v2, 4286644096 }
  0x5f   :  { %v1089_v41 = vsel %vm441_vm0, %v31_v33, 4286644096  ;;  %v1093_v44 = vsel %vm441_vm0, %v47_v10, 4286644096  ;;  %v95_v53 = vld [vmem:[%s4055_s0 + $0x158] sm:$0xf]  ;;  %v941_v19 = vmax.bf16 %v939_v38, %v937_v48  ;;  %v1016_v60 = vmax.bf16 %v1014_v40, %v1012_v49 }
  0x60   :  { %v206_v45 = vld [vmem:[%s4055_s0 + $0x314] sm:$0xf]  ;;  %v317_v46 = vld [vmem:[%s4055_s0 + $0x4d0] sm:$0xf]  ;;  %v864_v5 = vsel %vm441_vm0, %v412_v27, 4286644096  ;;  %v1091_v51 = vmax.bf16 %v1089_v41, %v1086_v50  ;;  %v862_v62 = vmax.bf16 %v860_v32, %v858_v52 }
  0x61   :  { %v333_v15 = vld [vmem:[%s4055_s0 + $0x510] sm:$0xf]  ;;  %v943_v55 = vsel %vm441_vm0, %v301_v25, 4286644096  ;;  %v1018_v29 = vsel %vm441_vm0, %v174_v24, 4286644096 }
  0x62   :  { %v1097_v54 = vsel %vm441_vm0, %v63_v39, 4286644096  ;;  %v111_v56 = vld [vmem:[%s4055_s0 + $0x198] sm:$0xf]  ;;  %v222_v11 = vld [vmem:[%s4055_s0 + $0x354] sm:$0xf]  ;;  %v1095_v61 = vmax.bf16 %v1093_v44, %v1091_v51  ;;  %v945_v2 = vmax.bf16 %v943_v55, %v941_v19  ;;  %v1020_v10 = vmax.bf16 %v1018_v29, %v1016_v60 }
  0x63   :  { %v349_v57 = vld [vmem:[%s4055_s0 + $0x550] sm:$0xf]  ;;  %v868_v59 = vsel %vm441_vm0, %v428_v35, 4286644096  ;;  %v947_v0 = vsel %vm441_vm0, %v317_v46, 4286644096  ;;  %v866_v16 = vmax.bf16 %v864_v5, %v862_v62 }
  0x64   :  { %v365_v58 = vld [vmem:[%s4055_s0 + $0x590] sm:$0xf]  ;;  %v1022_v1 = vsel %vm441_vm0, %v190_v14, 4286644096  ;;  %v1101_v37 = vsel %vm441_vm0, %v79_v4, 4286644096  ;;  %v1099_v12 = vmax.bf16 %v1097_v54, %v1095_v61  ;;  %v949_v3 = vmax.bf16 %v947_v0, %v945_v2 }
  0x65   :  { %v127_v6 = vld [vmem:[%s4055_s0 + $0x1d8] sm:$0xf]  ;;  %v238_v9 = vld [vmem:[%s4055_s0 + $0x394] sm:$0xf]  ;;  %v381_v7 = vld [vmem:[%s4055_s0 + $0x5d0] sm:$0xf]  ;;  %v1024_v39 = vmax.bf16 %v1022_v1, %v1020_v10  ;;  %v870_v27 = vmax.bf16 %v868_v59, %v866_v16 }
  0x66   :  { %v397_v63 = vld [vmem:[%s4055_s0 + $0x610] sm:$0xf]  ;;  %v951_v33 = vsel %vm441_vm0, %v333_v15, 4286644096  ;;  %v955_v17 = vsel %vm441_vm0, %v349_v57, 4286644096  ;;  %v1103_v24 = vmax.bf16 %v1101_v37, %v1099_v12 }
  0x67   :  { %v1026_v18 = vsel %vm441_vm0, %v206_v45, 4286644096  ;;  %v1105_v42 = vsel %vm441_vm0, %v95_v53, 4286644096  ;;  %v143_v20 = vld [vmem:[%s4055_s0 + $0x218] sm:$0xf]  ;;  %v953_v34 = vmax.bf16 %v951_v33, %v949_v3 }
  0x68   :  { %v413_v8 = vld [vmem:[%s4055_s0 + $0x650] sm:$0xf]  ;;  %v959_v22 = vsel %vm441_vm0, %v365_v58, 4286644096  ;;  %v16_v25 = vld [vmem:[%s4055_s0 + $0x1c] sm:$0xf]  ;;  %v1028_v14 = vmax.bf16 %v1026_v18, %v1024_v39  ;;  %v1107_v35 = vmax.bf16 %v1105_v42, %v1103_v24 }
  0x69   :  { %v429_v13 = vld [vmem:[%s4055_s0 + $0x690] sm:$0xf]  ;;  %v963_v30 = vsel %vm441_vm0, %v381_v7, 4286644096  ;;  %v1030_v23 = vsel %vm441_vm0, %v222_v11, 4286644096  ;;  %v957_v50 = vmax.bf16 %v955_v17, %v953_v34 }
  0x6a   :  { %v1109_v43 = vsel %vm441_vm0, %v111_v56, 4286644096  ;;  %v32_v21 = vld [vmem:[%s4055_s0 + $0x5c] sm:$0xf]  ;;  %v254_v32 = vld [vmem:[%s4055_s0 + $0x3d4] sm:$0xf]  ;;  %v1032_v44 = vmax.bf16 %v1030_v23, %v1028_v14 }
  0x6b   :  { %v48_v31 = vld [vmem:[%s4055_s0 + $0x9c] sm:$0xf]  ;;  %v270_v47 = vld [vmem:[%s4055_s0 + $0x414] sm:$0xf]  ;;  %v967_v4 = vsel %vm441_vm0, %v397_v63, 4286644096  ;;  %v1111_v53 = vmax.bf16 %v1109_v43, %v1107_v35  ;;  %v961_v51 = vmax.bf16 %v959_v22, %v957_v50 }
  0x6c   :  { %v971_v36 = vsel %vm441_vm0, %v413_v8, 4286644096  ;;  %v1034_v38 = vsel %vm441_vm0, %v238_v9, 4286644096  ;;  %v1113_v26 = vsel %vm441_vm0, %v127_v6, 4286644096 }
  0x6d   :  { %2158 = vst.msk [vmem:[%s4056_s1 + $0xc] sm:$0xf] %vm441_vm0, %v870_v27  ;;  %v64_v40 = vld [vmem:[%s4055_s0 + $0xdc] sm:$0xf]  ;;  %v159_v28 = vld [vmem:[%s4055_s0 + $0x258] sm:$0xf]  ;;  %v1036_v52 = vmax.bf16 %v1034_v38, %v1032_v44  ;;  %v1115_v55 = vmax.bf16 %v1113_v26, %v1111_v53  ;;  %v965_v19 = vmax.bf16 %v963_v30, %v961_v51 }
  0x6e   :  { %v975_v41 = vsel %vm441_vm0, %v429_v13, 4286644096  ;;  %v1038_v45 = vsel %vm441_vm0, %v254_v32, 4286644096  ;;  %v1042_v46 = vsel %vm441_vm0, %v270_v47, 4286644096 }
  0x6f   :  { %v1117_v15 = vsel %vm441_vm0, %v143_v20, 4286644096  ;;  %v80_v5 = vld [vmem:[%s4055_s0 + $0x11c] sm:$0xf]  ;;  %v175_v48 = vld [vmem:[%s4055_s0 + $0x298] sm:$0xf]  ;;  %v1040_v60 = vmax.bf16 %v1038_v45, %v1036_v52  ;;  %v969_v63 = vmax.bf16 %v967_v4, %v965_v19 }
  0x70   :  { %v286_v49 = vld [vmem:[%s4055_s0 + $0x454] sm:$0xf]  ;;  %v1193_v29 = vsel %vm441_vm0, %v16_v25, 4286644096  ;;  %v1121_v54 = vsel %vm441_vm0, %v159_v28, 4286644096  ;;  %v1119_v61 = vmax.bf16 %v1117_v15, %v1115_v55 }
  0x71   :  { %v1196_v56 = vsel %vm441_vm0, %v32_v21, 4286644096  ;;  %v1200_v11 = vsel %vm441_vm0, %v48_v31, 4286644096  ;;  %v96_v57 = vld [vmem:[%s4055_s0 + $0x15c] sm:$0xf]  ;;  %v1044_v2 = vmax.bf16 %v1042_v46, %v1040_v60  ;;  %v973_v8 = vmax.bf16 %v971_v36, %v969_v63 }
  0x72   :  { %v191_v58 = vld [vmem:[%s4055_s0 + $0x2d8] sm:$0xf]  ;;  %v302_v59 = vld [vmem:[%s4055_s0 + $0x494] sm:$0xf]  ;;  %v1198_v62 = vmax.bf16 %v1196_v56, %v1193_v29  ;;  %v1046_v0 = vsel %vm441_vm0, %v286_v49, 4286644096  ;;  %v1123_v33 = vmax.bf16 %v1121_v54, %v1119_v61 }
  0x73   :  { %v1125_v1 = vsel %vm441_vm0, %v175_v48, 4286644096  ;;  %v1204_v37 = vsel %vm441_vm0, %v64_v40, 4286644096  ;;  %v112_v6 = vld [vmem:[%s4055_s0 + $0x19c] sm:$0xf]  ;;  %v1048_v13 = vmax.bf16 %v1046_v0, %v1044_v2  ;;  %v977_v21 = vmax.bf16 %v975_v41, %v973_v8 }
  0x74   :  { %v207_v9 = vld [vmem:[%s4055_s0 + $0x318] sm:$0xf]  ;;  %v318_v7 = vld [vmem:[%s4055_s0 + $0x4d4] sm:$0xf]  ;;  %v1202_v10 = vmax.bf16 %v1200_v11, %v1198_v62  ;;  %v1050_v12 = vsel %vm441_vm0, %v302_v59, 4286644096  ;;  %v1127_v3 = vmax.bf16 %v1125_v1, %v1123_v33 }
  0x75   :  { %v1129_v16 = vsel %vm441_vm0, %v191_v58, 4286644096  ;;  %v1208_v17 = vsel %vm441_vm0, %v80_v5, 4286644096  ;;  %v128_v18 = vld [vmem:[%s4055_s0 + $0x1dc] sm:$0xf]  ;;  %v1052_v31 = vmax.bf16 %v1050_v12, %v1048_v13 }
  0x76   :  { %v223_v42 = vld [vmem:[%s4055_s0 + $0x358] sm:$0xf]  ;;  %v334_v20 = vld [vmem:[%s4055_s0 + $0x514] sm:$0xf]  ;;  %v1206_v22 = vmax.bf16 %v1204_v37, %v1202_v10  ;;  %v1054_v39 = vsel %vm441_vm0, %v318_v7, 4286644096  ;;  %v1131_v32 = vmax.bf16 %v1129_v16, %v1127_v3 }
  0x77   :  { %v1133_v24 = vsel %vm441_vm0, %v207_v9, 4286644096  ;;  %v1212_v25 = vsel %vm441_vm0, %v96_v57, 4286644096  ;;  %v144_v27 = vld [vmem:[%s4055_s0 + $0x21c] sm:$0xf]  ;;  %v1056_v28 = vmax.bf16 %v1054_v39, %v1052_v31 }
  0x78   :  { %v239_v30 = vld [vmem:[%s4055_s0 + $0x398] sm:$0xf]  ;;  %v350_v23 = vld [vmem:[%s4055_s0 + $0x554] sm:$0xf]  ;;  %v1210_v47 = vmax.bf16 %v1208_v17, %v1206_v22  ;;  %v1058_v34 = vsel %vm441_vm0, %v334_v20, 4286644096  ;;  %v1135_v50 = vmax.bf16 %v1133_v24, %v1131_v32 }
  0x79   :  { %v366_v43 = vld [vmem:[%s4055_s0 + $0x594] sm:$0xf]  ;;  %v1137_v4 = vsel %vm441_vm0, %v223_v42, 4286644096  ;;  %v1216_v14 = vsel %vm441_vm0, %v112_v6, 4286644096  ;;  %v1060_v49 = vmax.bf16 %v1058_v34, %v1056_v28 }
  0x7a   :  { %v17_v35 = vld [vmem:[%s4055_s0 + $0x20] sm:$0xf]  ;;  %v160_v36 = vld [vmem:[%s4055_s0 + $0x25c] sm:$0xf]  ;;  %v255_v38 = vld [vmem:[%s4055_s0 + $0x3d8] sm:$0xf]  ;;  %v1214_v41 = vmax.bf16 %v1212_v25, %v1210_v47  ;;  %v1139_v52 = vmax.bf16 %v1137_v4, %v1135_v50 }
  0x7b   :  { %v382_v26 = vld [vmem:[%s4055_s0 + $0x5d4] sm:$0xf]  ;;  %2159 = vst.msk [vmem:[%s4056_s1 + $0x10] sm:$0xf] %vm441_vm0, %v977_v21  ;;  %v33_v44 = vld [vmem:[%s4055_s0 + $0x60] sm:$0xf] }
  0x7c   :  { %v398_v40 = vld [vmem:[%s4055_s0 + $0x614] sm:$0xf]  ;;  %v1062_v53 = vsel %vm441_vm0, %v350_v23, 4286644096  ;;  %v1141_v45 = vsel %vm441_vm0, %v239_v30, 4286644096  ;;  %v1218_v55 = vmax.bf16 %v1216_v14, %v1214_v41 }
  0x7d   :  { %v1220_v46 = vsel %vm441_vm0, %v128_v18, 4286644096  ;;  %v49_v15 = vld [vmem:[%s4055_s0 + $0xa0] sm:$0xf]  ;;  %v176_v5 = vld [vmem:[%s4055_s0 + $0x29c] sm:$0xf]  ;;  %v1064_v59 = vmax.bf16 %v1062_v53, %v1060_v49  ;;  %v1143_v60 = vmax.bf16 %v1141_v45, %v1139_v52 }
  0x7e   :  { %v271_v48 = vld [vmem:[%s4055_s0 + $0x418] sm:$0xf]  ;;  %v1066_v51 = vsel %vm441_vm0, %v366_v43, 4286644096  ;;  %v65_v29 = vld [vmem:[%s4055_s0 + $0xe0] sm:$0xf]  ;;  %v1222_v61 = vmax.bf16 %v1220_v46, %v1218_v55 }
  0x7f   :  { %v1070_v54 = vsel %vm441_vm0, %v382_v26, 4286644096  ;;  %v1145_v56 = vsel %vm441_vm0, %v255_v38, 4286644096  ;;  %v1224_v11 = vsel %vm441_vm0, %v144_v27, 4286644096  ;;  %v1068_v63 = vmax.bf16 %v1066_v51, %v1064_v59 }
  0x80   :  { %v192_v57 = vld [vmem:[%s4055_s0 + $0x2dc] sm:$0xf]  ;;  %v287_v58 = vld [vmem:[%s4055_s0 + $0x458] sm:$0xf]  ;;  %v1074_v19 = vsel %vm441_vm0, %v398_v40, 4286644096  ;;  %v1147_v2 = vmax.bf16 %v1145_v56, %v1143_v60  ;;  %v1226_v33 = vmax.bf16 %v1224_v11, %v1222_v61 }
  0x81   :  { %v81_v62 = vld [vmem:[%s4055_s0 + $0x120] sm:$0xf]  ;;  %v1149_v0 = vsel %vm441_vm0, %v271_v48, 4286644096  ;;  %v1228_v1 = vsel %vm441_vm0, %v160_v36, 4286644096  ;;  %v1072_v13 = vmax.bf16 %v1070_v54, %v1068_v63 }
  0x82   :  { %v1300_v37 = vsel %vm441_vm0, %v17_v35, 4286644096  ;;  %v208_v6 = vld [vmem:[%s4055_s0 + $0x31c] sm:$0xf]  ;;  %v303_v9 = vld [vmem:[%s4055_s0 + $0x498] sm:$0xf]  ;;  %v1151_v3 = vmax.bf16 %v1149_v0, %v1147_v2  ;;  %v1230_v22 = vmax.bf16 %v1228_v1, %v1226_v33 }
  0x83   :  { %v414_v7 = vld [vmem:[%s4055_s0 + $0x654] sm:$0xf]  ;;  %v1303_v10 = vsel %vm441_vm0, %v33_v44, 4286644096  ;;  %v97_v12 = vld [vmem:[%s4055_s0 + $0x160] sm:$0xf]  ;;  %v1076_v31 = vmax.bf16 %v1074_v19, %v1072_v13 }
  0x84   :  { %v1153_v16 = vsel %vm441_vm0, %v287_v58, 4286644096  ;;  %v1232_v17 = vsel %vm441_vm0, %v176_v5, 4286644096  ;;  %v1305_v18 = vmax.bf16 %v1303_v10, %v1300_v37  ;;  %v1307_v42 = vsel %vm441_vm0, %v49_v15, 4286644096 }
  0x85   :  { %v319_v20 = vld [vmem:[%s4055_s0 + $0x4d8] sm:$0xf]  ;;  %v430_v8 = vld [vmem:[%s4055_s0 + $0x694] sm:$0xf]  ;;  %v1311_v39 = vsel %vm441_vm0, %v65_v29, 4286644096  ;;  %v1155_v32 = vmax.bf16 %v1153_v16, %v1151_v3  ;;  %v1234_v47 = vmax.bf16 %v1232_v17, %v1230_v22 }
  0x86   :  { %v113_v24 = vld [vmem:[%s4055_s0 + $0x1a0] sm:$0xf]  ;;  %v1078_v25 = vsel %vm441_vm0, %v414_v7, 4286644096  ;;  %v1157_v27 = vsel %vm441_vm0, %v303_v9, 4286644096  ;;  %v1309_v23 = vmax.bf16 %v1307_v42, %v1305_v18 }
  0x87   :  { %v1236_v30 = vsel %vm441_vm0, %v192_v57, 4286644096  ;;  %v224_v43 = vld [vmem:[%s4055_s0 + $0x35c] sm:$0xf]  ;;  %v335_v21 = vld [vmem:[%s4055_s0 + $0x518] sm:$0xf]  ;;  %v1080_v28 = vmax.bf16 %v1078_v25, %v1076_v31  ;;  %v1159_v50 = vmax.bf16 %v1157_v27, %v1155_v32 }
  0x88   :  { %v1315_v34 = vsel %vm441_vm0, %v81_v62, 4286644096  ;;  %v129_v4 = vld [vmem:[%s4055_s0 + $0x1e0] sm:$0xf]  ;;  %v1082_v14 = vsel %vm441_vm0, %v430_v8, 4286644096  ;;  %v1313_v38 = vmax.bf16 %v1311_v39, %v1309_v23  ;;  %v1238_v41 = vmax.bf16 %v1236_v30, %v1234_v47 }
  0x89   :  { %v1161_v35 = vsel %vm441_vm0, %v319_v20, 4286644096  ;;  %v1240_v36 = vsel %vm441_vm0, %v208_v6, 4286644096  ;;  %v240_v26 = vld [vmem:[%s4055_s0 + $0x39c] sm:$0xf]  ;;  %v1084_v29 = vmax.bf16 %v1082_v14, %v1080_v28 }
  0x8a   :  { %v351_v40 = vld [vmem:[%s4055_s0 + $0x558] sm:$0xf]  ;;  %v1319_v44 = vsel %vm441_vm0, %v97_v12, 4286644096  ;;  %v18_v53 = vld [vmem:[%s4055_s0 + $0x24] sm:$0xf]  ;;  %v1317_v48 = vmax.bf16 %v1315_v34, %v1313_v38  ;;  %v1163_v54 = vmax.bf16 %v1161_v35, %v1159_v50  ;;  %v1242_v56 = vmax.bf16 %v1240_v36, %v1238_v41 }
  0x8b   :  { %v145_v45 = vld [vmem:[%s4055_s0 + $0x220] sm:$0xf]  ;;  %v256_v46 = vld [vmem:[%s4055_s0 + $0x3dc] sm:$0xf]  ;;  %v1165_v15 = vsel %vm441_vm0, %v335_v21, 4286644096 }
  0x8c   :  { %v1244_v5 = vsel %vm441_vm0, %v224_v43, 4286644096  ;;  %v34_v49 = vld [vmem:[%s4055_s0 + $0x64] sm:$0xf]  ;;  %v367_v52 = vld [vmem:[%s4055_s0 + $0x598] sm:$0xf]  ;;  %v1321_v19 = vmax.bf16 %v1319_v44, %v1317_v48  ;;  %v1167_v0 = vmax.bf16 %v1165_v15, %v1163_v54 }
  0x8d   :  { %v50_v51 = vld [vmem:[%s4055_s0 + $0xa4] sm:$0xf]  ;;  %v383_v55 = vld [vmem:[%s4055_s0 + $0x5d8] sm:$0xf]  ;;  %v1323_v11 = vsel %vm441_vm0, %v113_v24, 4286644096  ;;  %v1246_v1 = vmax.bf16 %v1244_v5, %v1242_v56 }
  0x8e   :  { %v161_v57 = vld [vmem:[%s4055_s0 + $0x260] sm:$0xf]  ;;  %v1169_v58 = vsel %vm441_vm0, %v351_v40, 4286644096  ;;  %v1248_v59 = vsel %vm441_vm0, %v240_v26, 4286644096  ;;  %v1325_v2 = vmax.bf16 %v1323_v11, %v1321_v19 }
  0x8f   :  { %v66_v60 = vld [vmem:[%s4055_s0 + $0xe4] sm:$0xf]  ;;  %v272_v61 = vld [vmem:[%s4055_s0 + $0x41c] sm:$0xf]  ;;  %v1327_v37 = vsel %vm441_vm0, %v129_v4, 4286644096  ;;  %v1171_v12 = vmax.bf16 %v1169_v58, %v1167_v0  ;;  %v1250_v16 = vmax.bf16 %v1248_v59, %v1246_v1 }
  0x90   :  { %v288_v62 = vld [vmem:[%s4055_s0 + $0x45c] sm:$0xf]  ;;  %2160 = vst.msk [vmem:[%s4056_s1 + $0x14] sm:$0xf] %vm441_vm0, %v1084_v29  ;;  %v177_v6 = vld [vmem:[%s4055_s0 + $0x2a0] sm:$0xf]  ;;  %v1329_v8 = vmax.bf16 %v1327_v37, %v1325_v2 }
  0x91   :  { %v1173_v9 = vsel %vm441_vm0, %v367_v52, 4286644096  ;;  %v1177_v7 = vsel %vm441_vm0, %v383_v55, 4286644096  ;;  %v1252_v63 = vsel %vm441_vm0, %v256_v46, 4286644096 }
  0x92   :  { %v82_v33 = vld [vmem:[%s4055_s0 + $0x124] sm:$0xf]  ;;  %v399_v10 = vld [vmem:[%s4055_s0 + $0x618] sm:$0xf]  ;;  %v1331_v17 = vsel %vm441_vm0, %v145_v45, 4286644096  ;;  %v1175_v25 = vmax.bf16 %v1173_v9, %v1171_v12  ;;  %v1254_v27 = vmax.bf16 %v1252_v63, %v1250_v16 }
  0x93   :  { %v1407_v18 = vsel %vm441_vm0, %v18_v53, 4286644096  ;;  %v193_v42 = vld [vmem:[%s4055_s0 + $0x2e0] sm:$0xf]  ;;  %v1256_v20 = vsel %vm441_vm0, %v272_v61, 4286644096  ;;  %v1333_v32 = vmax.bf16 %v1331_v17, %v1329_v8 }
  0x94   :  { %v1410_v13 = vsel %vm441_vm0, %v34_v49, 4286644096  ;;  %v1414_v3 = vsel %vm441_vm0, %v50_v51, 4286644096  ;;  %v98_v22 = vld [vmem:[%s4055_s0 + $0x164] sm:$0xf]  ;;  %v1179_v35 = vmax.bf16 %v1177_v7, %v1175_v25  ;;  %v1258_v36 = vmax.bf16 %v1256_v20, %v1254_v27 }
  0x95   :  { %v304_v39 = vld [vmem:[%s4055_s0 + $0x49c] sm:$0xf]  ;;  %v415_v24 = vld [vmem:[%s4055_s0 + $0x658] sm:$0xf]  ;;  %v1335_v30 = vsel %vm441_vm0, %v161_v57, 4286644096  ;;  %v1412_v23 = vmax.bf16 %v1410_v13, %v1407_v18 }
  0x96   :  { %v209_v43 = vld [vmem:[%s4055_s0 + $0x320] sm:$0xf]  ;;  %v1181_v21 = vsel %vm441_vm0, %v399_v10, 4286644096  ;;  %v1260_v31 = vsel %vm441_vm0, %v288_v62, 4286644096  ;;  %v1337_v41 = vmax.bf16 %v1335_v30, %v1333_v32 }
  0x97   :  { %v1418_v47 = vsel %vm441_vm0, %v66_v60, 4286644096  ;;  %v114_v34 = vld [vmem:[%s4055_s0 + $0x1a4] sm:$0xf]  ;;  %v320_v4 = vld [vmem:[%s4055_s0 + $0x4dc] sm:$0xf]  ;;  %v1416_v26 = vmax.bf16 %v1414_v3, %v1412_v23  ;;  %v1183_v15 = vmax.bf16 %v1181_v21, %v1179_v35  ;;  %v1262_v5 = vmax.bf16 %v1260_v31, %v1258_v36 }
  0x98   :  { %v431_v14 = vld [vmem:[%s4055_s0 + $0x698] sm:$0xf]  ;;  %v1339_v38 = vsel %vm441_vm0, %v177_v6, 4286644096  ;;  %v225_v40 = vld [vmem:[%s4055_s0 + $0x360] sm:$0xf] }
  0x99   :  { %v1185_v28 = vsel %vm441_vm0, %v415_v24, 4286644096  ;;  %v1264_v50 = vsel %vm441_vm0, %v304_v39, 4286644096  ;;  %v1422_v44 = vsel %vm441_vm0, %v82_v33, 4286644096  ;;  %v1420_v49 = vmax.bf16 %v1418_v47, %v1416_v26 }
  0x9a   :  { %v130_v53 = vld [vmem:[%s4055_s0 + $0x1e4] sm:$0xf]  ;;  %v336_v45 = vld [vmem:[%s4055_s0 + $0x51c] sm:$0xf]  ;;  %v1343_v48 = vsel %vm441_vm0, %v193_v42, 4286644096  ;;  %v1341_v54 = vmax.bf16 %v1339_v38, %v1337_v41  ;;  %v1187_v19 = vmax.bf16 %v1185_v28, %v1183_v15  ;;  %v1266_v60 = vmax.bf16 %v1264_v50, %v1262_v5 }
  0x9b   :  { %v352_v46 = vld [vmem:[%s4055_s0 + $0x55c] sm:$0xf]  ;;  %v241_v51 = vld [vmem:[%s4055_s0 + $0x3a0] sm:$0xf]  ;;  %v1189_v55 = vsel %vm441_vm0, %v431_v14, 4286644096  ;;  %v1424_v62 = vmax.bf16 %v1422_v44, %v1420_v49 }
  0x9c   :  { %v257_v52 = vld [vmem:[%s4055_s0 + $0x3e0] sm:$0xf]  ;;  %v1268_v29 = vsel %vm441_vm0, %v320_v4, 4286644096  ;;  %v1426_v56 = vsel %vm441_vm0, %v98_v22, 4286644096  ;;  %v1345_v6 = vmax.bf16 %v1343_v48, %v1341_v54  ;;  %v1191_v33 = vmax.bf16 %v1189_v55, %v1187_v19 }
  0x9d   :  { %v19_v11 = vld [vmem:[%s4055_s0 + $0x28] sm:$0xf]  ;;  %v368_v58 = vld [vmem:[%s4055_s0 + $0x59c] sm:$0xf]  ;;  %v1347_v61 = vsel %vm441_vm0, %v209_v43, 4286644096  ;;  %v1270_v10 = vmax.bf16 %v1268_v29, %v1266_v60  ;;  %v1428_v16 = vmax.bf16 %v1426_v56, %v1424_v62 }
  0x9e   :  { %v35_v57 = vld [vmem:[%s4055_s0 + $0x68] sm:$0xf]  ;;  %v384_v59 = vld [vmem:[%s4055_s0 + $0x5dc] sm:$0xf]  ;;  %v1272_v1 = vsel %vm441_vm0, %v336_v45, 4286644096  ;;  %v1349_v20 = vmax.bf16 %v1347_v61, %v1345_v6 }
  0x9f   :  { %v51_v0 = vld [vmem:[%s4055_s0 + $0xa8] sm:$0xf]  ;;  %v1276_v37 = vsel %vm441_vm0, %v352_v46, 4286644096  ;;  %v1430_v9 = vsel %vm441_vm0, %v114_v34, 4286644096  ;;  %v1274_v39 = vmax.bf16 %v1272_v1, %v1270_v10 }
  0xa0   :  { %v67_v7 = vld [vmem:[%s4055_s0 + $0xe8] sm:$0xf]  ;;  %v146_v63 = vld [vmem:[%s4055_s0 + $0x224] sm:$0xf]  ;;  %v1351_v12 = vsel %vm441_vm0, %v225_v40, 4286644096  ;;  %v1432_v27 = vmax.bf16 %v1430_v9, %v1428_v16 }
  0xa1   :  { %v162_v2 = vld [vmem:[%s4055_s0 + $0x264] sm:$0xf]  ;;  %v273_v17 = vld [vmem:[%s4055_s0 + $0x420] sm:$0xf]  ;;  %v1280_v18 = vsel %vm441_vm0, %v368_v58, 4286644096  ;;  %v1353_v30 = vmax.bf16 %v1351_v12, %v1349_v20  ;;  %v1278_v4 = vmax.bf16 %v1276_v37, %v1274_v39 }
  0xa2   :  { %v1284_v42 = vsel %vm441_vm0, %v384_v59, 4286644096  ;;  %v1434_v8 = vsel %vm441_vm0, %v130_v53, 4286644096  ;;  %v83_v13 = vld [vmem:[%s4055_s0 + $0x128] sm:$0xf] }
  0xa3   :  { %v178_v3 = vld [vmem:[%s4055_s0 + $0x2a4] sm:$0xf]  ;;  %v400_v22 = vld [vmem:[%s4055_s0 + $0x61c] sm:$0xf]  ;;  %v1355_v24 = vsel %vm441_vm0, %v241_v51, 4286644096  ;;  %v1436_v14 = vmax.bf16 %v1434_v8, %v1432_v27  ;;  %v1282_v45 = vmax.bf16 %v1280_v18, %v1278_v4 }
  0xa4   :  { %v1359_v25 = vsel %vm441_vm0, %v257_v52, 4286644096  ;;  %2161 = vst.msk [vmem:[%s4056_s1 + $0x18] sm:$0xf] %vm441_vm0, %v1191_v33  ;;  %v1438_v23 = vsel %vm441_vm0, %v146_v63, 4286644096  ;;  %v1357_v26 = vmax.bf16 %v1355_v24, %v1353_v30 }
  0xa5   :  { %v1514_v43 = vsel %vm441_vm0, %v19_v11, 4286644096  ;;  %v1517_v21 = vsel %vm441_vm0, %v35_v57, 4286644096  ;;  %v99_v31 = vld [vmem:[%s4055_s0 + $0x168] sm:$0xf]  ;;  %v1440_v15 = vmax.bf16 %v1438_v23, %v1436_v14  ;;  %v1286_v11 = vmax.bf16 %v1284_v42, %v1282_v45 }
  0xa6   :  { %v194_v32 = vld [vmem:[%s4055_s0 + $0x2e4] sm:$0xf]  ;;  %v289_v47 = vld [vmem:[%s4055_s0 + $0x460] sm:$0xf]  ;;  %v416_v34 = vld [vmem:[%s4055_s0 + $0x65c] sm:$0xf]  ;;  %v1519_v35 = vmax.bf16 %v1517_v21, %v1514_v43  ;;  %v1361_v49 = vmax.bf16 %v1359_v25, %v1357_v26 }
  0xa7   :  { %v1521_v36 = vsel %vm441_vm0, %v51_v0, 4286644096  ;;  %v1288_v38 = vsel %vm441_vm0, %v400_v22, 4286644096  ;;  %v1442_v40 = vsel %vm441_vm0, %v162_v2, 4286644096 }
  0xa8   :  { %v1525_v28 = vsel %vm441_vm0, %v67_v7, 4286644096  ;;  %v115_v50 = vld [vmem:[%s4055_s0 + $0x1a8] sm:$0xf]  ;;  %v210_v41 = vld [vmem:[%s4055_s0 + $0x324] sm:$0xf]  ;;  %v1523_v5 = vmax.bf16 %v1521_v36, %v1519_v35  ;;  %v1444_v58 = vmax.bf16 %v1442_v40, %v1440_v15  ;;  %v1290_v9 = vmax.bf16 %v1288_v38, %v1286_v11 }
  0xa9   :  { %v305_v44 = vld [vmem:[%s4055_s0 + $0x4a0] sm:$0xf]  ;;  %v432_v53 = vld [vmem:[%s4055_s0 + $0x69c] sm:$0xf]  ;;  %v1363_v46 = vsel %vm441_vm0, %v273_v17, 4286644096 }
  0xaa   :  { %v1292_v48 = vsel %vm441_vm0, %v416_v34, 4286644096  ;;  %v1446_v51 = vsel %vm441_vm0, %v178_v3, 4286644096  ;;  %v1529_v52 = vsel %vm441_vm0, %v83_v13, 4286644096  ;;  %v1527_v59 = vmax.bf16 %v1525_v28, %v1523_v5 }
  0xab   :  { %v131_v55 = vld [vmem:[%s4055_s0 + $0x1e8] sm:$0xf]  ;;  %v226_v29 = vld [vmem:[%s4055_s0 + $0x364] sm:$0xf]  ;;  %v321_v54 = vld [vmem:[%s4055_s0 + $0x4e0] sm:$0xf]  ;;  %v1365_v60 = vmax.bf16 %v1363_v46, %v1361_v49  ;;  %v1448_v63 = vmax.bf16 %v1446_v51, %v1444_v58  ;;  %v1294_v3 = vmax.bf16 %v1292_v48, %v1290_v9 }
  0xac   :  { %v337_v56 = vld [vmem:[%s4055_s0 + $0x520] sm:$0xf]  ;;  %v1367_v57 = vsel %vm441_vm0, %v289_v47, 4286644096  ;;  %v1296_v19 = vsel %vm441_vm0, %v432_v53, 4286644096  ;;  %v1531_v2 = vmax.bf16 %v1529_v52, %v1527_v59 }
  0xad   :  { %v1450_v61 = vsel %vm441_vm0, %v194_v32, 4286644096  ;;  %v1533_v62 = vsel %vm441_vm0, %v99_v31, 4286644096  ;;  %v147_v0 = vld [vmem:[%s4055_s0 + $0x228] sm:$0xf]  ;;  %v1369_v10 = vmax.bf16 %v1367_v57, %v1365_v60  ;;  %v1298_v47 = vmax.bf16 %v1296_v19, %v1294_v3 }
  0xae   :  { %v242_v1 = vld [vmem:[%s4055_s0 + $0x3a4] sm:$0xf]  ;;  %v353_v37 = vld [vmem:[%s4055_s0 + $0x560] sm:$0xf]  ;;  %v1371_v7 = vsel %vm441_vm0, %v305_v44, 4286644096  ;;  %v1452_v39 = vmax.bf16 %v1450_v61, %v1448_v63  ;;  %v1535_v24 = vmax.bf16 %v1533_v62, %v1531_v2 }
  0xaf   :  { %v369_v6 = vld [vmem:[%s4055_s0 + $0x5a0] sm:$0xf]  ;;  %v20_v33 = vld [vmem:[%s4055_s0 + $0x2c] sm:$0xf]  ;;  %v1375_v12 = vsel %vm441_vm0, %v321_v54, 4286644096  ;;  %v1373_v25 = vmax.bf16 %v1371_v7, %v1369_v10 }
  0xb0   :  { %v1454_v16 = vsel %vm441_vm0, %v210_v41, 4286644096  ;;  %v1537_v17 = vsel %vm441_vm0, %v115_v50, 4286644096  ;;  %v36_v18 = vld [vmem:[%s4055_s0 + $0x6c] sm:$0xf] }
  0xb1   :  { %v52_v42 = vld [vmem:[%s4055_s0 + $0xac] sm:$0xf]  ;;  %v163_v20 = vld [vmem:[%s4055_s0 + $0x268] sm:$0xf]  ;;  %v258_v8 = vld [vmem:[%s4055_s0 + $0x3e4] sm:$0xf]  ;;  %v1456_v4 = vmax.bf16 %v1454_v16, %v1452_v39  ;;  %v1539_v14 = vmax.bf16 %v1537_v17, %v1535_v24  ;;  %v1377_v35 = vmax.bf16 %v1375_v12, %v1373_v25 }
  0xb2   :  { %v385_v13 = vld [vmem:[%s4055_s0 + $0x5e0] sm:$0xf]  ;;  %v1379_v22 = vsel %vm441_vm0, %v337_v56, 4286644096  ;;  %v1383_v27 = vsel %vm441_vm0, %v353_v37, 4286644096 }
  0xb3   :  { %v1458_v30 = vsel %vm441_vm0, %v226_v29, 4286644096  ;;  %v1541_v23 = vsel %vm441_vm0, %v131_v55, 4286644096  ;;  %v68_v43 = vld [vmem:[%s4055_s0 + $0xec] sm:$0xf]  ;;  %v1381_v46 = vmax.bf16 %v1379_v22, %v1377_v35 }
  0xb4   :  { %v179_v21 = vld [vmem:[%s4055_s0 + $0x2a8] sm:$0xf]  ;;  %v274_v31 = vld [vmem:[%s4055_s0 + $0x424] sm:$0xf]  ;;  %v401_v32 = vld [vmem:[%s4055_s0 + $0x620] sm:$0xf]  ;;  %v1460_v41 = vmax.bf16 %v1458_v30, %v1456_v4  ;;  %v1543_v53 = vmax.bf16 %v1541_v23, %v1539_v14 }
  0xb5   :  { %v1387_v34 = vsel %vm441_vm0, %v369_v6, 4286644096  ;;  %v1391_v36 = vsel %vm441_vm0, %v385_v13, 4286644096  ;;  %v1462_v38 = vsel %vm441_vm0, %v242_v1, 4286644096  ;;  %v1385_v57 = vmax.bf16 %v1383_v27, %v1381_v46 }
  0xb6   :  { %v1545_v26 = vsel %vm441_vm0, %v147_v0, 4286644096  ;;  %v84_v40 = vld [vmem:[%s4055_s0 + $0x12c] sm:$0xf]  ;;  %v195_v28 = vld [vmem:[%s4055_s0 + $0x2e8] sm:$0xf]  ;;  %v1464_v54 = vmax.bf16 %v1462_v38, %v1460_v41 }
  0xb7   :  { %v417_v50 = vld [vmem:[%s4055_s0 + $0x660] sm:$0xf]  ;;  %v1466_v44 = vsel %vm441_vm0, %v258_v8, 4286644096  ;;  %v1621_v45 = vsel %vm441_vm0, %v20_v33, 4286644096  ;;  %v1547_v56 = vmax.bf16 %v1545_v26, %v1543_v53  ;;  %v1389_v7 = vmax.bf16 %v1387_v34, %v1385_v57 }
  0xb8   :  { %2162 = vst.msk [vmem:[%s4056_s1 + $0x1c] sm:$0xf] %vm441_vm0, %v1298_v47  ;;  %v1549_v15 = vsel %vm441_vm0, %v163_v20, 4286644096  ;;  %v1624_v5 = vsel %vm441_vm0, %v36_v18, 4286644096  ;;  %v1468_v37 = vmax.bf16 %v1466_v44, %v1464_v54 }
  0xb9   :  { %v1628_v48 = vsel %vm441_vm0, %v52_v42, 4286644096  ;;  %v100_v49 = vld [vmem:[%s4055_s0 + $0x16c] sm:$0xf]  ;;  %v211_v51 = vld [vmem:[%s4055_s0 + $0x328] sm:$0xf]  ;;  %v1626_v11 = vmax.bf16 %v1624_v5, %v1621_v45  ;;  %v1551_v6 = vmax.bf16 %v1549_v15, %v1547_v56  ;;  %v1393_v13 = vmax.bf16 %v1391_v36, %v1389_v7 }
  0xba   :  { %v290_v52 = vld [vmem:[%s4055_s0 + $0x464] sm:$0xf]  ;;  %v433_v55 = vld [vmem:[%s4055_s0 + $0x6a0] sm:$0xf]  ;;  %v1395_v29 = vsel %vm441_vm0, %v401_v32, 4286644096 }
  0xbb   :  { %v1470_v58 = vsel %vm441_vm0, %v274_v31, 4286644096  ;;  %v1553_v59 = vsel %vm441_vm0, %v179_v21, 4286644096  ;;  %v1632_v19 = vsel %vm441_vm0, %v68_v43, 4286644096  ;;  %v1630_v9 = vmax.bf16 %v1628_v48, %v1626_v11 }
  0xbc   :  { %v116_v60 = vld [vmem:[%s4055_s0 + $0x1ac] sm:$0xf]  ;;  %v227_v61 = vld [vmem:[%s4055_s0 + $0x368] sm:$0xf]  ;;  %v306_v62 = vld [vmem:[%s4055_s0 + $0x4a4] sm:$0xf]  ;;  %v1472_v42 = vmax.bf16 %v1470_v58, %v1468_v37  ;;  %v1555_v20 = vmax.bf16 %v1553_v59, %v1551_v6  ;;  %v1397_v47 = vmax.bf16 %v1395_v29, %v1393_v13 }
  0xbd   :  { %v322_v0 = vld [vmem:[%s4055_s0 + $0x4e4] sm:$0xf]  ;;  %v1399_v1 = vsel %vm441_vm0, %v417_v50, 4286644096  ;;  %v1474_v63 = vsel %vm441_vm0, %v290_v52, 4286644096  ;;  %v1634_v8 = vmax.bf16 %v1632_v19, %v1630_v9 }
  0xbe   :  { %v1557_v2 = vsel %vm441_vm0, %v195_v28, 4286644096  ;;  %v1636_v33 = vsel %vm441_vm0, %v84_v40, 4286644096  ;;  %v132_v10 = vld [vmem:[%s4055_s0 + $0x1ec] sm:$0xf]  ;;  %v1476_v23 = vmax.bf16 %v1474_v63, %v1472_v42  ;;  %v1401_v44 = vmax.bf16 %v1399_v1, %v1397_v47 }
  0xbf   :  { %v243_v12 = vld [vmem:[%s4055_s0 + $0x3a8] sm:$0xf]  ;;  %v338_v16 = vld [vmem:[%s4055_s0 + $0x524] sm:$0xf]  ;;  %v1403_v18 = vsel %vm441_vm0, %v433_v55, 4286644096  ;;  %v1559_v21 = vmax.bf16 %v1557_v2, %v1555_v20  ;;  %v1638_v31 = vmax.bf16 %v1636_v33, %v1634_v8 }
  0xc0   :  { %v354_v17 = vld [vmem:[%s4055_s0 + $0x564] sm:$0xf]  ;;  %v1478_v3 = vsel %vm441_vm0, %v306_v62, 4286644096  ;;  %v1561_v22 = vsel %vm441_vm0, %v211_v51, 4286644096  ;;  %v1405_v29 = vmax.bf16 %v1403_v18, %v1401_v44 }
  0xc1   :  { %v1640_v39 = vsel %vm441_vm0, %v100_v49, 4286644096  ;;  %v21_v24 = vld [vmem:[%s4055_s0 + $0x30] sm:$0xf]  ;;  %v148_v25 = vld [vmem:[%s4055_s0 + $0x22c] sm:$0xf]  ;;  %v1480_v26 = vmax.bf16 %v1478_v3, %v1476_v23  ;;  %v1563_v28 = vmax.bf16 %v1561_v22, %v1559_v21 }
  0xc2   :  { %v370_v27 = vld [vmem:[%s4055_s0 + $0x5a4] sm:$0xf]  ;;  %v1482_v43 = vsel %vm441_vm0, %v322_v0, 4286644096  ;;  %v37_v32 = vld [vmem:[%s4055_s0 + $0x70] sm:$0xf]  ;;  %v1642_v50 = vmax.bf16 %v1640_v39, %v1638_v31 }
  0xc3   :  { %v386_v30 = vld [vmem:[%s4055_s0 + $0x5e4] sm:$0xf]  ;;  %v1486_v34 = vsel %vm441_vm0, %v338_v16, 4286644096  ;;  %v1565_v4 = vsel %vm441_vm0, %v227_v61, 4286644096  ;;  %v1484_v48 = vmax.bf16 %v1482_v43, %v1480_v26 }
  0xc4   :  { %v1644_v14 = vsel %vm441_vm0, %v116_v60, 4286644096  ;;  %v53_v35 = vld [vmem:[%s4055_s0 + $0xb0] sm:$0xf]  ;;  %v164_v36 = vld [vmem:[%s4055_s0 + $0x26c] sm:$0xf]  ;;  %v1567_v51 = vmax.bf16 %v1565_v4, %v1563_v28 }
  0xc5   :  { %v259_v38 = vld [vmem:[%s4055_s0 + $0x3e8] sm:$0xf]  ;;  %v1490_v40 = vsel %vm441_vm0, %v354_v17, 4286644096  ;;  %v69_v41 = vld [vmem:[%s4055_s0 + $0xf0] sm:$0xf]  ;;  %v1646_v52 = vmax.bf16 %v1644_v14, %v1642_v50  ;;  %v1488_v19 = vmax.bf16 %v1486_v34, %v1484_v48 }
  0xc6   :  { %v1494_v53 = vsel %vm441_vm0, %v370_v27, 4286644096  ;;  %v1569_v45 = vsel %vm441_vm0, %v243_v12, 4286644096  ;;  %v1648_v46 = vsel %vm441_vm0, %v132_v10, 4286644096 }
  0xc7   :  { %v180_v15 = vld [vmem:[%s4055_s0 + $0x2ac] sm:$0xf]  ;;  %v275_v5 = vld [vmem:[%s4055_s0 + $0x428] sm:$0xf]  ;;  %v1498_v49 = vsel %vm441_vm0, %v386_v30, 4286644096  ;;  %v1571_v60 = vmax.bf16 %v1569_v45, %v1567_v51  ;;  %v1650_v61 = vmax.bf16 %v1648_v46, %v1646_v52  ;;  %v1492_v33 = vmax.bf16 %v1490_v40, %v1488_v19 }
  0xc8   :  { %v85_v55 = vld [vmem:[%s4055_s0 + $0x130] sm:$0xf]  ;;  %v1573_v54 = vsel %vm441_vm0, %v259_v38, 4286644096  ;;  %v1652_v56 = vsel %vm441_vm0, %v148_v25, 4286644096 }
  0xc9   :  { %v1728_v11 = vsel %vm441_vm0, %v21_v24, 4286644096  ;;  %v196_v57 = vld [vmem:[%s4055_s0 + $0x2ec] sm:$0xf]  ;;  %v291_v58 = vld [vmem:[%s4055_s0 + $0x468] sm:$0xf]  ;;  %v1575_v10 = vmax.bf16 %v1573_v54, %v1571_v60  ;;  %v1654_v12 = vmax.bf16 %v1652_v56, %v1650_v61  ;;  %v1496_v39 = vmax.bf16 %v1494_v53, %v1492_v33 }
  0xca   :  { %v402_v59 = vld [vmem:[%s4055_s0 + $0x624] sm:$0xf]  ;;  %v1731_v62 = vsel %vm441_vm0, %v37_v32, 4286644096  ;;  %v101_v0 = vld [vmem:[%s4055_s0 + $0x170] sm:$0xf] }
  0xcb   :  { %v1577_v1 = vsel %vm441_vm0, %v275_v5, 4286644096  ;;  %v1656_v37 = vsel %vm441_vm0, %v164_v36, 4286644096  ;;  %v1733_v6 = vmax.bf16 %v1731_v62, %v1728_v11  ;;  %v1735_v9 = vsel %vm441_vm0, %v53_v35, 4286644096 }
  0xcc   :  { %2163 = vst.msk [vmem:[%s4056_s1 + $0x20] sm:$0xf] %vm441_vm0, %v1405_v29  ;;  %v212_v7 = vld [vmem:[%s4055_s0 + $0x32c] sm:$0xf]  ;;  %v307_v63 = vld [vmem:[%s4055_s0 + $0x4a8] sm:$0xf]  ;;  %v1579_v24 = vmax.bf16 %v1577_v1, %v1575_v10  ;;  %v1658_v25 = vmax.bf16 %v1656_v37, %v1654_v12  ;;  %v1500_v4 = vmax.bf16 %v1498_v49, %v1496_v39 }
  0xcd   :  { %v418_v2 = vld [vmem:[%s4055_s0 + $0x664] sm:$0xf]  ;;  %v1739_v16 = vsel %vm441_vm0, %v69_v41, 4286644096  ;;  %v117_v17 = vld [vmem:[%s4055_s0 + $0x1b0] sm:$0xf]  ;;  %v1737_v8 = vmax.bf16 %v1735_v9, %v1733_v6 }
  0xce   :  { %v1502_v18 = vsel %vm441_vm0, %v402_v59, 4286644096  ;;  %v1581_v42 = vsel %vm441_vm0, %v291_v58, 4286644096  ;;  %v1660_v20 = vsel %vm441_vm0, %v180_v15, 4286644096 }
  0xcf   :  { %v228_v13 = vld [vmem:[%s4055_s0 + $0x36c] sm:$0xf]  ;;  %v323_v3 = vld [vmem:[%s4055_s0 + $0x4e8] sm:$0xf]  ;;  %v434_v22 = vld [vmem:[%s4055_s0 + $0x6a4] sm:$0xf]  ;;  %v1741_v31 = vmax.bf16 %v1739_v16, %v1737_v8  ;;  %v1583_v14 = vmax.bf16 %v1581_v42, %v1579_v24  ;;  %v1662_v35 = vmax.bf16 %v1660_v20, %v1658_v25  ;;  %v1504_v46 = vmax.bf16 %v1502_v18, %v1500_v4 }
  0xd0   :  { %v1743_v27 = vsel %vm441_vm0, %v85_v55, 4286644096  ;;  %v133_v30 = vld [vmem:[%s4055_s0 + $0x1f0] sm:$0xf]  ;;  %v1506_v23 = vsel %vm441_vm0, %v418_v2, 4286644096 }
  0xd1   :  { %v1585_v43 = vsel %vm441_vm0, %v307_v63, 4286644096  ;;  %v1664_v21 = vsel %vm441_vm0, %v196_v57, 4286644096  ;;  %v244_v32 = vld [vmem:[%s4055_s0 + $0x3ac] sm:$0xf]  ;;  %v1745_v50 = vmax.bf16 %v1743_v27, %v1741_v31  ;;  %v1508_v11 = vmax.bf16 %v1506_v23, %v1504_v46 }
  0xd2   :  { %v339_v47 = vld [vmem:[%s4055_s0 + $0x528] sm:$0xf]  ;;  %v1747_v36 = vsel %vm441_vm0, %v101_v0, 4286644096  ;;  %v149_v38 = vld [vmem:[%s4055_s0 + $0x230] sm:$0xf]  ;;  %v1587_v15 = vmax.bf16 %v1585_v43, %v1583_v14  ;;  %v1666_v5 = vmax.bf16 %v1664_v21, %v1662_v35 }
  0xd3   :  { %v355_v34 = vld [vmem:[%s4055_s0 + $0x568] sm:$0xf]  ;;  %v1510_v26 = vsel %vm441_vm0, %v434_v22, 4286644096  ;;  %v1589_v40 = vsel %vm441_vm0, %v323_v3, 4286644096  ;;  %v1749_v29 = vmax.bf16 %v1747_v36, %v1745_v50 }
  0xd4   :  { %v1668_v28 = vsel %vm441_vm0, %v212_v7, 4286644096  ;;  %v22_v41 = vld [vmem:[%s4055_s0 + $0x34] sm:$0xf]  ;;  %v260_v53 = vld [vmem:[%s4055_s0 + $0x3ec] sm:$0xf]  ;;  %v1591_v57 = vmax.bf16 %v1589_v40, %v1587_v15  ;;  %v1512_v9 = vmax.bf16 %v1510_v26, %v1508_v11 }
  0xd5   :  { %v38_v44 = vld [vmem:[%s4055_s0 + $0x74] sm:$0xf]  ;;  %v371_v45 = vld [vmem:[%s4055_s0 + $0x5a8] sm:$0xf]  ;;  %v1751_v48 = vsel %vm441_vm0, %v117_v17, 4286644096  ;;  %v1670_v58 = vmax.bf16 %v1668_v28, %v1666_v5 }
  0xd6   :  { %v54_v49 = vld [vmem:[%s4055_s0 + $0xb4] sm:$0xf]  ;;  %v1593_v51 = vsel %vm441_vm0, %v339_v47, 4286644096  ;;  %v1597_v52 = vsel %vm441_vm0, %v355_v34, 4286644096  ;;  %v1753_v0 = vmax.bf16 %v1751_v48, %v1749_v29 }
  0xd7   :  { %v1672_v55 = vsel %vm441_vm0, %v228_v13, 4286644096  ;;  %v70_v54 = vld [vmem:[%s4055_s0 + $0xf4] sm:$0xf]  ;;  %v165_v56 = vld [vmem:[%s4055_s0 + $0x270] sm:$0xf]  ;;  %v1595_v7 = vmax.bf16 %v1593_v51, %v1591_v57 }
  0xd8   :  { %v1755_v59 = vsel %vm441_vm0, %v133_v30, 4286644096  ;;  %v181_v19 = vld [vmem:[%s4055_s0 + $0x2b0] sm:$0xf]  ;;  %v1601_v60 = vsel %vm441_vm0, %v371_v45, 4286644096  ;;  %v1674_v63 = vmax.bf16 %v1672_v55, %v1670_v58 }
  0xd9   :  { %v1676_v61 = vsel %vm441_vm0, %v244_v32, 4286644096  ;;  %v1680_v62 = vsel %vm441_vm0, %v260_v53, 4286644096  ;;  %v86_v1 = vld [vmem:[%s4055_s0 + $0x134] sm:$0xf]  ;;  %v1757_v10 = vmax.bf16 %v1755_v59, %v1753_v0  ;;  %v1599_v8 = vmax.bf16 %v1597_v52, %v1595_v7 }
  0xda   :  { %v276_v37 = vld [vmem:[%s4055_s0 + $0x42c] sm:$0xf]  ;;  %v387_v6 = vld [vmem:[%s4055_s0 + $0x5e8] sm:$0xf]  ;;  %v1759_v2 = vsel %vm441_vm0, %v149_v38, 4286644096  ;;  %v1678_v13 = vmax.bf16 %v1676_v61, %v1674_v63 }
  0xdb   :  { %v197_v33 = vld [vmem:[%s4055_s0 + $0x2f0] sm:$0xf]  ;;  %v1763_v12 = vsel %vm441_vm0, %v165_v56, 4286644096  ;;  %v1835_v16 = vsel %vm441_vm0, %v22_v41, 4286644096  ;;  %v1761_v27 = vmax.bf16 %v1759_v2, %v1757_v10  ;;  %v1603_v31 = vmax.bf16 %v1601_v60, %v1599_v8 }
  0xdc   :  { %v1838_v17 = vsel %vm441_vm0, %v38_v44, 4286644096  ;;  %v102_v18 = vld [vmem:[%s4055_s0 + $0x174] sm:$0xf]  ;;  %v292_v42 = vld [vmem:[%s4055_s0 + $0x46c] sm:$0xf]  ;;  %v1682_v32 = vmax.bf16 %v1680_v62, %v1678_v13 }
  0xdd   :  { %v403_v20 = vld [vmem:[%s4055_s0 + $0x628] sm:$0xf]  ;;  %v1840_v3 = vmax.bf16 %v1838_v17, %v1835_v16  ;;  %v1842_v22 = vsel %vm441_vm0, %v54_v49, 4286644096  ;;  %2164 = vst.msk [vmem:[%s4056_s1 + $0x24] sm:$0xf] %vm441_vm0, %v1512_v9  ;;  %v1765_v36 = vmax.bf16 %v1763_v12, %v1761_v27 }
  0xde   :  { %v213_v39 = vld [vmem:[%s4055_s0 + $0x330] sm:$0xf]  ;;  %v1605_v24 = vsel %vm441_vm0, %v387_v6, 4286644096  ;;  %v1684_v25 = vsel %vm441_vm0, %v276_v37, 4286644096 }
  0xdf   :  { %v1846_v30 = vsel %vm441_vm0, %v70_v54, 4286644096  ;;  %v118_v23 = vld [vmem:[%s4055_s0 + $0x1b4] sm:$0xf]  ;;  %v308_v43 = vld [vmem:[%s4055_s0 + $0x4ac] sm:$0xf]  ;;  %v1844_v34 = vmax.bf16 %v1842_v22, %v1840_v3  ;;  %v1607_v50 = vmax.bf16 %v1605_v24, %v1603_v31  ;;  %v1686_v41 = vmax.bf16 %v1684_v25, %v1682_v32 }
  0xe0   :  { %v419_v21 = vld [vmem:[%s4055_s0 + $0x668] sm:$0xf]  ;;  %v1767_v47 = vsel %vm441_vm0, %v181_v19, 4286644096  ;;  %v229_v4 = vld [vmem:[%s4055_s0 + $0x370] sm:$0xf] }
  0xe1   :  { %v1609_v14 = vsel %vm441_vm0, %v403_v20, 4286644096  ;;  %v1688_v35 = vsel %vm441_vm0, %v292_v42, 4286644096  ;;  %v1850_v38 = vsel %vm441_vm0, %v86_v1, 4286644096  ;;  %v1848_v53 = vmax.bf16 %v1846_v30, %v1844_v34 }
  0xe2   :  { %v134_v26 = vld [vmem:[%s4055_s0 + $0x1f4] sm:$0xf]  ;;  %v324_v40 = vld [vmem:[%s4055_s0 + $0x4ec] sm:$0xf]  ;;  %v435_v28 = vld [vmem:[%s4055_s0 + $0x6a8] sm:$0xf]  ;;  %v1769_v15 = vmax.bf16 %v1767_v47, %v1765_v36  ;;  %v1611_v52 = vmax.bf16 %v1609_v14, %v1607_v50  ;;  %v1690_v55 = vmax.bf16 %v1688_v35, %v1686_v41 }
  0xe3   :  { %v1771_v44 = vsel %vm441_vm0, %v197_v33, 4286644096  ;;  %v1613_v45 = vsel %vm441_vm0, %v419_v21, 4286644096  ;;  %v1692_v46 = vsel %vm441_vm0, %v308_v43, 4286644096  ;;  %v1852_v54 = vmax.bf16 %v1850_v38, %v1848_v53 }
  0xe4   :  { %v1854_v5 = vsel %vm441_vm0, %v102_v18, 4286644096  ;;  %v150_v48 = vld [vmem:[%s4055_s0 + $0x234] sm:$0xf]  ;;  %v245_v49 = vld [vmem:[%s4055_s0 + $0x3b0] sm:$0xf]  ;;  %v1773_v58 = vmax.bf16 %v1771_v44, %v1769_v15  ;;  %v1615_v1 = vmax.bf16 %v1613_v45, %v1611_v52  ;;  %v1694_v37 = vmax.bf16 %v1692_v46, %v1690_v55 }
  0xe5   :  { %v340_v51 = vld [vmem:[%s4055_s0 + $0x52c] sm:$0xf]  ;;  %v1775_v29 = vsel %vm441_vm0, %v213_v39, 4286644096  ;;  %v23_v56 = vld [vmem:[%s4055_s0 + $0x38] sm:$0xf]  ;;  %v1856_v9 = vmax.bf16 %v1854_v5, %v1852_v54 }
  0xe6   :  { %v1617_v11 = vsel %vm441_vm0, %v435_v28, 4286644096  ;;  %v1696_v57 = vsel %vm441_vm0, %v324_v40, 4286644096  ;;  %v1858_v59 = vsel %vm441_vm0, %v118_v23, 4286644096  ;;  %v1777_v2 = vmax.bf16 %v1775_v29, %v1773_v58 }
  0xe7   :  { %v39_v19 = vld [vmem:[%s4055_s0 + $0x78] sm:$0xf]  ;;  %v166_v61 = vld [vmem:[%s4055_s0 + $0x274] sm:$0xf]  ;;  %v356_v62 = vld [vmem:[%s4055_s0 + $0x56c] sm:$0xf]  ;;  %v1619_v17 = vmax.bf16 %v1617_v11, %v1615_v1  ;;  %v1698_v18 = vmax.bf16 %v1696_v57, %v1694_v37  ;;  %v1860_v20 = vmax.bf16 %v1858_v59, %v1856_v9 }
  0xe8   :  { %v55_v60 = vld [vmem:[%s4055_s0 + $0xb8] sm:$0xf]  ;;  %v372_v0 = vld [vmem:[%s4055_s0 + $0x5ac] sm:$0xf]  ;;  %v1779_v6 = vsel %vm441_vm0, %v229_v4, 4286644096 }
  0xe9   :  { %v261_v7 = vld [vmem:[%s4055_s0 + $0x3f0] sm:$0xf]  ;;  %v1700_v63 = vsel %vm441_vm0, %v340_v51, 4286644096  ;;  %v1862_v33 = vsel %vm441_vm0, %v134_v26, 4286644096  ;;  %v1781_v22 = vmax.bf16 %v1779_v6, %v1777_v2 }
  0xea   :  { %v71_v10 = vld [vmem:[%s4055_s0 + $0xf8] sm:$0xf]  ;;  %v182_v12 = vld [vmem:[%s4055_s0 + $0x2b4] sm:$0xf]  ;;  %v277_v16 = vld [vmem:[%s4055_s0 + $0x430] sm:$0xf]  ;;  %v1702_v30 = vmax.bf16 %v1700_v63, %v1698_v18  ;;  %v1864_v43 = vmax.bf16 %v1862_v33, %v1860_v20 }
  0xeb   :  { %v1783_v42 = vsel %vm441_vm0, %v245_v49, 4286644096  ;;  %v293_v8 = vld [vmem:[%s4055_s0 + $0x470] sm:$0xf]  ;;  %v1704_v13 = vsel %vm441_vm0, %v356_v62, 4286644096 }
  0xec   :  { %v1708_v3 = vsel %vm441_vm0, %v372_v0, 4286644096  ;;  %v1866_v39 = vsel %vm441_vm0, %v150_v48, 4286644096  ;;  %v87_v24 = vld [vmem:[%s4055_s0 + $0x138] sm:$0xf]  ;;  %v1785_v31 = vmax.bf16 %v1783_v42, %v1781_v22  ;;  %v1706_v38 = vmax.bf16 %v1704_v13, %v1702_v30 }
  0xed   :  { %v198_v25 = vld [vmem:[%s4055_s0 + $0x2f4] sm:$0xf]  ;;  %v388_v27 = vld [vmem:[%s4055_s0 + $0x5ec] sm:$0xf]  ;;  %v1787_v23 = vsel %vm441_vm0, %v261_v7, 4286644096  ;;  %v1868_v40 = vmax.bf16 %v1866_v39, %v1864_v43 }
  0xee   :  { %v1942_v21 = vsel %vm441_vm0, %v23_v56, 4286644096  ;;  %2165 = vst.msk [vmem:[%s4056_s1 + $0x28] sm:$0xf] %vm441_vm0, %v1619_v17  ;;  %v1870_v32 = vsel %vm441_vm0, %v166_v61, 4286644096  ;;  %v1789_v41 = vmax.bf16 %v1787_v23, %v1785_v31  ;;  %v1710_v48 = vmax.bf16 %v1708_v3, %v1706_v38 }
  0xef   :  { %v1945_v47 = vsel %vm441_vm0, %v39_v19, 4286644096  ;;  %v1949_v34 = vsel %vm441_vm0, %v55_v60, 4286644096  ;;  %v103_v4 = vld [vmem:[%s4055_s0 + $0x178] sm:$0xf]  ;;  %v1872_v51 = vmax.bf16 %v1870_v32, %v1868_v40 }
  0xf0   :  { %v214_v14 = vld [vmem:[%s4055_s0 + $0x334] sm:$0xf]  ;;  %v309_v35 = vld [vmem:[%s4055_s0 + $0x4b0] sm:$0xf]  ;;  %v404_v36 = vld [vmem:[%s4055_s0 + $0x62c] sm:$0xf]  ;;  %v1947_v28 = vmax.bf16 %v1945_v47, %v1942_v21 }
  0xf1   :  { %v1791_v26 = vsel %vm441_vm0, %v277_v16, 4286644096  ;;  %v1712_v50 = vsel %vm441_vm0, %v388_v27, 4286644096  ;;  %v1874_v44 = vsel %vm441_vm0, %v182_v12, 4286644096 }
  0xf2   :  { %v1953_v53 = vsel %vm441_vm0, %v71_v10, 4286644096  ;;  %v119_v45 = vld [vmem:[%s4055_s0 + $0x1b8] sm:$0xf]  ;;  %v230_v46 = vld [vmem:[%s4055_s0 + $0x374] sm:$0xf]  ;;  %v1951_v52 = vmax.bf16 %v1949_v34, %v1947_v28  ;;  %v1793_v29 = vmax.bf16 %v1791_v26, %v1789_v41  ;;  %v1714_v19 = vmax.bf16 %v1712_v50, %v1710_v48 }
  0xf3   :  { %v325_v15 = vld [vmem:[%s4055_s0 + $0x4f0] sm:$0xf]  ;;  %v420_v5 = vld [vmem:[%s4055_s0 + $0x66c] sm:$0xf]  ;;  %v1795_v49 = vsel %vm441_vm0, %v293_v8, 4286644096  ;;  %v1876_v61 = vmax.bf16 %v1874_v44, %v1872_v51 }
  0xf4   :  { %v1716_v55 = vsel %vm441_vm0, %v404_v36, 4286644096  ;;  %v1878_v54 = vsel %vm441_vm0, %v198_v25, 4286644096  ;;  %v1957_v56 = vsel %vm441_vm0, %v87_v24, 4286644096  ;;  %v1955_v62 = vmax.bf16 %v1953_v53, %v1951_v52 }
  0xf5   :  { %v135_v11 = vld [vmem:[%s4055_s0 + $0x1f8] sm:$0xf]  ;;  %v246_v57 = vld [vmem:[%s4055_s0 + $0x3b4] sm:$0xf]  ;;  %v341_v58 = vld [vmem:[%s4055_s0 + $0x530] sm:$0xf]  ;;  %v1797_v1 = vmax.bf16 %v1795_v49, %v1793_v29  ;;  %v1718_v33 = vmax.bf16 %v1716_v55, %v1714_v19  ;;  %v1880_v12 = vmax.bf16 %v1878_v54, %v1876_v61 }
  0xf6   :  { %v436_v59 = vld [vmem:[%s4055_s0 + $0x6ac] sm:$0xf]  ;;  %v1799_v60 = vsel %vm441_vm0, %v309_v35, 4286644096  ;;  %v1720_v0 = vsel %vm441_vm0, %v420_v5, 4286644096  ;;  %v1959_v16 = vmax.bf16 %v1957_v56, %v1955_v62 }
  0xf7   :  { %v1882_v37 = vsel %vm441_vm0, %v214_v14, 4286644096  ;;  %v1961_v6 = vsel %vm441_vm0, %v103_v4, 4286644096  ;;  %v24_v9 = vld [vmem:[%s4055_s0 + $0x3c] sm:$0xf]  ;;  %v1801_v20 = vmax.bf16 %v1799_v60, %v1797_v1  ;;  %v1722_v39 = vmax.bf16 %v1720_v0, %v1718_v33 }
  0xf8   :  { %v151_v7 = vld [vmem:[%s4055_s0 + $0x238] sm:$0xf]  ;;  %v357_v63 = vld [vmem:[%s4055_s0 + $0x570] sm:$0xf]  ;;  %v1803_v10 = vsel %vm441_vm0, %v325_v15, 4286644096  ;;  %v1884_v25 = vmax.bf16 %v1882_v37, %v1880_v12  ;;  %v1963_v27 = vmax.bf16 %v1961_v6, %v1959_v16 }
  0xf9   :  { %v373_v2 = vld [vmem:[%s4055_s0 + $0x5b0] sm:$0xf]  ;;  %v40_v17 = vld [vmem:[%s4055_s0 + $0x7c] sm:$0xf]  ;;  %v1724_v42 = vsel %vm441_vm0, %v436_v59, 4286644096  ;;  %v1805_v23 = vmax.bf16 %v1803_v10, %v1801_v20 }
  0xfa   :  { %v56_v18 = vld [vmem:[%s4055_s0 + $0xbc] sm:$0xf]  ;;  %v1886_v8 = vsel %vm441_vm0, %v230_v46, 4286644096  ;;  %v1965_v13 = vsel %vm441_vm0, %v119_v45, 4286644096  ;;  %v1726_v4 = vmax.bf16 %v1724_v42, %v1722_v39 }
  0xfb   :  { %v167_v3 = vld [vmem:[%s4055_s0 + $0x278] sm:$0xf]  ;;  %v262_v22 = vld [vmem:[%s4055_s0 + $0x3f4] sm:$0xf]  ;;  %v1807_v24 = vsel %vm441_vm0, %v341_v58, 4286644096  ;;  %v1888_v35 = vmax.bf16 %v1886_v8, %v1884_v25  ;;  %v1967_v36 = vmax.bf16 %v1965_v13, %v1963_v27 }
  0xfc   :  { %v72_v30 = vld [vmem:[%s4055_s0 + $0xfc] sm:$0xf]  ;;  %v1811_v43 = vsel %vm441_vm0, %v357_v63, 4286644096  ;;  %v1890_v21 = vsel %vm441_vm0, %v246_v57, 4286644096  ;;  %v1809_v26 = vmax.bf16 %v1807_v24, %v1805_v23 }
  0xfd   :  { %v1969_v31 = vsel %vm441_vm0, %v135_v11, 4286644096  ;;  %v183_v32 = vld [vmem:[%s4055_s0 + $0x2b8] sm:$0xf]  ;;  %v278_v47 = vld [vmem:[%s4055_s0 + $0x434] sm:$0xf]  ;;  %v1892_v53 = vmax.bf16 %v1890_v21, %v1888_v35 }
  0xfe   :  { %v389_v34 = vld [vmem:[%s4055_s0 + $0x5f0] sm:$0xf]  ;;  %v1815_v14 = vsel %vm441_vm0, %v373_v2, 4286644096  ;;  %v88_v38 = vld [vmem:[%s4055_s0 + $0x13c] sm:$0xf]  ;;  %v1971_v45 = vmax.bf16 %v1969_v31, %v1967_v36  ;;  %v1813_v49 = vmax.bf16 %v1811_v43, %v1809_v26 }
  0xff   :  { %v1894_v40 = vsel %vm441_vm0, %v262_v22, 4286644096  ;;  %v1973_v28 = vsel %vm441_vm0, %v151_v7, 4286644096  ;;  %v2049_v50 = vsel %vm441_vm0, %v24_v9, 4286644096 }
 0x100   :  { %v199_v41 = vld [vmem:[%s4055_s0 + $0x2f8] sm:$0xf]  ;;  %v294_v44 = vld [vmem:[%s4055_s0 + $0x474] sm:$0xf]  ;;  %v2052_v46 = vsel %vm441_vm0, %v40_v17, 4286644096  ;;  %v1896_v11 = vmax.bf16 %v1894_v40, %v1892_v53  ;;  %v1975_v57 = vmax.bf16 %v1973_v28, %v1971_v45  ;;  %v1817_v60 = vmax.bf16 %v1815_v14, %v1813_v49 }
 0x101   :  { %v2056_v15 = vsel %vm441_vm0, %v56_v18, 4286644096  ;;  %2166 = vst.msk [vmem:[%s4056_s1 + $0x2c] sm:$0xf] %vm441_vm0, %v1726_v4  ;;  %v104_v5 = vld [vmem:[%s4055_s0 + $0x17c] sm:$0xf]  ;;  %v2054_v55 = vmax.bf16 %v2052_v46, %v2049_v50 }
 0x102   :  { %v405_v48 = vld [vmem:[%s4055_s0 + $0x630] sm:$0xf]  ;;  %v1898_v51 = vsel %vm441_vm0, %v278_v47, 4286644096  ;;  %v1977_v52 = vsel %vm441_vm0, %v167_v3, 4286644096 }
 0x103   :  { %v215_v29 = vld [vmem:[%s4055_s0 + $0x338] sm:$0xf]  ;;  %v310_v54 = vld [vmem:[%s4055_s0 + $0x4b4] sm:$0xf]  ;;  %v1819_v56 = vsel %vm441_vm0, %v389_v34, 4286644096  ;;  %v2058_v0 = vmax.bf16 %v2056_v15, %v2054_v55  ;;  %v1900_v9 = vmax.bf16 %v1898_v51, %v1896_v11  ;;  %v1979_v7 = vmax.bf16 %v1977_v52, %v1975_v57 }
 0x104   :  { %v2060_v58 = vsel %vm441_vm0, %v72_v30, 4286644096  ;;  %v120_v59 = vld [vmem:[%s4055_s0 + $0x1bc] sm:$0xf]  ;;  %v421_v19 = vld [vmem:[%s4055_s0 + $0x670] sm:$0xf]  ;;  %v1821_v10 = vmax.bf16 %v1819_v56, %v1817_v60 }
 0x105   :  { %v1902_v61 = vsel %vm441_vm0, %v294_v44, 4286644096  ;;  %v1981_v62 = vsel %vm441_vm0, %v183_v32, 4286644096  ;;  %v231_v1 = vld [vmem:[%s4055_s0 + $0x378] sm:$0xf]  ;;  %v2062_v17 = vmax.bf16 %v2060_v58, %v2058_v0 }
 0x106   :  { %v326_v37 = vld [vmem:[%s4055_s0 + $0x4f4] sm:$0xf]  ;;  %v1823_v6 = vsel %vm441_vm0, %v405_v48, 4286644096  ;;  %v2064_v63 = vsel %vm441_vm0, %v88_v38, 4286644096  ;;  %v1904_v20 = vmax.bf16 %v1902_v61, %v1900_v9  ;;  %v1983_v8 = vmax.bf16 %v1981_v62, %v1979_v7 }
 0x107   :  { %v136_v2 = vld [vmem:[%s4055_s0 + $0x1fc] sm:$0xf]  ;;  %v437_v33 = vld [vmem:[%s4055_s0 + $0x6b0] sm:$0xf]  ;;  %v1906_v12 = vsel %vm441_vm0, %v310_v54, 4286644096  ;;  %v1825_v22 = vmax.bf16 %v1823_v6, %v1821_v10  ;;  %v2066_v25 = vmax.bf16 %v2064_v63, %v2062_v17 }
 0x108   :  { %v1985_v16 = vsel %vm441_vm0, %v199_v41, 4286644096  ;;  %v342_v18 = vld [vmem:[%s4055_s0 + $0x534] sm:$0xf]  ;;  %v1827_v42 = vsel %vm441_vm0, %v421_v19, 4286644096  ;;  %v1908_v23 = vmax.bf16 %v1906_v12, %v1904_v20 }
 0x109   :  { %v2068_v13 = vsel %vm441_vm0, %v104_v5, 4286644096  ;;  %v247_v3 = vld [vmem:[%s4055_s0 + $0x3b8] sm:$0xf]  ;;  %v1910_v39 = vsel %vm441_vm0, %v326_v37, 4286644096  ;;  %v1987_v43 = vmax.bf16 %v1985_v16, %v1983_v8  ;;  %v1829_v32 = vmax.bf16 %v1827_v42, %v1825_v22 }
 0x10a   :  { %v1989_v24 = vsel %vm441_vm0, %v215_v29, 4286644096  ;;  %v358_v27 = vld [vmem:[%s4055_s0 + $0x574] sm:$0xf]  ;;  %v1831_v30 = vsel %vm441_vm0, %v437_v33, 4286644096  ;;  %v2070_v4 = vmax.bf16 %v2068_v13, %v2066_v25  ;;  %v1912_v36 = vmax.bf16 %v1910_v39, %v1908_v23 }
 0x10b   :  { %v2072_v21 = vsel %vm441_vm0, %v120_v59, 4286644096  ;;  %v152_v31 = vld [vmem:[%s4055_s0 + $0x23c] sm:$0xf]  ;;  %v1914_v47 = vsel %vm441_vm0, %v342_v18, 4286644096  ;;  %v1991_v38 = vmax.bf16 %v1989_v24, %v1987_v43  ;;  %v1833_v28 = vmax.bf16 %v1831_v30, %v1829_v32 }
 0x10c   :  { %v1993_v34 = vsel %vm441_vm0, %v231_v1, 4286644096  ;;  %v263_v14 = vld [vmem:[%s4055_s0 + $0x3f8] sm:$0xf]  ;;  %v374_v35 = vld [vmem:[%s4055_s0 + $0x5b4] sm:$0xf]  ;;  %v2074_v44 = vmax.bf16 %v2072_v21, %v2070_v4  ;;  %v1916_v46 = vmax.bf16 %v1914_v47, %v1912_v36 }
 0x10d   :  { %v2076_v26 = vsel %vm441_vm0, %v136_v2, 4286644096  ;;  %v168_v40 = vld [vmem:[%s4055_s0 + $0x27c] sm:$0xf]  ;;  %v1918_v50 = vsel %vm441_vm0, %v358_v27, 4286644096  ;;  %v1995_v15 = vmax.bf16 %v1993_v34, %v1991_v38 }
 0x10e   :  { %v1997_v41 = vsel %vm441_vm0, %v247_v3, 4286644096  ;;  %v279_v53 = vld [vmem:[%s4055_s0 + $0x438] sm:$0xf]  ;;  %v390_v45 = vld [vmem:[%s4055_s0 + $0x5f4] sm:$0xf]  ;;  %v2078_v52 = vmax.bf16 %v2076_v26, %v2074_v44  ;;  %v1920_v54 = vmax.bf16 %v1918_v50, %v1916_v46 }
 0x10f   :  { %v2080_v5 = vsel %vm441_vm0, %v152_v31, 4286644096  ;;  %v184_v48 = vld [vmem:[%s4055_s0 + $0x2bc] sm:$0xf]  ;;  %v1922_v49 = vsel %vm441_vm0, %v374_v35, 4286644096  ;;  %v1999_v56 = vmax.bf16 %v1997_v41, %v1995_v15 }
 0x110   :  { %v2001_v51 = vsel %vm441_vm0, %v263_v14, 4286644096  ;;  %2167 = vst.msk [vmem:[%s4056_s1 + $0x30] sm:$0xf] %vm441_vm0, %v1833_v28  ;;  %v295_v55 = vld [vmem:[%s4055_s0 + $0x478] sm:$0xf]  ;;  %v2082_v19 = vmax.bf16 %v2080_v5, %v2078_v52  ;;  %v1924_v62 = vmax.bf16 %v1922_v49, %v1920_v54 }
 0x111   :  { %v406_v29 = vld [vmem:[%s4055_s0 + $0x634] sm:$0xf]  ;;  %v2084_v11 = vsel %vm441_vm0, %v168_v40, 4286644096  ;;  %v200_v57 = vld [vmem:[%s4055_s0 + $0x2fc] sm:$0xf]  ;;  %v2003_v0 = vmax.bf16 %v2001_v51, %v1999_v56 }
 0x112   :  { %v1926_v58 = vsel %vm441_vm0, %v390_v45, 4286644096  ;;  %v2005_v59 = vsel %vm441_vm0, %v279_v53, 4286644096  ;;  %v311_v60 = vld [vmem:[%s4055_s0 + $0x4b8] sm:$0xf]  ;;  %v2086_v7 = vmax.bf16 %v2084_v11, %v2082_v19 }
 0x113   :  { %v422_v61 = vld [vmem:[%s4055_s0 + $0x674] sm:$0xf]  ;;  %v2088_v1 = vsel %vm441_vm0, %v184_v48, 4286644096  ;;  %v216_v37 = vld [vmem:[%s4055_s0 + $0x33c] sm:$0xf]  ;;  %v1928_v33 = vmax.bf16 %v1926_v58, %v1924_v62  ;;  %v2007_v10 = vmax.bf16 %v2005_v59, %v2003_v0 }
 0x114   :  { %v1930_v6 = vsel %vm441_vm0, %v406_v29, 4286644096  ;;  %v2009_v9 = vsel %vm441_vm0, %v295_v55, 4286644096  ;;  %v327_v63 = vld [vmem:[%s4055_s0 + $0x4f8] sm:$0xf]  ;;  %v2090_v42 = vmax.bf16 %v2088_v1, %v2086_v7 }
 0x115   :  { %v438_v2 = vld [vmem:[%s4055_s0 + $0x6b4] sm:$0xf]  ;;  %v2092_v12 = vsel %vm441_vm0, %v200_v57, 4286644096  ;;  %v232_v16 = vld [vmem:[%s4055_s0 + $0x37c] sm:$0xf]  ;;  %v1932_v8 = vmax.bf16 %v1930_v6, %v1928_v33  ;;  %v2011_v13 = vmax.bf16 %v2009_v9, %v2007_v10 }
 0x116   :  { %v1934_v17 = vsel %vm441_vm0, %v422_v61, 4286644096  ;;  %v2013_v18 = vsel %vm441_vm0, %v311_v60, 4286644096  ;;  %v343_v20 = vld [vmem:[%s4055_s0 + $0x538] sm:$0xf]  ;;  %v2094_v25 = vmax.bf16 %v2092_v12, %v2090_v42 }
 0x117   :  { %v2096_v3 = vsel %vm441_vm0, %v216_v37, 4286644096  ;;  %v248_v22 = vld [vmem:[%s4055_s0 + $0x3bc] sm:$0xf]  ;;  %v1938_v39 = vsel %vm441_vm0, %v438_v2, 4286644096  ;;  %v1936_v30 = vmax.bf16 %v1934_v17, %v1932_v8  ;;  %v2015_v23 = vmax.bf16 %v2013_v18, %v2011_v13 }
 0x118   :  { %v2017_v24 = vsel %vm441_vm0, %v327_v63, 4286644096  ;;  %v359_v27 = vld [vmem:[%s4055_s0 + $0x578] sm:$0xf]  ;;  %v2100_v43 = vsel %vm441_vm0, %v232_v16, 4286644096  ;;  %v2098_v32 = vmax.bf16 %v2096_v3, %v2094_v25 }
 0x119   :  { %v264_v21 = vld [vmem:[%s4055_s0 + $0x3fc] sm:$0xf]  ;;  %v2021_v31 = vsel %vm441_vm0, %v343_v20, 4286644096  ;;  %v375_v47 = vld [vmem:[%s4055_s0 + $0x5b8] sm:$0xf]  ;;  %v1940_v34 = vmax.bf16 %v1938_v39, %v1936_v30  ;;  %v2019_v4 = vmax.bf16 %v2017_v24, %v2015_v23 }
 0x11a   :  { %v2104_v14 = vsel %vm441_vm0, %v248_v22, 4286644096  ;;  %v280_v35 = vld [vmem:[%s4055_s0 + $0x43c] sm:$0xf]  ;;  %v2025_v36 = vsel %vm441_vm0, %v359_v27, 4286644096  ;;  %v2102_v38 = vmax.bf16 %v2100_v43, %v2098_v32 }
 0x11b   :  { %v391_v26 = vld [vmem:[%s4055_s0 + $0x5f8] sm:$0xf]  ;;  %v2023_v40 = vmax.bf16 %v2021_v31, %v2019_v4  ;;  %v2108_v28 = vsel %vm441_vm0, %v264_v21, 4286644096  ;;  %2168 = vst.msk [vmem:[%s4056_s1 + $0x34] sm:$0xf] %vm441_vm0, %v1940_v34 }
 0x11c   :  { %v296_v50 = vld [vmem:[%s4055_s0 + $0x47c] sm:$0xf]  ;;  %v2029_v41 = vsel %vm441_vm0, %v375_v47, 4286644096  ;;  %v2106_v44 = vmax.bf16 %v2104_v14, %v2102_v38  ;;  %v407_v53 = vld [vmem:[%s4055_s0 + $0x638] sm:$0xf] }
 0x11d   :  { %v2027_v45 = vmax.bf16 %v2025_v36, %v2023_v40  ;;  %v2112_v46 = vsel %vm441_vm0, %v280_v35, 4286644096  ;;  %v312_v15 = vld [vmem:[%s4055_s0 + $0x4bc] sm:$0xf]  ;;  %v2033_v5 = vsel %vm441_vm0, %v391_v26, 4286644096 }
 0x11e   :  { %v2110_v48 = vmax.bf16 %v2108_v28, %v2106_v44  ;;  %v423_v49 = vld [vmem:[%s4055_s0 + $0x678] sm:$0xf]  ;;  %v2116_v52 = vsel %vm441_vm0, %v296_v50, 4286644096  ;;  %v328_v55 = vld [vmem:[%s4055_s0 + $0x4fc] sm:$0xf] }
 0x11f   :  { %v2031_v51 = vmax.bf16 %v2029_v41, %v2027_v45  ;;  %v2037_v29 = vsel %vm441_vm0, %v407_v53, 4286644096  ;;  %v439_v56 = vld [vmem:[%s4055_s0 + $0x6b8] sm:$0xf]  ;;  %v2120_v57 = vsel %vm441_vm0, %v312_v15, 4286644096 }
 0x120   :  { %v2114_v54 = vmax.bf16 %v2112_v46, %v2110_v48  ;;  %v344_v58 = vld [vmem:[%s4055_s0 + $0x53c] sm:$0xf]  ;;  %v2041_v59 = vsel %vm441_vm0, %v423_v49, 4286644096  ;;  %v2124_v61 = vsel %vm441_vm0, %v328_v55, 4286644096 }
 0x121   :  { %v2035_v11 = vmax.bf16 %v2033_v5, %v2031_v51  ;;  %v360_v62 = vld [vmem:[%s4055_s0 + $0x57c] sm:$0xf]  ;;  %v2045_v0 = vsel %vm441_vm0, %v439_v56, 4286644096  ;;  %v2128_v6 = vsel %vm441_vm0, %v344_v58, 4286644096 }
 0x122   :  { %v2118_v19 = vmax.bf16 %v2116_v52, %v2114_v54  ;;  %v376_v9 = vld [vmem:[%s4055_s0 + $0x5bc] sm:$0xf]  ;;  %v2132_v2 = vsel %vm441_vm0, %v360_v62, 4286644096 }
 0x123   :  { %v2039_v60 = vmax.bf16 %v2037_v29, %v2035_v11  ;;  %v392_v33 = vld [vmem:[%s4055_s0 + $0x5fc] sm:$0xf]  ;;  %v2136_v12 = vsel %vm441_vm0, %v376_v9, 4286644096 }
 0x124   :  { %v2122_v1 = vmax.bf16 %v2120_v57, %v2118_v19  ;;  %v408_v16 = vld [vmem:[%s4055_s0 + $0x63c] sm:$0xf]  ;;  %v2140_v18 = vsel %vm441_vm0, %v392_v33, 4286644096 }
 0x125   :  { %v2043_v37 = vmax.bf16 %v2041_v59, %v2039_v60  ;;  %v424_v42 = vld [vmem:[%s4055_s0 + $0x67c] sm:$0xf]  ;;  %v2144_v8 = vsel %vm441_vm0, %v408_v16, 4286644096 }
 0x126   :  { %v2126_v7 = vmax.bf16 %v2124_v61, %v2122_v1  ;;  %v440_v13 = vld [vmem:[%s4055_s0 + $0x6bc] sm:$0xf]  ;;  %v2148_v22 = vsel %vm441_vm0, %v424_v42, 4286644096 }
 0x127   :  { %v2047_v63 = vmax.bf16 %v2045_v0, %v2043_v37  ;;  %v2152_v24 = vsel %vm441_vm0, %v440_v13, 4286644096 }
 0x128   :  { %v2130_v10 = vmax.bf16 %v2128_v6, %v2126_v7 }
 0x129   :  { %2169 = vst.msk [vmem:[%s4056_s1 + $0x38] sm:$0xf] %vm441_vm0, %v2047_v63 }
 0x12a   :  { %v2134_v17 = vmax.bf16 %v2132_v2, %v2130_v10 }
 0x12c   :  { %v2138_v20 = vmax.bf16 %v2136_v12, %v2134_v17 }
 0x12e   :  { %v2142_v3 = vmax.bf16 %v2140_v18, %v2138_v20 }
 0x130   :  { %v2146_v39 = vmax.bf16 %v2144_v8, %v2142_v3 }
 0x132   :  { %v2150_v25 = vmax.bf16 %v2148_v22, %v2146_v39 }
 0x134   :  { %v2154_v27 = vmax.bf16 %v2152_v24, %v2150_v25 }
 0x136   :  { %2170 = vst.msk [vmem:[%s4056_s1 + $0x3c] sm:$0xf] %vm441_vm0, %v2154_v27 }

// kernel: clsnet_forward.15
= control target key start
LH: loop header
LB: loop body
LE: loop exit
PB: predicated region body
PF: predicated region fallthrough
CT: control target
= control target key end

     0   :  { %v1025_v0 = vmov 0   ;;  %vm418_vm0 = vcmask 392192   ;;  %vm763_vm1 = vcmask 125952   ;;  %s1353_s1 = inlined_call_operand.vmem [shape: bf16[432,16], index: 1, kind: input, shape index: {}]   ;;  %s1354_s0 = inlined_call_operand.vmem [shape: bf16[128,432], index: 0, kind: input, shape index: {}]   ;;  %s1355_s2 = inlined_call_operand.vmem [shape: f32[1,16], index: 2, kind: input, shape index: {}]   ;;  %s1356_s3 = inlined_call_operand.vmem [shape: f32[1,16], index: 3, kind: input, shape index: {}]   ;;  %s1357_s4 = inlined_call_operand.vmem [shape: bf16[128,16], index: 4, kind: output, shape index: {}]  }
   0x1   :  { %540 = vmatprep.subr.bf16.mxu1 %v1025_v0  ;;  %v950_v1 = vld [vmem:[%s1353_s1 + $0xb8] sm:$0xff]   ;;  %v953_v4 = vld [vmem:[%s1353_s1 + $0xb0] sm:$0xff]   ;;  %v956_v7 = vld [vmem:[%s1353_s1 + $0xa8] sm:$0xff]  }
   0x2   :  { %v951_v2 = vld [vmem:[%s1353_s1 + $0x78] sm:$0xff]   ;;  %541 = vmatpush1.bf16.msra.mxu1 %v950_v1  ;;  %v954_v5 = vld [vmem:[%s1353_s1 + $0x70] sm:$0xff]   ;;  %v957_v8 = vld [vmem:[%s1353_s1 + $0x68] sm:$0xff]  }
   0x3   :  { %v952_v3 = vld [vmem:[%s1353_s1 + $0x38] sm:$0xff]   ;;  %885 = vmatprep.subr.bf16.mxu0 %v951_v2  ;;  %542 = vmatprep.subr.bf16.mxu1 %v1025_v0  ;;  %v955_v6 = vld [vmem:[%s1353_s1 + $0x30] sm:$0xff]   ;;  %v958_v9 = vld [vmem:[%s1353_s1 + $0x28] sm:$0xff]  }
   0x4   :  { %886 = vmatpush3.bf16.msra.mxu0 %v952_v3  ;;  %v959_v10 = vld [vmem:[%s1353_s1 + $0xa0] sm:$0xff]   ;;  %v963_v13 = vld [vmem:[%s1353_s1 + $0x58] sm:$0xff]   ;;  %v966_v16 = vld [vmem:[%s1353_s1 + $0x50] sm:$0xff]  }
   0x5   :  { %887 = vmatprep.subr.bf16.mxu0 %v954_v5  ;;  %v960_v11 = vld [vmem:[%s1353_s1 + $0x60] sm:$0xff]   ;;  %v962_v14 = vld [vmem:[%s1353_s1 + $0x98] sm:$0xff]   ;;  %v965_v17 = vld [vmem:[%s1353_s1 + $0x90] sm:$0xff]  }
   0x6   :  { %543 = vmatpush1.bf16.msra.mxu1 %v953_v4  ;;  %v961_v12 = vld [vmem:[%s1353_s1 + $0x20] sm:$0xff]   ;;  %v964_v15 = vld [vmem:[%s1353_s1 + $0x18] sm:$0xff]   ;;  %v967_v18 = vld [vmem:[%s1353_s1 + $0x10] sm:$0xff]  }
   0x7   :  { %544 = vmatprep.subr.bf16.mxu1 %v1025_v0  ;;  %v969_v19 = vld [vmem:[%s1353_s1 + $0x48] sm:$0xff]   ;;  %v972_v22 = vld [vmem:[%s1353_s1 + $0x40] sm:$0xff]   ;;  %v977_v26 = vld [vmem:[%s1353_s1 + $0xd0] sm:$0xff]  }
   0x8   :  { %888 = vmatpush3.bf16.msra.mxu0 %v955_v6  ;;  %v968_v20 = vld [vmem:[%s1353_s1 + $0x88] sm:$0xff]   ;;  %v976_v23 = vld [vmem:[%s1354_s0 + $0x4] ss:$16 sps:$4 sm:$0xff]   ;;  %v974_v28 = vld [vmem:[%s1354_s0] ss:$16 sps:$4 sm:$0xff]  }
   0x9   :  { %889 = vmatprep.subr.bf16.mxu0 %v957_v8  ;;  %v970_v21 = vld [vmem:[%s1353_s1 + $0x8] sm:$0xff]   ;;  %v971_v24 = vld [vmem:[%s1353_s1 + $0x80] sm:$0xff]   ;;  %475 = vmatprep.mubr.bf16.mxu0 %v976_v23 }
   0xa   :  { %545 = vmatpush1.bf16.msra.mxu1 %v956_v7  ;;  %v973_v25 = vld [vmem:[%s1353_s1] sm:$0xff]   ;;  %v985_v27 = vld [vmem:[%s1354_s0 + $0xc] ss:$16 sps:$4 sm:$0xff]   ;;  %v983_v34 = vld [vmem:[%s1354_s0 + $0x8] ss:$16 sps:$4 sm:$0xff]  }
   0xb   :  { %546 = vmatprep.subr.bf16.mxu1 %v1025_v0  ;;  %v979_v29 = vld [vmem:[%s1354_s0 + $0x24] ss:$16 sps:$4 sm:$0xff]   ;;  %843 = vmatprep.mubr.msk.bf16.mxu1 %vm418_vm0, %v985_v27  ;;  %v978_v30 = vld [vmem:[%s1353_s1 + $0xc8] sm:$0xff]   ;;  %v982_v32 = vld [vmem:[%s1354_s0 + $0x20] ss:$16 sps:$4 sm:$0xff]  }
   0xc   :  { %890 = vmatpush3.bf16.msra.mxu0 %v958_v9  ;;  %v981_v31 = vld [vmem:[%s1353_s1 + $0xc0] sm:$0xff]   ;;  %v989_v35 = vld [vmem:[%s1354_s0 + $0x2c] ss:$16 sps:$4 sm:$0xff]   ;;  %v991_v38 = vld [vmem:[%s1354_s0 + $0x28] ss:$16 sps:$4 sm:$0xff]  }
   0xd   :  { %891 = vmatprep.subr.bf16.mxu0 %v960_v11  ;;  %v986_v33 = vld [vmem:[%s1354_s0 + $0x44] ss:$16 sps:$4 sm:$0xff]   ;;  %v988_v36 = vld [vmem:[%s1354_s0 + $0x40] ss:$16 sps:$4 sm:$0xff]   ;;  %v995_v39 = vld [vmem:[%s1354_s0 + $0x4c] ss:$16 sps:$4 sm:$0xff]  }
   0xe   :  { %547 = vmatpush1.bf16.msra.mxu1 %v959_v10  ;;  %v992_v37 = vld [vmem:[%s1354_s0 + $0x64] ss:$16 sps:$4 sm:$0xff]   ;;  %v994_v40 = vld [vmem:[%s1354_s0 + $0x60] ss:$16 sps:$4 sm:$0xff]   ;;  %v997_v42 = vld [vmem:[%s1354_s0 + $0x48] ss:$16 sps:$4 sm:$0xff]  }
   0xf   :  { %548 = vmatprep.subr.bf16.mxu1 %v1025_v0  ;;  %v998_v41 = vld [vmem:[%s1354_s0 + $0x84] ss:$16 sps:$4 sm:$0xff]   ;;  %v1001_v43 = vld [vmem:[%s1354_s0 + $0x6c] ss:$16 sps:$4 sm:$0xff]   ;;  %v1000_v44 = vld [vmem:[%s1354_s0 + $0x80] ss:$16 sps:$4 sm:$0xff]  }
  0x10   :  { %892 = vmatpush3.bf16.msra.mxu0 %v961_v12  ;;  %v1004_v45 = vld [vmem:[%s1354_s0 + $0xa4] ss:$16 sps:$4 sm:$0xff]   ;;  %v1003_v46 = vld [vmem:[%s1354_s0 + $0x68] ss:$16 sps:$4 sm:$0xff]   ;;  %v1007_v47 = vld [vmem:[%s1354_s0 + $0x8c] ss:$16 sps:$4 sm:$0xff]  }
  0x11   :  { %893 = vmatprep.subr.bf16.mxu0 %v963_v13  ;;  %v1006_v48 = vld [vmem:[%s1354_s0 + $0xa0] ss:$16 sps:$4 sm:$0xff]   ;;  %v1010_v49 = vld [vmem:[%s1354_s0 + $0xc4] ss:$16 sps:$4 sm:$0xff]   ;;  %v1009_v50 = vld [vmem:[%s1354_s0 + $0x88] ss:$16 sps:$4 sm:$0xff]  }
  0x12   :  { %549 = vmatpush1.bf16.msra.mxu1 %v962_v14  ;;  %v1013_v51 = vld [vmem:[%s1354_s0 + $0xac] ss:$16 sps:$4 sm:$0xff]   ;;  %v1012_v52 = vld [vmem:[%s1354_s0 + $0xc0] ss:$16 sps:$4 sm:$0xff]   ;;  %v1016_v53 = vld [vmem:[%s1354_s0 + $0xe4] ss:$16 sps:$4 sm:$0xff]  }
  0x13   :  { %550 = vmatprep.subr.bf16.mxu1 %v1025_v0  ;;  %v1015_v54 = vld [vmem:[%s1354_s0 + $0xa8] ss:$16 sps:$4 sm:$0xff]   ;;  %v1019_v55 = vld [vmem:[%s1354_s0 + $0xcc] ss:$16 sps:$4 sm:$0xff]   ;;  %v1018_v56 = vld [vmem:[%s1354_s0 + $0xe0] ss:$16 sps:$4 sm:$0xff]  }
  0x14   :  { %894 = vmatpush3.bf16.msra.mxu0 %v964_v15  ;;  %v1021_v57 = vld [vmem:[%s1354_s0 + $0xc8] ss:$16 sps:$4 sm:$0xff]   ;;  %v1022_v58 = vld [vmem:[%s1354_s0 + $0xec] ss:$16 sps:$4 sm:$0xff]   ;;  %v1250_v4 = vld [vmem:[%s1355_s2] ss:$0 sm:$0xff] }
  0x15   :  { %895 = vmatprep.subr.bf16.mxu0 %v966_v16  ;;  %v1024_v59 = vld [vmem:[%s1354_s0 + $0xe8] ss:$16 sps:$4 sm:$0xff]   ;;  %v1255_v6 = vld [vmem:[%s1356_s3] ss:$0 sm:$0xff] }
  0x16   :  { %551 = vmatpush1.bf16.msra.mxu1 %v965_v17 }
  0x17   :  { %552 = vmatprep.subr.bf16.mxu1 %v1025_v0 }
  0x18   :  { %896 = vmatpush3.bf16.msra.mxu0 %v967_v18 }
  0x19   :  { %897 = vmatprep.subr.bf16.mxu0 %v969_v19 }
  0x1a   :  { %553 = vmatpush1.bf16.msra.mxu1 %v968_v20 }
  0x1b   :  { %554 = vmatprep.subr.bf16.mxu1 %v1025_v0 }
  0x1c   :  { %898 = vmatpush3.bf16.msra.mxu0 %v970_v21 }
  0x1d   :  { %899 = vmatprep.subr.bf16.mxu0 %v972_v22 }
  0x1e   :  { %555 = vmatpush1.bf16.msra.mxu1 %v971_v24 }
  0x1f   :  { %566 = vmatprep.subr.bf16.mxu1 %v1025_v0 }
  0x20   :  { %900 = vmatpush3.bf16.msra.mxu0 %v973_v25 }
  0x22   :  { %567 = vmatpush2.bf16.msra.mxu1 %v977_v26 }
  0x23   :  { %476 = vmatmul.mubr.bf16.vlgmr.msra.gmra.mxu0 %v974_v28  ;;  %568 = vmatprep.subr.bf16.mxu1 %v1025_v0 }
  0x24   :  { %483 = vmatprep.mubr.bf16.mxu0 %v979_v29 }
  0x26   :  { %569 = vmatpush2.bf16.msra.mxu1 %v978_v30 }
  0x27   :  { %570 = vmatprep.subr.bf16.mxu1 %v1025_v0 }
  0x2a   :  { %571 = vmatpush2.bf16.msra.mxu1 %v981_v31 }
  0x2b   :  { %484 = vmatmul.mubr.bf16.gmra.mxu0 %v982_v32 }
  0x2c   :  { %491 = vmatprep.mubr.bf16.mxu0 %v986_v33 }
  0x2d   :  { %573 = vmatmul.mubr.bf16.vlgmr.msra.gmra.mxu1 %v983_v34 }
  0x2e   :  { %844 = vmatprep.mubr.msk.bf16.mxu1 %vm418_vm0, %v989_v35 }
  0x33   :  { %492 = vmatmul.mubr.bf16.gmra.mxu0 %v988_v36 }
  0x34   :  { %499 = vmatprep.mubr.bf16.mxu0 %v992_v37 }
  0x35   :  { %581 = vmatmul.mubr.bf16.gmra.mxu1 %v991_v38 }
  0x36   :  { %845 = vmatprep.mubr.msk.bf16.mxu1 %vm418_vm0, %v995_v39 }
  0x3b   :  { %500 = vmatmul.mubr.bf16.gmra.mxu0 %v994_v40 }
  0x3c   :  { %507 = vmatprep.mubr.bf16.mxu0 %v998_v41 }
  0x3d   :  { %589 = vmatmul.mubr.bf16.gmra.mxu1 %v997_v42 }
  0x3e   :  { %846 = vmatprep.mubr.msk.bf16.mxu1 %vm418_vm0, %v1001_v43 }
  0x43   :  { %508 = vmatmul.mubr.bf16.gmra.mxu0 %v1000_v44 }
  0x44   :  { %515 = vmatprep.mubr.bf16.mxu0 %v1004_v45 }
  0x45   :  { %597 = vmatmul.mubr.bf16.gmra.mxu1 %v1003_v46 }
  0x46   :  { %847 = vmatprep.mubr.msk.bf16.mxu1 %vm418_vm0, %v1007_v47 }
  0x4b   :  { %516 = vmatmul.mubr.bf16.gmra.mxu0 %v1006_v48 }
  0x4c   :  { %523 = vmatprep.mubr.bf16.mxu0 %v1010_v49 }
  0x4d   :  { %605 = vmatmul.mubr.bf16.gmra.mxu1 %v1009_v50 }
  0x4e   :  { %848 = vmatprep.mubr.msk.bf16.mxu1 %vm418_vm0, %v1013_v51 }
  0x53   :  { %524 = vmatmul.mubr.bf16.gmra.mxu0 %v1012_v52 }
  0x54   :  { %531 = vmatprep.mubr.bf16.mxu0 %v1016_v53 }
  0x55   :  { %613 = vmatmul.mubr.bf16.gmra.mxu1 %v1015_v54 }
  0x56   :  { %849 = vmatprep.mubr.msk.bf16.mxu1 %vm418_vm0, %v1019_v55 }
  0x5b   :  { %532 = vmatmul.mubr.bf16.gmra.mxu0 %v1018_v56 }
  0x5d   :  { %621 = vmatmul.mubr.bf16.gmra.mxu1 %v1021_v57 }
  0x5e   :  { %850 = vmatprep.mubr.msk.bf16.mxu1 %vm418_vm0, %v1022_v58 }
  0x65   :  { %629 = vmatmul.mubr.bf16.gmra.mxu1 %v1024_v59 }
  0xe3   :  { %v901_v60 = vpop.f32.mrf.mxu0 }
  0xe5   :  { %v902_v61 = vpop.f32.mrf.mxu0 }
  0xe6   :  { %v903_v1 = vadd.f32 %v902_v61, %v901_v60 }
  0xe7   :  { %v904_v62 = vpop.f32.mrf.mxu0 }
  0xe9   :  { %v905_v63 = vpop.f32.mrf.mxu0 }
  0xea   :  { %v906_v9 = vadd.f32 %v905_v63, %v904_v62 }
  0xeb   :  { %v907_v0 = vpop.f32.mrf.mxu0 }
  0xed   :  { %v908_v2 = vpop.f32.mrf.mxu0  ;;  %v574_v3 = vpop.f32.mrf.mxu1 }
  0xee   :  { %v575_v5 = vadd.f32 %v903_v1, %v574_v3  ;;  %v909_v17 = vadd.f32 %v908_v2, %v907_v0 }
  0xef   :  { %v910_v7 = vpop.f32.mrf.mxu0  ;;  %v576_v8 = vpop.f32.mrf.mxu1 }
  0xf0   :  { %v644_v10 = vmul.f32 %v1250_v4, %v575_v5 }
  0xf1   :  { %v911_v11 = vpop.f32.mrf.mxu0  ;;  %v577_v12 = vpop.f32.mrf.mxu1 }
  0xf2   :  { %v667_v13 = vadd.f32 %v1255_v6, %v644_v10  ;;  %v578_v14 = vadd.f32 %v906_v9, %v577_v12  ;;  %v912_v27 = vadd.f32 %v911_v11, %v910_v7 }
  0xf3   :  { %v913_v15 = vpop.f32.mrf.mxu0  ;;  %v579_v16 = vpop.f32.mrf.mxu1 }
  0xf4   :  { %v683_v18 = vmax.f32 %v667_v13, 0.0  ;;  %v645_v19 = vmul.f32 %v1250_v4, %v578_v14 }
  0xf5   :  { %v914_v20 = vpop.f32.mrf.mxu0  ;;  %v582_v21 = vpop.f32.mrf.mxu1 }
  0xf6   :  { %v869_v22 = vpack.c.bf16 %v683_v18, %v683_v18  ;;  %v668_v23 = vadd.f32 %v1255_v6, %v645_v19  ;;  %v583_v24 = vadd.f32 %v909_v17, %v582_v21  ;;  %v915_v37 = vadd.f32 %v914_v20, %v913_v15 }
  0xf7   :  { %v916_v25 = vpop.f32.mrf.mxu0  ;;  %v584_v26 = vpop.f32.mrf.mxu1 }
  0xf8   :  { %764 = vst.msk [vmem:[%s1357_s4] sm:$0xf] %vm763_vm1, %v869_v22  ;;  %v684_v28 = vmax.f32 %v668_v23, 0.0  ;;  %v646_v29 = vmul.f32 %v1250_v4, %v583_v24 }
  0xf9   :  { %v917_v30 = vpop.f32.mrf.mxu0  ;;  %v585_v31 = vpop.f32.mrf.mxu1 }
  0xfa   :  { %v870_v32 = vpack.c.bf16 %v684_v28, %v684_v28  ;;  %v669_v33 = vadd.f32 %v1255_v6, %v646_v29  ;;  %v586_v34 = vadd.f32 %v912_v27, %v585_v31  ;;  %v918_v47 = vadd.f32 %v917_v30, %v916_v25 }
  0xfb   :  { %v919_v35 = vpop.f32.mrf.mxu0  ;;  %v587_v36 = vpop.f32.mrf.mxu1 }
  0xfc   :  { %765 = vst.msk [vmem:[%s1357_s4 + $0x4] sm:$0xf] %vm763_vm1, %v870_v32  ;;  %v685_v38 = vmax.f32 %v669_v33, 0.0  ;;  %v647_v39 = vmul.f32 %v1250_v4, %v586_v34 }
  0xfd   :  { %v920_v40 = vpop.f32.mrf.mxu0  ;;  %v590_v41 = vpop.f32.mrf.mxu1 }
  0xfe   :  { %v871_v42 = vpack.c.bf16 %v685_v38, %v685_v38  ;;  %v670_v43 = vadd.f32 %v1255_v6, %v647_v39  ;;  %v591_v44 = vadd.f32 %v915_v37, %v590_v41  ;;  %v921_v57 = vadd.f32 %v920_v40, %v919_v35 }
  0xff   :  { %v922_v45 = vpop.f32.mrf.mxu0  ;;  %v592_v46 = vpop.f32.mrf.mxu1 }
 0x100   :  { %766 = vst.msk [vmem:[%s1357_s4 + $0x8] sm:$0xf] %vm763_vm1, %v871_v42  ;;  %v686_v48 = vmax.f32 %v670_v43, 0.0  ;;  %v648_v49 = vmul.f32 %v1250_v4, %v591_v44 }
 0x101   :  { %v923_v50 = vpop.f32.mrf.mxu0  ;;  %v593_v51 = vpop.f32.mrf.mxu1 }
 0x102   :  { %v872_v52 = vpack.c.bf16 %v686_v48, %v686_v48  ;;  %v671_v53 = vadd.f32 %v1255_v6, %v648_v49  ;;  %v594_v54 = vadd.f32 %v918_v47, %v593_v51  ;;  %v924_v3 = vadd.f32 %v923_v50, %v922_v45 }
 0x103   :  { %v925_v55 = vpop.f32.mrf.mxu0  ;;  %v595_v56 = vpop.f32.mrf.mxu1 }
 0x104   :  { %767 = vst.msk [vmem:[%s1357_s4 + $0xc] sm:$0xf] %vm763_vm1, %v872_v52  ;;  %v687_v58 = vmax.f32 %v671_v53, 0.0  ;;  %v649_v59 = vmul.f32 %v1250_v4, %v594_v54 }
 0x105   :  { %v926_v60 = vpop.f32.mrf.mxu0  ;;  %v598_v61 = vpop.f32.mrf.mxu1 }
 0x106   :  { %v873_v62 = vpack.c.bf16 %v687_v58, %v687_v58  ;;  %v672_v63 = vadd.f32 %v1255_v6, %v649_v59  ;;  %v599_v0 = vadd.f32 %v921_v57, %v598_v61  ;;  %v927_v15 = vadd.f32 %v926_v60, %v925_v55 }
 0x107   :  { %v928_v1 = vpop.f32.mrf.mxu0  ;;  %v600_v2 = vpop.f32.mrf.mxu1 }
 0x108   :  { %768 = vst.msk [vmem:[%s1357_s4 + $0x10] sm:$0xf] %vm763_vm1, %v873_v62  ;;  %v688_v5 = vmax.f32 %v672_v63, 0.0  ;;  %v650_v7 = vmul.f32 %v1250_v4, %v599_v0 }
 0x109   :  { %v929_v8 = vpop.f32.mrf.mxu0  ;;  %v601_v9 = vpop.f32.mrf.mxu1 }
 0x10a   :  { %v874_v10 = vpack.c.bf16 %v688_v5, %v688_v5  ;;  %v673_v11 = vadd.f32 %v1255_v6, %v650_v7  ;;  %v602_v12 = vadd.f32 %v924_v3, %v601_v9  ;;  %v930_v25 = vadd.f32 %v929_v8, %v928_v1 }
 0x10b   :  { %v931_v13 = vpop.f32.mrf.mxu0  ;;  %v603_v14 = vpop.f32.mrf.mxu1 }
 0x10c   :  { %769 = vst.msk [vmem:[%s1357_s4 + $0x14] sm:$0xf] %vm763_vm1, %v874_v10  ;;  %v689_v16 = vmax.f32 %v673_v11, 0.0  ;;  %v651_v17 = vmul.f32 %v1250_v4, %v602_v12 }
 0x10d   :  { %v932_v18 = vpop.f32.mrf.mxu0  ;;  %v606_v19 = vpop.f32.mrf.mxu1 }
 0x10e   :  { %v875_v20 = vpack.c.bf16 %v689_v16, %v689_v16  ;;  %v674_v21 = vadd.f32 %v1255_v6, %v651_v17  ;;  %v607_v22 = vadd.f32 %v927_v15, %v606_v19  ;;  %v933_v35 = vadd.f32 %v932_v18, %v931_v13 }
 0x10f   :  { %v934_v23 = vpop.f32.mrf.mxu0  ;;  %v608_v24 = vpop.f32.mrf.mxu1 }
 0x110   :  { %770 = vst.msk [vmem:[%s1357_s4 + $0x18] sm:$0xf] %vm763_vm1, %v875_v20  ;;  %v690_v26 = vmax.f32 %v674_v21, 0.0  ;;  %v652_v27 = vmul.f32 %v1250_v4, %v607_v22 }
 0x111   :  { %v935_v28 = vpop.f32.mrf.mxu0  ;;  %v609_v29 = vpop.f32.mrf.mxu1 }
 0x112   :  { %v876_v30 = vpack.c.bf16 %v690_v26, %v690_v26  ;;  %v675_v31 = vadd.f32 %v1255_v6, %v652_v27  ;;  %v610_v32 = vadd.f32 %v930_v25, %v609_v29  ;;  %v936_v45 = vadd.f32 %v935_v28, %v934_v23 }
 0x113   :  { %v937_v33 = vpop.f32.mrf.mxu0  ;;  %v611_v34 = vpop.f32.mrf.mxu1 }
 0x114   :  { %771 = vst.msk [vmem:[%s1357_s4 + $0x1c] sm:$0xf] %vm763_vm1, %v876_v30  ;;  %v691_v36 = vmax.f32 %v675_v31, 0.0  ;;  %v653_v37 = vmul.f32 %v1250_v4, %v610_v32 }
 0x115   :  { %v938_v38 = vpop.f32.mrf.mxu0  ;;  %v614_v39 = vpop.f32.mrf.mxu1 }
 0x116   :  { %v877_v40 = vpack.c.bf16 %v691_v36, %v691_v36  ;;  %v676_v41 = vadd.f32 %v1255_v6, %v653_v37  ;;  %v615_v42 = vadd.f32 %v933_v35, %v614_v39  ;;  %v939_v55 = vadd.f32 %v938_v38, %v937_v33 }
 0x117   :  { %v940_v43 = vpop.f32.mrf.mxu0  ;;  %v616_v44 = vpop.f32.mrf.mxu1 }
 0x118   :  { %772 = vst.msk [vmem:[%s1357_s4 + $0x20] sm:$0xf] %vm763_vm1, %v877_v40  ;;  %v692_v46 = vmax.f32 %v676_v41, 0.0  ;;  %v654_v47 = vmul.f32 %v1250_v4, %v615_v42 }
 0x119   :  { %v941_v48 = vpop.f32.mrf.mxu0  ;;  %v617_v49 = vpop.f32.mrf.mxu1 }
 0x11a   :  { %v878_v50 = vpack.c.bf16 %v692_v46, %v692_v46  ;;  %v677_v51 = vadd.f32 %v1255_v6, %v654_v47  ;;  %v618_v52 = vadd.f32 %v936_v45, %v617_v49  ;;  %v942_v0 = vadd.f32 %v941_v48, %v940_v43 }
 0x11b   :  { %v943_v53 = vpop.f32.mrf.mxu0  ;;  %v619_v54 = vpop.f32.mrf.mxu1 }
 0x11c   :  { %773 = vst.msk [vmem:[%s1357_s4 + $0x24] sm:$0xf] %vm763_vm1, %v878_v50  ;;  %v693_v56 = vmax.f32 %v677_v51, 0.0  ;;  %v655_v57 = vmul.f32 %v1250_v4, %v618_v52 }
 0x11d   :  { %v944_v58 = vpop.f32.mrf.mxu0  ;;  %v622_v59 = vpop.f32.mrf.mxu1 }
 0x11e   :  { %v879_v60 = vpack.c.bf16 %v693_v56, %v693_v56  ;;  %v678_v61 = vadd.f32 %v1255_v6, %v655_v57  ;;  %v623_v62 = vadd.f32 %v939_v55, %v622_v59  ;;  %v945_v11 = vadd.f32 %v944_v58, %v943_v53 }
 0x11f   :  { %v624_v63 = vpop.f32.mrf.mxu1  ;;  %v946_v3 = vpop.f32.mrf.mxu0 }
 0x120   :  { %774 = vst.msk [vmem:[%s1357_s4 + $0x28] sm:$0xf] %vm763_vm1, %v879_v60  ;;  %v694_v1 = vmax.f32 %v678_v61, 0.0  ;;  %v656_v2 = vmul.f32 %v1250_v4, %v623_v62 }
 0x121   :  { %v625_v5 = vpop.f32.mrf.mxu1  ;;  %v947_v14 = vpop.f32.mrf.mxu0 }
 0x122   :  { %v880_v7 = vpack.c.bf16 %v694_v1, %v694_v1  ;;  %v679_v8 = vadd.f32 %v1255_v6, %v656_v2  ;;  %v626_v9 = vadd.f32 %v942_v0, %v625_v5  ;;  %v948_v20 = vadd.f32 %v947_v14, %v946_v3 }
 0x123   :  { %v627_v10 = vpop.f32.mrf.mxu1 }
 0x124   :  { %775 = vst.msk [vmem:[%s1357_s4 + $0x2c] sm:$0xf] %vm763_vm1, %v880_v7  ;;  %v695_v12 = vmax.f32 %v679_v8, 0.0  ;;  %v657_v13 = vmul.f32 %v1250_v4, %v626_v9 }
 0x125   :  { %v630_v15 = vpop.f32.mrf.mxu1 }
 0x126   :  { %v881_v16 = vpack.c.bf16 %v695_v12, %v695_v12  ;;  %v680_v17 = vadd.f32 %v1255_v6, %v657_v13  ;;  %v631_v18 = vadd.f32 %v945_v11, %v630_v15 }
 0x127   :  { %v632_v19 = vpop.f32.mrf.mxu1 }
 0x128   :  { %776 = vst.msk [vmem:[%s1357_s4 + $0x30] sm:$0xf] %vm763_vm1, %v881_v16  ;;  %v696_v21 = vmax.f32 %v680_v17, 0.0  ;;  %v658_v22 = vmul.f32 %v1250_v4, %v631_v18 }
 0x129   :  { %v633_v23 = vpop.f32.mrf.mxu1 }
 0x12a   :  { %v882_v24 = vpack.c.bf16 %v696_v21, %v696_v21  ;;  %v681_v25 = vadd.f32 %v1255_v6, %v658_v22  ;;  %v634_v26 = vadd.f32 %v948_v20, %v633_v23 }
 0x12b   :  { %v635_v27 = vpop.f32.mrf.mxu1 }
 0x12c   :  { %777 = vst.msk [vmem:[%s1357_s4 + $0x34] sm:$0xf] %vm763_vm1, %v882_v24  ;;  %v697_v28 = vmax.f32 %v681_v25, 0.0  ;;  %v659_v29 = vmul.f32 %v1250_v4, %v634_v26 }
 0x12e   :  { %v883_v30 = vpack.c.bf16 %v697_v28, %v697_v28  ;;  %v682_v31 = vadd.f32 %v1255_v6, %v659_v29 }
 0x130   :  { %778 = vst.msk [vmem:[%s1357_s4 + $0x38] sm:$0xf] %vm763_vm1, %v883_v30  ;;  %v698_v32 = vmax.f32 %v682_v31, 0.0 }
 0x132   :  { %v884_v33 = vpack.c.bf16 %v698_v32, %v698_v32 }
 0x134   :  { %779 = vst.msk [vmem:[%s1357_s4 + $0x3c] sm:$0xf] %vm763_vm1, %v884_v33 }

// kernel: clsnet_forward.16
= control target key start
LH: loop header
LB: loop body
LE: loop exit
PB: predicated region body
PF: predicated region fallthrough
CT: control target
= control target key end

     0   :  { %v1115_v0 = vmov 0   ;;  %vm421_vm0 = vcmask 392192   ;;  %vm814_vm1 = vcmask 125952   ;;  %s1472_s1 = inlined_call_operand.vmem [shape: bf16[432,16], index: 1, kind: input, shape index: {}]   ;;  %s1473_s0 = inlined_call_operand.vmem [shape: bf16[128,432], index: 0, kind: input, shape index: {}]   ;;  %s1474_s2 = inlined_call_operand.vmem [shape: f32[1,16], index: 2, kind: input, shape index: {}]   ;;  %s1475_s4 = inlined_call_operand.vmem [shape: bf16[128,16], index: 4, kind: input, shape index: {}]   ;;  %s1476_s3 = inlined_call_operand.vmem [shape: f32[1,16], index: 3, kind: input, shape index: {}]   ;;  %s1477_s5 = inlined_call_operand.vmem [shape: bf16[128,16], index: 5, kind: output, shape index: {}]  }
   0x1   :  { %543 = vmatprep.subr.bf16.mxu1 %v1115_v0  ;;  %v1040_v1 = vld [vmem:[%s1472_s1 + $0xb8] sm:$0xff]   ;;  %v1043_v4 = vld [vmem:[%s1472_s1 + $0xb0] sm:$0xff]   ;;  %v1046_v7 = vld [vmem:[%s1472_s1 + $0xa8] sm:$0xff]  }
   0x2   :  { %v1041_v2 = vld [vmem:[%s1472_s1 + $0x78] sm:$0xff]   ;;  %544 = vmatpush1.bf16.msra.mxu1 %v1040_v1  ;;  %v1044_v5 = vld [vmem:[%s1472_s1 + $0x70] sm:$0xff]   ;;  %v1047_v8 = vld [vmem:[%s1472_s1 + $0x68] sm:$0xff]  }
   0x3   :  { %v1042_v3 = vld [vmem:[%s1472_s1 + $0x38] sm:$0xff]   ;;  %975 = vmatprep.subr.bf16.mxu0 %v1041_v2  ;;  %545 = vmatprep.subr.bf16.mxu1 %v1115_v0  ;;  %v1045_v6 = vld [vmem:[%s1472_s1 + $0x30] sm:$0xff]   ;;  %v1048_v9 = vld [vmem:[%s1472_s1 + $0x28] sm:$0xff]  }
   0x4   :  { %976 = vmatpush3.bf16.msra.mxu0 %v1042_v3  ;;  %v1049_v10 = vld [vmem:[%s1472_s1 + $0xa0] sm:$0xff]   ;;  %v1053_v13 = vld [vmem:[%s1472_s1 + $0x58] sm:$0xff]   ;;  %v1056_v16 = vld [vmem:[%s1472_s1 + $0x50] sm:$0xff]  }
   0x5   :  { %977 = vmatprep.subr.bf16.mxu0 %v1044_v5  ;;  %v1050_v11 = vld [vmem:[%s1472_s1 + $0x60] sm:$0xff]   ;;  %v1052_v14 = vld [vmem:[%s1472_s1 + $0x98] sm:$0xff]   ;;  %v1055_v17 = vld [vmem:[%s1472_s1 + $0x90] sm:$0xff]  }
   0x6   :  { %546 = vmatpush1.bf16.msra.mxu1 %v1043_v4  ;;  %v1051_v12 = vld [vmem:[%s1472_s1 + $0x20] sm:$0xff]   ;;  %v1054_v15 = vld [vmem:[%s1472_s1 + $0x18] sm:$0xff]   ;;  %v1057_v18 = vld [vmem:[%s1472_s1 + $0x10] sm:$0xff]  }
   0x7   :  { %547 = vmatprep.subr.bf16.mxu1 %v1115_v0  ;;  %v1059_v19 = vld [vmem:[%s1472_s1 + $0x48] sm:$0xff]   ;;  %v1062_v22 = vld [vmem:[%s1472_s1 + $0x40] sm:$0xff]   ;;  %v1067_v26 = vld [vmem:[%s1472_s1 + $0xd0] sm:$0xff]  }
   0x8   :  { %978 = vmatpush3.bf16.msra.mxu0 %v1045_v6  ;;  %v1058_v20 = vld [vmem:[%s1472_s1 + $0x88] sm:$0xff]   ;;  %v1066_v23 = vld [vmem:[%s1473_s0 + $0x4] ss:$16 sps:$4 sm:$0xff]   ;;  %v1064_v28 = vld [vmem:[%s1473_s0] ss:$16 sps:$4 sm:$0xff]  }
   0x9   :  { %979 = vmatprep.subr.bf16.mxu0 %v1047_v8  ;;  %v1060_v21 = vld [vmem:[%s1472_s1 + $0x8] sm:$0xff]   ;;  %v1061_v24 = vld [vmem:[%s1472_s1 + $0x80] sm:$0xff]   ;;  %478 = vmatprep.mubr.bf16.mxu0 %v1066_v23 }
   0xa   :  { %548 = vmatpush1.bf16.msra.mxu1 %v1046_v7  ;;  %v1063_v25 = vld [vmem:[%s1472_s1] sm:$0xff]   ;;  %v1075_v27 = vld [vmem:[%s1473_s0 + $0xc] ss:$16 sps:$4 sm:$0xff]   ;;  %v1073_v34 = vld [vmem:[%s1473_s0 + $0x8] ss:$16 sps:$4 sm:$0xff]  }
   0xb   :  { %549 = vmatprep.subr.bf16.mxu1 %v1115_v0  ;;  %v1069_v29 = vld [vmem:[%s1473_s0 + $0x24] ss:$16 sps:$4 sm:$0xff]   ;;  %894 = vmatprep.mubr.msk.bf16.mxu1 %vm421_vm0, %v1075_v27  ;;  %v1068_v30 = vld [vmem:[%s1472_s1 + $0xc8] sm:$0xff]   ;;  %v1072_v32 = vld [vmem:[%s1473_s0 + $0x20] ss:$16 sps:$4 sm:$0xff]  }
   0xc   :  { %980 = vmatpush3.bf16.msra.mxu0 %v1048_v9  ;;  %v1071_v31 = vld [vmem:[%s1472_s1 + $0xc0] sm:$0xff]   ;;  %v1079_v35 = vld [vmem:[%s1473_s0 + $0x2c] ss:$16 sps:$4 sm:$0xff]   ;;  %v1081_v38 = vld [vmem:[%s1473_s0 + $0x28] ss:$16 sps:$4 sm:$0xff]  }
   0xd   :  { %981 = vmatprep.subr.bf16.mxu0 %v1050_v11  ;;  %v1076_v33 = vld [vmem:[%s1473_s0 + $0x44] ss:$16 sps:$4 sm:$0xff]   ;;  %v1078_v36 = vld [vmem:[%s1473_s0 + $0x40] ss:$16 sps:$4 sm:$0xff]   ;;  %v1085_v39 = vld [vmem:[%s1473_s0 + $0x4c] ss:$16 sps:$4 sm:$0xff]  }
   0xe   :  { %550 = vmatpush1.bf16.msra.mxu1 %v1049_v10  ;;  %v1082_v37 = vld [vmem:[%s1473_s0 + $0x64] ss:$16 sps:$4 sm:$0xff]   ;;  %v1084_v40 = vld [vmem:[%s1473_s0 + $0x60] ss:$16 sps:$4 sm:$0xff]   ;;  %v1087_v42 = vld [vmem:[%s1473_s0 + $0x48] ss:$16 sps:$4 sm:$0xff]  }
   0xf   :  { %551 = vmatprep.subr.bf16.mxu1 %v1115_v0  ;;  %v1088_v41 = vld [vmem:[%s1473_s0 + $0x84] ss:$16 sps:$4 sm:$0xff]   ;;  %v1091_v43 = vld [vmem:[%s1473_s0 + $0x6c] ss:$16 sps:$4 sm:$0xff]   ;;  %v1090_v44 = vld [vmem:[%s1473_s0 + $0x80] ss:$16 sps:$4 sm:$0xff]  }
  0x10   :  { %982 = vmatpush3.bf16.msra.mxu0 %v1051_v12  ;;  %v1094_v45 = vld [vmem:[%s1473_s0 + $0xa4] ss:$16 sps:$4 sm:$0xff]   ;;  %v1093_v46 = vld [vmem:[%s1473_s0 + $0x68] ss:$16 sps:$4 sm:$0xff]   ;;  %v1097_v47 = vld [vmem:[%s1473_s0 + $0x8c] ss:$16 sps:$4 sm:$0xff]  }
  0x11   :  { %983 = vmatprep.subr.bf16.mxu0 %v1053_v13  ;;  %v1096_v48 = vld [vmem:[%s1473_s0 + $0xa0] ss:$16 sps:$4 sm:$0xff]   ;;  %v1100_v49 = vld [vmem:[%s1473_s0 + $0xc4] ss:$16 sps:$4 sm:$0xff]   ;;  %v1099_v50 = vld [vmem:[%s1473_s0 + $0x88] ss:$16 sps:$4 sm:$0xff]  }
  0x12   :  { %552 = vmatpush1.bf16.msra.mxu1 %v1052_v14  ;;  %v1103_v51 = vld [vmem:[%s1473_s0 + $0xac] ss:$16 sps:$4 sm:$0xff]   ;;  %v1102_v52 = vld [vmem:[%s1473_s0 + $0xc0] ss:$16 sps:$4 sm:$0xff]   ;;  %v1106_v53 = vld [vmem:[%s1473_s0 + $0xe4] ss:$16 sps:$4 sm:$0xff]  }
  0x13   :  { %553 = vmatprep.subr.bf16.mxu1 %v1115_v0  ;;  %v1105_v54 = vld [vmem:[%s1473_s0 + $0xa8] ss:$16 sps:$4 sm:$0xff]   ;;  %v1109_v55 = vld [vmem:[%s1473_s0 + $0xcc] ss:$16 sps:$4 sm:$0xff]   ;;  %v1108_v56 = vld [vmem:[%s1473_s0 + $0xe0] ss:$16 sps:$4 sm:$0xff]  }
  0x14   :  { %984 = vmatpush3.bf16.msra.mxu0 %v1054_v15  ;;  %v1111_v57 = vld [vmem:[%s1473_s0 + $0xc8] ss:$16 sps:$4 sm:$0xff]   ;;  %v1112_v58 = vld [vmem:[%s1473_s0 + $0xec] ss:$16 sps:$4 sm:$0xff]   ;;  %v1345_v4 = vld [vmem:[%s1474_s2] ss:$0 sm:$0xff] }
  0x15   :  { %985 = vmatprep.subr.bf16.mxu0 %v1056_v16  ;;  %v1114_v59 = vld [vmem:[%s1473_s0 + $0xe8] ss:$16 sps:$4 sm:$0xff]   ;;  %v937_v5 = vld [vmem:[%s1475_s4] sm:$0xff]  }
  0x16   :  { %554 = vmatpush1.bf16.msra.mxu1 %v1055_v17  ;;  %v1353_v7 = vld [vmem:[%s1476_s3] ss:$0 sm:$0xff]  ;;  %v938_v12 = vunpack.c.l.bf16 %v937_v5  ;;  %v968_v23 = vld [vmem:[%s1475_s4 + $0x8] sm:$0xff]  }
  0x17   :  { %555 = vmatprep.subr.bf16.mxu1 %v1115_v0 }
  0x18   :  { %986 = vmatpush3.bf16.msra.mxu0 %v1057_v18 }
  0x19   :  { %987 = vmatprep.subr.bf16.mxu0 %v1059_v19 }
  0x1a   :  { %556 = vmatpush1.bf16.msra.mxu1 %v1058_v20 }
  0x1b   :  { %557 = vmatprep.subr.bf16.mxu1 %v1115_v0 }
  0x1c   :  { %988 = vmatpush3.bf16.msra.mxu0 %v1060_v21 }
  0x1d   :  { %989 = vmatprep.subr.bf16.mxu0 %v1062_v22  ;;  %v939_v22 = vunpack.c.h.bf16 %v937_v5 }
  0x1e   :  { %558 = vmatpush1.bf16.msra.mxu1 %v1061_v24 }
  0x1f   :  { %569 = vmatprep.subr.bf16.mxu1 %v1115_v0 }
  0x20   :  { %990 = vmatpush3.bf16.msra.mxu0 %v1063_v25 }
  0x22   :  { %570 = vmatpush2.bf16.msra.mxu1 %v1067_v26 }
  0x23   :  { %479 = vmatmul.mubr.bf16.vlgmr.msra.gmra.mxu0 %v1064_v28  ;;  %571 = vmatprep.subr.bf16.mxu1 %v1115_v0 }
  0x24   :  { %486 = vmatprep.mubr.bf16.mxu0 %v1069_v29  ;;  %v942_v29 = vunpack.c.l.bf16 %v968_v23 }
  0x26   :  { %572 = vmatpush2.bf16.msra.mxu1 %v1068_v30 }
  0x27   :  { %573 = vmatprep.subr.bf16.mxu1 %v1115_v0 }
  0x2a   :  { %574 = vmatpush2.bf16.msra.mxu1 %v1071_v31 }
  0x2b   :  { %487 = vmatmul.mubr.bf16.gmra.mxu0 %v1072_v32 }
  0x2c   :  { %494 = vmatprep.mubr.bf16.mxu0 %v1076_v33 }
  0x2d   :  { %576 = vmatmul.mubr.bf16.vlgmr.msra.gmra.mxu1 %v1073_v34 }
  0x2e   :  { %895 = vmatprep.mubr.msk.bf16.mxu1 %vm421_vm0, %v1079_v35 }
  0x33   :  { %495 = vmatmul.mubr.bf16.gmra.mxu0 %v1078_v36 }
  0x34   :  { %502 = vmatprep.mubr.bf16.mxu0 %v1082_v37 }
  0x35   :  { %584 = vmatmul.mubr.bf16.gmra.mxu1 %v1081_v38 }
  0x36   :  { %896 = vmatprep.mubr.msk.bf16.mxu1 %vm421_vm0, %v1085_v39 }
  0x3b   :  { %503 = vmatmul.mubr.bf16.gmra.mxu0 %v1084_v40 }
  0x3c   :  { %510 = vmatprep.mubr.bf16.mxu0 %v1088_v41  ;;  %v943_v41 = vunpack.c.h.bf16 %v968_v23 }
  0x3d   :  { %592 = vmatmul.mubr.bf16.gmra.mxu1 %v1087_v42 }
  0x3e   :  { %897 = vmatprep.mubr.msk.bf16.mxu1 %vm421_vm0, %v1091_v43 }
  0x43   :  { %511 = vmatmul.mubr.bf16.gmra.mxu0 %v1090_v44 }
  0x44   :  { %518 = vmatprep.mubr.bf16.mxu0 %v1094_v45 }
  0x45   :  { %600 = vmatmul.mubr.bf16.gmra.mxu1 %v1093_v46 }
  0x46   :  { %898 = vmatprep.mubr.msk.bf16.mxu1 %vm421_vm0, %v1097_v47 }
  0x4b   :  { %519 = vmatmul.mubr.bf16.gmra.mxu0 %v1096_v48  ;;  %v969_v48 = vld [vmem:[%s1475_s4 + $0x10] sm:$0xff]  }
  0x4c   :  { %526 = vmatprep.mubr.bf16.mxu0 %v1100_v49 }
  0x4d   :  { %608 = vmatmul.mubr.bf16.gmra.mxu1 %v1099_v50 }
  0x4e   :  { %899 = vmatprep.mubr.msk.bf16.mxu1 %vm421_vm0, %v1103_v51 }
  0x53   :  { %527 = vmatmul.mubr.bf16.gmra.mxu0 %v1102_v52 }
  0x54   :  { %534 = vmatprep.mubr.bf16.mxu0 %v1106_v53 }
  0x55   :  { %616 = vmatmul.mubr.bf16.gmra.mxu1 %v1105_v54  ;;  %v946_v54 = vunpack.c.l.bf16 %v969_v48 }
  0x56   :  { %900 = vmatprep.mubr.msk.bf16.mxu1 %vm421_vm0, %v1109_v55 }
  0x5b   :  { %535 = vmatmul.mubr.bf16.gmra.mxu0 %v1108_v56 }
  0x5d   :  { %624 = vmatmul.mubr.bf16.gmra.mxu1 %v1111_v57 }
  0x5e   :  { %901 = vmatprep.mubr.msk.bf16.mxu1 %vm421_vm0, %v1112_v58 }
  0x65   :  { %632 = vmatmul.mubr.bf16.gmra.mxu1 %v1114_v59 }
  0xe3   :  { %v991_v60 = vpop.f32.mrf.mxu0 }
  0xe5   :  { %v992_v61 = vpop.f32.mrf.mxu0 }
  0xe6   :  { %v993_v1 = vadd.f32 %v992_v61, %v991_v60 }
  0xe7   :  { %v994_v62 = vpop.f32.mrf.mxu0 }
  0xe9   :  { %v995_v63 = vpop.f32.mrf.mxu0 }
  0xea   :  { %v996_v10 = vadd.f32 %v995_v63, %v994_v62 }
  0xeb   :  { %v997_v0 = vpop.f32.mrf.mxu0 }
  0xed   :  { %v998_v2 = vpop.f32.mrf.mxu0  ;;  %v577_v3 = vpop.f32.mrf.mxu1 }
  0xee   :  { %v578_v6 = vadd.f32 %v993_v1, %v577_v3  ;;  %v999_v19 = vadd.f32 %v998_v2, %v997_v0  ;;  %v947_v2 = vunpack.c.h.bf16 %v969_v48 }
  0xef   :  { %v1000_v8 = vpop.f32.mrf.mxu0  ;;  %v579_v9 = vpop.f32.mrf.mxu1 }
  0xf0   :  { %v647_v11 = vmul.f32 %v1345_v4, %v578_v6 }
  0xf1   :  { %v1001_v13 = vpop.f32.mrf.mxu0  ;;  %v580_v14 = vpop.f32.mrf.mxu1 }
  0xf2   :  { %v670_v15 = vadd.f32 %v1353_v7, %v647_v11  ;;  %v581_v16 = vadd.f32 %v996_v10, %v580_v14  ;;  %v1002_v33 = vadd.f32 %v1001_v13, %v1000_v8  ;;  %v970_v11 = vld [vmem:[%s1475_s4 + $0x18] sm:$0xff]  }
  0xf3   :  { %v1003_v17 = vpop.f32.mrf.mxu0  ;;  %v582_v18 = vpop.f32.mrf.mxu1 }
  0xf4   :  { %v718_v20 = vadd.f32 %v938_v12, %v670_v15  ;;  %v648_v21 = vmul.f32 %v1345_v4, %v581_v16 }
  0xf5   :  { %v1004_v24 = vpop.f32.mrf.mxu0  ;;  %v585_v25 = vpop.f32.mrf.mxu1 }
  0xf6   :  { %v734_v26 = vmax.f32 %v718_v20, 0.0  ;;  %v671_v27 = vadd.f32 %v1353_v7, %v648_v21  ;;  %v586_v28 = vadd.f32 %v999_v19, %v585_v25  ;;  %v1005_v45 = vadd.f32 %v1004_v24, %v1003_v17 }
  0xf7   :  { %v1006_v30 = vpop.f32.mrf.mxu0  ;;  %v587_v31 = vpop.f32.mrf.mxu1  ;;  %v950_v17 = vunpack.c.l.bf16 %v970_v11 }
  0xf8   :  { %v920_v32 = vpack.c.bf16 %v734_v26, %v734_v26  ;;  %v719_v34 = vadd.f32 %v939_v22, %v671_v27  ;;  %v649_v35 = vmul.f32 %v1345_v4, %v586_v28 }
  0xf9   :  { %v1007_v36 = vpop.f32.mrf.mxu0  ;;  %v588_v37 = vpop.f32.mrf.mxu1 }
  0xfa   :  { %815 = vst.msk [vmem:[%s1477_s5] sm:$0xf] %vm814_vm1, %v920_v32  ;;  %v735_v38 = vmax.f32 %v719_v34, 0.0  ;;  %v672_v39 = vadd.f32 %v1353_v7, %v649_v35  ;;  %v589_v40 = vadd.f32 %v1002_v33, %v588_v37  ;;  %v1008_v58 = vadd.f32 %v1007_v36, %v1006_v30  ;;  %v971_v36 = vld [vmem:[%s1475_s4 + $0x20] sm:$0xff]  }
  0xfb   :  { %v1009_v42 = vpop.f32.mrf.mxu0  ;;  %v590_v43 = vpop.f32.mrf.mxu1 }
  0xfc   :  { %v921_v44 = vpack.c.bf16 %v735_v38, %v735_v38  ;;  %v720_v46 = vadd.f32 %v942_v29, %v672_v39  ;;  %v650_v47 = vmul.f32 %v1345_v4, %v589_v40  ;;  %v951_v29 = vunpack.c.h.bf16 %v970_v11 }
  0xfd   :  { %v1010_v49 = vpop.f32.mrf.mxu0  ;;  %v593_v50 = vpop.f32.mrf.mxu1 }
  0xfe   :  { %816 = vst.msk [vmem:[%s1477_s5 + $0x4] sm:$0xf] %vm814_vm1, %v921_v44  ;;  %v736_v51 = vmax.f32 %v720_v46, 0.0  ;;  %v673_v52 = vadd.f32 %v1353_v7, %v650_v47  ;;  %v594_v53 = vadd.f32 %v1005_v45, %v593_v50  ;;  %v1011_v8 = vadd.f32 %v1010_v49, %v1009_v42 }
  0xff   :  { %v1012_v55 = vpop.f32.mrf.mxu0  ;;  %v595_v56 = vpop.f32.mrf.mxu1  ;;  %v954_v42 = vunpack.c.l.bf16 %v971_v36 }
 0x100   :  { %v922_v57 = vpack.c.bf16 %v736_v51, %v736_v51  ;;  %v721_v59 = vadd.f32 %v943_v41, %v673_v52  ;;  %v651_v60 = vmul.f32 %v1345_v4, %v594_v53 }
 0x101   :  { %v1013_v61 = vpop.f32.mrf.mxu0  ;;  %v596_v62 = vpop.f32.mrf.mxu1 }
 0x102   :  { %817 = vst.msk [vmem:[%s1477_s5 + $0x8] sm:$0xf] %vm814_vm1, %v922_v57  ;;  %v737_v63 = vmax.f32 %v721_v59, 0.0  ;;  %v674_v0 = vadd.f32 %v1353_v7, %v651_v60  ;;  %v597_v1 = vadd.f32 %v1008_v58, %v596_v62  ;;  %v1014_v21 = vadd.f32 %v1013_v61, %v1012_v55  ;;  %v972_v61 = vld [vmem:[%s1475_s4 + $0x28] sm:$0xff]  }
 0x103   :  { %v1015_v3 = vpop.f32.mrf.mxu0  ;;  %v598_v5 = vpop.f32.mrf.mxu1 }
 0x104   :  { %v923_v6 = vpack.c.bf16 %v737_v63, %v737_v63  ;;  %v722_v9 = vadd.f32 %v946_v54, %v674_v0  ;;  %v652_v10 = vmul.f32 %v1345_v4, %v597_v1  ;;  %v955_v54 = vunpack.c.h.bf16 %v971_v36 }
 0x105   :  { %v1016_v12 = vpop.f32.mrf.mxu0  ;;  %v601_v13 = vpop.f32.mrf.mxu1 }
 0x106   :  { %818 = vst.msk [vmem:[%s1477_s5 + $0xc] sm:$0xf] %vm814_vm1, %v923_v6  ;;  %v738_v14 = vmax.f32 %v722_v9, 0.0  ;;  %v675_v15 = vadd.f32 %v1353_v7, %v652_v10  ;;  %v602_v16 = vadd.f32 %v1011_v8, %v601_v13  ;;  %v1017_v33 = vadd.f32 %v1016_v12, %v1015_v3 }
 0x107   :  { %v1018_v18 = vpop.f32.mrf.mxu0  ;;  %v603_v19 = vpop.f32.mrf.mxu1  ;;  %v958_v3 = vunpack.c.l.bf16 %v972_v61 }
 0x108   :  { %v924_v20 = vpack.c.bf16 %v738_v14, %v738_v14  ;;  %v723_v22 = vadd.f32 %v947_v2, %v675_v15  ;;  %v653_v23 = vmul.f32 %v1345_v4, %v602_v16 }
 0x109   :  { %v1019_v24 = vpop.f32.mrf.mxu0  ;;  %v604_v25 = vpop.f32.mrf.mxu1 }
 0x10a   :  { %819 = vst.msk [vmem:[%s1477_s5 + $0x10] sm:$0xf] %vm814_vm1, %v924_v20  ;;  %v739_v26 = vmax.f32 %v723_v22, 0.0  ;;  %v676_v27 = vadd.f32 %v1353_v7, %v653_v23  ;;  %v605_v28 = vadd.f32 %v1014_v21, %v604_v25  ;;  %v1020_v46 = vadd.f32 %v1019_v24, %v1018_v18  ;;  %v973_v24 = vld [vmem:[%s1475_s4 + $0x30] sm:$0xff]  }
 0x10b   :  { %v1021_v30 = vpop.f32.mrf.mxu0  ;;  %v606_v31 = vpop.f32.mrf.mxu1 }
 0x10c   :  { %v925_v32 = vpack.c.bf16 %v739_v26, %v739_v26  ;;  %v724_v34 = vadd.f32 %v950_v17, %v676_v27  ;;  %v654_v35 = vmul.f32 %v1345_v4, %v605_v28  ;;  %v959_v17 = vunpack.c.h.bf16 %v972_v61 }
 0x10d   :  { %v1022_v37 = vpop.f32.mrf.mxu0  ;;  %v609_v38 = vpop.f32.mrf.mxu1 }
 0x10e   :  { %820 = vst.msk [vmem:[%s1477_s5 + $0x14] sm:$0xf] %vm814_vm1, %v925_v32  ;;  %v740_v39 = vmax.f32 %v724_v34, 0.0  ;;  %v677_v40 = vadd.f32 %v1353_v7, %v654_v35  ;;  %v610_v41 = vadd.f32 %v1017_v33, %v609_v38  ;;  %v1023_v58 = vadd.f32 %v1022_v37, %v1021_v30 }
 0x10f   :  { %v1024_v43 = vpop.f32.mrf.mxu0  ;;  %v611_v44 = vpop.f32.mrf.mxu1  ;;  %v962_v30 = vunpack.c.l.bf16 %v973_v24 }
 0x110   :  { %v926_v45 = vpack.c.bf16 %v740_v39, %v740_v39  ;;  %v725_v47 = vadd.f32 %v951_v29, %v677_v40  ;;  %v655_v48 = vmul.f32 %v1345_v4, %v610_v41  ;;  %v963_v41 = vunpack.c.h.bf16 %v973_v24 }
 0x111   :  { %v1025_v49 = vpop.f32.mrf.mxu0  ;;  %v612_v50 = vpop.f32.mrf.mxu1 }
 0x112   :  { %821 = vst.msk [vmem:[%s1477_s5 + $0x18] sm:$0xf] %vm814_vm1, %v926_v45  ;;  %v741_v51 = vmax.f32 %v725_v47, 0.0  ;;  %v678_v52 = vadd.f32 %v1353_v7, %v655_v48  ;;  %v613_v53 = vadd.f32 %v1020_v46, %v612_v50  ;;  %v1026_v9 = vadd.f32 %v1025_v49, %v1024_v43  ;;  %v974_v47 = vld [vmem:[%s1475_s4 + $0x38] sm:$0xff]  }
 0x113   :  { %v1027_v55 = vpop.f32.mrf.mxu0  ;;  %v614_v56 = vpop.f32.mrf.mxu1 }
 0x114   :  { %v927_v57 = vpack.c.bf16 %v741_v51, %v741_v51  ;;  %v726_v59 = vadd.f32 %v954_v42, %v678_v52  ;;  %v656_v60 = vmul.f32 %v1345_v4, %v613_v53  ;;  %v966_v53 = vunpack.c.l.bf16 %v974_v47 }
 0x115   :  { %v1028_v62 = vpop.f32.mrf.mxu0  ;;  %v617_v63 = vpop.f32.mrf.mxu1 }
 0x116   :  { %822 = vst.msk [vmem:[%s1477_s5 + $0x1c] sm:$0xf] %vm814_vm1, %v927_v57  ;;  %v742_v0 = vmax.f32 %v726_v59, 0.0  ;;  %v679_v1 = vadd.f32 %v1353_v7, %v656_v60  ;;  %v618_v2 = vadd.f32 %v1023_v58, %v617_v63  ;;  %v1029_v21 = vadd.f32 %v1028_v62, %v1027_v55 }
 0x117   :  { %v1030_v5 = vpop.f32.mrf.mxu0  ;;  %v619_v6 = vpop.f32.mrf.mxu1 }
 0x118   :  { %v928_v8 = vpack.c.bf16 %v742_v0, %v742_v0  ;;  %v727_v10 = vadd.f32 %v955_v54, %v679_v1  ;;  %v657_v11 = vmul.f32 %v1345_v4, %v618_v2 }
 0x119   :  { %v1031_v12 = vpop.f32.mrf.mxu0  ;;  %v620_v13 = vpop.f32.mrf.mxu1 }
 0x11a   :  { %823 = vst.msk [vmem:[%s1477_s5 + $0x20] sm:$0xf] %vm814_vm1, %v928_v8  ;;  %v743_v14 = vmax.f32 %v727_v10, 0.0  ;;  %v680_v15 = vadd.f32 %v1353_v7, %v657_v11  ;;  %v621_v16 = vadd.f32 %v1026_v9, %v620_v13  ;;  %v1032_v33 = vadd.f32 %v1031_v12, %v1030_v5 }
 0x11b   :  { %v1033_v18 = vpop.f32.mrf.mxu0  ;;  %v622_v19 = vpop.f32.mrf.mxu1 }
 0x11c   :  { %v929_v20 = vpack.c.bf16 %v743_v14, %v743_v14  ;;  %v728_v22 = vadd.f32 %v958_v3, %v680_v15  ;;  %v658_v23 = vmul.f32 %v1345_v4, %v621_v16  ;;  %v967_v3 = vunpack.c.h.bf16 %v974_v47 }
 0x11d   :  { %v1034_v25 = vpop.f32.mrf.mxu0  ;;  %v625_v26 = vpop.f32.mrf.mxu1 }
 0x11e   :  { %824 = vst.msk [vmem:[%s1477_s5 + $0x24] sm:$0xf] %vm814_vm1, %v929_v20  ;;  %v744_v27 = vmax.f32 %v728_v22, 0.0  ;;  %v681_v28 = vadd.f32 %v1353_v7, %v658_v23  ;;  %v626_v29 = vadd.f32 %v1029_v21, %v625_v26  ;;  %v1035_v44 = vadd.f32 %v1034_v25, %v1033_v18 }
 0x11f   :  { %v627_v31 = vpop.f32.mrf.mxu1  ;;  %v1036_v36 = vpop.f32.mrf.mxu0 }
 0x120   :  { %v930_v32 = vpack.c.bf16 %v744_v27, %v744_v27  ;;  %v729_v34 = vadd.f32 %v959_v17, %v681_v28  ;;  %v659_v35 = vmul.f32 %v1345_v4, %v626_v29 }
 0x121   :  { %v628_v37 = vpop.f32.mrf.mxu1  ;;  %v1037_v48 = vpop.f32.mrf.mxu0 }
 0x122   :  { %825 = vst.msk [vmem:[%s1477_s5 + $0x28] sm:$0xf] %vm814_vm1, %v930_v32  ;;  %v745_v38 = vmax.f32 %v729_v34, 0.0  ;;  %v682_v39 = vadd.f32 %v1353_v7, %v659_v35  ;;  %v629_v40 = vadd.f32 %v1032_v33, %v628_v37  ;;  %v1038_v56 = vadd.f32 %v1037_v48, %v1036_v36 }
 0x123   :  { %v630_v42 = vpop.f32.mrf.mxu1 }
 0x124   :  { %v931_v43 = vpack.c.bf16 %v745_v38, %v745_v38  ;;  %v730_v45 = vadd.f32 %v962_v30, %v682_v39  ;;  %v660_v46 = vmul.f32 %v1345_v4, %v629_v40 }
 0x125   :  { %v633_v49 = vpop.f32.mrf.mxu1 }
 0x126   :  { %826 = vst.msk [vmem:[%s1477_s5 + $0x2c] sm:$0xf] %vm814_vm1, %v931_v43  ;;  %v746_v50 = vmax.f32 %v730_v45, 0.0  ;;  %v683_v51 = vadd.f32 %v1353_v7, %v660_v46  ;;  %v634_v52 = vadd.f32 %v1035_v44, %v633_v49 }
 0x127   :  { %v635_v54 = vpop.f32.mrf.mxu1 }
 0x128   :  { %v932_v55 = vpack.c.bf16 %v746_v50, %v746_v50  ;;  %v731_v57 = vadd.f32 %v963_v41, %v683_v51  ;;  %v661_v58 = vmul.f32 %v1345_v4, %v634_v52 }
 0x129   :  { %v636_v59 = vpop.f32.mrf.mxu1 }
 0x12a   :  { %827 = vst.msk [vmem:[%s1477_s5 + $0x30] sm:$0xf] %vm814_vm1, %v932_v55  ;;  %v747_v60 = vmax.f32 %v731_v57, 0.0  ;;  %v684_v61 = vadd.f32 %v1353_v7, %v661_v58  ;;  %v637_v62 = vadd.f32 %v1038_v56, %v636_v59 }
 0x12b   :  { %v638_v63 = vpop.f32.mrf.mxu1 }
 0x12c   :  { %v933_v0 = vpack.c.bf16 %v747_v60, %v747_v60  ;;  %v732_v1 = vadd.f32 %v966_v53, %v684_v61  ;;  %v662_v2 = vmul.f32 %v1345_v4, %v637_v62 }
 0x12e   :  { %828 = vst.msk [vmem:[%s1477_s5 + $0x34] sm:$0xf] %vm814_vm1, %v933_v0  ;;  %v748_v5 = vmax.f32 %v732_v1, 0.0  ;;  %v685_v6 = vadd.f32 %v1353_v7, %v662_v2 }
 0x130   :  { %v934_v8 = vpack.c.bf16 %v748_v5, %v748_v5  ;;  %v733_v9 = vadd.f32 %v967_v3, %v685_v6 }
 0x132   :  { %829 = vst.msk [vmem:[%s1477_s5 + $0x38] sm:$0xf] %vm814_vm1, %v934_v8  ;;  %v749_v10 = vmax.f32 %v733_v9, 0.0 }
 0x134   :  { %v935_v11 = vpack.c.bf16 %v749_v10, %v749_v10 }
 0x136   :  { %830 = vst.msk [vmem:[%s1477_s5 + $0x3c] sm:$0xf] %vm814_vm1, %v935_v11 }

// kernel: clsnet_forward.18
= control target key start
LH: loop header
LB: loop body
LE: loop exit
PB: predicated region body
PF: predicated region fallthrough
CT: control target
= control target key end

     0   :  { %v472_v0 = vmov 0   ;;  %vm257_vm0 = vcmask 392192   ;;  %vm371_vm1 = vcmask 257024   ;;  %s614_s1 = inlined_call_operand.vmem [shape: bf16[432,32], index: 1, kind: input, shape index: {}]   ;;  %s615_s0 = inlined_call_operand.vmem [shape: bf16[16,432], index: 0, kind: input, shape index: {}]   ;;  %s616_s2 = inlined_call_operand.vmem [shape: f32[1,32], index: 2, kind: input, shape index: {}]   ;;  %s617_s3 = inlined_call_operand.vmem [shape: f32[1,32], index: 3, kind: input, shape index: {}]   ;;  %s618_s4 = inlined_call_operand.vmem [shape: bf16[16,32], index: 4, kind: output, shape index: {}]  }
   0x1   :  { %302 = vmatprep.subr.bf16.mxu1 %v472_v0  ;;  %v439_v1 = vld [vmem:[%s614_s1 + $0xb8] sm:$0xff]   ;;  %v442_v4 = vld [vmem:[%s614_s1 + $0xb0] sm:$0xff]   ;;  %v445_v7 = vld [vmem:[%s614_s1 + $0xa8] sm:$0xff]  }
   0x2   :  { %v440_v2 = vld [vmem:[%s614_s1 + $0x78] sm:$0xff]   ;;  %303 = vmatpush1.bf16.msra.mxu1 %v439_v1  ;;  %v443_v5 = vld [vmem:[%s614_s1 + $0x70] sm:$0xff]   ;;  %v446_v8 = vld [vmem:[%s614_s1 + $0x68] sm:$0xff]  }
   0x3   :  { %v441_v3 = vld [vmem:[%s614_s1 + $0x38] sm:$0xff]   ;;  %416 = vmatprep.subr.bf16.mxu0 %v440_v2  ;;  %304 = vmatprep.subr.bf16.mxu1 %v472_v0  ;;  %v444_v6 = vld [vmem:[%s614_s1 + $0x30] sm:$0xff]   ;;  %v447_v9 = vld [vmem:[%s614_s1 + $0x28] sm:$0xff]  }
   0x4   :  { %417 = vmatpush3.bf16.msra.mxu0 %v441_v3  ;;  %v448_v10 = vld [vmem:[%s614_s1 + $0xa0] sm:$0xff]   ;;  %v452_v13 = vld [vmem:[%s614_s1 + $0x58] sm:$0xff]   ;;  %v455_v16 = vld [vmem:[%s614_s1 + $0x50] sm:$0xff]  }
   0x5   :  { %418 = vmatprep.subr.bf16.mxu0 %v443_v5  ;;  %v449_v11 = vld [vmem:[%s614_s1 + $0x60] sm:$0xff]   ;;  %v451_v14 = vld [vmem:[%s614_s1 + $0x98] sm:$0xff]   ;;  %v454_v17 = vld [vmem:[%s614_s1 + $0x90] sm:$0xff]  }
   0x6   :  { %305 = vmatpush1.bf16.msra.mxu1 %v442_v4  ;;  %v450_v12 = vld [vmem:[%s614_s1 + $0x20] sm:$0xff]   ;;  %v453_v15 = vld [vmem:[%s614_s1 + $0x18] sm:$0xff]   ;;  %v456_v18 = vld [vmem:[%s614_s1 + $0x10] sm:$0xff]  }
   0x7   :  { %306 = vmatprep.subr.bf16.mxu1 %v472_v0  ;;  %v458_v19 = vld [vmem:[%s614_s1 + $0x48] sm:$0xff]   ;;  %v461_v22 = vld [vmem:[%s614_s1 + $0x40] sm:$0xff]   ;;  %v466_v27 = vld [vmem:[%s614_s1 + $0xd0] sm:$0xff]  }
   0x8   :  { %419 = vmatpush3.bf16.msra.mxu0 %v444_v6  ;;  %v457_v20 = vld [vmem:[%s614_s1 + $0x88] sm:$0xff]   ;;  %v465_v23 = vld [vmem:[%s615_s0 + $0x4] ss:$16 sps:$4 sm:$0xff]   ;;  %v463_v28 = vld [vmem:[%s615_s0] ss:$16 sps:$4 sm:$0xff]  }
   0x9   :  { %420 = vmatprep.subr.bf16.mxu0 %v446_v8  ;;  %v459_v21 = vld [vmem:[%s614_s1 + $0x8] sm:$0xff]   ;;  %v460_v24 = vld [vmem:[%s614_s1 + $0x80] sm:$0xff]   ;;  %293 = vmatprep.mubr.bf16.mxu0 %v465_v23 }
   0xa   :  { %307 = vmatpush1.bf16.msra.mxu1 %v445_v7  ;;  %v462_v25 = vld [vmem:[%s614_s1] sm:$0xff]   ;;  %v471_v26 = vld [vmem:[%s615_s0 + $0xc] ss:$16 sps:$4 sm:$0xff]   ;;  %v469_v31 = vld [vmem:[%s615_s0 + $0x8] ss:$16 sps:$4 sm:$0xff]  }
   0xb   :  { %308 = vmatprep.subr.bf16.mxu1 %v472_v0  ;;  %409 = vmatprep.mubr.msk.bf16.mxu1 %vm257_vm0, %v471_v26  ;;  %v467_v29 = vld [vmem:[%s614_s1 + $0xc8] sm:$0xff]   ;;  %v468_v30 = vld [vmem:[%s614_s1 + $0xc0] sm:$0xff]  }
   0xc   :  { %421 = vmatpush3.bf16.msra.mxu0 %v447_v9  ;;  %v410_v38 = vld [vmem:[%s616_s2] ss:$0 sm:$0xff] }
   0xd   :  { %422 = vmatprep.subr.bf16.mxu0 %v449_v11  ;;  %v411_v40 = vld [vmem:[%s617_s3] ss:$0 sm:$0xff] }
   0xe   :  { %309 = vmatpush1.bf16.msra.mxu1 %v448_v10 }
   0xf   :  { %310 = vmatprep.subr.bf16.mxu1 %v472_v0 }
  0x10   :  { %423 = vmatpush3.bf16.msra.mxu0 %v450_v12 }
  0x11   :  { %424 = vmatprep.subr.bf16.mxu0 %v452_v13 }
  0x12   :  { %311 = vmatpush1.bf16.msra.mxu1 %v451_v14 }
  0x13   :  { %312 = vmatprep.subr.bf16.mxu1 %v472_v0 }
  0x14   :  { %425 = vmatpush3.bf16.msra.mxu0 %v453_v15 }
  0x15   :  { %426 = vmatprep.subr.bf16.mxu0 %v455_v16 }
  0x16   :  { %313 = vmatpush1.bf16.msra.mxu1 %v454_v17 }
  0x17   :  { %314 = vmatprep.subr.bf16.mxu1 %v472_v0 }
  0x18   :  { %427 = vmatpush3.bf16.msra.mxu0 %v456_v18 }
  0x19   :  { %428 = vmatprep.subr.bf16.mxu0 %v458_v19 }
  0x1a   :  { %315 = vmatpush1.bf16.msra.mxu1 %v457_v20 }
  0x1b   :  { %316 = vmatprep.subr.bf16.mxu1 %v472_v0 }
  0x1c   :  { %429 = vmatpush3.bf16.msra.mxu0 %v459_v21 }
  0x1d   :  { %430 = vmatprep.subr.bf16.mxu0 %v461_v22 }
  0x1e   :  { %317 = vmatpush1.bf16.msra.mxu1 %v460_v24 }
  0x1f   :  { %328 = vmatprep.subr.bf16.mxu1 %v472_v0 }
  0x20   :  { %431 = vmatpush3.bf16.msra.mxu0 %v462_v25 }
  0x22   :  { %329 = vmatpush2.bf16.msra.mxu1 %v466_v27 }
  0x23   :  { %294 = vmatmul.mubr.bf16.vlgmr.msra.gmra.mxu0 %v463_v28  ;;  %330 = vmatprep.subr.bf16.mxu1 %v472_v0 }
  0x26   :  { %331 = vmatpush2.bf16.msra.mxu1 %v467_v29 }
  0x27   :  { %332 = vmatprep.subr.bf16.mxu1 %v472_v0 }
  0x2a   :  { %333 = vmatpush2.bf16.msra.mxu1 %v468_v30 }
  0x2d   :  { %335 = vmatmul.mubr.bf16.vlgmr.msra.gmra.mxu1 %v469_v31 }
  0xe3   :  { %v432_v32 = vpop.f32.mrf.mxu0 }
  0xe5   :  { %v433_v33 = vpop.f32.mrf.mxu0 }
  0xe6   :  { %v434_v35 = vadd.f32 %v433_v33, %v432_v32 }
  0xe7   :  { %v435_v34 = vpop.f32.mrf.mxu0 }
  0xe9   :  { %v436_v36 = vpop.f32.mrf.mxu0 }
  0xea   :  { %v437_v42 = vadd.f32 %v436_v36, %v435_v34 }
  0xed   :  { %v336_v37 = vpop.f32.mrf.mxu1 }
  0xee   :  { %v337_v39 = vadd.f32 %v434_v35, %v336_v37 }
  0xef   :  { %v338_v41 = vpop.f32.mrf.mxu1 }
  0xf0   :  { %v350_v43 = vmul.f32 %v410_v38, %v337_v39 }
  0xf1   :  { %v339_v44 = vpop.f32.mrf.mxu1 }
  0xf2   :  { %v359_v45 = vadd.f32 %v411_v40, %v350_v43  ;;  %v340_v46 = vadd.f32 %v437_v42, %v339_v44 }
  0xf3   :  { %v341_v47 = vpop.f32.mrf.mxu1 }
  0xf4   :  { %v361_v48 = vmax.f32 %v359_v45, 0.0  ;;  %v351_v49 = vmul.f32 %v410_v38, %v340_v46 }
  0xf6   :  { %v414_v50 = vpack.c.bf16 %v361_v48, %v361_v48  ;;  %v360_v51 = vadd.f32 %v411_v40, %v351_v49 }
  0xf8   :  { %372 = vst.msk [vmem:[%s618_s4] sm:$0xf] %vm371_vm1, %v414_v50  ;;  %v362_v52 = vmax.f32 %v360_v51, 0.0 }
  0xfa   :  { %v415_v53 = vpack.c.bf16 %v362_v52, %v362_v52 }
  0xfc   :  { %373 = vst.msk [vmem:[%s618_s4 + $0x4] sm:$0xf] %vm371_vm1, %v415_v53 }

// kernel: clsnet_forward.17
= control target key start
LH: loop header
LB: loop body
LE: loop exit
PB: predicated region body
PF: predicated region fallthrough
CT: control target
= control target key end

     0   :  { %v132_v0 = vmov 0.0   ;;  %vm133_vm0 = vmmov 0   ;;  %vm33_vm1 = vcmask 130048   ;;  %vm104_vm2 = vcmask 257024   ;;  %s177_s1 = inlined_call_operand.vmem [shape: bf16[16,32], index: 1, kind: input, shape index: {}]   ;;  %s178_s0 = inlined_call_operand.vmem [shape: bf16[16,16], index: 0, kind: input, shape index: {}]   ;;  %s179_s2 = inlined_call_operand.vmem [shape: f32[1,32], index: 2, kind: input, shape index: {}]   ;;  %s180_s3 = inlined_call_operand.vmem [shape: f32[1,32], index: 3, kind: input, shape index: {}]   ;;  %s181_s4 = inlined_call_operand.vmem [shape: bf16[16,32], index: 4, kind: output, shape index: {}]  }
   0x1   :  { %122 = vmatprep.subr.bf16.mxu0 %v132_v0  ;;  %v130_v1 = vld [vmem:[%s177_s1] sm:$0xff]   ;;  %124 = vmatprep.mubr.msk.bf16.mxu0 %vm133_vm0, %v132_v0 }
   0x2   :  { %v131_v2 = vld [vmem:[%s178_s0] sm:$0xff]   ;;  %123 = vmatpush3.bf16.msra.mxu0 %v130_v1 }
   0x3   :  { %v114_v3 = vld [vmem:[%s179_s2] ss:$0 sm:$0xff] }
   0x4   :  { %v115_v5 = vld [vmem:[%s180_s3] ss:$0 sm:$0xff] }
   0x5   :  { %125 = vmatmul.mubr.msk.bf16.vlgmr.msra.gmra.mxu0 %vm33_vm1, %v131_v2 }
  0xc5   :  { %v71_v4 = vpop.f32.mrf.mxu0 }
  0xc6   :  { %v85_v6 = vmul.f32 %v114_v3, %v71_v4 }
  0xc7   :  { %v126_v7 = vpop.f32.mrf.mxu0 }
  0xc8   :  { %v94_v8 = vadd.f32 %v115_v5, %v85_v6 }
  0xc9   :  { %v74_v9 = vpop.f32.mrf.mxu0 }
  0xca   :  { %v118_v10 = vpack.c.bf16 %v94_v8, %v94_v8  ;;  %v86_v11 = vmul.f32 %v114_v3, %v74_v9 }
  0xcb   :  { %v127_v12 = vpop.f32.mrf.mxu0 }
  0xcc   :  { %105 = vst.msk [vmem:[%s181_s4] sm:$0xf] %vm104_vm2, %v118_v10  ;;  %v95_v13 = vadd.f32 %v115_v5, %v86_v11 }
  0xce   :  { %v119_v14 = vpack.c.bf16 %v95_v13, %v95_v13 }
  0xd0   :  { %106 = vst.msk [vmem:[%s181_s4 + $0x4] sm:$0xf] %vm104_vm2, %v119_v14 }

// kernel: clsnet_forward.19
= control target key start
LH: loop header
LB: loop body
LE: loop exit
PB: predicated region body
PF: predicated region fallthrough
CT: control target
= control target key end

     0   :  { %v932_v36 = vmov 0.0   ;;  %vm933_vm0 = vmmov 0   ;;  %vm496_vm1 = vcmask 785408   ;;  %vm698_vm2 = vcmask 257024   ;;  %s1162_s1 = inlined_call_operand.vmem [shape: bf16[864,32], index: 1, kind: input, shape index: {}]   ;;  %s1163_s0 = inlined_call_operand.vmem [shape: bf16[16,864], index: 0, kind: input, shape index: {}]   ;;  %s1164_s2 = inlined_call_operand.vmem [shape: f32[1,32], index: 2, kind: input, shape index: {}]   ;;  %s1165_s4 = inlined_call_operand.vmem [shape: bf16[16,32], index: 4, kind: input, shape index: {}]   ;;  %s1166_s3 = inlined_call_operand.vmem [shape: f32[1,32], index: 3, kind: input, shape index: {}]   ;;  %s1167_s5 = inlined_call_operand.vmem [shape: bf16[16,32], index: 5, kind: output, shape index: {}]  }
   0x1   :  { %v868_v0 = vld [vmem:[%s1162_s1 + $0x78] sm:$0xff]   ;;  %v872_v4 = vld [vmem:[%s1162_s1 + $0x70] sm:$0xff]   ;;  %v876_v8 = vld [vmem:[%s1162_s1 + $0x68] sm:$0xff]  }
   0x2   :  { %v869_v1 = vld [vmem:[%s1162_s1 + $0xf8] sm:$0xff]   ;;  %777 = vmatprep.subr.bf16.mxu0 %v868_v0  ;;  %v873_v5 = vld [vmem:[%s1162_s1 + $0xf0] sm:$0xff]   ;;  %v877_v9 = vld [vmem:[%s1162_s1 + $0xe8] sm:$0xff]  }
   0x3   :  { %v870_v2 = vld [vmem:[%s1162_s1 + $0x38] sm:$0xff]   ;;  %799 = vmatprep.subr.bf16.mxu1 %v869_v1  ;;  %v874_v6 = vld [vmem:[%s1162_s1 + $0x30] sm:$0xff]   ;;  %v878_v10 = vld [vmem:[%s1162_s1 + $0x28] sm:$0xff]  }
   0x4   :  { %v871_v3 = vld [vmem:[%s1162_s1 + $0xb8] sm:$0xff]   ;;  %778 = vmatpush3.bf16.msra.mxu0 %v870_v2  ;;  %v875_v7 = vld [vmem:[%s1162_s1 + $0xb0] sm:$0xff]   ;;  %v879_v11 = vld [vmem:[%s1162_s1 + $0xa8] sm:$0xff]  }
   0x5   :  { %800 = vmatpush3.bf16.msra.mxu1 %v871_v3  ;;  %779 = vmatprep.subr.bf16.mxu0 %v872_v4  ;;  %v880_v12 = vld [vmem:[%s1162_s1 + $0x60] sm:$0xff]   ;;  %v884_v16 = vld [vmem:[%s1162_s1 + $0x58] sm:$0xff]   ;;  %v888_v20 = vld [vmem:[%s1162_s1 + $0x50] sm:$0xff]  }
   0x6   :  { %801 = vmatprep.subr.bf16.mxu1 %v873_v5  ;;  %v881_v13 = vld [vmem:[%s1162_s1 + $0xe0] sm:$0xff]   ;;  %v885_v17 = vld [vmem:[%s1162_s1 + $0xd8] sm:$0xff]   ;;  %v889_v21 = vld [vmem:[%s1162_s1 + $0xd0] sm:$0xff]  }
   0x7   :  { %v882_v14 = vld [vmem:[%s1162_s1 + $0x20] sm:$0xff]   ;;  %v886_v18 = vld [vmem:[%s1162_s1 + $0x18] sm:$0xff]   ;;  %v890_v22 = vld [vmem:[%s1162_s1 + $0x10] sm:$0xff]  }
   0x8   :  { %780 = vmatpush3.bf16.msra.mxu0 %v874_v6  ;;  %v883_v15 = vld [vmem:[%s1162_s1 + $0xa0] sm:$0xff]   ;;  %v887_v19 = vld [vmem:[%s1162_s1 + $0x98] sm:$0xff]   ;;  %v891_v23 = vld [vmem:[%s1162_s1 + $0x90] sm:$0xff]  }
   0x9   :  { %802 = vmatpush3.bf16.msra.mxu1 %v875_v7  ;;  %781 = vmatprep.subr.bf16.mxu0 %v876_v8  ;;  %v892_v24 = vld [vmem:[%s1162_s1 + $0x48] sm:$0xff]   ;;  %v896_v28 = vld [vmem:[%s1162_s1 + $0x40] sm:$0xff]   ;;  %v906_v37 = vld [vmem:[%s1162_s1 + $0x178] sm:$0xff]  }
   0xa   :  { %803 = vmatprep.subr.bf16.mxu1 %v877_v9  ;;  %v893_v25 = vld [vmem:[%s1162_s1 + $0xc8] sm:$0xff]   ;;  %v897_v29 = vld [vmem:[%s1162_s1 + $0xc0] sm:$0xff]   ;;  %v907_v38 = vld [vmem:[%s1162_s1 + $0x138] sm:$0xff]  }
   0xb   :  { %v894_v26 = vld [vmem:[%s1162_s1 + $0x8] sm:$0xff]   ;;  %v898_v30 = vld [vmem:[%s1162_s1] sm:$0xff]   ;;  %v908_v39 = vld [vmem:[%s1162_s1 + $0x170] sm:$0xff]  }
   0xc   :  { %782 = vmatpush3.bf16.msra.mxu0 %v878_v10  ;;  %v895_v27 = vld [vmem:[%s1162_s1 + $0x88] sm:$0xff]   ;;  %v899_v31 = vld [vmem:[%s1162_s1 + $0x80] sm:$0xff]   ;;  %v909_v40 = vld [vmem:[%s1162_s1 + $0x130] sm:$0xff]  }
   0xd   :  { %804 = vmatpush3.bf16.msra.mxu1 %v879_v11  ;;  %783 = vmatprep.subr.bf16.mxu0 %v880_v12  ;;  %v900_v32 = vld [vmem:[%s1163_s0] ss:$28 sps:$4 sm:$0xff]   ;;  %v903_v34 = vld [vmem:[%s1163_s0 + $0x8] ss:$28 sps:$4 sm:$0xff]   ;;  %v919_v50 = vld [vmem:[%s1162_s1 + $0x150] sm:$0xff]  }
   0xe   :  { %805 = vmatprep.subr.bf16.mxu1 %v881_v13  ;;  %v902_v33 = vld [vmem:[%s1163_s0 + $0x4] ss:$28 sps:$4 sm:$0xff]   ;;  %v905_v35 = vld [vmem:[%s1163_s0 + $0xc] ss:$28 sps:$4 sm:$0xff]   ;;  %v916_v47 = vld [vmem:[%s1162_s1 + $0x158] sm:$0xff]  }
   0xf   :  { %532 = vmatprep.mubr.bf16.mxu0 %v902_v33  ;;  %573 = vmatprep.mubr.bf16.mxu1 %v905_v35  ;;  %v910_v41 = vld [vmem:[%s1162_s1 + $0x168] sm:$0xff]   ;;  %v913_v44 = vld [vmem:[%s1162_s1 + $0x160] sm:$0xff]   ;;  %v918_v48 = vld [vmem:[%s1162_s1 + $0x198] sm:$0xff]  }
  0x10   :  { %784 = vmatpush3.bf16.msra.mxu0 %v882_v14  ;;  %v912_v42 = vld [vmem:[%s1162_s1 + $0x1a8] sm:$0xff]   ;;  %v915_v45 = vld [vmem:[%s1162_s1 + $0x1a0] sm:$0xff]   ;;  %v917_v49 = vld [vmem:[%s1162_s1 + $0x118] sm:$0xff]  }
  0x11   :  { %806 = vmatpush3.bf16.msra.mxu1 %v883_v15  ;;  %785 = vmatprep.subr.bf16.mxu0 %v884_v16  ;;  %v911_v43 = vld [vmem:[%s1162_s1 + $0x128] sm:$0xff]   ;;  %v914_v46 = vld [vmem:[%s1162_s1 + $0x120] sm:$0xff]   ;;  %v921_v51 = vld [vmem:[%s1162_s1 + $0x190] sm:$0xff]  }
  0x12   :  { %807 = vmatprep.subr.bf16.mxu1 %v885_v17  ;;  %v920_v52 = vld [vmem:[%s1162_s1 + $0x110] sm:$0xff]   ;;  %v922_v53 = vld [vmem:[%s1162_s1 + $0x148] sm:$0xff]   ;;  %v925_v57 = vld [vmem:[%s1162_s1 + $0x140] sm:$0xff]  }
  0x13   :  { %v924_v54 = vld [vmem:[%s1162_s1 + $0x188] sm:$0xff]   ;;  %v930_v55 = vld [vmem:[%s1163_s0 + $0x14] ss:$28 sps:$4 sm:$0xff]   ;;  %v927_v58 = vld [vmem:[%s1162_s1 + $0x180] sm:$0xff]  }
  0x14   :  { %786 = vmatpush3.bf16.msra.mxu0 %v886_v18  ;;  %v923_v56 = vld [vmem:[%s1162_s1 + $0x108] sm:$0xff]   ;;  %v926_v59 = vld [vmem:[%s1162_s1 + $0x100] sm:$0xff]   ;;  %v931_v60 = vld [vmem:[%s1163_s0 + $0x18] ss:$28 sps:$4 sm:$0xff]  }
  0x15   :  { %808 = vmatpush3.bf16.msra.mxu1 %v887_v19  ;;  %787 = vmatprep.subr.bf16.mxu0 %v888_v20  ;;  %v928_v61 = vld [vmem:[%s1163_s0 + $0x10] ss:$28 sps:$4 sm:$0xff]   ;;  %v767_v20 = vld [vmem:[%s1164_s2] ss:$0 sm:$0xff] }
  0x16   :  { %809 = vmatprep.subr.bf16.mxu1 %v889_v21  ;;  %v774_v21 = vld [vmem:[%s1165_s4] sm:$0xff]  }
  0x18   :  { %788 = vmatpush3.bf16.msra.mxu0 %v890_v22 }
  0x19   :  { %810 = vmatpush3.bf16.msra.mxu1 %v891_v23  ;;  %789 = vmatprep.subr.bf16.mxu0 %v892_v24 }
  0x1a   :  { %811 = vmatprep.subr.bf16.mxu1 %v893_v25 }
  0x1c   :  { %790 = vmatpush3.bf16.msra.mxu0 %v894_v26  ;;  %v768_v26 = vld [vmem:[%s1166_s3] ss:$0 sm:$0xff] }
  0x1d   :  { %812 = vmatpush3.bf16.msra.mxu1 %v895_v27  ;;  %791 = vmatprep.subr.bf16.mxu0 %v896_v28  ;;  %v775_v28 = vunpack.c.l.bf16 %v774_v21 }
  0x1e   :  { %813 = vmatprep.subr.bf16.mxu1 %v897_v29 }
  0x20   :  { %792 = vmatpush3.bf16.msra.mxu0 %v898_v30 }
  0x21   :  { %814 = vmatpush3.bf16.msra.mxu1 %v899_v31  ;;  %821 = vmatprep.subr.bf16.mxu0 %v906_v37 }
  0x22   :  { %850 = vmatprep.subr.bf16.mxu1 %v932_v36 }
  0x23   :  { %533 = vmatmul.mubr.bf16.vlgmr.msra.gmra.mxu0 %v900_v32 }
  0x24   :  { %574 = vmatmul.mubr.bf16.vlgmr.msra.gmra.mxu1 %v903_v34  ;;  %822 = vmatpush3.bf16.msra.mxu0 %v907_v38  ;;  %v776_v34 = vunpack.c.h.bf16 %v774_v21 }
  0x25   :  { %862 = vmatprep.mubr.msk.bf16.mxu1 %vm933_vm0, %v932_v36  ;;  %823 = vmatprep.subr.bf16.mxu0 %v908_v39 }
  0x26   :  { %851 = vmatpush3.bf16.msra.mxu1 %v912_v42  ;;  %614 = vmatprep.mubr.bf16.mxu0 %v930_v55 }
  0x27   :  { %852 = vmatprep.subr.bf16.mxu1 %v932_v36 }
  0x28   :  { %824 = vmatpush3.bf16.msra.mxu0 %v909_v40 }
  0x29   :  { %825 = vmatprep.subr.bf16.mxu0 %v910_v41 }
  0x2a   :  { %853 = vmatpush3.bf16.msra.mxu1 %v915_v45 }
  0x2b   :  { %854 = vmatprep.subr.bf16.mxu1 %v932_v36 }
  0x2c   :  { %826 = vmatpush3.bf16.msra.mxu0 %v911_v43 }
  0x2d   :  { %827 = vmatprep.subr.bf16.mxu0 %v913_v44 }
  0x2e   :  { %855 = vmatpush3.bf16.msra.mxu1 %v918_v48 }
  0x2f   :  { %856 = vmatprep.subr.bf16.mxu1 %v932_v36 }
  0x30   :  { %828 = vmatpush3.bf16.msra.mxu0 %v914_v46 }
  0x31   :  { %829 = vmatprep.subr.bf16.mxu0 %v916_v47 }
  0x32   :  { %857 = vmatpush3.bf16.msra.mxu1 %v921_v51 }
  0x33   :  { %858 = vmatprep.subr.bf16.mxu1 %v932_v36 }
  0x34   :  { %830 = vmatpush3.bf16.msra.mxu0 %v917_v49 }
  0x35   :  { %831 = vmatprep.subr.bf16.mxu0 %v919_v50 }
  0x36   :  { %859 = vmatpush3.bf16.msra.mxu1 %v924_v54 }
  0x37   :  { %860 = vmatprep.subr.bf16.mxu1 %v932_v36 }
  0x38   :  { %832 = vmatpush3.bf16.msra.mxu0 %v920_v52 }
  0x39   :  { %833 = vmatprep.subr.bf16.mxu0 %v922_v53 }
  0x3a   :  { %861 = vmatpush3.bf16.msra.mxu1 %v927_v58 }
  0x3c   :  { %834 = vmatpush3.bf16.msra.mxu0 %v923_v56 }
  0x3d   :  { %835 = vmatprep.subr.bf16.mxu0 %v925_v57  ;;  %863 = vmatmul.mubr.msk.bf16.vlgmr.msra.gmra.mxu1 %vm496_vm1, %v931_v60 }
  0x40   :  { %836 = vmatpush3.bf16.msra.mxu0 %v926_v59 }
  0x43   :  { %615 = vmatmul.mubr.bf16.vlgmr.msra.gmra.mxu0 %v928_v61 }
  0xe3   :  { %v793_v63 = vpop.f32.mrf.mxu0 }
  0xe4   :  { %v815_v62 = vpop.f32.mrf.mxu1 }
  0xe5   :  { %v794_v1 = vpop.f32.mrf.mxu0 }
  0xe6   :  { %v816_v0 = vpop.f32.mrf.mxu1  ;;  %v795_v7 = vadd.f32 %v794_v1, %v793_v63 }
  0xe7   :  { %v796_v3 = vpop.f32.mrf.mxu0  ;;  %v817_v8 = vadd.f32 %v816_v0, %v815_v62 }
  0xe8   :  { %v818_v2 = vpop.f32.mrf.mxu1 }
  0xe9   :  { %v797_v6 = vpop.f32.mrf.mxu0  ;;  %v576_v13 = vadd.f32 %v817_v8, %v795_v7 }
  0xea   :  { %v819_v4 = vpop.f32.mrf.mxu1  ;;  %v798_v14 = vadd.f32 %v797_v6, %v796_v3 }
  0xeb   :  { %v820_v15 = vadd.f32 %v819_v4, %v818_v2 }
  0xed   :  { %v579_v23 = vadd.f32 %v820_v15, %v798_v14 }
  0xfd   :  { %v657_v5 = vpop.f32.mrf.mxu1 }
  0xff   :  { %v864_v9 = vpop.f32.mrf.mxu1 }
 0x101   :  { %v660_v11 = vpop.f32.mrf.mxu1 }
 0x103   :  { %v837_v10 = vpop.f32.mrf.mxu0  ;;  %v865_v17 = vpop.f32.mrf.mxu1 }
 0x105   :  { %v838_v12 = vpop.f32.mrf.mxu0 }
 0x106   :  { %v839_v16 = vadd.f32 %v838_v12, %v837_v10 }
 0x107   :  { %v840_v18 = vpop.f32.mrf.mxu0 }
 0x108   :  { %v617_v19 = vadd.f32 %v839_v16, %v576_v13 }
 0x109   :  { %v841_v22 = vpop.f32.mrf.mxu0 }
 0x10a   :  { %v658_v24 = vadd.f32 %v657_v5, %v617_v19  ;;  %v842_v25 = vadd.f32 %v841_v22, %v840_v18 }
 0x10c   :  { %v671_v27 = vmul.f32 %v767_v20, %v658_v24  ;;  %v620_v29 = vadd.f32 %v842_v25, %v579_v23 }
 0x10e   :  { %v680_v30 = vadd.f32 %v768_v26, %v671_v27  ;;  %v661_v31 = vadd.f32 %v660_v11, %v620_v29 }
 0x110   :  { %v686_v32 = vadd.f32 %v775_v28, %v680_v30  ;;  %v672_v33 = vmul.f32 %v767_v20, %v661_v31 }
 0x112   :  { %v688_v35 = vmax.f32 %v686_v32, 0.0  ;;  %v681_v36 = vadd.f32 %v768_v26, %v672_v33 }
 0x114   :  { %v771_v37 = vpack.c.bf16 %v688_v35, %v688_v35  ;;  %v687_v38 = vadd.f32 %v776_v34, %v681_v36 }
 0x116   :  { %699 = vst.msk [vmem:[%s1167_s5] sm:$0xf] %vm698_vm2, %v771_v37  ;;  %v689_v39 = vmax.f32 %v687_v38, 0.0 }
 0x118   :  { %v772_v40 = vpack.c.bf16 %v689_v39, %v689_v39 }
 0x11a   :  { %700 = vst.msk [vmem:[%s1167_s5 + $0x4] sm:$0xf] %vm698_vm2, %v772_v40 }

// kernel: clsnet_forward.21
= control target key start
LH: loop header
LB: loop body
LE: loop exit
PB: predicated region body
PF: predicated region fallthrough
CT: control target
= control target key end

     0   :  { %v919_v36 = vmov 0.0   ;;  %vm920_vm0 = vmmov 0   ;;  %vm493_vm1 = vcmask 785408   ;;  %vm689_vm2 = vcmask 519168   ;;  %s1141_s1 = inlined_call_operand.vmem [shape: bf16[864,64], index: 1, kind: input, shape index: {}]   ;;  %s1142_s0 = inlined_call_operand.vmem [shape: bf16[16,864], index: 0, kind: input, shape index: {}]   ;;  %s1143_s2 = inlined_call_operand.vmem [shape: f32[1,64], index: 2, kind: input, shape index: {}]   ;;  %s1144_s3 = inlined_call_operand.vmem [shape: f32[1,64], index: 3, kind: input, shape index: {}]   ;;  %s1145_s4 = inlined_call_operand.vmem [shape: bf16[16,64], index: 4, kind: output, shape index: {}]  }
   0x1   :  { %v855_v0 = vld [vmem:[%s1141_s1 + $0x78] sm:$0xff]   ;;  %v859_v4 = vld [vmem:[%s1141_s1 + $0x70] sm:$0xff]   ;;  %v863_v8 = vld [vmem:[%s1141_s1 + $0x68] sm:$0xff]  }
   0x2   :  { %v856_v1 = vld [vmem:[%s1141_s1 + $0xf8] sm:$0xff]   ;;  %764 = vmatprep.subr.bf16.mxu0 %v855_v0  ;;  %v860_v5 = vld [vmem:[%s1141_s1 + $0xf0] sm:$0xff]   ;;  %v864_v9 = vld [vmem:[%s1141_s1 + $0xe8] sm:$0xff]  }
   0x3   :  { %v857_v2 = vld [vmem:[%s1141_s1 + $0x38] sm:$0xff]   ;;  %786 = vmatprep.subr.bf16.mxu1 %v856_v1  ;;  %v861_v6 = vld [vmem:[%s1141_s1 + $0x30] sm:$0xff]   ;;  %v865_v10 = vld [vmem:[%s1141_s1 + $0x28] sm:$0xff]  }
   0x4   :  { %v858_v3 = vld [vmem:[%s1141_s1 + $0xb8] sm:$0xff]   ;;  %765 = vmatpush3.bf16.msra.mxu0 %v857_v2  ;;  %v862_v7 = vld [vmem:[%s1141_s1 + $0xb0] sm:$0xff]   ;;  %v866_v11 = vld [vmem:[%s1141_s1 + $0xa8] sm:$0xff]  }
   0x5   :  { %787 = vmatpush3.bf16.msra.mxu1 %v858_v3  ;;  %766 = vmatprep.subr.bf16.mxu0 %v859_v4  ;;  %v867_v12 = vld [vmem:[%s1141_s1 + $0x60] sm:$0xff]   ;;  %v871_v16 = vld [vmem:[%s1141_s1 + $0x58] sm:$0xff]   ;;  %v875_v20 = vld [vmem:[%s1141_s1 + $0x50] sm:$0xff]  }
   0x6   :  { %788 = vmatprep.subr.bf16.mxu1 %v860_v5  ;;  %v868_v13 = vld [vmem:[%s1141_s1 + $0xe0] sm:$0xff]   ;;  %v872_v17 = vld [vmem:[%s1141_s1 + $0xd8] sm:$0xff]   ;;  %v876_v21 = vld [vmem:[%s1141_s1 + $0xd0] sm:$0xff]  }
   0x7   :  { %v869_v14 = vld [vmem:[%s1141_s1 + $0x20] sm:$0xff]   ;;  %v873_v18 = vld [vmem:[%s1141_s1 + $0x18] sm:$0xff]   ;;  %v877_v22 = vld [vmem:[%s1141_s1 + $0x10] sm:$0xff]  }
   0x8   :  { %767 = vmatpush3.bf16.msra.mxu0 %v861_v6  ;;  %v870_v15 = vld [vmem:[%s1141_s1 + $0xa0] sm:$0xff]   ;;  %v874_v19 = vld [vmem:[%s1141_s1 + $0x98] sm:$0xff]   ;;  %v878_v23 = vld [vmem:[%s1141_s1 + $0x90] sm:$0xff]  }
   0x9   :  { %789 = vmatpush3.bf16.msra.mxu1 %v862_v7  ;;  %768 = vmatprep.subr.bf16.mxu0 %v863_v8  ;;  %v879_v24 = vld [vmem:[%s1141_s1 + $0x48] sm:$0xff]   ;;  %v883_v28 = vld [vmem:[%s1141_s1 + $0x40] sm:$0xff]   ;;  %v893_v37 = vld [vmem:[%s1141_s1 + $0x178] sm:$0xff]  }
   0xa   :  { %790 = vmatprep.subr.bf16.mxu1 %v864_v9  ;;  %v880_v25 = vld [vmem:[%s1141_s1 + $0xc8] sm:$0xff]   ;;  %v884_v29 = vld [vmem:[%s1141_s1 + $0xc0] sm:$0xff]   ;;  %v894_v38 = vld [vmem:[%s1141_s1 + $0x138] sm:$0xff]  }
   0xb   :  { %v881_v26 = vld [vmem:[%s1141_s1 + $0x8] sm:$0xff]   ;;  %v885_v30 = vld [vmem:[%s1141_s1] sm:$0xff]   ;;  %v895_v39 = vld [vmem:[%s1141_s1 + $0x170] sm:$0xff]  }
   0xc   :  { %769 = vmatpush3.bf16.msra.mxu0 %v865_v10  ;;  %v882_v27 = vld [vmem:[%s1141_s1 + $0x88] sm:$0xff]   ;;  %v886_v31 = vld [vmem:[%s1141_s1 + $0x80] sm:$0xff]   ;;  %v896_v40 = vld [vmem:[%s1141_s1 + $0x130] sm:$0xff]  }
   0xd   :  { %791 = vmatpush3.bf16.msra.mxu1 %v866_v11  ;;  %770 = vmatprep.subr.bf16.mxu0 %v867_v12  ;;  %v887_v32 = vld [vmem:[%s1142_s0] ss:$28 sps:$4 sm:$0xff]   ;;  %v890_v34 = vld [vmem:[%s1142_s0 + $0x8] ss:$28 sps:$4 sm:$0xff]   ;;  %v906_v50 = vld [vmem:[%s1141_s1 + $0x150] sm:$0xff]  }
   0xe   :  { %792 = vmatprep.subr.bf16.mxu1 %v868_v13  ;;  %v889_v33 = vld [vmem:[%s1142_s0 + $0x4] ss:$28 sps:$4 sm:$0xff]   ;;  %v892_v35 = vld [vmem:[%s1142_s0 + $0xc] ss:$28 sps:$4 sm:$0xff]   ;;  %v903_v47 = vld [vmem:[%s1141_s1 + $0x158] sm:$0xff]  }
   0xf   :  { %529 = vmatprep.mubr.bf16.mxu0 %v889_v33  ;;  %570 = vmatprep.mubr.bf16.mxu1 %v892_v35  ;;  %v897_v41 = vld [vmem:[%s1141_s1 + $0x168] sm:$0xff]   ;;  %v900_v44 = vld [vmem:[%s1141_s1 + $0x160] sm:$0xff]   ;;  %v905_v48 = vld [vmem:[%s1141_s1 + $0x198] sm:$0xff]  }
  0x10   :  { %771 = vmatpush3.bf16.msra.mxu0 %v869_v14  ;;  %v899_v42 = vld [vmem:[%s1141_s1 + $0x1a8] sm:$0xff]   ;;  %v902_v45 = vld [vmem:[%s1141_s1 + $0x1a0] sm:$0xff]   ;;  %v904_v49 = vld [vmem:[%s1141_s1 + $0x118] sm:$0xff]  }
  0x11   :  { %793 = vmatpush3.bf16.msra.mxu1 %v870_v15  ;;  %772 = vmatprep.subr.bf16.mxu0 %v871_v16  ;;  %v898_v43 = vld [vmem:[%s1141_s1 + $0x128] sm:$0xff]   ;;  %v901_v46 = vld [vmem:[%s1141_s1 + $0x120] sm:$0xff]   ;;  %v908_v51 = vld [vmem:[%s1141_s1 + $0x190] sm:$0xff]  }
  0x12   :  { %794 = vmatprep.subr.bf16.mxu1 %v872_v17  ;;  %v907_v52 = vld [vmem:[%s1141_s1 + $0x110] sm:$0xff]   ;;  %v909_v53 = vld [vmem:[%s1141_s1 + $0x148] sm:$0xff]   ;;  %v912_v57 = vld [vmem:[%s1141_s1 + $0x140] sm:$0xff]  }
  0x13   :  { %v911_v54 = vld [vmem:[%s1141_s1 + $0x188] sm:$0xff]   ;;  %v917_v55 = vld [vmem:[%s1142_s0 + $0x14] ss:$28 sps:$4 sm:$0xff]   ;;  %v914_v58 = vld [vmem:[%s1141_s1 + $0x180] sm:$0xff]  }
  0x14   :  { %773 = vmatpush3.bf16.msra.mxu0 %v873_v18  ;;  %v910_v56 = vld [vmem:[%s1141_s1 + $0x108] sm:$0xff]   ;;  %v913_v59 = vld [vmem:[%s1141_s1 + $0x100] sm:$0xff]   ;;  %v918_v60 = vld [vmem:[%s1142_s0 + $0x18] ss:$28 sps:$4 sm:$0xff]  }
  0x15   :  { %795 = vmatpush3.bf16.msra.mxu1 %v874_v19  ;;  %774 = vmatprep.subr.bf16.mxu0 %v875_v20  ;;  %v915_v61 = vld [vmem:[%s1142_s0 + $0x10] ss:$28 sps:$4 sm:$0xff]   ;;  %v758_v20 = vld [vmem:[%s1143_s2] ss:$0 sm:$0xff] }
  0x16   :  { %796 = vmatprep.subr.bf16.mxu1 %v876_v21 }
  0x18   :  { %775 = vmatpush3.bf16.msra.mxu0 %v877_v22 }
  0x19   :  { %797 = vmatpush3.bf16.msra.mxu1 %v878_v23  ;;  %776 = vmatprep.subr.bf16.mxu0 %v879_v24 }
  0x1a   :  { %798 = vmatprep.subr.bf16.mxu1 %v880_v25  ;;  %v759_v25 = vld [vmem:[%s1144_s3] ss:$0 sm:$0xff] }
  0x1c   :  { %777 = vmatpush3.bf16.msra.mxu0 %v881_v26 }
  0x1d   :  { %799 = vmatpush3.bf16.msra.mxu1 %v882_v27  ;;  %778 = vmatprep.subr.bf16.mxu0 %v883_v28 }
  0x1e   :  { %800 = vmatprep.subr.bf16.mxu1 %v884_v29 }
  0x20   :  { %779 = vmatpush3.bf16.msra.mxu0 %v885_v30 }
  0x21   :  { %801 = vmatpush3.bf16.msra.mxu1 %v886_v31  ;;  %808 = vmatprep.subr.bf16.mxu0 %v893_v37 }
  0x22   :  { %837 = vmatprep.subr.bf16.mxu1 %v919_v36 }
  0x23   :  { %530 = vmatmul.mubr.bf16.vlgmr.msra.gmra.mxu0 %v887_v32 }
  0x24   :  { %571 = vmatmul.mubr.bf16.vlgmr.msra.gmra.mxu1 %v890_v34  ;;  %809 = vmatpush3.bf16.msra.mxu0 %v894_v38 }
  0x25   :  { %849 = vmatprep.mubr.msk.bf16.mxu1 %vm920_vm0, %v919_v36  ;;  %810 = vmatprep.subr.bf16.mxu0 %v895_v39 }
  0x26   :  { %838 = vmatpush3.bf16.msra.mxu1 %v899_v42  ;;  %611 = vmatprep.mubr.bf16.mxu0 %v917_v55 }
  0x27   :  { %839 = vmatprep.subr.bf16.mxu1 %v919_v36 }
  0x28   :  { %811 = vmatpush3.bf16.msra.mxu0 %v896_v40 }
  0x29   :  { %812 = vmatprep.subr.bf16.mxu0 %v897_v41 }
  0x2a   :  { %840 = vmatpush3.bf16.msra.mxu1 %v902_v45 }
  0x2b   :  { %841 = vmatprep.subr.bf16.mxu1 %v919_v36 }
  0x2c   :  { %813 = vmatpush3.bf16.msra.mxu0 %v898_v43 }
  0x2d   :  { %814 = vmatprep.subr.bf16.mxu0 %v900_v44 }
  0x2e   :  { %842 = vmatpush3.bf16.msra.mxu1 %v905_v48 }
  0x2f   :  { %843 = vmatprep.subr.bf16.mxu1 %v919_v36 }
  0x30   :  { %815 = vmatpush3.bf16.msra.mxu0 %v901_v46 }
  0x31   :  { %816 = vmatprep.subr.bf16.mxu0 %v903_v47 }
  0x32   :  { %844 = vmatpush3.bf16.msra.mxu1 %v908_v51 }
  0x33   :  { %845 = vmatprep.subr.bf16.mxu1 %v919_v36 }
  0x34   :  { %817 = vmatpush3.bf16.msra.mxu0 %v904_v49 }
  0x35   :  { %818 = vmatprep.subr.bf16.mxu0 %v906_v50 }
  0x36   :  { %846 = vmatpush3.bf16.msra.mxu1 %v911_v54 }
  0x37   :  { %847 = vmatprep.subr.bf16.mxu1 %v919_v36 }
  0x38   :  { %819 = vmatpush3.bf16.msra.mxu0 %v907_v52 }
  0x39   :  { %820 = vmatprep.subr.bf16.mxu0 %v909_v53 }
  0x3a   :  { %848 = vmatpush3.bf16.msra.mxu1 %v914_v58 }
  0x3c   :  { %821 = vmatpush3.bf16.msra.mxu0 %v910_v56 }
  0x3d   :  { %822 = vmatprep.subr.bf16.mxu0 %v912_v57  ;;  %850 = vmatmul.mubr.msk.bf16.vlgmr.msra.gmra.mxu1 %vm493_vm1, %v918_v60 }
  0x40   :  { %823 = vmatpush3.bf16.msra.mxu0 %v913_v59 }
  0x43   :  { %612 = vmatmul.mubr.bf16.vlgmr.msra.gmra.mxu0 %v915_v61 }
  0xe3   :  { %v780_v63 = vpop.f32.mrf.mxu0 }
  0xe4   :  { %v802_v62 = vpop.f32.mrf.mxu1 }
  0xe5   :  { %v781_v1 = vpop.f32.mrf.mxu0 }
  0xe6   :  { %v803_v0 = vpop.f32.mrf.mxu1  ;;  %v782_v7 = vadd.f32 %v781_v1, %v780_v63 }
  0xe7   :  { %v783_v3 = vpop.f32.mrf.mxu0  ;;  %v804_v8 = vadd.f32 %v803_v0, %v802_v62 }
  0xe8   :  { %v805_v2 = vpop.f32.mrf.mxu1 }
  0xe9   :  { %v784_v6 = vpop.f32.mrf.mxu0  ;;  %v573_v13 = vadd.f32 %v804_v8, %v782_v7 }
  0xea   :  { %v806_v4 = vpop.f32.mrf.mxu1  ;;  %v785_v14 = vadd.f32 %v784_v6, %v783_v3 }
  0xeb   :  { %v807_v15 = vadd.f32 %v806_v4, %v805_v2 }
  0xed   :  { %v576_v22 = vadd.f32 %v807_v15, %v785_v14 }
  0xfd   :  { %v654_v5 = vpop.f32.mrf.mxu1 }
  0xff   :  { %v851_v9 = vpop.f32.mrf.mxu1 }
 0x101   :  { %v657_v11 = vpop.f32.mrf.mxu1 }
 0x103   :  { %v824_v10 = vpop.f32.mrf.mxu0  ;;  %v852_v17 = vpop.f32.mrf.mxu1 }
 0x105   :  { %v825_v12 = vpop.f32.mrf.mxu0 }
 0x106   :  { %v826_v16 = vadd.f32 %v825_v12, %v824_v10 }
 0x107   :  { %v827_v18 = vpop.f32.mrf.mxu0 }
 0x108   :  { %v614_v19 = vadd.f32 %v826_v16, %v573_v13 }
 0x109   :  { %v828_v21 = vpop.f32.mrf.mxu0 }
 0x10a   :  { %v655_v23 = vadd.f32 %v654_v5, %v614_v19  ;;  %v829_v24 = vadd.f32 %v828_v21, %v827_v18 }
 0x10c   :  { %v668_v26 = vmul.f32 %v758_v20, %v655_v23  ;;  %v617_v27 = vadd.f32 %v829_v24, %v576_v22 }
 0x10e   :  { %v677_v28 = vadd.f32 %v759_v25, %v668_v26  ;;  %v658_v29 = vadd.f32 %v657_v11, %v617_v27 }
 0x110   :  { %v679_v30 = vmax.f32 %v677_v28, 0.0  ;;  %v669_v31 = vmul.f32 %v758_v20, %v658_v29 }
 0x112   :  { %v762_v32 = vpack.c.bf16 %v679_v30, %v679_v30  ;;  %v678_v33 = vadd.f32 %v759_v25, %v669_v31 }
 0x114   :  { %690 = vst.msk [vmem:[%s1145_s4] sm:$0xf] %vm689_vm2, %v762_v32  ;;  %v680_v34 = vmax.f32 %v678_v33, 0.0 }
 0x116   :  { %v763_v35 = vpack.c.bf16 %v680_v34, %v680_v34 }
 0x118   :  { %691 = vst.msk [vmem:[%s1145_s4 + $0x4] sm:$0xf] %vm689_vm2, %v763_v35 }

// kernel: clsnet_forward.20
= control target key start
LH: loop header
LB: loop body
LE: loop exit
PB: predicated region body
PF: predicated region fallthrough
CT: control target
= control target key end

     0   :  { %v145_v0 = vmov 0.0   ;;  %vm146_vm0 = vmmov 0   ;;  %vm41_vm1 = vcmask 261120   ;;  %vm112_vm2 = vcmask 519168   ;;  %s193_s1 = inlined_call_operand.vmem [shape: bf16[32,64], index: 1, kind: input, shape index: {}]   ;;  %s194_s0 = inlined_call_operand.vmem [shape: bf16[16,32], index: 0, kind: input, shape index: {}]   ;;  %s195_s2 = inlined_call_operand.vmem [shape: f32[1,64], index: 2, kind: input, shape index: {}]   ;;  %s196_s3 = inlined_call_operand.vmem [shape: f32[1,64], index: 3, kind: input, shape index: {}]   ;;  %s197_s4 = inlined_call_operand.vmem [shape: bf16[16,64], index: 4, kind: output, shape index: {}]  }
   0x1   :  { %132 = vmatprep.subr.bf16.mxu0 %v145_v0  ;;  %v142_v1 = vld [vmem:[%s193_s1 + $0x8] sm:$0xff]   ;;  %136 = vmatprep.mubr.msk.bf16.mxu0 %vm146_vm0, %v145_v0  ;;  %v143_v2 = vld [vmem:[%s193_s1] sm:$0xff]  }
   0x2   :  { %133 = vmatpush3.bf16.msra.mxu0 %v142_v1  ;;  %v144_v3 = vld [vmem:[%s194_s0] sm:$0xff]  }
   0x3   :  { %134 = vmatprep.subr.bf16.mxu0 %v145_v0  ;;  %v123_v4 = vld [vmem:[%s195_s2] ss:$0 sm:$0xff] }
   0x4   :  { %v124_v6 = vld [vmem:[%s196_s3] ss:$0 sm:$0xff] }
   0x6   :  { %135 = vmatpush3.bf16.msra.mxu0 %v143_v2 }
   0x9   :  { %137 = vmatmul.mubr.msk.bf16.vlgmr.msra.gmra.mxu0 %vm41_vm1, %v144_v3 }
  0xc9   :  { %v79_v5 = vpop.f32.mrf.mxu0 }
  0xca   :  { %v93_v7 = vmul.f32 %v123_v4, %v79_v5 }
  0xcb   :  { %v138_v8 = vpop.f32.mrf.mxu0 }
  0xcc   :  { %v102_v9 = vadd.f32 %v124_v6, %v93_v7 }
  0xcd   :  { %v82_v10 = vpop.f32.mrf.mxu0 }
  0xce   :  { %v127_v11 = vpack.c.bf16 %v102_v9, %v102_v9  ;;  %v94_v12 = vmul.f32 %v123_v4, %v82_v10 }
  0xcf   :  { %v139_v13 = vpop.f32.mrf.mxu0 }
  0xd0   :  { %113 = vst.msk [vmem:[%s197_s4] sm:$0xf] %vm112_vm2, %v127_v11  ;;  %v103_v14 = vadd.f32 %v124_v6, %v94_v12 }
  0xd2   :  { %v128_v15 = vpack.c.bf16 %v103_v14, %v103_v14 }
  0xd4   :  { %114 = vst.msk [vmem:[%s197_s4 + $0x4] sm:$0xf] %vm112_vm2, %v128_v15 }

// kernel: clsnet_forward.22
= control target key start
LH: loop header
LB: loop body
LE: loop exit
PB: predicated region body
PF: predicated region fallthrough
CT: control target
= control target key end

     0   :  { %vm968_vm0 = vcmask 523264   ;;  %vm1293_vm1 = vcmask 519168   ;;  %s2119_s1 = inlined_call_operand.vmem [shape: bf16[1728,64], index: 1, kind: input, shape index: {}]   ;;  %s2120_s0 = inlined_call_operand.vmem [shape: bf16[16,1728], index: 0, kind: input, shape index: {}]   ;;  %s2121_s2 = inlined_call_operand.vmem [shape: f32[1,64], index: 2, kind: input, shape index: {}]   ;;  %s2122_s4 = inlined_call_operand.vmem [shape: bf16[16,64], index: 4, kind: input, shape index: {}]   ;;  %s2123_s3 = inlined_call_operand.vmem [shape: f32[1,64], index: 3, kind: input, shape index: {}]   ;;  %s2124_s5 = inlined_call_operand.vmem [shape: bf16[16,64], index: 5, kind: output, shape index: {}]  }
   0x1   :  { %v1566_v0 = vld [vmem:[%s2119_s1 + $0x78] sm:$0xff]   ;;  %v1568_v2 = vld [vmem:[%s2119_s1 + $0x70] sm:$0xff]   ;;  %v1570_v4 = vld [vmem:[%s2119_s1 + $0x68] sm:$0xff]  }
   0x2   :  { %v1567_v1 = vld [vmem:[%s2119_s1 + $0x38] sm:$0xff]   ;;  %1433 = vmatprep.subr.bf16.mxu1 %v1566_v0  ;;  %v1569_v3 = vld [vmem:[%s2119_s1 + $0x30] sm:$0xff]   ;;  %v1571_v5 = vld [vmem:[%s2119_s1 + $0x28] sm:$0xff]  }
   0x3   :  { %1434 = vmatpush3.bf16.msra.mxu1 %v1567_v1  ;;  %v1572_v6 = vld [vmem:[%s2119_s1 + $0x60] sm:$0xff]   ;;  %v1575_v7 = vld [vmem:[%s2119_s1 + $0x178] sm:$0xff]   ;;  %v1579_v11 = vld [vmem:[%s2119_s1 + $0x170] sm:$0xff]  }
   0x4   :  { %1435 = vmatprep.subr.bf16.mxu1 %v1568_v2  ;;  %v1573_v8 = vld [vmem:[%s2119_s1 + $0x20] sm:$0xff]   ;;  %1477 = vmatprep.subr.bf16.mxu0 %v1575_v7  ;;  %v1577_v9 = vld [vmem:[%s2119_s1 + $0x138] sm:$0xff]   ;;  %v1581_v13 = vld [vmem:[%s2119_s1 + $0x130] sm:$0xff]  }
   0x5   :  { %v1574_v10 = vld [vmem:[%s2119_s1 + $0x58] sm:$0xff]   ;;  %1478 = vmatpush3.bf16.msra.mxu0 %v1577_v9  ;;  %v1578_v14 = vld [vmem:[%s2119_s1 + $0x50] sm:$0xff]   ;;  %v1583_v15 = vld [vmem:[%s2119_s1 + $0x168] sm:$0xff]  }
   0x6   :  { %v1576_v12 = vld [vmem:[%s2119_s1 + $0x18] sm:$0xff]   ;;  %1479 = vmatprep.subr.bf16.mxu0 %v1579_v11  ;;  %v1580_v16 = vld [vmem:[%s2119_s1 + $0x10] sm:$0xff]   ;;  %v1585_v17 = vld [vmem:[%s2119_s1 + $0x128] sm:$0xff]  }
   0x7   :  { %1436 = vmatpush3.bf16.msra.mxu1 %v1569_v3  ;;  %v1582_v18 = vld [vmem:[%s2119_s1 + $0x48] sm:$0xff]   ;;  %v1587_v19 = vld [vmem:[%s2119_s1 + $0x160] sm:$0xff]   ;;  %v1594_v25 = vld [vmem:[%s2119_s1 + $0x158] sm:$0xff]  }
   0x8   :  { %1437 = vmatprep.subr.bf16.mxu1 %v1570_v4  ;;  %v1584_v20 = vld [vmem:[%s2119_s1 + $0x8] sm:$0xff]   ;;  %v1589_v21 = vld [vmem:[%s2119_s1 + $0x120] sm:$0xff]   ;;  %v1593_v27 = vld [vmem:[%s2119_s1 + $0xf8] sm:$0xff]  }
   0x9   :  { %1480 = vmatpush3.bf16.msra.mxu0 %v1581_v13  ;;  %v1586_v22 = vld [vmem:[%s2119_s1 + $0x40] sm:$0xff]   ;;  %v1596_v28 = vld [vmem:[%s2119_s1 + $0x118] sm:$0xff]   ;;  %v1598_v30 = vld [vmem:[%s2119_s1 + $0x150] sm:$0xff]  }
   0xa   :  { %1481 = vmatprep.subr.bf16.mxu0 %v1583_v15  ;;  %v1592_v23 = vld [vmem:[%s2120_s0 + $0x4] ss:$56 sps:$4 sm:$0xff]   ;;  %v1590_v26 = vld [vmem:[%s2120_s0] ss:$56 sps:$4 sm:$0xff]   ;;  %v1597_v31 = vld [vmem:[%s2119_s1 + $0xf0] sm:$0xff]  }
   0xb   :  { %1438 = vmatpush3.bf16.msra.mxu1 %v1571_v5  ;;  %v1588_v24 = vld [vmem:[%s2119_s1] sm:$0xff]   ;;  %1004 = vmatprep.mubr.bf16.mxu1 %v1592_v23  ;;  %v1595_v29 = vld [vmem:[%s2119_s1 + $0xb8] sm:$0xff]   ;;  %v1600_v32 = vld [vmem:[%s2119_s1 + $0x110] sm:$0xff]  }
   0xc   :  { %1439 = vmatprep.subr.bf16.mxu1 %v1572_v6  ;;  %v1599_v33 = vld [vmem:[%s2119_s1 + $0xb0] sm:$0xff]   ;;  %v1602_v34 = vld [vmem:[%s2119_s1 + $0x148] sm:$0xff]   ;;  %v1606_v38 = vld [vmem:[%s2119_s1 + $0x140] sm:$0xff]  }
   0xd   :  { %1482 = vmatpush3.bf16.msra.mxu0 %v1585_v17  ;;  %v1601_v35 = vld [vmem:[%s2119_s1 + $0xe8] sm:$0xff]   ;;  %v1605_v39 = vld [vmem:[%s2119_s1 + $0xe0] sm:$0xff]   ;;  %v1609_v42 = vld [vmem:[%s2119_s1 + $0xd8] sm:$0xff]   ;;  %v1695_v17 = vmov 0  }
   0xe   :  { %1483 = vmatprep.subr.bf16.mxu0 %v1587_v19  ;;  %v1604_v36 = vld [vmem:[%s2119_s1 + $0x108] sm:$0xff]   ;;  %v1607_v40 = vld [vmem:[%s2119_s1 + $0xa0] sm:$0xff]   ;;  %v1613_v45 = vld [vmem:[%s2119_s1 + $0x278] sm:$0xff]  }
   0xf   :  { %1440 = vmatpush3.bf16.msra.mxu1 %v1573_v8  ;;  %v1603_v37 = vld [vmem:[%s2119_s1 + $0xa8] sm:$0xff]   ;;  %v1608_v41 = vld [vmem:[%s2119_s1 + $0x100] sm:$0xff]   ;;  %v1614_v46 = vld [vmem:[%s2119_s1 + $0x98] sm:$0xff]  }
  0x10   :  { %1441 = vmatprep.subr.bf16.mxu1 %v1574_v10  ;;  %v1610_v43 = vld [vmem:[%s2120_s0 + $0x10] ss:$56 sps:$4 sm:$0xff]   ;;  %v1612_v44 = vld [vmem:[%s2120_s0 + $0x14] ss:$56 sps:$4 sm:$0xff]   ;;  %v1615_v47 = vld [vmem:[%s2119_s1 + $0x238] sm:$0xff]  }
  0x11   :  { %1484 = vmatpush3.bf16.msra.mxu0 %v1589_v21  ;;  %1086 = vmatprep.mubr.bf16.mxu0 %v1612_v44  ;;  %v1616_v48 = vld [vmem:[%s2119_s1 + $0xd0] sm:$0xff]   ;;  %v1620_v52 = vld [vmem:[%s2119_s1 + $0xc8] sm:$0xff]   ;;  %v1624_v56 = vld [vmem:[%s2119_s1 + $0xc0] sm:$0xff]  }
  0x12   :  { %1485 = vmatprep.subr.bf16.mxu0 %v1594_v25  ;;  %v1617_v49 = vld [vmem:[%s2119_s1 + $0x270] sm:$0xff]   ;;  %v1621_v53 = vld [vmem:[%s2119_s1 + $0x268] sm:$0xff]   ;;  %v1625_v57 = vld [vmem:[%s2119_s1 + $0x260] sm:$0xff]  }
  0x13   :  { %1442 = vmatpush3.bf16.msra.mxu1 %v1576_v12  ;;  %v1618_v50 = vld [vmem:[%s2119_s1 + $0x90] sm:$0xff]   ;;  %v1622_v54 = vld [vmem:[%s2119_s1 + $0x88] sm:$0xff]   ;;  %v1627_v58 = vld [vmem:[%s2119_s1 + $0x220] sm:$0xff]  }
  0x14   :  { %1443 = vmatprep.subr.bf16.mxu1 %v1578_v14  ;;  %v1619_v51 = vld [vmem:[%s2119_s1 + $0x230] sm:$0xff]   ;;  %v1623_v55 = vld [vmem:[%s2119_s1 + $0x228] sm:$0xff]   ;;  %v1626_v59 = vld [vmem:[%s2119_s1 + $0x80] sm:$0xff]  }
  0x15   :  { %1486 = vmatpush3.bf16.msra.mxu0 %v1596_v28  ;;  %v1630_v60 = vld [vmem:[%s2120_s0 + $0xc] ss:$56 sps:$4 sm:$0xff]   ;;  %v1628_v61 = vld [vmem:[%s2120_s0 + $0x8] ss:$56 sps:$4 sm:$0xff]   ;;  %v1631_v62 = vld [vmem:[%s2119_s1 + $0x1f8] sm:$0xff]  }
  0x16   :  { %1487 = vmatprep.subr.bf16.mxu0 %v1598_v30  ;;  %v1632_v63 = vld [vmem:[%s2119_s1 + $0x258] sm:$0xff]   ;;  %v1635_v2 = vld [vmem:[%s2119_s1 + $0x1f0] sm:$0xff]   ;;  %v1639_v6 = vld [vmem:[%s2119_s1 + $0x1e8] sm:$0xff]  }
  0x17   :  { %1444 = vmatpush3.bf16.msra.mxu1 %v1580_v16  ;;  %v1633_v0 = vld [vmem:[%s2119_s1 + $0x1b8] sm:$0xff]   ;;  %v1636_v3 = vld [vmem:[%s2119_s1 + $0x250] sm:$0xff]   ;;  %v1640_v7 = vld [vmem:[%s2119_s1 + $0x248] sm:$0xff]  }
  0x18   :  { %1445 = vmatprep.subr.bf16.mxu1 %v1582_v18  ;;  %v1634_v1 = vld [vmem:[%s2119_s1 + $0x218] sm:$0xff]   ;;  %v1637_v4 = vld [vmem:[%s2119_s1 + $0x1b0] sm:$0xff]   ;;  %v1641_v8 = vld [vmem:[%s2119_s1 + $0x1a8] sm:$0xff]  }
  0x19   :  { %1488 = vmatpush3.bf16.msra.mxu0 %v1600_v32  ;;  %v1638_v5 = vld [vmem:[%s2119_s1 + $0x210] sm:$0xff]   ;;  %v1642_v9 = vld [vmem:[%s2119_s1 + $0x208] sm:$0xff]   ;;  %v1643_v10 = vld [vmem:[%s2119_s1 + $0x1e0] sm:$0xff]  }
  0x1a   :  { %1489 = vmatprep.subr.bf16.mxu0 %v1602_v34  ;;  %v1644_v11 = vld [vmem:[%s2119_s1 + $0x240] sm:$0xff]   ;;  %v1647_v14 = vld [vmem:[%s2119_s1 + $0x1d8] sm:$0xff]   ;;  %v1654_v21 = vld [vmem:[%s2119_s1 + $0x190] sm:$0xff]  }
  0x1b   :  { %1446 = vmatpush3.bf16.msra.mxu1 %v1584_v20  ;;  %v1645_v12 = vld [vmem:[%s2119_s1 + $0x1a0] sm:$0xff]   ;;  %v1651_v18 = vld [vmem:[%s2119_s1 + $0x198] sm:$0xff]   ;;  %v1653_v20 = vld [vmem:[%s2119_s1 + $0x1d0] sm:$0xff]  }
  0x1c   :  { %1447 = vmatprep.subr.bf16.mxu1 %v1586_v22  ;;  %v1646_v13 = vld [vmem:[%s2119_s1 + $0x200] sm:$0xff]   ;;  %v1652_v19 = vld [vmem:[%s2119_s1 + $0x338] sm:$0xff]   ;;  %v1655_v22 = vld [vmem:[%s2119_s1 + $0x330] sm:$0xff]  }
  0x1d   :  { %1490 = vmatpush3.bf16.msra.mxu0 %v1604_v36  ;;  %v1648_v15 = vld [vmem:[%s2120_s0 + $0x20] ss:$56 sps:$4 sm:$0xff]   ;;  %v1650_v16 = vld [vmem:[%s2120_s0 + $0x24] ss:$56 sps:$4 sm:$0xff]   ;;  %v1656_v23 = vld [vmem:[%s2119_s1 + $0x1c8] sm:$0xff]  }
  0x1e   :  { %1491 = vmatprep.subr.bf16.mxu0 %v1606_v38  ;;  %v1657_v25 = vld [vmem:[%s2119_s1 + $0x188] sm:$0xff]   ;;  %v1664_v28 = vld [vmem:[%s2120_s0 + $0x1c] ss:$56 sps:$4 sm:$0xff]  }
  0x1f   :  { %1448 = vmatpush3.bf16.msra.mxu1 %v1588_v24  ;;  %v1658_v24 = vld [vmem:[%s2119_s1 + $0x328] sm:$0xff]   ;;  %v1665_v30 = vld [vmem:[%s2119_s1 + $0x2f8] sm:$0xff]   ;;  %v1668_v34 = vld [vmem:[%s2119_s1 + $0x2f0] sm:$0xff]  }
  0x20   :  { %1455 = vmatprep.subr.bf16.mxu1 %v1593_v27  ;;  %v1661_v27 = vld [vmem:[%s2119_s1 + $0x320] sm:$0xff]   ;;  %v1667_v32 = vld [vmem:[%s2119_s1 + $0x318] sm:$0xff]   ;;  %v1669_v36 = vld [vmem:[%s2119_s1 + $0x2b0] sm:$0xff]  }
  0x21   :  { %1492 = vmatpush3.bf16.msra.mxu0 %v1608_v41  ;;  %v1673_v38 = vld [vmem:[%s2119_s1 + $0x308] sm:$0xff]   ;;  %v1676_v41 = vld [vmem:[%s2119_s1 + $0x300] sm:$0xff]   ;;  %v1679_v44 = vld [vmem:[%s2119_s1 + $0x358] sm:$0xff]  }
  0x22   :  { %1005 = vmatmul.mubr.bf16.vlgmr.msra.gmra.mxu1 %v1590_v26  ;;  %1521 = vmatprep.subr.bf16.mxu0 %v1613_v45  ;;  %v1659_v26 = vld [vmem:[%s2119_s1 + $0x1c0] sm:$0xff]   ;;  %v1678_v45 = vld [vmem:[%s2119_s1 + $0x298] sm:$0xff]  }
  0x23   :  { %1456 = vmatpush3.bf16.msra.mxu1 %v1595_v29  ;;  %1045 = vmatprep.mubr.bf16.mxu1 %v1630_v60  ;;  %v1660_v29 = vld [vmem:[%s2119_s1 + $0x180] sm:$0xff]  }
  0x24   :  { %1457 = vmatprep.subr.bf16.mxu1 %v1597_v31  ;;  %1087 = vmatmul.mubr.bf16.vlgmr.msra.gmra.mxu0 %v1610_v43  ;;  %v1662_v31 = vld [vmem:[%s2120_s0 + $0x18] ss:$56 sps:$4 sm:$0xff]  }
  0x25   :  { %1522 = vmatpush3.bf16.msra.mxu0 %v1615_v47  ;;  %1168 = vmatprep.mubr.bf16.mxu0 %v1650_v16  ;;  %v1677_v43 = vld [vmem:[%s2119_s1 + $0x2d8] sm:$0xff]   ;;  %v1681_v47 = vld [vmem:[%s2119_s1 + $0x290] sm:$0xff]  }
  0x26   :  { %1523 = vmatprep.subr.bf16.mxu0 %v1617_v49  ;;  %v1683_v49 = vld [vmem:[%s2119_s1 + $0x2c8] sm:$0xff]  }
  0x27   :  { %1458 = vmatpush3.bf16.msra.mxu1 %v1599_v33  ;;  %v1666_v33 = vld [vmem:[%s2119_s1 + $0x2b8] sm:$0xff]  }
  0x28   :  { %1459 = vmatprep.subr.bf16.mxu1 %v1601_v35  ;;  %v1670_v35 = vld [vmem:[%s2119_s1 + $0x310] sm:$0xff]  }
  0x29   :  { %1524 = vmatpush3.bf16.msra.mxu0 %v1619_v51  ;;  %v1692_v51 = vld [vmem:[%s2120_s0 + $0x34] ss:$56 sps:$4 sm:$0xff]  }
  0x2a   :  { %1525 = vmatprep.subr.bf16.mxu0 %v1621_v53  ;;  %v1684_v53 = vld [vmem:[%s2119_s1 + $0x288] sm:$0xff]  }
  0x2b   :  { %1460 = vmatpush3.bf16.msra.mxu1 %v1603_v37  ;;  %v1671_v37 = vld [vmem:[%s2119_s1 + $0x2e8] sm:$0xff]  }
  0x2c   :  { %1461 = vmatprep.subr.bf16.mxu1 %v1605_v39  ;;  %v1672_v39 = vld [vmem:[%s2119_s1 + $0x2a8] sm:$0xff]  }
  0x2d   :  { %1526 = vmatpush3.bf16.msra.mxu0 %v1623_v55  ;;  %v1688_v55 = vld [vmem:[%s2119_s1 + $0x340] sm:$0xff]  }
  0x2e   :  { %1527 = vmatprep.subr.bf16.mxu0 %v1625_v57  ;;  %v1694_v57 = vld [vmem:[%s2120_s0 + $0x30] ss:$56 sps:$4 sm:$0xff]  }
  0x2f   :  { %1462 = vmatpush3.bf16.msra.mxu1 %v1607_v40  ;;  %v1674_v40 = vld [vmem:[%s2119_s1 + $0x2e0] sm:$0xff]  }
  0x30   :  { %1463 = vmatprep.subr.bf16.mxu1 %v1609_v42  ;;  %v1675_v42 = vld [vmem:[%s2119_s1 + $0x2a0] sm:$0xff]  }
  0x31   :  { %1528 = vmatpush3.bf16.msra.mxu0 %v1627_v58  ;;  %v1689_v58 = vld [vmem:[%s2120_s0 + $0x28] ss:$56 sps:$4 sm:$0xff]  }
  0x32   :  { %1529 = vmatprep.subr.bf16.mxu0 %v1632_v63 }
  0x33   :  { %1464 = vmatpush3.bf16.msra.mxu1 %v1614_v46  ;;  %v1680_v46 = vld [vmem:[%s2119_s1 + $0x2d0] sm:$0xff]  }
  0x34   :  { %1465 = vmatprep.subr.bf16.mxu1 %v1616_v48  ;;  %v1682_v48 = vld [vmem:[%s2119_s1 + $0x350] sm:$0xff]  }
  0x35   :  { %1530 = vmatpush3.bf16.msra.mxu0 %v1634_v1 }
  0x36   :  { %1531 = vmatprep.subr.bf16.mxu0 %v1636_v3 }
  0x37   :  { %1466 = vmatpush3.bf16.msra.mxu1 %v1618_v50  ;;  %v1691_v50 = vld [vmem:[%s2120_s0 + $0x2c] ss:$56 sps:$4 sm:$0xff]  }
  0x38   :  { %1467 = vmatprep.subr.bf16.mxu1 %v1620_v52  ;;  %v1685_v52 = vld [vmem:[%s2119_s1 + $0x348] sm:$0xff]  }
  0x39   :  { %1532 = vmatpush3.bf16.msra.mxu0 %v1638_v5 }
  0x3a   :  { %1533 = vmatprep.subr.bf16.mxu0 %v1640_v7 }
  0x3b   :  { %1468 = vmatpush3.bf16.msra.mxu1 %v1622_v54  ;;  %v1686_v54 = vld [vmem:[%s2119_s1 + $0x2c0] sm:$0xff]  }
  0x3c   :  { %1469 = vmatprep.subr.bf16.mxu1 %v1624_v56  ;;  %v1687_v56 = vld [vmem:[%s2119_s1 + $0x280] sm:$0xff]  }
  0x3d   :  { %1534 = vmatpush3.bf16.msra.mxu0 %v1642_v9 }
  0x3e   :  { %1535 = vmatprep.subr.bf16.mxu0 %v1644_v11 }
  0x3f   :  { %1470 = vmatpush3.bf16.msra.mxu1 %v1626_v59 }
  0x40   :  { %1499 = vmatprep.subr.bf16.mxu1 %v1631_v62 }
  0x41   :  { %1536 = vmatpush3.bf16.msra.mxu0 %v1646_v13 }
  0x42   :  { %1046 = vmatmul.mubr.bf16.vlgmr.msra.gmra.mxu1 %v1628_v61  ;;  %1218 = vmatprep.subr.bf16.mxu0 %v1695_v17 }
  0x43   :  { %1500 = vmatpush3.bf16.msra.mxu1 %v1633_v0  ;;  %1127 = vmatprep.mubr.bf16.mxu1 %v1664_v28 }
  0x44   :  { %1501 = vmatprep.subr.bf16.mxu1 %v1635_v2  ;;  %1169 = vmatmul.mubr.bf16.vlgmr.msra.gmra.mxu0 %v1648_v15 }
  0x45   :  { %1219 = vmatpush1.bf16.msra.mxu0 %v1652_v19  ;;  %1422 = vmatprep.mubr.msk.bf16.mxu0 %vm968_vm0, %v1692_v51 }
  0x46   :  { %1220 = vmatprep.subr.bf16.mxu0 %v1695_v17 }
  0x47   :  { %1502 = vmatpush3.bf16.msra.mxu1 %v1637_v4 }
  0x48   :  { %1503 = vmatprep.subr.bf16.mxu1 %v1639_v6 }
  0x49   :  { %1221 = vmatpush1.bf16.msra.mxu0 %v1655_v22 }
  0x4a   :  { %1222 = vmatprep.subr.bf16.mxu0 %v1695_v17 }
  0x4b   :  { %1504 = vmatpush3.bf16.msra.mxu1 %v1641_v8 }
  0x4c   :  { %1505 = vmatprep.subr.bf16.mxu1 %v1643_v10 }
  0x4d   :  { %1223 = vmatpush1.bf16.msra.mxu0 %v1658_v24 }
  0x4e   :  { %1224 = vmatprep.subr.bf16.mxu0 %v1695_v17 }
  0x4f   :  { %1506 = vmatpush3.bf16.msra.mxu1 %v1645_v12 }
  0x50   :  { %1507 = vmatprep.subr.bf16.mxu1 %v1647_v14 }
  0x51   :  { %1225 = vmatpush1.bf16.msra.mxu0 %v1661_v27 }
  0x52   :  { %1226 = vmatprep.subr.bf16.mxu0 %v1695_v17 }
  0x53   :  { %1508 = vmatpush3.bf16.msra.mxu1 %v1651_v18 }
  0x54   :  { %1509 = vmatprep.subr.bf16.mxu1 %v1653_v20 }
  0x55   :  { %1227 = vmatpush1.bf16.msra.mxu0 %v1667_v32 }
  0x56   :  { %1228 = vmatprep.subr.bf16.mxu0 %v1695_v17 }
  0x57   :  { %1510 = vmatpush3.bf16.msra.mxu1 %v1654_v21 }
  0x58   :  { %1511 = vmatprep.subr.bf16.mxu1 %v1656_v23 }
  0x59   :  { %1229 = vmatpush1.bf16.msra.mxu0 %v1670_v35 }
  0x5a   :  { %1230 = vmatprep.subr.bf16.mxu0 %v1695_v17 }
  0x5b   :  { %1512 = vmatpush3.bf16.msra.mxu1 %v1657_v25 }
  0x5c   :  { %1513 = vmatprep.subr.bf16.mxu1 %v1659_v26 }
  0x5d   :  { %1231 = vmatpush1.bf16.msra.mxu0 %v1673_v38 }
  0x5e   :  { %1232 = vmatprep.subr.bf16.mxu0 %v1695_v17 }
  0x5f   :  { %1514 = vmatpush3.bf16.msra.mxu1 %v1660_v29 }
  0x60   :  { %1543 = vmatprep.subr.bf16.mxu1 %v1665_v30 }
  0x61   :  { %1233 = vmatpush1.bf16.msra.mxu0 %v1676_v41  ;;  %v1423_v41 = vld [vmem:[%s2121_s2] ss:$0 sm:$0xff] }
  0x62   :  { %1128 = vmatmul.mubr.bf16.vlgmr.msra.gmra.mxu1 %v1662_v31  ;;  %1242 = vmatprep.subr.bf16.mxu0 %v1695_v17 }
  0x63   :  { %1544 = vmatpush3.bf16.msra.mxu1 %v1666_v33  ;;  %1209 = vmatprep.mubr.bf16.mxu1 %v1691_v50 }
  0x64   :  { %1545 = vmatprep.subr.bf16.mxu1 %v1668_v34 }
  0x65   :  { %1243 = vmatpush2.bf16.msra.mxu0 %v1679_v44 }
  0x66   :  { %1244 = vmatprep.subr.bf16.mxu0 %v1695_v17 }
  0x67   :  { %1546 = vmatpush3.bf16.msra.mxu1 %v1669_v36 }
  0x68   :  { %1547 = vmatprep.subr.bf16.mxu1 %v1671_v37 }
  0x69   :  { %1245 = vmatpush2.bf16.msra.mxu0 %v1682_v48 }
  0x6a   :  { %1246 = vmatprep.subr.bf16.mxu0 %v1695_v17 }
  0x6b   :  { %1548 = vmatpush3.bf16.msra.mxu1 %v1672_v39 }
  0x6c   :  { %1549 = vmatprep.subr.bf16.mxu1 %v1674_v40 }
  0x6d   :  { %1247 = vmatpush2.bf16.msra.mxu0 %v1685_v52 }
  0x6e   :  { %1248 = vmatprep.subr.bf16.mxu0 %v1695_v17 }
  0x6f   :  { %1550 = vmatpush3.bf16.msra.mxu1 %v1675_v42  ;;  %v1430_v42 = vld [vmem:[%s2122_s4] sm:$0xff]  }
  0x70   :  { %1551 = vmatprep.subr.bf16.mxu1 %v1677_v43 }
  0x71   :  { %1249 = vmatpush2.bf16.msra.mxu0 %v1688_v55  ;;  %v1432_v55 = vunpack.c.h.bf16 %v1430_v42 }
  0x73   :  { %1552 = vmatpush3.bf16.msra.mxu1 %v1678_v45 }
  0x74   :  { %1553 = vmatprep.subr.bf16.mxu1 %v1680_v46  ;;  %1251 = vmatmul.mubr.bf16.vlgmr.msra.gmra.mxu0 %v1694_v57 }
  0x77   :  { %1554 = vmatpush3.bf16.msra.mxu1 %v1681_v47  ;;  %v1424_v47 = vld [vmem:[%s2123_s3] ss:$0 sm:$0xff] }
  0x78   :  { %1555 = vmatprep.subr.bf16.mxu1 %v1683_v49  ;;  %v1431_v49 = vunpack.c.l.bf16 %v1430_v42 }
  0x7b   :  { %1556 = vmatpush3.bf16.msra.mxu1 %v1684_v53 }
  0x7c   :  { %1557 = vmatprep.subr.bf16.mxu1 %v1686_v54 }
  0x7f   :  { %1558 = vmatpush3.bf16.msra.mxu1 %v1687_v56 }
  0x82   :  { %1210 = vmatmul.mubr.bf16.vlgmr.msra.gmra.mxu1 %v1689_v58 }
  0xe2   :  { %v1449_v59 = vpop.f32.mrf.mxu1 }
  0xe4   :  { %v1450_v60 = vpop.f32.mrf.mxu1  ;;  %v1493_v0 = vpop.f32.mrf.mxu0 }
  0xe5   :  { %v1451_v12 = vadd.f32 %v1450_v60, %v1449_v59 }
  0xe6   :  { %v1452_v61 = vpop.f32.mrf.mxu1  ;;  %v1494_v2 = vpop.f32.mrf.mxu0 }
  0xe7   :  { %v1495_v18 = vadd.f32 %v1494_v2, %v1493_v0 }
  0xe8   :  { %v1453_v62 = vpop.f32.mrf.mxu1  ;;  %v1496_v4 = vpop.f32.mrf.mxu0 }
  0xe9   :  { %v1454_v17 = vadd.f32 %v1453_v62, %v1452_v61 }
  0xea   :  { %v1497_v6 = vpop.f32.mrf.mxu0 }
  0xeb   :  { %v1498_v24 = vadd.f32 %v1497_v6, %v1496_v4 }
 0x102   :  { %v1471_v63 = vpop.f32.mrf.mxu1 }
 0x104   :  { %v1472_v1 = vpop.f32.mrf.mxu1  ;;  %v1537_v8 = vpop.f32.mrf.mxu0 }
 0x105   :  { %v1473_v10 = vadd.f32 %v1472_v1, %v1471_v63 }
 0x106   :  { %v1474_v3 = vpop.f32.mrf.mxu1  ;;  %v1538_v11 = vpop.f32.mrf.mxu0 }
 0x107   :  { %v1048_v14 = vadd.f32 %v1473_v10, %v1451_v12  ;;  %v1539_v29 = vadd.f32 %v1538_v11, %v1537_v8 }
 0x108   :  { %v1475_v5 = vpop.f32.mrf.mxu1  ;;  %v1540_v16 = vpop.f32.mrf.mxu0 }
 0x109   :  { %v1476_v15 = vadd.f32 %v1475_v5, %v1474_v3  ;;  %v1089_v23 = vadd.f32 %v1495_v18, %v1048_v14 }
 0x10a   :  { %v1541_v22 = vpop.f32.mrf.mxu0 }
 0x10b   :  { %v1051_v21 = vadd.f32 %v1476_v15, %v1454_v17  ;;  %v1542_v38 = vadd.f32 %v1541_v22, %v1540_v16 }
 0x10d   :  { %v1092_v30 = vadd.f32 %v1498_v24, %v1051_v21 }
 0x122   :  { %v1515_v7 = vpop.f32.mrf.mxu1 }
 0x124   :  { %v1516_v9 = vpop.f32.mrf.mxu1 }
 0x125   :  { %v1517_v19 = vadd.f32 %v1516_v9, %v1515_v7 }
 0x126   :  { %v1518_v13 = vpop.f32.mrf.mxu1 }
 0x127   :  { %v1130_v25 = vadd.f32 %v1517_v19, %v1089_v23 }
 0x128   :  { %v1519_v20 = vpop.f32.mrf.mxu1 }
 0x129   :  { %v1520_v26 = vadd.f32 %v1519_v20, %v1518_v13  ;;  %v1171_v34 = vadd.f32 %v1539_v29, %v1130_v25 }
 0x12b   :  { %v1133_v33 = vadd.f32 %v1520_v26, %v1092_v30 }
 0x12d   :  { %v1174_v45 = vadd.f32 %v1542_v38, %v1133_v33 }
 0x134   :  { %v1252_v27 = vpop.f32.mrf.mxu0 }
 0x136   :  { %v1254_v31 = vpop.f32.mrf.mxu0 }
 0x138   :  { %v1255_v36 = vpop.f32.mrf.mxu0 }
 0x13a   :  { %v1257_v40 = vpop.f32.mrf.mxu0 }
 0x142   :  { %v1559_v28 = vpop.f32.mrf.mxu1 }
 0x144   :  { %v1560_v32 = vpop.f32.mrf.mxu1 }
 0x145   :  { %v1561_v35 = vadd.f32 %v1560_v32, %v1559_v28 }
 0x146   :  { %v1562_v37 = vpop.f32.mrf.mxu1 }
 0x147   :  { %v1212_v39 = vadd.f32 %v1561_v35, %v1171_v34 }
 0x148   :  { %v1563_v43 = vpop.f32.mrf.mxu1 }
 0x149   :  { %v1253_v44 = vadd.f32 %v1252_v27, %v1212_v39  ;;  %v1564_v46 = vadd.f32 %v1563_v43, %v1562_v37 }
 0x14b   :  { %v1266_v48 = vmul.f32 %v1423_v41, %v1253_v44  ;;  %v1215_v50 = vadd.f32 %v1564_v46, %v1174_v45 }
 0x14d   :  { %v1275_v51 = vadd.f32 %v1424_v47, %v1266_v48  ;;  %v1256_v52 = vadd.f32 %v1255_v36, %v1215_v50 }
 0x14f   :  { %v1281_v53 = vadd.f32 %v1431_v49, %v1275_v51  ;;  %v1267_v54 = vmul.f32 %v1423_v41, %v1256_v52 }
 0x151   :  { %v1283_v56 = vmax.f32 %v1281_v53, 0.0  ;;  %v1276_v57 = vadd.f32 %v1424_v47, %v1267_v54 }
 0x153   :  { %v1427_v58 = vpack.c.bf16 %v1283_v56, %v1283_v56  ;;  %v1282_v59 = vadd.f32 %v1432_v55, %v1276_v57 }
 0x155   :  { %1294 = vst.msk [vmem:[%s2124_s5] sm:$0xf] %vm1293_vm1, %v1427_v58  ;;  %v1284_v60 = vmax.f32 %v1282_v59, 0.0 }
 0x157   :  { %v1428_v61 = vpack.c.bf16 %v1284_v60, %v1284_v60 }
 0x159   :  { %1295 = vst.msk [vmem:[%s2124_s5 + $0x4] sm:$0xf] %vm1293_vm1, %v1428_v61 }

// kernel: clsnet_forward.24
= control target key start
LH: loop header
LB: loop body
LE: loop exit
PB: predicated region body
PF: predicated region fallthrough
CT: control target
= control target key end

     0   :  { %vm965_vm0 = vcmask 523264   ;;  %s2099_s1 = inlined_call_operand.vmem [shape: bf16[1728,128], index: 1, kind: input, shape index: {}]   ;;  %s2100_s0 = inlined_call_operand.vmem [shape: bf16[16,1728], index: 0, kind: input, shape index: {}]   ;;  %s2101_s2 = inlined_call_operand.vmem [shape: f32[1,128], index: 2, kind: input, shape index: {}]   ;;  %s2102_s3 = inlined_call_operand.vmem [shape: f32[1,128], index: 3, kind: input, shape index: {}]   ;;  %s2103_s4 = inlined_call_operand.vmem [shape: bf16[16,128], index: 4, kind: output, shape index: {}]  }
   0x1   :  { %v1557_v0 = vld [vmem:[%s2099_s1 + $0x78] sm:$0xff]   ;;  %v1559_v2 = vld [vmem:[%s2099_s1 + $0x70] sm:$0xff]   ;;  %v1561_v4 = vld [vmem:[%s2099_s1 + $0x68] sm:$0xff]  }
   0x2   :  { %v1558_v1 = vld [vmem:[%s2099_s1 + $0x38] sm:$0xff]   ;;  %1424 = vmatprep.subr.bf16.mxu1 %v1557_v0  ;;  %v1560_v3 = vld [vmem:[%s2099_s1 + $0x30] sm:$0xff]   ;;  %v1562_v5 = vld [vmem:[%s2099_s1 + $0x28] sm:$0xff]  }
   0x3   :  { %1425 = vmatpush3.bf16.msra.mxu1 %v1558_v1  ;;  %v1563_v6 = vld [vmem:[%s2099_s1 + $0x60] sm:$0xff]   ;;  %v1566_v7 = vld [vmem:[%s2099_s1 + $0x178] sm:$0xff]   ;;  %v1570_v11 = vld [vmem:[%s2099_s1 + $0x170] sm:$0xff]  }
   0x4   :  { %1426 = vmatprep.subr.bf16.mxu1 %v1559_v2  ;;  %v1564_v8 = vld [vmem:[%s2099_s1 + $0x20] sm:$0xff]   ;;  %1468 = vmatprep.subr.bf16.mxu0 %v1566_v7  ;;  %v1568_v9 = vld [vmem:[%s2099_s1 + $0x138] sm:$0xff]   ;;  %v1572_v13 = vld [vmem:[%s2099_s1 + $0x130] sm:$0xff]  }
   0x5   :  { %v1565_v10 = vld [vmem:[%s2099_s1 + $0x58] sm:$0xff]   ;;  %1469 = vmatpush3.bf16.msra.mxu0 %v1568_v9  ;;  %v1569_v14 = vld [vmem:[%s2099_s1 + $0x50] sm:$0xff]   ;;  %v1574_v15 = vld [vmem:[%s2099_s1 + $0x168] sm:$0xff]  }
   0x6   :  { %v1567_v12 = vld [vmem:[%s2099_s1 + $0x18] sm:$0xff]   ;;  %1470 = vmatprep.subr.bf16.mxu0 %v1570_v11  ;;  %v1571_v16 = vld [vmem:[%s2099_s1 + $0x10] sm:$0xff]   ;;  %v1576_v17 = vld [vmem:[%s2099_s1 + $0x128] sm:$0xff]  }
   0x7   :  { %1427 = vmatpush3.bf16.msra.mxu1 %v1560_v3  ;;  %v1573_v18 = vld [vmem:[%s2099_s1 + $0x48] sm:$0xff]   ;;  %v1578_v19 = vld [vmem:[%s2099_s1 + $0x160] sm:$0xff]   ;;  %v1585_v25 = vld [vmem:[%s2099_s1 + $0x158] sm:$0xff]  }
   0x8   :  { %1428 = vmatprep.subr.bf16.mxu1 %v1561_v4  ;;  %v1575_v20 = vld [vmem:[%s2099_s1 + $0x8] sm:$0xff]   ;;  %v1580_v21 = vld [vmem:[%s2099_s1 + $0x120] sm:$0xff]   ;;  %v1584_v27 = vld [vmem:[%s2099_s1 + $0xf8] sm:$0xff]  }
   0x9   :  { %1471 = vmatpush3.bf16.msra.mxu0 %v1572_v13  ;;  %v1577_v22 = vld [vmem:[%s2099_s1 + $0x40] sm:$0xff]   ;;  %v1587_v28 = vld [vmem:[%s2099_s1 + $0x118] sm:$0xff]   ;;  %v1589_v30 = vld [vmem:[%s2099_s1 + $0x150] sm:$0xff]  }
   0xa   :  { %1472 = vmatprep.subr.bf16.mxu0 %v1574_v15  ;;  %v1583_v23 = vld [vmem:[%s2100_s0 + $0x4] ss:$56 sps:$4 sm:$0xff]   ;;  %v1581_v26 = vld [vmem:[%s2100_s0] ss:$56 sps:$4 sm:$0xff]   ;;  %v1588_v31 = vld [vmem:[%s2099_s1 + $0xf0] sm:$0xff]  }
   0xb   :  { %1429 = vmatpush3.bf16.msra.mxu1 %v1562_v5  ;;  %v1579_v24 = vld [vmem:[%s2099_s1] sm:$0xff]   ;;  %1001 = vmatprep.mubr.bf16.mxu1 %v1583_v23  ;;  %v1586_v29 = vld [vmem:[%s2099_s1 + $0xb8] sm:$0xff]   ;;  %v1591_v32 = vld [vmem:[%s2099_s1 + $0x110] sm:$0xff]  }
   0xc   :  { %1430 = vmatprep.subr.bf16.mxu1 %v1563_v6  ;;  %v1590_v33 = vld [vmem:[%s2099_s1 + $0xb0] sm:$0xff]   ;;  %v1593_v34 = vld [vmem:[%s2099_s1 + $0x148] sm:$0xff]   ;;  %v1597_v38 = vld [vmem:[%s2099_s1 + $0x140] sm:$0xff]  }
   0xd   :  { %1473 = vmatpush3.bf16.msra.mxu0 %v1576_v17  ;;  %v1592_v35 = vld [vmem:[%s2099_s1 + $0xe8] sm:$0xff]   ;;  %v1596_v39 = vld [vmem:[%s2099_s1 + $0xe0] sm:$0xff]   ;;  %v1600_v42 = vld [vmem:[%s2099_s1 + $0xd8] sm:$0xff]   ;;  %v1686_v17 = vmov 0  }
   0xe   :  { %1474 = vmatprep.subr.bf16.mxu0 %v1578_v19  ;;  %v1595_v36 = vld [vmem:[%s2099_s1 + $0x108] sm:$0xff]   ;;  %v1598_v40 = vld [vmem:[%s2099_s1 + $0xa0] sm:$0xff]   ;;  %v1604_v45 = vld [vmem:[%s2099_s1 + $0x278] sm:$0xff]  }
   0xf   :  { %1431 = vmatpush3.bf16.msra.mxu1 %v1564_v8  ;;  %v1594_v37 = vld [vmem:[%s2099_s1 + $0xa8] sm:$0xff]   ;;  %v1599_v41 = vld [vmem:[%s2099_s1 + $0x100] sm:$0xff]   ;;  %v1605_v46 = vld [vmem:[%s2099_s1 + $0x98] sm:$0xff]  }
  0x10   :  { %1432 = vmatprep.subr.bf16.mxu1 %v1565_v10  ;;  %v1601_v43 = vld [vmem:[%s2100_s0 + $0x10] ss:$56 sps:$4 sm:$0xff]   ;;  %v1603_v44 = vld [vmem:[%s2100_s0 + $0x14] ss:$56 sps:$4 sm:$0xff]   ;;  %v1606_v47 = vld [vmem:[%s2099_s1 + $0x238] sm:$0xff]  }
  0x11   :  { %1475 = vmatpush3.bf16.msra.mxu0 %v1580_v21  ;;  %1083 = vmatprep.mubr.bf16.mxu0 %v1603_v44  ;;  %v1607_v48 = vld [vmem:[%s2099_s1 + $0xd0] sm:$0xff]   ;;  %v1611_v52 = vld [vmem:[%s2099_s1 + $0xc8] sm:$0xff]   ;;  %v1615_v56 = vld [vmem:[%s2099_s1 + $0xc0] sm:$0xff]  }
  0x12   :  { %1476 = vmatprep.subr.bf16.mxu0 %v1585_v25  ;;  %v1608_v49 = vld [vmem:[%s2099_s1 + $0x270] sm:$0xff]   ;;  %v1612_v53 = vld [vmem:[%s2099_s1 + $0x268] sm:$0xff]   ;;  %v1616_v57 = vld [vmem:[%s2099_s1 + $0x260] sm:$0xff]  }
  0x13   :  { %1433 = vmatpush3.bf16.msra.mxu1 %v1567_v12  ;;  %v1609_v50 = vld [vmem:[%s2099_s1 + $0x90] sm:$0xff]   ;;  %v1613_v54 = vld [vmem:[%s2099_s1 + $0x88] sm:$0xff]   ;;  %v1618_v58 = vld [vmem:[%s2099_s1 + $0x220] sm:$0xff]  }
  0x14   :  { %1434 = vmatprep.subr.bf16.mxu1 %v1569_v14  ;;  %v1610_v51 = vld [vmem:[%s2099_s1 + $0x230] sm:$0xff]   ;;  %v1614_v55 = vld [vmem:[%s2099_s1 + $0x228] sm:$0xff]   ;;  %v1617_v59 = vld [vmem:[%s2099_s1 + $0x80] sm:$0xff]  }
  0x15   :  { %1477 = vmatpush3.bf16.msra.mxu0 %v1587_v28  ;;  %v1621_v60 = vld [vmem:[%s2100_s0 + $0xc] ss:$56 sps:$4 sm:$0xff]   ;;  %v1619_v61 = vld [vmem:[%s2100_s0 + $0x8] ss:$56 sps:$4 sm:$0xff]   ;;  %v1622_v62 = vld [vmem:[%s2099_s1 + $0x1f8] sm:$0xff]  }
  0x16   :  { %1478 = vmatprep.subr.bf16.mxu0 %v1589_v30  ;;  %v1623_v63 = vld [vmem:[%s2099_s1 + $0x258] sm:$0xff]   ;;  %v1626_v2 = vld [vmem:[%s2099_s1 + $0x1f0] sm:$0xff]   ;;  %v1630_v6 = vld [vmem:[%s2099_s1 + $0x1e8] sm:$0xff]  }
  0x17   :  { %1435 = vmatpush3.bf16.msra.mxu1 %v1571_v16  ;;  %v1624_v0 = vld [vmem:[%s2099_s1 + $0x1b8] sm:$0xff]   ;;  %v1627_v3 = vld [vmem:[%s2099_s1 + $0x250] sm:$0xff]   ;;  %v1631_v7 = vld [vmem:[%s2099_s1 + $0x248] sm:$0xff]  }
  0x18   :  { %1436 = vmatprep.subr.bf16.mxu1 %v1573_v18  ;;  %v1625_v1 = vld [vmem:[%s2099_s1 + $0x218] sm:$0xff]   ;;  %v1628_v4 = vld [vmem:[%s2099_s1 + $0x1b0] sm:$0xff]   ;;  %v1632_v8 = vld [vmem:[%s2099_s1 + $0x1a8] sm:$0xff]  }
  0x19   :  { %1479 = vmatpush3.bf16.msra.mxu0 %v1591_v32  ;;  %v1629_v5 = vld [vmem:[%s2099_s1 + $0x210] sm:$0xff]   ;;  %v1633_v9 = vld [vmem:[%s2099_s1 + $0x208] sm:$0xff]   ;;  %v1634_v10 = vld [vmem:[%s2099_s1 + $0x1e0] sm:$0xff]  }
  0x1a   :  { %1480 = vmatprep.subr.bf16.mxu0 %v1593_v34  ;;  %v1635_v11 = vld [vmem:[%s2099_s1 + $0x240] sm:$0xff]   ;;  %v1638_v14 = vld [vmem:[%s2099_s1 + $0x1d8] sm:$0xff]   ;;  %v1645_v21 = vld [vmem:[%s2099_s1 + $0x190] sm:$0xff]  }
  0x1b   :  { %1437 = vmatpush3.bf16.msra.mxu1 %v1575_v20  ;;  %v1636_v12 = vld [vmem:[%s2099_s1 + $0x1a0] sm:$0xff]   ;;  %v1642_v18 = vld [vmem:[%s2099_s1 + $0x198] sm:$0xff]   ;;  %v1644_v20 = vld [vmem:[%s2099_s1 + $0x1d0] sm:$0xff]  }
  0x1c   :  { %1438 = vmatprep.subr.bf16.mxu1 %v1577_v22  ;;  %v1637_v13 = vld [vmem:[%s2099_s1 + $0x200] sm:$0xff]   ;;  %v1643_v19 = vld [vmem:[%s2099_s1 + $0x338] sm:$0xff]   ;;  %v1646_v22 = vld [vmem:[%s2099_s1 + $0x330] sm:$0xff]  }
  0x1d   :  { %1481 = vmatpush3.bf16.msra.mxu0 %v1595_v36  ;;  %v1639_v15 = vld [vmem:[%s2100_s0 + $0x20] ss:$56 sps:$4 sm:$0xff]   ;;  %v1641_v16 = vld [vmem:[%s2100_s0 + $0x24] ss:$56 sps:$4 sm:$0xff]   ;;  %v1647_v23 = vld [vmem:[%s2099_s1 + $0x1c8] sm:$0xff]  }
  0x1e   :  { %1482 = vmatprep.subr.bf16.mxu0 %v1597_v38  ;;  %v1648_v25 = vld [vmem:[%s2099_s1 + $0x188] sm:$0xff]   ;;  %v1655_v28 = vld [vmem:[%s2100_s0 + $0x1c] ss:$56 sps:$4 sm:$0xff]  }
  0x1f   :  { %1439 = vmatpush3.bf16.msra.mxu1 %v1579_v24  ;;  %v1649_v24 = vld [vmem:[%s2099_s1 + $0x328] sm:$0xff]   ;;  %v1656_v30 = vld [vmem:[%s2099_s1 + $0x2f8] sm:$0xff]   ;;  %v1659_v34 = vld [vmem:[%s2099_s1 + $0x2f0] sm:$0xff]  }
  0x20   :  { %1446 = vmatprep.subr.bf16.mxu1 %v1584_v27  ;;  %v1652_v27 = vld [vmem:[%s2099_s1 + $0x320] sm:$0xff]   ;;  %v1658_v32 = vld [vmem:[%s2099_s1 + $0x318] sm:$0xff]   ;;  %v1660_v36 = vld [vmem:[%s2099_s1 + $0x2b0] sm:$0xff]  }
  0x21   :  { %1483 = vmatpush3.bf16.msra.mxu0 %v1599_v41  ;;  %v1664_v38 = vld [vmem:[%s2099_s1 + $0x308] sm:$0xff]   ;;  %v1667_v41 = vld [vmem:[%s2099_s1 + $0x300] sm:$0xff]   ;;  %v1670_v44 = vld [vmem:[%s2099_s1 + $0x358] sm:$0xff]  }
  0x22   :  { %1002 = vmatmul.mubr.bf16.vlgmr.msra.gmra.mxu1 %v1581_v26  ;;  %1512 = vmatprep.subr.bf16.mxu0 %v1604_v45  ;;  %v1650_v26 = vld [vmem:[%s2099_s1 + $0x1c0] sm:$0xff]   ;;  %v1669_v45 = vld [vmem:[%s2099_s1 + $0x298] sm:$0xff]  }
  0x23   :  { %1447 = vmatpush3.bf16.msra.mxu1 %v1586_v29  ;;  %1042 = vmatprep.mubr.bf16.mxu1 %v1621_v60  ;;  %v1651_v29 = vld [vmem:[%s2099_s1 + $0x180] sm:$0xff]  }
  0x24   :  { %1448 = vmatprep.subr.bf16.mxu1 %v1588_v31  ;;  %1084 = vmatmul.mubr.bf16.vlgmr.msra.gmra.mxu0 %v1601_v43  ;;  %v1653_v31 = vld [vmem:[%s2100_s0 + $0x18] ss:$56 sps:$4 sm:$0xff]  }
  0x25   :  { %1513 = vmatpush3.bf16.msra.mxu0 %v1606_v47  ;;  %1165 = vmatprep.mubr.bf16.mxu0 %v1641_v16  ;;  %v1668_v43 = vld [vmem:[%s2099_s1 + $0x2d8] sm:$0xff]   ;;  %v1672_v47 = vld [vmem:[%s2099_s1 + $0x290] sm:$0xff]  }
  0x26   :  { %1514 = vmatprep.subr.bf16.mxu0 %v1608_v49  ;;  %v1674_v49 = vld [vmem:[%s2099_s1 + $0x2c8] sm:$0xff]  }
  0x27   :  { %1449 = vmatpush3.bf16.msra.mxu1 %v1590_v33  ;;  %v1657_v33 = vld [vmem:[%s2099_s1 + $0x2b8] sm:$0xff]  }
  0x28   :  { %1450 = vmatprep.subr.bf16.mxu1 %v1592_v35  ;;  %v1661_v35 = vld [vmem:[%s2099_s1 + $0x310] sm:$0xff]  }
  0x29   :  { %1515 = vmatpush3.bf16.msra.mxu0 %v1610_v51  ;;  %v1683_v51 = vld [vmem:[%s2100_s0 + $0x34] ss:$56 sps:$4 sm:$0xff]  }
  0x2a   :  { %1516 = vmatprep.subr.bf16.mxu0 %v1612_v53  ;;  %v1675_v53 = vld [vmem:[%s2099_s1 + $0x288] sm:$0xff]  }
  0x2b   :  { %1451 = vmatpush3.bf16.msra.mxu1 %v1594_v37  ;;  %v1662_v37 = vld [vmem:[%s2099_s1 + $0x2e8] sm:$0xff]  }
  0x2c   :  { %1452 = vmatprep.subr.bf16.mxu1 %v1596_v39  ;;  %v1663_v39 = vld [vmem:[%s2099_s1 + $0x2a8] sm:$0xff]  }
  0x2d   :  { %1517 = vmatpush3.bf16.msra.mxu0 %v1614_v55  ;;  %v1679_v55 = vld [vmem:[%s2099_s1 + $0x340] sm:$0xff]  }
  0x2e   :  { %1518 = vmatprep.subr.bf16.mxu0 %v1616_v57  ;;  %v1685_v57 = vld [vmem:[%s2100_s0 + $0x30] ss:$56 sps:$4 sm:$0xff]  }
  0x2f   :  { %1453 = vmatpush3.bf16.msra.mxu1 %v1598_v40  ;;  %v1665_v40 = vld [vmem:[%s2099_s1 + $0x2e0] sm:$0xff]  }
  0x30   :  { %1454 = vmatprep.subr.bf16.mxu1 %v1600_v42  ;;  %v1666_v42 = vld [vmem:[%s2099_s1 + $0x2a0] sm:$0xff]  }
  0x31   :  { %1519 = vmatpush3.bf16.msra.mxu0 %v1618_v58  ;;  %v1680_v58 = vld [vmem:[%s2100_s0 + $0x28] ss:$56 sps:$4 sm:$0xff]  }
  0x32   :  { %1520 = vmatprep.subr.bf16.mxu0 %v1623_v63 }
  0x33   :  { %1455 = vmatpush3.bf16.msra.mxu1 %v1605_v46  ;;  %v1671_v46 = vld [vmem:[%s2099_s1 + $0x2d0] sm:$0xff]  }
  0x34   :  { %1456 = vmatprep.subr.bf16.mxu1 %v1607_v48  ;;  %v1673_v48 = vld [vmem:[%s2099_s1 + $0x350] sm:$0xff]  }
  0x35   :  { %1521 = vmatpush3.bf16.msra.mxu0 %v1625_v1 }
  0x36   :  { %1522 = vmatprep.subr.bf16.mxu0 %v1627_v3 }
  0x37   :  { %1457 = vmatpush3.bf16.msra.mxu1 %v1609_v50  ;;  %v1682_v50 = vld [vmem:[%s2100_s0 + $0x2c] ss:$56 sps:$4 sm:$0xff]  }
  0x38   :  { %1458 = vmatprep.subr.bf16.mxu1 %v1611_v52  ;;  %v1676_v52 = vld [vmem:[%s2099_s1 + $0x348] sm:$0xff]  }
  0x39   :  { %1523 = vmatpush3.bf16.msra.mxu0 %v1629_v5 }
  0x3a   :  { %1524 = vmatprep.subr.bf16.mxu0 %v1631_v7 }
  0x3b   :  { %1459 = vmatpush3.bf16.msra.mxu1 %v1613_v54  ;;  %v1677_v54 = vld [vmem:[%s2099_s1 + $0x2c0] sm:$0xff]  }
  0x3c   :  { %1460 = vmatprep.subr.bf16.mxu1 %v1615_v56  ;;  %v1678_v56 = vld [vmem:[%s2099_s1 + $0x280] sm:$0xff]  }
  0x3d   :  { %1525 = vmatpush3.bf16.msra.mxu0 %v1633_v9 }
  0x3e   :  { %1526 = vmatprep.subr.bf16.mxu0 %v1635_v11 }
  0x3f   :  { %1461 = vmatpush3.bf16.msra.mxu1 %v1617_v59 }
  0x40   :  { %1490 = vmatprep.subr.bf16.mxu1 %v1622_v62 }
  0x41   :  { %1527 = vmatpush3.bf16.msra.mxu0 %v1637_v13 }
  0x42   :  { %1043 = vmatmul.mubr.bf16.vlgmr.msra.gmra.mxu1 %v1619_v61  ;;  %1215 = vmatprep.subr.bf16.mxu0 %v1686_v17 }
  0x43   :  { %1491 = vmatpush3.bf16.msra.mxu1 %v1624_v0  ;;  %1124 = vmatprep.mubr.bf16.mxu1 %v1655_v28 }
  0x44   :  { %1492 = vmatprep.subr.bf16.mxu1 %v1626_v2  ;;  %1166 = vmatmul.mubr.bf16.vlgmr.msra.gmra.mxu0 %v1639_v15 }
  0x45   :  { %1216 = vmatpush1.bf16.msra.mxu0 %v1643_v19  ;;  %1412 = vmatprep.mubr.msk.bf16.mxu0 %vm965_vm0, %v1683_v51 }
  0x46   :  { %1217 = vmatprep.subr.bf16.mxu0 %v1686_v17 }
  0x47   :  { %1493 = vmatpush3.bf16.msra.mxu1 %v1628_v4 }
  0x48   :  { %1494 = vmatprep.subr.bf16.mxu1 %v1630_v6 }
  0x49   :  { %1218 = vmatpush1.bf16.msra.mxu0 %v1646_v22 }
  0x4a   :  { %1219 = vmatprep.subr.bf16.mxu0 %v1686_v17 }
  0x4b   :  { %1495 = vmatpush3.bf16.msra.mxu1 %v1632_v8 }
  0x4c   :  { %1496 = vmatprep.subr.bf16.mxu1 %v1634_v10 }
  0x4d   :  { %1220 = vmatpush1.bf16.msra.mxu0 %v1649_v24 }
  0x4e   :  { %1221 = vmatprep.subr.bf16.mxu0 %v1686_v17 }
  0x4f   :  { %1497 = vmatpush3.bf16.msra.mxu1 %v1636_v12 }
  0x50   :  { %1498 = vmatprep.subr.bf16.mxu1 %v1638_v14 }
  0x51   :  { %1222 = vmatpush1.bf16.msra.mxu0 %v1652_v27 }
  0x52   :  { %1223 = vmatprep.subr.bf16.mxu0 %v1686_v17 }
  0x53   :  { %1499 = vmatpush3.bf16.msra.mxu1 %v1642_v18 }
  0x54   :  { %1500 = vmatprep.subr.bf16.mxu1 %v1644_v20 }
  0x55   :  { %1224 = vmatpush1.bf16.msra.mxu0 %v1658_v32 }
  0x56   :  { %1225 = vmatprep.subr.bf16.mxu0 %v1686_v17 }
  0x57   :  { %1501 = vmatpush3.bf16.msra.mxu1 %v1645_v21 }
  0x58   :  { %1502 = vmatprep.subr.bf16.mxu1 %v1647_v23 }
  0x59   :  { %1226 = vmatpush1.bf16.msra.mxu0 %v1661_v35 }
  0x5a   :  { %1227 = vmatprep.subr.bf16.mxu0 %v1686_v17 }
  0x5b   :  { %1503 = vmatpush3.bf16.msra.mxu1 %v1648_v25 }
  0x5c   :  { %1504 = vmatprep.subr.bf16.mxu1 %v1650_v26 }
  0x5d   :  { %1228 = vmatpush1.bf16.msra.mxu0 %v1664_v38 }
  0x5e   :  { %1229 = vmatprep.subr.bf16.mxu0 %v1686_v17 }
  0x5f   :  { %1505 = vmatpush3.bf16.msra.mxu1 %v1651_v29 }
  0x60   :  { %1534 = vmatprep.subr.bf16.mxu1 %v1656_v30 }
  0x61   :  { %1230 = vmatpush1.bf16.msra.mxu0 %v1667_v41  ;;  %v1413_v41 = vld [vmem:[%s2101_s2] ss:$0 sm:$0xff] }
  0x62   :  { %1125 = vmatmul.mubr.bf16.vlgmr.msra.gmra.mxu1 %v1653_v31  ;;  %1239 = vmatprep.subr.bf16.mxu0 %v1686_v17 }
  0x63   :  { %1535 = vmatpush3.bf16.msra.mxu1 %v1657_v33  ;;  %1206 = vmatprep.mubr.bf16.mxu1 %v1682_v50 }
  0x64   :  { %1536 = vmatprep.subr.bf16.mxu1 %v1659_v34 }
  0x65   :  { %1240 = vmatpush2.bf16.msra.mxu0 %v1670_v44 }
  0x66   :  { %1241 = vmatprep.subr.bf16.mxu0 %v1686_v17 }
  0x67   :  { %1537 = vmatpush3.bf16.msra.mxu1 %v1660_v36 }
  0x68   :  { %1538 = vmatprep.subr.bf16.mxu1 %v1662_v37 }
  0x69   :  { %1242 = vmatpush2.bf16.msra.mxu0 %v1673_v48  ;;  %v1414_v48 = vld [vmem:[%s2102_s3] ss:$0 sm:$0xff] }
  0x6a   :  { %1243 = vmatprep.subr.bf16.mxu0 %v1686_v17 }
  0x6b   :  { %1539 = vmatpush3.bf16.msra.mxu1 %v1663_v39 }
  0x6c   :  { %1540 = vmatprep.subr.bf16.mxu1 %v1665_v40 }
  0x6d   :  { %1244 = vmatpush2.bf16.msra.mxu0 %v1676_v52 }
  0x6e   :  { %1245 = vmatprep.subr.bf16.mxu0 %v1686_v17 }
  0x6f   :  { %1541 = vmatpush3.bf16.msra.mxu1 %v1666_v42 }
  0x70   :  { %1542 = vmatprep.subr.bf16.mxu1 %v1668_v43 }
  0x71   :  { %1246 = vmatpush2.bf16.msra.mxu0 %v1679_v55 }
  0x73   :  { %1543 = vmatpush3.bf16.msra.mxu1 %v1669_v45 }
  0x74   :  { %1544 = vmatprep.subr.bf16.mxu1 %v1671_v46  ;;  %1248 = vmatmul.mubr.bf16.vlgmr.msra.gmra.mxu0 %v1685_v57 }
  0x77   :  { %1545 = vmatpush3.bf16.msra.mxu1 %v1672_v47 }
  0x78   :  { %1546 = vmatprep.subr.bf16.mxu1 %v1674_v49 }
  0x7b   :  { %1547 = vmatpush3.bf16.msra.mxu1 %v1675_v53 }
  0x7c   :  { %1548 = vmatprep.subr.bf16.mxu1 %v1677_v54 }
  0x7f   :  { %1549 = vmatpush3.bf16.msra.mxu1 %v1678_v56 }
  0x82   :  { %1207 = vmatmul.mubr.bf16.vlgmr.msra.gmra.mxu1 %v1680_v58 }
  0xe2   :  { %v1440_v59 = vpop.f32.mrf.mxu1 }
  0xe4   :  { %v1441_v60 = vpop.f32.mrf.mxu1  ;;  %v1484_v0 = vpop.f32.mrf.mxu0 }
  0xe5   :  { %v1442_v12 = vadd.f32 %v1441_v60, %v1440_v59 }
  0xe6   :  { %v1443_v61 = vpop.f32.mrf.mxu1  ;;  %v1485_v2 = vpop.f32.mrf.mxu0 }
  0xe7   :  { %v1486_v18 = vadd.f32 %v1485_v2, %v1484_v0 }
  0xe8   :  { %v1444_v62 = vpop.f32.mrf.mxu1  ;;  %v1487_v4 = vpop.f32.mrf.mxu0 }
  0xe9   :  { %v1445_v17 = vadd.f32 %v1444_v62, %v1443_v61 }
  0xea   :  { %v1488_v6 = vpop.f32.mrf.mxu0 }
  0xeb   :  { %v1489_v24 = vadd.f32 %v1488_v6, %v1487_v4 }
 0x102   :  { %v1462_v63 = vpop.f32.mrf.mxu1 }
 0x104   :  { %v1463_v1 = vpop.f32.mrf.mxu1  ;;  %v1528_v8 = vpop.f32.mrf.mxu0 }
 0x105   :  { %v1464_v10 = vadd.f32 %v1463_v1, %v1462_v63 }
 0x106   :  { %v1465_v3 = vpop.f32.mrf.mxu1  ;;  %v1529_v11 = vpop.f32.mrf.mxu0 }
 0x107   :  { %v1045_v14 = vadd.f32 %v1464_v10, %v1442_v12  ;;  %v1530_v29 = vadd.f32 %v1529_v11, %v1528_v8 }
 0x108   :  { %v1466_v5 = vpop.f32.mrf.mxu1  ;;  %v1531_v16 = vpop.f32.mrf.mxu0 }
 0x109   :  { %v1467_v15 = vadd.f32 %v1466_v5, %v1465_v3  ;;  %v1086_v23 = vadd.f32 %v1486_v18, %v1045_v14 }
 0x10a   :  { %v1532_v22 = vpop.f32.mrf.mxu0 }
 0x10b   :  { %v1048_v21 = vadd.f32 %v1467_v15, %v1445_v17  ;;  %v1533_v38 = vadd.f32 %v1532_v22, %v1531_v16 }
 0x10d   :  { %v1089_v30 = vadd.f32 %v1489_v24, %v1048_v21 }
 0x122   :  { %v1506_v7 = vpop.f32.mrf.mxu1 }
 0x124   :  { %v1507_v9 = vpop.f32.mrf.mxu1 }
 0x125   :  { %v1508_v19 = vadd.f32 %v1507_v9, %v1506_v7 }
 0x126   :  { %v1509_v13 = vpop.f32.mrf.mxu1 }
 0x127   :  { %v1127_v25 = vadd.f32 %v1508_v19, %v1086_v23 }
 0x128   :  { %v1510_v20 = vpop.f32.mrf.mxu1 }
 0x129   :  { %v1511_v26 = vadd.f32 %v1510_v20, %v1509_v13  ;;  %v1168_v34 = vadd.f32 %v1530_v29, %v1127_v25 }
 0x12b   :  { %v1130_v33 = vadd.f32 %v1511_v26, %v1089_v30 }
 0x12d   :  { %v1171_v44 = vadd.f32 %v1533_v38, %v1130_v33 }
 0x134   :  { %v1249_v27 = vpop.f32.mrf.mxu0 }
 0x136   :  { %v1251_v31 = vpop.f32.mrf.mxu0 }
 0x138   :  { %v1252_v36 = vpop.f32.mrf.mxu0 }
 0x13a   :  { %v1254_v40 = vpop.f32.mrf.mxu0 }
 0x142   :  { %v1550_v28 = vpop.f32.mrf.mxu1 }
 0x144   :  { %v1551_v32 = vpop.f32.mrf.mxu1 }
 0x145   :  { %v1552_v35 = vadd.f32 %v1551_v32, %v1550_v28 }
 0x146   :  { %v1553_v37 = vpop.f32.mrf.mxu1 }
 0x147   :  { %v1209_v39 = vadd.f32 %v1552_v35, %v1168_v34 }
 0x148   :  { %v1554_v42 = vpop.f32.mrf.mxu1 }
 0x149   :  { %v1250_v43 = vadd.f32 %v1249_v27, %v1209_v39  ;;  %v1555_v45 = vadd.f32 %v1554_v42, %v1553_v37 }
 0x14b   :  { %v1263_v46 = vmul.f32 %v1413_v41, %v1250_v43  ;;  %v1212_v47 = vadd.f32 %v1555_v45, %v1171_v44 }
 0x14d   :  { %v1253_v49 = vadd.f32 %v1252_v36, %v1212_v47  ;;  %v1272_v50 = vadd.f32 %v1414_v48, %v1263_v46 }
 0x14f   :  { %v1264_v51 = vmul.f32 %v1413_v41, %v1253_v49  ;;  %v1274_v53 = vmax.f32 %v1272_v50, 0.0 }
 0x151   :  { %v1273_v52 = vadd.f32 %v1414_v48, %v1264_v51 }
 0x153   :  { %v1275_v54 = vmax.f32 %v1273_v52, 0.0 }
 0x155   :  { %v1422_v55 = vpack.c.bf16 %v1275_v54, %v1274_v53 }
 0x157   :  { %1423 = vst [vmem:[%s2103_s4] sm:$0xff] %v1422_v55  }

// kernel: clsnet_forward.23
= control target key start
LH: loop header
LB: loop body
LE: loop exit
PB: predicated region body
PF: predicated region fallthrough
CT: control target
= control target key end

     0   :  { %v175_v0 = vmov 0.0   ;;  %vm176_vm0 = vmmov 0   ;;  %vm57_vm1 = vcmask 523264   ;;  %s226_s1 = inlined_call_operand.vmem [shape: bf16[64,128], index: 1, kind: input, shape index: {}]   ;;  %s227_s0 = inlined_call_operand.vmem [shape: bf16[16,64], index: 0, kind: input, shape index: {}]   ;;  %s228_s2 = inlined_call_operand.vmem [shape: f32[1,128], index: 2, kind: input, shape index: {}]   ;;  %s229_s3 = inlined_call_operand.vmem [shape: f32[1,128], index: 3, kind: input, shape index: {}]   ;;  %s230_s4 = inlined_call_operand.vmem [shape: bf16[16,128], index: 4, kind: output, shape index: {}]  }
   0x1   :  { %156 = vmatprep.subr.bf16.mxu0 %v175_v0  ;;  %v170_v1 = vld [vmem:[%s226_s1 + $0x18] sm:$0xff]   ;;  %164 = vmatprep.mubr.msk.bf16.mxu0 %vm176_vm0, %v175_v0  ;;  %v171_v2 = vld [vmem:[%s226_s1 + $0x10] sm:$0xff]   ;;  %v172_v3 = vld [vmem:[%s226_s1 + $0x8] sm:$0xff]  }
   0x2   :  { %157 = vmatpush3.bf16.msra.mxu0 %v170_v1  ;;  %v173_v4 = vld [vmem:[%s226_s1] sm:$0xff]  }
   0x3   :  { %158 = vmatprep.subr.bf16.mxu0 %v175_v0  ;;  %v174_v5 = vld [vmem:[%s227_s0] sm:$0xff]  }
   0x4   :  { %v140_v7 = vld [vmem:[%s228_s2] ss:$0 sm:$0xff] }
   0x5   :  { %v141_v10 = vld [vmem:[%s229_s3] ss:$0 sm:$0xff] }
   0x6   :  { %159 = vmatpush3.bf16.msra.mxu0 %v171_v2 }
   0x7   :  { %160 = vmatprep.subr.bf16.mxu0 %v175_v0 }
   0xa   :  { %161 = vmatpush3.bf16.msra.mxu0 %v172_v3 }
   0xb   :  { %162 = vmatprep.subr.bf16.mxu0 %v175_v0 }
   0xe   :  { %163 = vmatpush3.bf16.msra.mxu0 %v173_v4 }
  0x11   :  { %165 = vmatmul.mubr.msk.bf16.vlgmr.msra.gmra.mxu0 %vm57_vm1, %v174_v5 }
  0xd1   :  { %v95_v6 = vpop.f32.mrf.mxu0 }
  0xd2   :  { %v109_v9 = vmul.f32 %v140_v7, %v95_v6 }
  0xd3   :  { %v166_v8 = vpop.f32.mrf.mxu0 }
  0xd4   :  { %v118_v14 = vadd.f32 %v141_v10, %v109_v9 }
  0xd5   :  { %v98_v11 = vpop.f32.mrf.mxu0 }
  0xd6   :  { %v110_v12 = vmul.f32 %v140_v7, %v98_v11 }
  0xd7   :  { %v167_v13 = vpop.f32.mrf.mxu0 }
  0xd8   :  { %v119_v15 = vadd.f32 %v141_v10, %v110_v12 }
  0xda   :  { %v149_v16 = vpack.c.bf16 %v119_v15, %v118_v14 }
  0xdc   :  { %150 = vst [vmem:[%s230_s4] sm:$0xff] %v149_v16  }

// kernel: clsnet_forward.25
= control target key start
LH: loop header
LB: loop body
LE: loop exit
PB: predicated region body
PF: predicated region fallthrough
CT: control target
= control target key end

     0   :  { %vm3359_vm0 = vmmov 0   ;;  %s4131_s1 = inlined_call_operand.vmem [shape: bf16[3456,128], index: 1, kind: input, shape index: {}]   ;;  %s4132_s0 = inlined_call_operand.vmem [shape: bf16[16,3456], index: 0, kind: input, shape index: {}]   ;;  %s4133_s2 = inlined_call_operand.vmem [shape: f32[1,128], index: 2, kind: input, shape index: {}]   ;;  %s4134_s3 = inlined_call_operand.vmem [shape: f32[1,128], index: 3, kind: input, shape index: {}]   ;;  %s4135_s4 = inlined_call_operand.vmem [shape: bf16[16,128], index: 4, kind: input, shape index: {}]   ;;  %s4136_s5 = inlined_call_operand.vmem [shape: bf16[16,128], index: 5, kind: output, shape index: {}]  }
   0x1   :  { %v3102_v0 = vld [vmem:[%s4131_s1 + $0x78] sm:$0xff]   ;;  %v3106_v4 = vld [vmem:[%s4131_s1 + $0x70] sm:$0xff]   ;;  %v3110_v8 = vld [vmem:[%s4131_s1 + $0x68] sm:$0xff]  }
   0x2   :  { %v3103_v1 = vld [vmem:[%s4131_s1 + $0xf8] sm:$0xff]   ;;  %2785 = vmatprep.subr.bf16.mxu0 %v3102_v0  ;;  %v3107_v5 = vld [vmem:[%s4131_s1 + $0xf0] sm:$0xff]   ;;  %v3111_v9 = vld [vmem:[%s4131_s1 + $0xe8] sm:$0xff]  }
   0x3   :  { %v3104_v2 = vld [vmem:[%s4131_s1 + $0x38] sm:$0xff]   ;;  %2807 = vmatprep.subr.bf16.mxu1 %v3103_v1  ;;  %v3108_v6 = vld [vmem:[%s4131_s1 + $0x30] sm:$0xff]   ;;  %v3112_v10 = vld [vmem:[%s4131_s1 + $0x28] sm:$0xff]  }
   0x4   :  { %v3105_v3 = vld [vmem:[%s4131_s1 + $0xb8] sm:$0xff]   ;;  %2786 = vmatpush3.bf16.msra.mxu0 %v3104_v2  ;;  %v3109_v7 = vld [vmem:[%s4131_s1 + $0xb0] sm:$0xff]   ;;  %v3113_v11 = vld [vmem:[%s4131_s1 + $0xa8] sm:$0xff]  }
   0x5   :  { %2808 = vmatpush3.bf16.msra.mxu1 %v3105_v3  ;;  %2787 = vmatprep.subr.bf16.mxu0 %v3106_v4  ;;  %v3114_v12 = vld [vmem:[%s4131_s1 + $0x60] sm:$0xff]   ;;  %v3118_v16 = vld [vmem:[%s4131_s1 + $0x58] sm:$0xff]   ;;  %v3122_v20 = vld [vmem:[%s4131_s1 + $0x50] sm:$0xff]  }
   0x6   :  { %2809 = vmatprep.subr.bf16.mxu1 %v3107_v5  ;;  %v3115_v13 = vld [vmem:[%s4131_s1 + $0xe0] sm:$0xff]   ;;  %v3119_v17 = vld [vmem:[%s4131_s1 + $0xd8] sm:$0xff]   ;;  %v3123_v21 = vld [vmem:[%s4131_s1 + $0xd0] sm:$0xff]  }
   0x7   :  { %v3116_v14 = vld [vmem:[%s4131_s1 + $0x20] sm:$0xff]   ;;  %v3120_v18 = vld [vmem:[%s4131_s1 + $0x18] sm:$0xff]   ;;  %v3124_v22 = vld [vmem:[%s4131_s1 + $0x10] sm:$0xff]  }
   0x8   :  { %2788 = vmatpush3.bf16.msra.mxu0 %v3108_v6  ;;  %v3117_v15 = vld [vmem:[%s4131_s1 + $0xa0] sm:$0xff]   ;;  %v3121_v19 = vld [vmem:[%s4131_s1 + $0x98] sm:$0xff]   ;;  %v3125_v23 = vld [vmem:[%s4131_s1 + $0x90] sm:$0xff]  }
   0x9   :  { %2810 = vmatpush3.bf16.msra.mxu1 %v3109_v7  ;;  %2789 = vmatprep.subr.bf16.mxu0 %v3110_v8  ;;  %v3126_v24 = vld [vmem:[%s4131_s1 + $0x48] sm:$0xff]   ;;  %v3130_v28 = vld [vmem:[%s4131_s1 + $0x40] sm:$0xff]   ;;  %v3140_v36 = vld [vmem:[%s4131_s1 + $0x178] sm:$0xff]  }
   0xa   :  { %2811 = vmatprep.subr.bf16.mxu1 %v3111_v9  ;;  %v3127_v25 = vld [vmem:[%s4131_s1 + $0xc8] sm:$0xff]   ;;  %v3131_v29 = vld [vmem:[%s4131_s1 + $0xc0] sm:$0xff]   ;;  %v3141_v37 = vld [vmem:[%s4131_s1 + $0x1f8] sm:$0xff]  }
   0xb   :  { %v3128_v26 = vld [vmem:[%s4131_s1 + $0x8] sm:$0xff]   ;;  %v3132_v30 = vld [vmem:[%s4131_s1] sm:$0xff]   ;;  %v3142_v38 = vld [vmem:[%s4131_s1 + $0x138] sm:$0xff]  }
   0xc   :  { %2790 = vmatpush3.bf16.msra.mxu0 %v3112_v10  ;;  %v3129_v27 = vld [vmem:[%s4131_s1 + $0x88] sm:$0xff]   ;;  %v3133_v31 = vld [vmem:[%s4131_s1 + $0x80] sm:$0xff]   ;;  %v3143_v39 = vld [vmem:[%s4131_s1 + $0x1b8] sm:$0xff]  }
   0xd   :  { %2812 = vmatpush3.bf16.msra.mxu1 %v3113_v11  ;;  %2791 = vmatprep.subr.bf16.mxu0 %v3114_v12  ;;  %v3134_v32 = vld [vmem:[%s4132_s0] ss:$108 sps:$4 sm:$0xff]   ;;  %v3136_v33 = vld [vmem:[%s4132_s0 + $0x4] ss:$108 sps:$4 sm:$0xff]   ;;  %v3137_v34 = vld [vmem:[%s4132_s0 + $0x8] ss:$108 sps:$4 sm:$0xff]  }
   0xe   :  { %2813 = vmatprep.subr.bf16.mxu1 %v3115_v13  ;;  %v3139_v35 = vld [vmem:[%s4132_s0 + $0xc] ss:$108 sps:$4 sm:$0xff]   ;;  %1945 = vmatprep.mubr.bf16.mxu0 %v3136_v33  ;;  %v3144_v40 = vld [vmem:[%s4131_s1 + $0x170] sm:$0xff]   ;;  %v3152_v48 = vld [vmem:[%s4131_s1 + $0x160] sm:$0xff]  }
   0xf   :  { %1986 = vmatprep.mubr.bf16.mxu1 %v3139_v35  ;;  %v3145_v41 = vld [vmem:[%s4131_s1 + $0x1f0] sm:$0xff]   ;;  %v3148_v44 = vld [vmem:[%s4131_s1 + $0x168] sm:$0xff]   ;;  %v3153_v49 = vld [vmem:[%s4131_s1 + $0x1e0] sm:$0xff]  }
  0x10   :  { %2792 = vmatpush3.bf16.msra.mxu0 %v3116_v14  ;;  %v3146_v42 = vld [vmem:[%s4131_s1 + $0x130] sm:$0xff]   ;;  %v3149_v45 = vld [vmem:[%s4131_s1 + $0x1e8] sm:$0xff]   ;;  %v3154_v50 = vld [vmem:[%s4131_s1 + $0x120] sm:$0xff]  }
  0x11   :  { %2814 = vmatpush3.bf16.msra.mxu1 %v3117_v15  ;;  %2793 = vmatprep.subr.bf16.mxu0 %v3118_v16  ;;  %v3147_v43 = vld [vmem:[%s4131_s1 + $0x1b0] sm:$0xff]   ;;  %v3150_v46 = vld [vmem:[%s4131_s1 + $0x128] sm:$0xff]   ;;  %v3155_v51 = vld [vmem:[%s4131_s1 + $0x1a0] sm:$0xff]  }
  0x12   :  { %2815 = vmatprep.subr.bf16.mxu1 %v3119_v17  ;;  %v3151_v47 = vld [vmem:[%s4131_s1 + $0x1a8] sm:$0xff]   ;;  %v3156_v52 = vld [vmem:[%s4131_s1 + $0x158] sm:$0xff]   ;;  %v3160_v56 = vld [vmem:[%s4131_s1 + $0x150] sm:$0xff]  }
  0x13   :  { %v3157_v53 = vld [vmem:[%s4131_s1 + $0x1d8] sm:$0xff]   ;;  %v3161_v57 = vld [vmem:[%s4131_s1 + $0x1d0] sm:$0xff]   ;;  %v3164_v60 = vld [vmem:[%s4131_s1 + $0x148] sm:$0xff]  }
  0x14   :  { %2794 = vmatpush3.bf16.msra.mxu0 %v3120_v18  ;;  %v3158_v54 = vld [vmem:[%s4131_s1 + $0x118] sm:$0xff]   ;;  %v3162_v58 = vld [vmem:[%s4131_s1 + $0x110] sm:$0xff]   ;;  %v3165_v61 = vld [vmem:[%s4131_s1 + $0x1c8] sm:$0xff]  }
  0x15   :  { %2816 = vmatpush3.bf16.msra.mxu1 %v3121_v19  ;;  %2795 = vmatprep.subr.bf16.mxu0 %v3122_v20  ;;  %v3159_v55 = vld [vmem:[%s4131_s1 + $0x198] sm:$0xff]   ;;  %v3163_v59 = vld [vmem:[%s4131_s1 + $0x190] sm:$0xff]   ;;  %v3166_v62 = vld [vmem:[%s4131_s1 + $0x108] sm:$0xff]  }
  0x16   :  { %2817 = vmatprep.subr.bf16.mxu1 %v3123_v21  ;;  %v3167_v63 = vld [vmem:[%s4131_s1 + $0x188] sm:$0xff]   ;;  %v3168_v0 = vld [vmem:[%s4131_s1 + $0x140] sm:$0xff]   ;;  %v3172_v4 = vld [vmem:[%s4132_s0 + $0x10] ss:$108 sps:$4 sm:$0xff]  }
  0x17   :  { %v3169_v1 = vld [vmem:[%s4131_s1 + $0x1c0] sm:$0xff]   ;;  %v3177_v7 = vld [vmem:[%s4132_s0 + $0x1c] ss:$108 sps:$4 sm:$0xff]   ;;  %v3182_v12 = vld [vmem:[%s4131_s1 + $0x270] sm:$0xff]  }
  0x18   :  { %2796 = vmatpush3.bf16.msra.mxu0 %v3124_v22  ;;  %v3170_v2 = vld [vmem:[%s4131_s1 + $0x100] sm:$0xff]   ;;  %v3178_v8 = vld [vmem:[%s4131_s1 + $0x278] sm:$0xff]   ;;  %v3183_v13 = vld [vmem:[%s4131_s1 + $0x2f0] sm:$0xff]  }
  0x19   :  { %2818 = vmatpush3.bf16.msra.mxu1 %v3125_v23  ;;  %2797 = vmatprep.subr.bf16.mxu0 %v3126_v24  ;;  %v3171_v3 = vld [vmem:[%s4131_s1 + $0x180] sm:$0xff]   ;;  %v3179_v9 = vld [vmem:[%s4131_s1 + $0x2f8] sm:$0xff]   ;;  %v3184_v14 = vld [vmem:[%s4131_s1 + $0x230] sm:$0xff]  }
  0x1a   :  { %2819 = vmatprep.subr.bf16.mxu1 %v3127_v25  ;;  %v3174_v5 = vld [vmem:[%s4132_s0 + $0x14] ss:$108 sps:$4 sm:$0xff]   ;;  %v3175_v6 = vld [vmem:[%s4132_s0 + $0x18] ss:$108 sps:$4 sm:$0xff]   ;;  %v3186_v16 = vld [vmem:[%s4131_s1 + $0x268] sm:$0xff]  }
  0x1b   :  { %v3180_v10 = vld [vmem:[%s4131_s1 + $0x238] sm:$0xff]   ;;  %v3185_v15 = vld [vmem:[%s4131_s1 + $0x2b0] sm:$0xff]   ;;  %v3187_v17 = vld [vmem:[%s4131_s1 + $0x2e8] sm:$0xff]  }
  0x1c   :  { %2798 = vmatpush3.bf16.msra.mxu0 %v3128_v26  ;;  %v3181_v11 = vld [vmem:[%s4131_s1 + $0x2b8] sm:$0xff]   ;;  %v3188_v18 = vld [vmem:[%s4131_s1 + $0x228] sm:$0xff]   ;;  %v3190_v20 = vld [vmem:[%s4131_s1 + $0x260] sm:$0xff]  }
  0x1d   :  { %2820 = vmatpush3.bf16.msra.mxu1 %v3129_v27  ;;  %2799 = vmatprep.subr.bf16.mxu0 %v3130_v28  ;;  %v3189_v19 = vld [vmem:[%s4131_s1 + $0x2a8] sm:$0xff]   ;;  %v3191_v21 = vld [vmem:[%s4131_s1 + $0x2e0] sm:$0xff]   ;;  %v3194_v24 = vld [vmem:[%s4131_s1 + $0x258] sm:$0xff]  }
  0x1e   :  { %2821 = vmatprep.subr.bf16.mxu1 %v3131_v29  ;;  %v3192_v22 = vld [vmem:[%s4131_s1 + $0x220] sm:$0xff]   ;;  %v3195_v25 = vld [vmem:[%s4131_s1 + $0x2d8] sm:$0xff]   ;;  %v3198_v28 = vld [vmem:[%s4131_s1 + $0x250] sm:$0xff]  }
  0x1f   :  { %v3193_v23 = vld [vmem:[%s4131_s1 + $0x2a0] sm:$0xff]   ;;  %v3196_v26 = vld [vmem:[%s4131_s1 + $0x218] sm:$0xff]   ;;  %v3199_v29 = vld [vmem:[%s4131_s1 + $0x2d0] sm:$0xff]  }
  0x20   :  { %2800 = vmatpush3.bf16.msra.mxu0 %v3132_v30  ;;  %v3197_v27 = vld [vmem:[%s4131_s1 + $0x298] sm:$0xff]   ;;  %v3200_v30 = vld [vmem:[%s4131_s1 + $0x210] sm:$0xff]   ;;  %v3203_v33 = vld [vmem:[%s4131_s1 + $0x2c8] sm:$0xff]  }
  0x21   :  { %2822 = vmatpush3.bf16.msra.mxu1 %v3133_v31  ;;  %2829 = vmatprep.subr.bf16.mxu0 %v3140_v36  ;;  %v3201_v31 = vld [vmem:[%s4131_s1 + $0x290] sm:$0xff]   ;;  %v3205_v35 = vld [vmem:[%s4131_s1 + $0x288] sm:$0xff]   ;;  %v3206_v36 = vld [vmem:[%s4131_s1 + $0x240] sm:$0xff]  }
  0x22   :  { %2851 = vmatprep.subr.bf16.mxu1 %v3141_v37  ;;  %v3207_v37 = vld [vmem:[%s4131_s1 + $0x2c0] sm:$0xff]  }
  0x23   :  { %1946 = vmatmul.mubr.bf16.vlgmr.msra.gmra.mxu0 %v3134_v32  ;;  %v3202_v32 = vld [vmem:[%s4131_s1 + $0x248] sm:$0xff]  }
  0x24   :  { %1987 = vmatmul.mubr.bf16.vlgmr.msra.gmra.mxu1 %v3137_v34  ;;  %2830 = vmatpush3.bf16.msra.mxu0 %v3142_v38  ;;  %v3204_v34 = vld [vmem:[%s4131_s1 + $0x208] sm:$0xff]   ;;  %v3208_v38 = vld [vmem:[%s4131_s1 + $0x200] sm:$0xff]  }
  0x25   :  { %2852 = vmatpush3.bf16.msra.mxu1 %v3143_v39  ;;  %2831 = vmatprep.subr.bf16.mxu0 %v3144_v40  ;;  %v3209_v39 = vld [vmem:[%s4131_s1 + $0x280] sm:$0xff]  }
  0x26   :  { %2853 = vmatprep.subr.bf16.mxu1 %v3145_v41  ;;  %2027 = vmatprep.mubr.bf16.mxu0 %v3174_v5  ;;  %v3210_v40 = vld [vmem:[%s4132_s0 + $0x20] ss:$108 sps:$4 sm:$0xff]   ;;  %v3212_v41 = vld [vmem:[%s4132_s0 + $0x24] ss:$108 sps:$4 sm:$0xff]  }
  0x27   :  { %2068 = vmatprep.mubr.bf16.mxu1 %v3177_v7  ;;  %v3241_v5 = vld [vmem:[%s4131_s1 + $0x3c8] sm:$0xff]  }
  0x28   :  { %2832 = vmatpush3.bf16.msra.mxu0 %v3146_v42  ;;  %v3213_v42 = vld [vmem:[%s4132_s0 + $0x28] ss:$108 sps:$4 sm:$0xff]  }
  0x29   :  { %2854 = vmatpush3.bf16.msra.mxu1 %v3147_v43  ;;  %2833 = vmatprep.subr.bf16.mxu0 %v3148_v44  ;;  %v3215_v43 = vld [vmem:[%s4132_s0 + $0x2c] ss:$108 sps:$4 sm:$0xff]  }
  0x2a   :  { %2855 = vmatprep.subr.bf16.mxu1 %v3149_v45  ;;  %v3216_v44 = vld [vmem:[%s4131_s1 + $0x378] sm:$0xff]   ;;  %v3243_v7 = vld [vmem:[%s4131_s1 + $0x388] sm:$0xff]  }
  0x2b   :  { %v3217_v45 = vld [vmem:[%s4131_s1 + $0x3f8] sm:$0xff]  }
  0x2c   :  { %2834 = vmatpush3.bf16.msra.mxu0 %v3150_v46  ;;  %v3218_v46 = vld [vmem:[%s4131_s1 + $0x338] sm:$0xff]  }
  0x2d   :  { %2856 = vmatpush3.bf16.msra.mxu1 %v3151_v47  ;;  %2835 = vmatprep.subr.bf16.mxu0 %v3152_v48  ;;  %v3219_v47 = vld [vmem:[%s4131_s1 + $0x3b8] sm:$0xff]   ;;  %v3220_v48 = vld [vmem:[%s4131_s1 + $0x370] sm:$0xff]  }
  0x2e   :  { %2857 = vmatprep.subr.bf16.mxu1 %v3153_v49  ;;  %v3221_v49 = vld [vmem:[%s4131_s1 + $0x3f0] sm:$0xff]  }
  0x30   :  { %2836 = vmatpush3.bf16.msra.mxu0 %v3154_v50  ;;  %v3222_v50 = vld [vmem:[%s4131_s1 + $0x330] sm:$0xff]  }
  0x31   :  { %2858 = vmatpush3.bf16.msra.mxu1 %v3155_v51  ;;  %2837 = vmatprep.subr.bf16.mxu0 %v3156_v52  ;;  %v3223_v51 = vld [vmem:[%s4131_s1 + $0x3b0] sm:$0xff]   ;;  %v3224_v52 = vld [vmem:[%s4131_s1 + $0x368] sm:$0xff]  }
  0x32   :  { %2859 = vmatprep.subr.bf16.mxu1 %v3157_v53  ;;  %v3225_v53 = vld [vmem:[%s4131_s1 + $0x3e8] sm:$0xff]  }
  0x34   :  { %2838 = vmatpush3.bf16.msra.mxu0 %v3158_v54  ;;  %v3226_v54 = vld [vmem:[%s4131_s1 + $0x328] sm:$0xff]  }
  0x35   :  { %2860 = vmatpush3.bf16.msra.mxu1 %v3159_v55  ;;  %2839 = vmatprep.subr.bf16.mxu0 %v3160_v56  ;;  %v3227_v55 = vld [vmem:[%s4131_s1 + $0x3a8] sm:$0xff]   ;;  %v3228_v56 = vld [vmem:[%s4131_s1 + $0x360] sm:$0xff]  }
  0x36   :  { %2861 = vmatprep.subr.bf16.mxu1 %v3161_v57  ;;  %v3229_v57 = vld [vmem:[%s4131_s1 + $0x3e0] sm:$0xff]  }
  0x38   :  { %2840 = vmatpush3.bf16.msra.mxu0 %v3162_v58  ;;  %v3230_v58 = vld [vmem:[%s4131_s1 + $0x320] sm:$0xff]  }
  0x39   :  { %2862 = vmatpush3.bf16.msra.mxu1 %v3163_v59  ;;  %2841 = vmatprep.subr.bf16.mxu0 %v3164_v60  ;;  %v3231_v59 = vld [vmem:[%s4131_s1 + $0x3a0] sm:$0xff]   ;;  %v3232_v60 = vld [vmem:[%s4131_s1 + $0x358] sm:$0xff]  }
  0x3a   :  { %2863 = vmatprep.subr.bf16.mxu1 %v3165_v61  ;;  %v3233_v61 = vld [vmem:[%s4131_s1 + $0x3d8] sm:$0xff]  }
  0x3c   :  { %2842 = vmatpush3.bf16.msra.mxu0 %v3166_v62  ;;  %v3234_v62 = vld [vmem:[%s4131_s1 + $0x318] sm:$0xff]  }
  0x3d   :  { %2864 = vmatpush3.bf16.msra.mxu1 %v3167_v63  ;;  %2843 = vmatprep.subr.bf16.mxu0 %v3168_v0  ;;  %v3235_v63 = vld [vmem:[%s4131_s1 + $0x398] sm:$0xff]   ;;  %v3236_v0 = vld [vmem:[%s4131_s1 + $0x350] sm:$0xff]  }
  0x3e   :  { %2865 = vmatprep.subr.bf16.mxu1 %v3169_v1  ;;  %v3237_v1 = vld [vmem:[%s4131_s1 + $0x3d0] sm:$0xff]  }
  0x40   :  { %2844 = vmatpush3.bf16.msra.mxu0 %v3170_v2  ;;  %v3238_v2 = vld [vmem:[%s4131_s1 + $0x310] sm:$0xff]  }
  0x41   :  { %2866 = vmatpush3.bf16.msra.mxu1 %v3171_v3  ;;  %2873 = vmatprep.subr.bf16.mxu0 %v3178_v8  ;;  %v3239_v3 = vld [vmem:[%s4131_s1 + $0x390] sm:$0xff]   ;;  %v3244_v8 = vld [vmem:[%s4131_s1 + $0x340] sm:$0xff]  }
  0x42   :  { %2895 = vmatprep.subr.bf16.mxu1 %v3179_v9  ;;  %v3245_v9 = vld [vmem:[%s4131_s1 + $0x3c0] sm:$0xff]  }
  0x43   :  { %2028 = vmatmul.mubr.bf16.vlgmr.msra.gmra.mxu0 %v3172_v4  ;;  %v3240_v4 = vld [vmem:[%s4131_s1 + $0x348] sm:$0xff]  }
  0x44   :  { %2069 = vmatmul.mubr.bf16.vlgmr.msra.gmra.mxu1 %v3175_v6  ;;  %2874 = vmatpush3.bf16.msra.mxu0 %v3180_v10  ;;  %v3242_v6 = vld [vmem:[%s4131_s1 + $0x308] sm:$0xff]   ;;  %v3246_v10 = vld [vmem:[%s4131_s1 + $0x300] sm:$0xff]  }
  0x45   :  { %2896 = vmatpush3.bf16.msra.mxu1 %v3181_v11  ;;  %2875 = vmatprep.subr.bf16.mxu0 %v3182_v12  ;;  %v3247_v11 = vld [vmem:[%s4131_s1 + $0x380] sm:$0xff]   ;;  %v3248_v12 = vld [vmem:[%s4132_s0 + $0x30] ss:$108 sps:$4 sm:$0xff]  }
  0x46   :  { %2897 = vmatprep.subr.bf16.mxu1 %v3183_v13  ;;  %2109 = vmatprep.mubr.bf16.mxu0 %v3212_v41  ;;  %v3250_v13 = vld [vmem:[%s4132_s0 + $0x34] ss:$108 sps:$4 sm:$0xff]   ;;  %v3279_v41 = vld [vmem:[%s4131_s1 + $0x4c8] sm:$0xff]  }
  0x47   :  { %2150 = vmatprep.mubr.bf16.mxu1 %v3215_v43  ;;  %v3281_v43 = vld [vmem:[%s4131_s1 + $0x488] sm:$0xff]  }
  0x48   :  { %2876 = vmatpush3.bf16.msra.mxu0 %v3184_v14  ;;  %v3251_v14 = vld [vmem:[%s4132_s0 + $0x38] ss:$108 sps:$4 sm:$0xff]  }
  0x49   :  { %2898 = vmatpush3.bf16.msra.mxu1 %v3185_v15  ;;  %2877 = vmatprep.subr.bf16.mxu0 %v3186_v16  ;;  %v3253_v15 = vld [vmem:[%s4132_s0 + $0x3c] ss:$108 sps:$4 sm:$0xff]  }
  0x4a   :  { %2899 = vmatprep.subr.bf16.mxu1 %v3187_v17  ;;  %v3254_v16 = vld [vmem:[%s4131_s1 + $0x478] sm:$0xff]  }
  0x4b   :  { %v3255_v17 = vld [vmem:[%s4131_s1 + $0x4f8] sm:$0xff]  }
  0x4c   :  { %2878 = vmatpush3.bf16.msra.mxu0 %v3188_v18  ;;  %v3256_v18 = vld [vmem:[%s4131_s1 + $0x438] sm:$0xff]  }
  0x4d   :  { %2900 = vmatpush3.bf16.msra.mxu1 %v3189_v19  ;;  %2879 = vmatprep.subr.bf16.mxu0 %v3190_v20  ;;  %v3257_v19 = vld [vmem:[%s4131_s1 + $0x4b8] sm:$0xff]   ;;  %v3258_v20 = vld [vmem:[%s4131_s1 + $0x470] sm:$0xff]  }
  0x4e   :  { %2901 = vmatprep.subr.bf16.mxu1 %v3191_v21  ;;  %v3259_v21 = vld [vmem:[%s4131_s1 + $0x4f0] sm:$0xff]  }
  0x50   :  { %2880 = vmatpush3.bf16.msra.mxu0 %v3192_v22  ;;  %v3260_v22 = vld [vmem:[%s4131_s1 + $0x430] sm:$0xff]  }
  0x51   :  { %2902 = vmatpush3.bf16.msra.mxu1 %v3193_v23  ;;  %2881 = vmatprep.subr.bf16.mxu0 %v3194_v24  ;;  %v3261_v23 = vld [vmem:[%s4131_s1 + $0x4b0] sm:$0xff]   ;;  %v3262_v24 = vld [vmem:[%s4131_s1 + $0x468] sm:$0xff]  }
  0x52   :  { %2903 = vmatprep.subr.bf16.mxu1 %v3195_v25  ;;  %v3263_v25 = vld [vmem:[%s4131_s1 + $0x4e8] sm:$0xff]  }
  0x54   :  { %2882 = vmatpush3.bf16.msra.mxu0 %v3196_v26  ;;  %v3264_v26 = vld [vmem:[%s4131_s1 + $0x428] sm:$0xff]  }
  0x55   :  { %2904 = vmatpush3.bf16.msra.mxu1 %v3197_v27  ;;  %2883 = vmatprep.subr.bf16.mxu0 %v3198_v28  ;;  %v3265_v27 = vld [vmem:[%s4131_s1 + $0x4a8] sm:$0xff]   ;;  %v3266_v28 = vld [vmem:[%s4131_s1 + $0x460] sm:$0xff]  }
  0x56   :  { %2905 = vmatprep.subr.bf16.mxu1 %v3199_v29  ;;  %v3267_v29 = vld [vmem:[%s4131_s1 + $0x4e0] sm:$0xff]  }
  0x58   :  { %2884 = vmatpush3.bf16.msra.mxu0 %v3200_v30  ;;  %v3268_v30 = vld [vmem:[%s4131_s1 + $0x420] sm:$0xff]  }
  0x59   :  { %2906 = vmatpush3.bf16.msra.mxu1 %v3201_v31  ;;  %2885 = vmatprep.subr.bf16.mxu0 %v3202_v32  ;;  %v3269_v31 = vld [vmem:[%s4131_s1 + $0x4a0] sm:$0xff]   ;;  %v3270_v32 = vld [vmem:[%s4131_s1 + $0x458] sm:$0xff]  }
  0x5a   :  { %2907 = vmatprep.subr.bf16.mxu1 %v3203_v33  ;;  %v3271_v33 = vld [vmem:[%s4131_s1 + $0x4d8] sm:$0xff]  }
  0x5c   :  { %2886 = vmatpush3.bf16.msra.mxu0 %v3204_v34  ;;  %v3272_v34 = vld [vmem:[%s4131_s1 + $0x418] sm:$0xff]  }
  0x5d   :  { %2908 = vmatpush3.bf16.msra.mxu1 %v3205_v35  ;;  %2887 = vmatprep.subr.bf16.mxu0 %v3206_v36  ;;  %v3273_v35 = vld [vmem:[%s4131_s1 + $0x498] sm:$0xff]   ;;  %v3274_v36 = vld [vmem:[%s4131_s1 + $0x450] sm:$0xff]  }
  0x5e   :  { %2909 = vmatprep.subr.bf16.mxu1 %v3207_v37  ;;  %v3275_v37 = vld [vmem:[%s4131_s1 + $0x4d0] sm:$0xff]  }
  0x60   :  { %2888 = vmatpush3.bf16.msra.mxu0 %v3208_v38  ;;  %v3276_v38 = vld [vmem:[%s4131_s1 + $0x410] sm:$0xff]  }
  0x61   :  { %2910 = vmatpush3.bf16.msra.mxu1 %v3209_v39  ;;  %2917 = vmatprep.subr.bf16.mxu0 %v3216_v44  ;;  %v3277_v39 = vld [vmem:[%s4131_s1 + $0x490] sm:$0xff]   ;;  %v3282_v44 = vld [vmem:[%s4131_s1 + $0x440] sm:$0xff]  }
  0x62   :  { %2939 = vmatprep.subr.bf16.mxu1 %v3217_v45  ;;  %v3283_v45 = vld [vmem:[%s4131_s1 + $0x4c0] sm:$0xff]  }
  0x63   :  { %2110 = vmatmul.mubr.bf16.vlgmr.msra.gmra.mxu0 %v3210_v40  ;;  %v3278_v40 = vld [vmem:[%s4131_s1 + $0x448] sm:$0xff]  }
  0x64   :  { %2151 = vmatmul.mubr.bf16.vlgmr.msra.gmra.mxu1 %v3213_v42  ;;  %2918 = vmatpush3.bf16.msra.mxu0 %v3218_v46  ;;  %v3280_v42 = vld [vmem:[%s4131_s1 + $0x408] sm:$0xff]   ;;  %v3284_v46 = vld [vmem:[%s4131_s1 + $0x400] sm:$0xff]  }
  0x65   :  { %2940 = vmatpush3.bf16.msra.mxu1 %v3219_v47  ;;  %2919 = vmatprep.subr.bf16.mxu0 %v3220_v48  ;;  %v3285_v47 = vld [vmem:[%s4131_s1 + $0x480] sm:$0xff]  }
  0x66   :  { %2941 = vmatprep.subr.bf16.mxu1 %v3221_v49  ;;  %2191 = vmatprep.mubr.bf16.mxu0 %v3250_v13  ;;  %v3286_v48 = vld [vmem:[%s4132_s0 + $0x40] ss:$108 sps:$4 sm:$0xff]   ;;  %v3288_v49 = vld [vmem:[%s4132_s0 + $0x44] ss:$108 sps:$4 sm:$0xff]  }
  0x67   :  { %2232 = vmatprep.mubr.bf16.mxu1 %v3253_v15  ;;  %v3317_v13 = vld [vmem:[%s4131_s1 + $0x5c8] sm:$0xff]  }
  0x68   :  { %2920 = vmatpush3.bf16.msra.mxu0 %v3222_v50  ;;  %v3289_v50 = vld [vmem:[%s4132_s0 + $0x48] ss:$108 sps:$4 sm:$0xff]  }
  0x69   :  { %2942 = vmatpush3.bf16.msra.mxu1 %v3223_v51  ;;  %2921 = vmatprep.subr.bf16.mxu0 %v3224_v52  ;;  %v3291_v51 = vld [vmem:[%s4132_s0 + $0x4c] ss:$108 sps:$4 sm:$0xff]  }
  0x6a   :  { %2943 = vmatprep.subr.bf16.mxu1 %v3225_v53  ;;  %v3292_v52 = vld [vmem:[%s4131_s1 + $0x578] sm:$0xff]   ;;  %v3319_v15 = vld [vmem:[%s4131_s1 + $0x588] sm:$0xff]  }
  0x6b   :  { %v3293_v53 = vld [vmem:[%s4131_s1 + $0x5f8] sm:$0xff]  }
  0x6c   :  { %2922 = vmatpush3.bf16.msra.mxu0 %v3226_v54  ;;  %v3294_v54 = vld [vmem:[%s4131_s1 + $0x538] sm:$0xff]  }
  0x6d   :  { %2944 = vmatpush3.bf16.msra.mxu1 %v3227_v55  ;;  %2923 = vmatprep.subr.bf16.mxu0 %v3228_v56  ;;  %v3295_v55 = vld [vmem:[%s4131_s1 + $0x5b8] sm:$0xff]   ;;  %v3296_v56 = vld [vmem:[%s4131_s1 + $0x570] sm:$0xff]  }
  0x6e   :  { %2945 = vmatprep.subr.bf16.mxu1 %v3229_v57  ;;  %v3297_v57 = vld [vmem:[%s4131_s1 + $0x5f0] sm:$0xff]  }
  0x70   :  { %2924 = vmatpush3.bf16.msra.mxu0 %v3230_v58  ;;  %v3298_v58 = vld [vmem:[%s4131_s1 + $0x530] sm:$0xff]  }
  0x71   :  { %2946 = vmatpush3.bf16.msra.mxu1 %v3231_v59  ;;  %2925 = vmatprep.subr.bf16.mxu0 %v3232_v60  ;;  %v3299_v59 = vld [vmem:[%s4131_s1 + $0x5b0] sm:$0xff]   ;;  %v3300_v60 = vld [vmem:[%s4131_s1 + $0x568] sm:$0xff]  }
  0x72   :  { %2947 = vmatprep.subr.bf16.mxu1 %v3233_v61  ;;  %v3301_v61 = vld [vmem:[%s4131_s1 + $0x5e8] sm:$0xff]  }
  0x74   :  { %2926 = vmatpush3.bf16.msra.mxu0 %v3234_v62  ;;  %v3302_v62 = vld [vmem:[%s4131_s1 + $0x528] sm:$0xff]  }
  0x75   :  { %2948 = vmatpush3.bf16.msra.mxu1 %v3235_v63  ;;  %2927 = vmatprep.subr.bf16.mxu0 %v3236_v0  ;;  %v3303_v63 = vld [vmem:[%s4131_s1 + $0x5a8] sm:$0xff]   ;;  %v3304_v0 = vld [vmem:[%s4131_s1 + $0x560] sm:$0xff]  }
  0x76   :  { %2949 = vmatprep.subr.bf16.mxu1 %v3237_v1  ;;  %v3305_v1 = vld [vmem:[%s4131_s1 + $0x5e0] sm:$0xff]  }
  0x78   :  { %2928 = vmatpush3.bf16.msra.mxu0 %v3238_v2  ;;  %v3306_v2 = vld [vmem:[%s4131_s1 + $0x520] sm:$0xff]  }
  0x79   :  { %2950 = vmatpush3.bf16.msra.mxu1 %v3239_v3  ;;  %2929 = vmatprep.subr.bf16.mxu0 %v3240_v4  ;;  %v3307_v3 = vld [vmem:[%s4131_s1 + $0x5a0] sm:$0xff]   ;;  %v3308_v4 = vld [vmem:[%s4131_s1 + $0x558] sm:$0xff]  }
  0x7a   :  { %2951 = vmatprep.subr.bf16.mxu1 %v3241_v5  ;;  %v3309_v5 = vld [vmem:[%s4131_s1 + $0x5d8] sm:$0xff]  }
  0x7c   :  { %2930 = vmatpush3.bf16.msra.mxu0 %v3242_v6  ;;  %v3310_v6 = vld [vmem:[%s4131_s1 + $0x518] sm:$0xff]  }
  0x7d   :  { %2952 = vmatpush3.bf16.msra.mxu1 %v3243_v7  ;;  %2931 = vmatprep.subr.bf16.mxu0 %v3244_v8  ;;  %v3311_v7 = vld [vmem:[%s4131_s1 + $0x598] sm:$0xff]   ;;  %v3312_v8 = vld [vmem:[%s4131_s1 + $0x550] sm:$0xff]  }
  0x7e   :  { %2953 = vmatprep.subr.bf16.mxu1 %v3245_v9  ;;  %v3313_v9 = vld [vmem:[%s4131_s1 + $0x5d0] sm:$0xff]  }
  0x80   :  { %2932 = vmatpush3.bf16.msra.mxu0 %v3246_v10  ;;  %v3314_v10 = vld [vmem:[%s4131_s1 + $0x510] sm:$0xff]  }
  0x81   :  { %2954 = vmatpush3.bf16.msra.mxu1 %v3247_v11  ;;  %2961 = vmatprep.subr.bf16.mxu0 %v3254_v16  ;;  %v3315_v11 = vld [vmem:[%s4131_s1 + $0x590] sm:$0xff]   ;;  %v3320_v16 = vld [vmem:[%s4131_s1 + $0x540] sm:$0xff]  }
  0x82   :  { %2983 = vmatprep.subr.bf16.mxu1 %v3255_v17  ;;  %v3321_v17 = vld [vmem:[%s4131_s1 + $0x5c0] sm:$0xff]  }
  0x83   :  { %2192 = vmatmul.mubr.bf16.vlgmr.msra.gmra.mxu0 %v3248_v12  ;;  %v3316_v12 = vld [vmem:[%s4131_s1 + $0x548] sm:$0xff]  }
  0x84   :  { %2233 = vmatmul.mubr.bf16.vlgmr.msra.gmra.mxu1 %v3251_v14  ;;  %2962 = vmatpush3.bf16.msra.mxu0 %v3256_v18  ;;  %v3318_v14 = vld [vmem:[%s4131_s1 + $0x508] sm:$0xff]   ;;  %v3322_v18 = vld [vmem:[%s4131_s1 + $0x500] sm:$0xff]  }
  0x85   :  { %2984 = vmatpush3.bf16.msra.mxu1 %v3257_v19  ;;  %2963 = vmatprep.subr.bf16.mxu0 %v3258_v20  ;;  %v3323_v19 = vld [vmem:[%s4131_s1 + $0x580] sm:$0xff]   ;;  %v3324_v20 = vld [vmem:[%s4132_s0 + $0x50] ss:$108 sps:$4 sm:$0xff]  }
  0x86   :  { %2985 = vmatprep.subr.bf16.mxu1 %v3259_v21  ;;  %2273 = vmatprep.mubr.bf16.mxu0 %v3288_v49  ;;  %v3326_v21 = vld [vmem:[%s4132_s0 + $0x54] ss:$108 sps:$4 sm:$0xff]  }
  0x87   :  { %2314 = vmatprep.mubr.bf16.mxu1 %v3291_v51  ;;  %v3353_v49 = vld [vmem:[%s4131_s1 + $0x680] sm:$0xff]   ;;  %v3357_v51 = vld [vmem:[%s4132_s0 + $0x68] ss:$108 sps:$4 sm:$0xff]  }
  0x88   :  { %2964 = vmatpush3.bf16.msra.mxu0 %v3260_v22  ;;  %v3327_v22 = vld [vmem:[%s4132_s0 + $0x58] ss:$108 sps:$4 sm:$0xff]  }
  0x89   :  { %2986 = vmatpush3.bf16.msra.mxu1 %v3261_v23  ;;  %2965 = vmatprep.subr.bf16.mxu0 %v3262_v24  ;;  %v3329_v23 = vld [vmem:[%s4132_s0 + $0x5c] ss:$108 sps:$4 sm:$0xff]  }
  0x8a   :  { %2987 = vmatprep.subr.bf16.mxu1 %v3263_v25  ;;  %v3330_v24 = vld [vmem:[%s4131_s1 + $0x678] sm:$0xff]   ;;  %v3358_v25 = vmov 0.0  }
  0x8c   :  { %2966 = vmatpush3.bf16.msra.mxu0 %v3264_v26  ;;  %v3331_v26 = vld [vmem:[%s4131_s1 + $0x638] sm:$0xff]  }
  0x8d   :  { %2988 = vmatpush3.bf16.msra.mxu1 %v3265_v27  ;;  %2967 = vmatprep.subr.bf16.mxu0 %v3266_v28  ;;  %v3332_v27 = vld [vmem:[%s4131_s1 + $0x6b8] sm:$0xff]   ;;  %v3333_v28 = vld [vmem:[%s4131_s1 + $0x670] sm:$0xff]  }
  0x8e   :  { %2989 = vmatprep.subr.bf16.mxu1 %v3267_v29  ;;  %v3334_v29 = vld [vmem:[%s4131_s1 + $0x630] sm:$0xff]  }
  0x90   :  { %2968 = vmatpush3.bf16.msra.mxu0 %v3268_v30  ;;  %v3335_v30 = vld [vmem:[%s4131_s1 + $0x6b0] sm:$0xff]  }
  0x91   :  { %2990 = vmatpush3.bf16.msra.mxu1 %v3269_v31  ;;  %2969 = vmatprep.subr.bf16.mxu0 %v3270_v32  ;;  %v3336_v31 = vld [vmem:[%s4131_s1 + $0x668] sm:$0xff]  }
  0x92   :  { %2991 = vmatprep.subr.bf16.mxu1 %v3271_v33  ;;  %v3337_v32 = vld [vmem:[%s4131_s1 + $0x628] sm:$0xff]  }
  0x93   :  { %v3338_v33 = vld [vmem:[%s4131_s1 + $0x6a8] sm:$0xff]  }
  0x94   :  { %2970 = vmatpush3.bf16.msra.mxu0 %v3272_v34  ;;  %v3339_v34 = vld [vmem:[%s4131_s1 + $0x660] sm:$0xff]  }
  0x95   :  { %2992 = vmatpush3.bf16.msra.mxu1 %v3273_v35  ;;  %2971 = vmatprep.subr.bf16.mxu0 %v3274_v36  ;;  %v3340_v35 = vld [vmem:[%s4131_s1 + $0x620] sm:$0xff]  }
  0x96   :  { %2993 = vmatprep.subr.bf16.mxu1 %v3275_v37  ;;  %v3341_v36 = vld [vmem:[%s4131_s1 + $0x6a0] sm:$0xff]   ;;  %v3342_v37 = vld [vmem:[%s4131_s1 + $0x658] sm:$0xff]  }
  0x98   :  { %2972 = vmatpush3.bf16.msra.mxu0 %v3276_v38  ;;  %v3343_v38 = vld [vmem:[%s4131_s1 + $0x618] sm:$0xff]  }
  0x99   :  { %2994 = vmatpush3.bf16.msra.mxu1 %v3277_v39  ;;  %2973 = vmatprep.subr.bf16.mxu0 %v3278_v40  ;;  %v3344_v39 = vld [vmem:[%s4131_s1 + $0x698] sm:$0xff]   ;;  %v3345_v40 = vld [vmem:[%s4131_s1 + $0x650] sm:$0xff]  }
  0x9a   :  { %2995 = vmatprep.subr.bf16.mxu1 %v3279_v41  ;;  %v3346_v41 = vld [vmem:[%s4131_s1 + $0x610] sm:$0xff]  }
  0x9c   :  { %2974 = vmatpush3.bf16.msra.mxu0 %v3280_v42  ;;  %v3347_v42 = vld [vmem:[%s4131_s1 + $0x690] sm:$0xff]  }
  0x9d   :  { %2996 = vmatpush3.bf16.msra.mxu1 %v3281_v43  ;;  %2975 = vmatprep.subr.bf16.mxu0 %v3282_v44  ;;  %v3348_v43 = vld [vmem:[%s4131_s1 + $0x648] sm:$0xff]  }
  0x9e   :  { %2997 = vmatprep.subr.bf16.mxu1 %v3283_v45  ;;  %v3349_v44 = vld [vmem:[%s4131_s1 + $0x608] sm:$0xff]  }
  0x9f   :  { %v3350_v45 = vld [vmem:[%s4131_s1 + $0x688] sm:$0xff]  }
  0xa0   :  { %2976 = vmatpush3.bf16.msra.mxu0 %v3284_v46  ;;  %v3351_v46 = vld [vmem:[%s4131_s1 + $0x640] sm:$0xff]  }
  0xa1   :  { %2998 = vmatpush3.bf16.msra.mxu1 %v3285_v47  ;;  %3005 = vmatprep.subr.bf16.mxu0 %v3292_v52  ;;  %v3356_v47 = vld [vmem:[%s4132_s0 + $0x64] ss:$108 sps:$4 sm:$0xff]  }
  0xa2   :  { %3027 = vmatprep.subr.bf16.mxu1 %v3293_v53 }
  0xa3   :  { %2274 = vmatmul.mubr.bf16.vlgmr.msra.gmra.mxu0 %v3286_v48  ;;  %v3352_v48 = vld [vmem:[%s4131_s1 + $0x600] sm:$0xff]  }
  0xa4   :  { %2315 = vmatmul.mubr.bf16.vlgmr.msra.gmra.mxu1 %v3289_v50  ;;  %3006 = vmatpush3.bf16.msra.mxu0 %v3294_v54  ;;  %v3354_v50 = vld [vmem:[%s4132_s0 + $0x60] ss:$108 sps:$4 sm:$0xff]  }
  0xa5   :  { %3028 = vmatpush3.bf16.msra.mxu1 %v3295_v55  ;;  %3007 = vmatprep.subr.bf16.mxu0 %v3296_v56 }
  0xa6   :  { %3029 = vmatprep.subr.bf16.mxu1 %v3297_v57  ;;  %2355 = vmatprep.mubr.bf16.mxu0 %v3326_v21 }
  0xa7   :  { %2396 = vmatprep.mubr.bf16.mxu1 %v3329_v23 }
  0xa8   :  { %3008 = vmatpush3.bf16.msra.mxu0 %v3298_v58 }
  0xa9   :  { %3030 = vmatpush3.bf16.msra.mxu1 %v3299_v59  ;;  %3009 = vmatprep.subr.bf16.mxu0 %v3300_v60 }
  0xaa   :  { %3031 = vmatprep.subr.bf16.mxu1 %v3301_v61 }
  0xac   :  { %3010 = vmatpush3.bf16.msra.mxu0 %v3302_v62 }
  0xad   :  { %3032 = vmatpush3.bf16.msra.mxu1 %v3303_v63  ;;  %3011 = vmatprep.subr.bf16.mxu0 %v3304_v0 }
  0xae   :  { %3033 = vmatprep.subr.bf16.mxu1 %v3305_v1 }
  0xb0   :  { %3012 = vmatpush3.bf16.msra.mxu0 %v3306_v2 }
  0xb1   :  { %3034 = vmatpush3.bf16.msra.mxu1 %v3307_v3  ;;  %3013 = vmatprep.subr.bf16.mxu0 %v3308_v4 }
  0xb2   :  { %3035 = vmatprep.subr.bf16.mxu1 %v3309_v5 }
  0xb4   :  { %3014 = vmatpush3.bf16.msra.mxu0 %v3310_v6 }
  0xb5   :  { %3036 = vmatpush3.bf16.msra.mxu1 %v3311_v7  ;;  %3015 = vmatprep.subr.bf16.mxu0 %v3312_v8 }
  0xb6   :  { %3037 = vmatprep.subr.bf16.mxu1 %v3313_v9 }
  0xb8   :  { %3016 = vmatpush3.bf16.msra.mxu0 %v3314_v10 }
  0xb9   :  { %3038 = vmatpush3.bf16.msra.mxu1 %v3315_v11  ;;  %3017 = vmatprep.subr.bf16.mxu0 %v3316_v12 }
  0xba   :  { %3039 = vmatprep.subr.bf16.mxu1 %v3317_v13 }
  0xbc   :  { %3018 = vmatpush3.bf16.msra.mxu0 %v3318_v14 }
  0xbd   :  { %3040 = vmatpush3.bf16.msra.mxu1 %v3319_v15  ;;  %3019 = vmatprep.subr.bf16.mxu0 %v3320_v16 }
  0xbe   :  { %3041 = vmatprep.subr.bf16.mxu1 %v3321_v17 }
  0xc0   :  { %3020 = vmatpush3.bf16.msra.mxu0 %v3322_v18 }
  0xc1   :  { %3042 = vmatpush3.bf16.msra.mxu1 %v3323_v19  ;;  %3049 = vmatprep.subr.bf16.mxu0 %v3330_v24 }
  0xc2   :  { %3080 = vmatprep.subr.bf16.mxu1 %v3358_v25 }
  0xc3   :  { %2356 = vmatmul.mubr.bf16.vlgmr.msra.gmra.mxu0 %v3324_v20 }
  0xc4   :  { %2397 = vmatmul.mubr.bf16.vlgmr.msra.gmra.mxu1 %v3327_v22  ;;  %3050 = vmatpush3.bf16.msra.mxu0 %v3331_v26 }
  0xc5   :  { %3096 = vmatprep.mubr.msk.bf16.mxu1 %vm3359_vm0, %v3358_v25  ;;  %3081 = vmatpush3.bf16.msra.mxu1 %v3332_v27 }
  0xc6   :  { %3051 = vmatprep.subr.bf16.mxu0 %v3333_v28  ;;  %3082 = vmatprep.subr.bf16.mxu1 %v3358_v25 }
  0xc7   :  { %2437 = vmatprep.mubr.bf16.mxu0 %v3356_v47 }
  0xc8   :  { %3052 = vmatpush3.bf16.msra.mxu0 %v3334_v29 }
  0xc9   :  { %3083 = vmatpush3.bf16.msra.mxu1 %v3335_v30  ;;  %3053 = vmatprep.subr.bf16.mxu0 %v3336_v31 }
  0xca   :  { %3084 = vmatprep.subr.bf16.mxu1 %v3358_v25 }
  0xcc   :  { %3054 = vmatpush3.bf16.msra.mxu0 %v3337_v32 }
  0xcd   :  { %3085 = vmatpush3.bf16.msra.mxu1 %v3338_v33  ;;  %3055 = vmatprep.subr.bf16.mxu0 %v3339_v34 }
  0xce   :  { %3086 = vmatprep.subr.bf16.mxu1 %v3358_v25 }
  0xd0   :  { %3056 = vmatpush3.bf16.msra.mxu0 %v3340_v35 }
  0xd1   :  { %3087 = vmatpush3.bf16.msra.mxu1 %v3341_v36  ;;  %3057 = vmatprep.subr.bf16.mxu0 %v3342_v37 }
  0xd2   :  { %3088 = vmatprep.subr.bf16.mxu1 %v3358_v25 }
  0xd4   :  { %3058 = vmatpush3.bf16.msra.mxu0 %v3343_v38 }
  0xd5   :  { %3089 = vmatpush3.bf16.msra.mxu1 %v3344_v39  ;;  %3059 = vmatprep.subr.bf16.mxu0 %v3345_v40 }
  0xd6   :  { %3090 = vmatprep.subr.bf16.mxu1 %v3358_v25 }
  0xd8   :  { %3060 = vmatpush3.bf16.msra.mxu0 %v3346_v41 }
  0xd9   :  { %3091 = vmatpush3.bf16.msra.mxu1 %v3347_v42  ;;  %3061 = vmatprep.subr.bf16.mxu0 %v3348_v43 }
  0xda   :  { %3092 = vmatprep.subr.bf16.mxu1 %v3358_v25 }
  0xdc   :  { %3062 = vmatpush3.bf16.msra.mxu0 %v3349_v44 }
  0xdd   :  { %3093 = vmatpush3.bf16.msra.mxu1 %v3350_v45  ;;  %3063 = vmatprep.subr.bf16.mxu0 %v3351_v46 }
  0xde   :  { %3094 = vmatprep.subr.bf16.mxu1 %v3358_v25 }
  0xe0   :  { %3064 = vmatpush3.bf16.msra.mxu0 %v3352_v48 }
  0xe1   :  { %3095 = vmatpush3.bf16.msra.mxu1 %v3353_v49 }
  0xe3   :  { %2438 = vmatmul.mubr.bf16.vlgmr.msra.gmra.mxu0 %v3354_v50  ;;  %v2801_v52 = vpop.f32.mrf.mxu0 }
  0xe4   :  { %3097 = vmatmul.mubr.bf16.vlgmr.msra.gmra.mxu1 %v3357_v51  ;;  %v2823_v53 = vpop.f32.mrf.mxu1 }
  0xe5   :  { %v2802_v54 = vpop.f32.mrf.mxu0 }
  0xe6   :  { %v2824_v55 = vpop.f32.mrf.mxu1  ;;  %v2803_v19 = vadd.f32 %v2802_v54, %v2801_v52 }
  0xe7   :  { %v2804_v56 = vpop.f32.mrf.mxu0  ;;  %v2825_v20 = vadd.f32 %v2824_v55, %v2823_v53 }
  0xe8   :  { %v2826_v57 = vpop.f32.mrf.mxu1 }
  0xe9   :  { %v2805_v58 = vpop.f32.mrf.mxu0  ;;  %v1989_v24 = vadd.f32 %v2825_v20, %v2803_v19 }
  0xea   :  { %v2827_v60 = vpop.f32.mrf.mxu1  ;;  %v2806_v25 = vadd.f32 %v2805_v58, %v2804_v56 }
  0xeb   :  { %v2828_v26 = vadd.f32 %v2827_v60, %v2826_v57 }
  0xed   :  { %v1992_v32 = vadd.f32 %v2828_v26, %v2806_v25  ;;  %v2770_v25 = vld [vmem:[%s4133_s2] ss:$0 sm:$0xff] }
 0x103   :  { %v2845_v59 = vpop.f32.mrf.mxu0 }
 0x104   :  { %v2867_v61 = vpop.f32.mrf.mxu1 }
 0x105   :  { %v2846_v62 = vpop.f32.mrf.mxu0 }
 0x106   :  { %v2868_v63 = vpop.f32.mrf.mxu1  ;;  %v2847_v22 = vadd.f32 %v2846_v62, %v2845_v59 }
 0x107   :  { %v2848_v0 = vpop.f32.mrf.mxu0  ;;  %v2869_v30 = vadd.f32 %v2868_v63, %v2867_v61 }
 0x108   :  { %v2870_v1 = vpop.f32.mrf.mxu1  ;;  %v2030_v29 = vadd.f32 %v2847_v22, %v1989_v24 }
 0x109   :  { %v2849_v2 = vpop.f32.mrf.mxu0 }
 0x10a   :  { %v2871_v4 = vpop.f32.mrf.mxu1  ;;  %v2850_v31 = vadd.f32 %v2849_v2, %v2848_v0  ;;  %v2071_v36 = vadd.f32 %v2869_v30, %v2030_v29 }
 0x10b   :  { %v2872_v38 = vadd.f32 %v2871_v4, %v2870_v1 }
 0x10c   :  { %v2033_v37 = vadd.f32 %v2850_v31, %v1992_v32  ;;  %v2771_v31 = vld [vmem:[%s4134_s3] ss:$0 sm:$0xff] }
 0x10d   :  { %v2777_v32 = vld [vmem:[%s4135_s4] sm:$0xff]  }
 0x10e   :  { %v2074_v44 = vadd.f32 %v2872_v38, %v2033_v37 }
 0x123   :  { %v2889_v3 = vpop.f32.mrf.mxu0 }
 0x124   :  { %v2911_v5 = vpop.f32.mrf.mxu1 }
 0x125   :  { %v2890_v6 = vpop.f32.mrf.mxu0 }
 0x126   :  { %v2912_v7 = vpop.f32.mrf.mxu1  ;;  %v2891_v33 = vadd.f32 %v2890_v6, %v2889_v3 }
 0x127   :  { %v2892_v8 = vpop.f32.mrf.mxu0  ;;  %v2913_v40 = vadd.f32 %v2912_v7, %v2911_v5 }
 0x128   :  { %v2914_v9 = vpop.f32.mrf.mxu1  ;;  %v2112_v39 = vadd.f32 %v2891_v33, %v2071_v36  ;;  %v2778_v36 = vunpack.c.l.bf16 %v2777_v32 }
 0x129   :  { %v2893_v10 = vpop.f32.mrf.mxu0 }
 0x12a   :  { %v2915_v12 = vpop.f32.mrf.mxu1  ;;  %v2894_v41 = vadd.f32 %v2893_v10, %v2892_v8  ;;  %v2153_v47 = vadd.f32 %v2913_v40, %v2112_v39  ;;  %v2779_v39 = vunpack.c.h.bf16 %v2777_v32 }
 0x12b   :  { %v2916_v49 = vadd.f32 %v2915_v12, %v2914_v9 }
 0x12c   :  { %v2115_v48 = vadd.f32 %v2894_v41, %v2074_v44 }
 0x12e   :  { %v2156_v56 = vadd.f32 %v2916_v49, %v2115_v48 }
 0x143   :  { %v2933_v11 = vpop.f32.mrf.mxu0 }
 0x144   :  { %v2955_v13 = vpop.f32.mrf.mxu1 }
 0x145   :  { %v2934_v14 = vpop.f32.mrf.mxu0 }
 0x146   :  { %v2956_v15 = vpop.f32.mrf.mxu1  ;;  %v2935_v45 = vadd.f32 %v2934_v14, %v2933_v11 }
 0x147   :  { %v2936_v16 = vpop.f32.mrf.mxu0  ;;  %v2957_v52 = vadd.f32 %v2956_v15, %v2955_v13 }
 0x148   :  { %v2958_v17 = vpop.f32.mrf.mxu1  ;;  %v2194_v51 = vadd.f32 %v2935_v45, %v2153_v47 }
 0x149   :  { %v2937_v18 = vpop.f32.mrf.mxu0 }
 0x14a   :  { %v2959_v23 = vpop.f32.mrf.mxu1  ;;  %v2938_v53 = vadd.f32 %v2937_v18, %v2936_v16  ;;  %v2235_v58 = vadd.f32 %v2957_v52, %v2194_v51 }
 0x14b   :  { %v2960_v60 = vadd.f32 %v2959_v23, %v2958_v17 }
 0x14c   :  { %v2197_v59 = vadd.f32 %v2938_v53, %v2156_v56 }
 0x14e   :  { %v2238_v2 = vadd.f32 %v2960_v60, %v2197_v59 }
 0x163   :  { %v2977_v21 = vpop.f32.mrf.mxu0 }
 0x164   :  { %v2999_v27 = vpop.f32.mrf.mxu1 }
 0x165   :  { %v2978_v28 = vpop.f32.mrf.mxu0 }
 0x166   :  { %v3000_v34 = vpop.f32.mrf.mxu1  ;;  %v2979_v57 = vadd.f32 %v2978_v28, %v2977_v21 }
 0x167   :  { %v2980_v35 = vpop.f32.mrf.mxu0  ;;  %v3001_v0 = vadd.f32 %v3000_v34, %v2999_v27 }
 0x168   :  { %v3002_v42 = vpop.f32.mrf.mxu1  ;;  %v2276_v63 = vadd.f32 %v2979_v57, %v2235_v58 }
 0x169   :  { %v2981_v43 = vpop.f32.mrf.mxu0 }
 0x16a   :  { %v3003_v50 = vpop.f32.mrf.mxu1  ;;  %v2982_v1 = vadd.f32 %v2981_v43, %v2980_v35  ;;  %v2317_v6 = vadd.f32 %v3001_v0, %v2276_v63 }
 0x16b   :  { %v3004_v8 = vadd.f32 %v3003_v50, %v3002_v42 }
 0x16c   :  { %v2279_v7 = vadd.f32 %v2982_v1, %v2238_v2 }
 0x16e   :  { %v2320_v14 = vadd.f32 %v3004_v8, %v2279_v7 }
 0x183   :  { %v3021_v46 = vpop.f32.mrf.mxu0 }
 0x184   :  { %v3043_v54 = vpop.f32.mrf.mxu1 }
 0x185   :  { %v3022_v55 = vpop.f32.mrf.mxu0 }
 0x186   :  { %v3044_v61 = vpop.f32.mrf.mxu1  ;;  %v3023_v3 = vadd.f32 %v3022_v55, %v3021_v46 }
 0x187   :  { %v3024_v62 = vpop.f32.mrf.mxu0  ;;  %v3045_v10 = vadd.f32 %v3044_v61, %v3043_v54 }
 0x188   :  { %v3046_v4 = vpop.f32.mrf.mxu1  ;;  %v2358_v9 = vadd.f32 %v3023_v3, %v2317_v6 }
 0x189   :  { %v3025_v5 = vpop.f32.mrf.mxu0 }
 0x18a   :  { %v3026_v11 = vadd.f32 %v3025_v5, %v3024_v62  ;;  %v3047_v12 = vpop.f32.mrf.mxu1  ;;  %v2399_v17 = vadd.f32 %v3045_v10, %v2358_v9 }
 0x18b   :  { %v3048_v19 = vadd.f32 %v3047_v12, %v3046_v4 }
 0x18c   :  { %v2361_v18 = vadd.f32 %v3026_v11, %v2320_v14 }
 0x18e   :  { %v2402_v27 = vadd.f32 %v3048_v19, %v2361_v18 }
 0x1a3   :  { %v3065_v13 = vpop.f32.mrf.mxu0 }
 0x1a4   :  { %v2480_v15 = vpop.f32.mrf.mxu1 }
 0x1a5   :  { %v3066_v16 = vpop.f32.mrf.mxu0 }
 0x1a6   :  { %v3067_v20 = vadd.f32 %v3066_v16, %v3065_v13  ;;  %v3098_v21 = vpop.f32.mrf.mxu1 }
 0x1a7   :  { %v3068_v22 = vpop.f32.mrf.mxu0 }
 0x1a8   :  { %v2440_v23 = vadd.f32 %v3067_v20, %v2399_v17  ;;  %v2483_v24 = vpop.f32.mrf.mxu1 }
 0x1a9   :  { %v3069_v26 = vpop.f32.mrf.mxu0 }
 0x1aa   :  { %v2481_v28 = vadd.f32 %v2480_v15, %v2440_v23  ;;  %v3070_v29 = vadd.f32 %v3069_v26, %v3068_v22  ;;  %v3099_v30 = vpop.f32.mrf.mxu1 }
 0x1ac   :  { %v2494_v33 = vmul.f32 %v2770_v25, %v2481_v28  ;;  %v2443_v34 = vadd.f32 %v3070_v29, %v2402_v27 }
 0x1ae   :  { %v2503_v35 = vadd.f32 %v2771_v31, %v2494_v33  ;;  %v2484_v37 = vadd.f32 %v2483_v24, %v2443_v34 }
 0x1b0   :  { %v2495_v38 = vmul.f32 %v2770_v25, %v2484_v37  ;;  %v2509_v40 = vadd.f32 %v2778_v36, %v2503_v35 }
 0x1b2   :  { %v2504_v41 = vadd.f32 %v2771_v31, %v2495_v38  ;;  %v2511_v43 = vmax.f32 %v2509_v40, 0.0 }
 0x1b4   :  { %v2510_v42 = vadd.f32 %v2779_v39, %v2504_v41 }
 0x1b6   :  { %v2512_v44 = vmax.f32 %v2510_v42, 0.0 }
 0x1b8   :  { %v2783_v45 = vpack.c.bf16 %v2512_v44, %v2511_v43 }
 0x1ba   :  { %2784 = vst [vmem:[%s4136_s5] sm:$0xff] %v2783_v45  }

</bundles_post_ra>
